<compile_context>
chip_gen: v5e
topology: v5e:2x2
jax: 0.10.0
libtpu: 0.0.40
codegen_flags: <defaults>
</compile_context>

<pallas_src>
import functools

import jax
import jax.numpy as jnp
from jax.experimental import pallas as pl
from jax.experimental.pallas import tpu as pltpu


def _round_up(x, m):
    return ((x + m - 1) // m) * m


# ----------------------------------------------------------------------------
# Fused multi-layer, time-chunked LSTM + Linear kernel.
# ----------------------------------------------------------------------------
def _lstm_fc_kernel(x_ref, wih_ref, whh_ref, b_ref, fcw_ref, fcb_ref, out_ref,
                    h_sc, c_sc, act_sc, xproj_sc, *, num_layers, h_pad, chunk):
    # x_ref   : (chunk*Bp, R)    bf16  time-major embedded input block
    # wih_ref : (L, R, 4*Hp)     bf16  W_ih^T per layer (layers>0 use rows :Hp)
    # whh_ref : (L, Hp, 4*Hp)    bf16  W_hh^T per layer
    # b_ref   : (L, 1, 4*Hp)     f32   combined bias per layer
    # fcw_ref : (Hp, Vp)         bf16  fc weight (transposed)
    # fcb_ref : (1, Vp)          f32   fc bias
    # out_ref : (chunk*Bp, Vp)   f32   logits for this chunk
    # h_sc/c_sc: (L, Bp, Hp)     f32   recurrent state (persists across grid)
    # act_sc  : (chunk*Bp, Hp)   bf16  current layer's chunk activations
    # xproj_sc: (chunk*Bp, 4*Hp) f32   whole-chunk input projection
    Hp = h_pad
    Bp = h_sc.shape[1]

    @pl.when(pl.program_id(0) == 0)
    def _():
        h_sc[...] = jnp.zeros_like(h_sc)
        c_sc[...] = jnp.zeros_like(c_sc)

    for l in range(num_layers):
        # One big MXU matmul for the whole chunk's input projection (+ bias,
        # hoisted out of the serial per-timestep path).
        if l == 0:
            src = x_ref[...]                       # (chunk*Bp, R) bf16
            w_in = wih_ref[l]                      # (R, 4Hp)
        else:
            src = act_sc[...]                      # (chunk*Bp, Hp) bf16
            w_in = wih_ref[l, :Hp, :]              # (Hp, 4Hp)
        xproj_sc[...] = (
            jnp.dot(src, w_in, preferred_element_type=jnp.float32) + b_ref[l])

        def timestep(t, carry, l=l):
            row = pl.multiple_of(t * Bp, Bp)       # Bp is a multiple of 16
            h_prev = h_sc[l]                       # (Bp, Hp) f32
            c_prev = c_sc[l]
            # Only the recurrent matmul (K = Hp) stays on the serial path.
            gates = xproj_sc[pl.ds(row, Bp), :] + jnp.dot(
                h_prev.astype(jnp.bfloat16), whh_ref[l],
                preferred_element_type=jnp.float32)      # (Bp, 4Hp) f32

            i_g = jax.nn.sigmoid(gates[:, 0 * Hp:1 * Hp])
            f_g = jax.nn.sigmoid(gates[:, 1 * Hp:2 * Hp])
            g_g = jnp.tanh(gates[:, 2 * Hp:3 * Hp])
            o_g = jax.nn.sigmoid(gates[:, 3 * Hp:4 * Hp])

            c_new = f_g * c_prev + i_g * g_g
            h_new = o_g * jnp.tanh(c_new)

            h_sc[l] = h_new
            c_sc[l] = c_new
            act_sc[pl.ds(row, Bp), :] = h_new.astype(jnp.bfloat16)
            return carry

        jax.lax.fori_loop(0, chunk, timestep, 0, unroll=True)

    # Fused final Linear: (chunk*Bp, Hp) x (Hp, Vp) — ideal MXU shape, weights
    # already resident in VMEM. Output stays lane-dense (Vp multiple of 128).
    out_ref[...] = (
        jnp.dot(act_sc[...], fcw_ref[...], preferred_element_type=jnp.float32)
        + fcb_ref[...])


def lstm_fc(x, w_ih, w_hh, bias, fc_w_t, fc_b, *, chunk, b_pad):
    """Fused LSTM stack + Linear.

    x: (Tp*Bp, R) bf16 time-major rows; returns (Tp*Bp, Vp) f32 logits.
    """
    TB, R = x.shape
    L, R_w, G4 = w_ih.shape
    Hp = G4 // 4
    Vp = fc_w_t.shape[1]
    Bp = b_pad
    rows = chunk * Bp
    assert R_w == R and TB % rows == 0
    num_chunks = TB // rows

    kernel = functools.partial(_lstm_fc_kernel, num_layers=L, h_pad=Hp,
                               chunk=chunk)

    # Explicit VMEM budget from actual footprints (inputs/outputs counted
    # double-buffered) + headroom for compiler-internal scratch.
    vmem_bytes = 2 * (rows * R * 2 + rows * Vp * 4
                      + L * R * G4 * 2 + L * Hp * G4 * 2 + L * G4 * 4
                      + Hp * Vp * 2 + Vp * 4)
    vmem_bytes += 2 * L * Bp * Hp * 4 + rows * Hp * 2 + rows * G4 * 4
    vmem_limit = int(vmem_bytes) + (8 << 20)

    return pl.pallas_call(
        kernel,
        out_shape=jax.ShapeDtypeStruct((TB, Vp), jnp.float32),
        grid_spec=pltpu.PrefetchScalarGridSpec(
            num_scalar_prefetch=0,
            grid=(num_chunks,),
            in_specs=[
                pl.BlockSpec((rows, R), lambda s: (s, 0)),
                pl.BlockSpec((L, R, G4), lambda s: (0, 0, 0)),
                pl.BlockSpec((L, Hp, G4), lambda s: (0, 0, 0)),
                pl.BlockSpec((L, 1, G4), lambda s: (0, 0, 0)),
                pl.BlockSpec((Hp, Vp), lambda s: (0, 0)),
                pl.BlockSpec((1, Vp), lambda s: (0, 0)),
            ],
            out_specs=pl.BlockSpec((rows, Vp), lambda s: (s, 0)),
            scratch_shapes=[
                pltpu.VMEM((L, Bp, Hp), jnp.float32),    # h state (all layers)
                pltpu.VMEM((L, Bp, Hp), jnp.float32),    # c state (all layers)
                pltpu.VMEM((rows, Hp), jnp.bfloat16),    # inter-layer chunk acts
                pltpu.VMEM((rows, G4), jnp.float32),     # chunk input projection
            ],
        ),
        compiler_params=pltpu.CompilerParams(
            dimension_semantics=("arbitrary",),          # recurrence is sequential
            vmem_limit_bytes=vmem_limit),
    )(x, w_ih, w_hh, bias, fc_w_t, fc_b)


# ----------------------------------------------------------------------------
# Parameter init (PyTorch-equivalent layout) and one-time packing.
# ----------------------------------------------------------------------------
def init_params(key, vocab_size, embed_size, hidden_size, num_layers):
    ks = jax.random.split(key, 4 + 4 * num_layers)
    k_it = iter(ks)
    params = {}
    params["embedding"] = jax.random.normal(
        next(k_it), (vocab_size, embed_size), jnp.float32)
    bound = 1.0 / jnp.sqrt(hidden_size)
    params["lstm"] = []
    for layer in range(num_layers):
        in_size = embed_size if layer == 0 else hidden_size
        w_ih = jax.random.uniform(next(k_it), (4 * hidden_size, in_size),
                                  jnp.float32, -bound, bound)
        w_hh = jax.random.uniform(next(k_it), (4 * hidden_size, hidden_size),
                                  jnp.float32, -bound, bound)
        b_ih = jax.random.uniform(next(k_it), (4 * hidden_size,),
                                  jnp.float32, -bound, bound)
        b_hh = jax.random.uniform(next(k_it), (4 * hidden_size,),
                                  jnp.float32, -bound, bound)
        params["lstm"].append((w_ih, w_hh, b_ih, b_hh))
    params["fc_w"] = jax.random.uniform(next(k_it), (vocab_size, hidden_size),
                                        jnp.float32, -bound, bound)
    params["fc_b"] = jax.random.uniform(next(k_it), (vocab_size,),
                                        jnp.float32, -bound, bound)
    return params


def pack_params(params):
    """One-time transpose / per-gate pad / stack / bf16-cast for the kernel."""
    emb = params["embedding"]                     # (V, E)
    V, E = emb.shape
    H = params["lstm"][0][1].shape[1]             # w_hh: (4H, H)
    Hp = _round_up(H, 128)
    Ep = _round_up(E, 128)
    R = max(Ep, Hp)                               # uniform layer-0 input width
    Vp = _round_up(V, 128)

    def pad_gates(w, in_pad):
        # w: (4H, X) PyTorch layout -> (in_pad, 4*Hp), per-gate column padding
        # so gate k lives exactly in lanes [k*Hp, (k+1)*Hp).
        X = w.shape[1]
        w4 = w.T.reshape(X, 4, H)
        w4 = jnp.pad(w4, ((0, in_pad - X), (0, 0), (0, Hp - H)))
        return w4.reshape(in_pad, 4 * Hp)

    wih_list, whh_list, b_list = [], [], []
    for (w_ih, w_hh, b_ih, b_hh) in params["lstm"]:
        wih_list.append(pad_gates(w_ih, R))       # (R, 4Hp)  (layers>0: rows :Hp)
        whh_list.append(pad_gates(w_hh, Hp))      # (Hp, 4Hp)
        b = (b_ih + b_hh).reshape(4, H)
        b = jnp.pad(b, ((0, 0), (0, Hp - H))).reshape(1, 4 * Hp)
        b_list.append(b)

    return {
        "emb": jnp.pad(emb, ((0, 0), (0, R - E))).astype(jnp.bfloat16),   # (V, R)
        "w_ih": jnp.stack(wih_list).astype(jnp.bfloat16),   # (L, R, 4Hp)
        "w_hh": jnp.stack(whh_list).astype(jnp.bfloat16),   # (L, Hp, 4Hp)
        "bias": jnp.stack(b_list),                           # (L, 1, 4Hp) f32
        "fc_w_t": jnp.pad(params["fc_w"].T,
                          ((0, Hp - H), (0, Vp - V))).astype(jnp.bfloat16),  # (Hp, Vp)
        "fc_b": jnp.pad(params["fc_b"], (0, Vp - V)).reshape(1, Vp),         # (1, Vp)
    }


# ----------------------------------------------------------------------------
# Full model forward (batch_first tokens -> batch_first logits).
# ----------------------------------------------------------------------------
def make_forward(vocab_size):
    @jax.jit
    def forward(packed, tokens):
        B, T = tokens.shape
        R = packed["emb"].shape[1]
        Vp = packed["fc_w_t"].shape[1]

        Bp = _round_up(B, 16)                 # bf16-friendly sublane padding
        chunk = min(32, T)                    # timesteps per grid step
        Tp = _round_up(T, chunk)

        # Embedding gather (data-dependent index plumbing, plain JAX),
        # time-major, already bf16; padded timesteps/batch rows are zeros and
        # never feed back into real rows.
        x = packed["emb"][tokens.T]                                  # (T, B, R)
        x = jnp.pad(x, ((0, Tp - T), (0, Bp - B), (0, 0)))
        x = x.reshape(Tp * Bp, R)

        logits = lstm_fc(x, packed["w_ih"], packed["w_hh"], packed["bias"],
                         packed["fc_w_t"], packed["fc_b"],
                         chunk=chunk, b_pad=Bp)                      # (Tp*Bp, Vp)
        logits = logits.reshape(Tp, Bp, Vp)[:T, :B, :vocab_size]
        return jnp.transpose(logits, (1, 0, 2))                      # (B, T, V)

    return forward


# ----------------------------------------------------------------------------
# Pure-JAX f32 reference (PyTorch semantics) for sanity checking.
# ----------------------------------------------------------------------------
def reference_forward(params, tokens):
    x = params["embedding"][tokens]                 # (B, T, E)
    B, T, _ = x.shape
    for (w_ih, w_hh, b_ih, b_hh) in params["lstm"]:
        H = w_hh.shape[1]
        h = jnp.zeros((B, H), jnp.float32)
        c = jnp.zeros((B, H), jnp.float32)
        outs = []
        for t in range(T):
            gates = x[:, t] @ w_ih.T + h @ w_hh.T + b_ih + b_hh
            i = jax.nn.sigmoid(gates[:, 0 * H:1 * H])
            f = jax.nn.sigmoid(gates[:, 1 * H:2 * H])
            g = jnp.tanh(gates[:, 2 * H:3 * H])
            o = jax.nn.sigmoid(gates[:, 3 * H:4 * H])
            c = f * c + i * g
            h = o * jnp.tanh(c)
            outs.append(h)
        x = jnp.stack(outs, axis=1)                 # (B, T, H)
    return x @ params["fc_w"].T + params["fc_b"]


if __name__ == "__main__":
    vocab_size, embed_size, hidden_size, num_layers = 64, 32, 32, 2
    B, T = 2, 8

    key = jax.random.PRNGKey(0)
    k_params, k_tokens = jax.random.split(key)
    params = init_params(k_params, vocab_size, embed_size, hidden_size, num_layers)
    tokens = jax.random.randint(k_tokens, (B, T), 0, vocab_size, dtype=jnp.int32)

    packed = pack_params(params)
    forward = make_forward(vocab_size)

    out = jax.block_until_ready(forward(packed, tokens))
    assert out.shape == (B, T, vocab_size), out.shape

    ref = reference_forward(params, tokens)
    # bf16 MXU operands (f32 accumulation) -> relaxed tolerance vs f32 reference.
    err = float(jnp.max(jnp.abs(out - ref)))
    assert err < 5e-2, err

    print("KERNEL_OK")
</pallas_src>

<mosaic_0001>
module attributes {stable_mosaic.version = 11 : i64} {
  func.func @_lstm_fc_kernel(%arg0: i32, %arg1: memref<128x128xbf16, #tpu.memory_space<vmem>>, %arg2: memref<2x128x512xbf16, #tpu.memory_space<vmem>>, %arg3: memref<2x128x512xbf16, #tpu.memory_space<vmem>>, %arg4: memref<2x1x512xf32, #tpu.memory_space<vmem>>, %arg5: memref<128x128xbf16, #tpu.memory_space<vmem>>, %arg6: memref<1x128xf32, #tpu.memory_space<vmem>>, %arg7: memref<128x128xf32, #tpu.memory_space<vmem>>, %arg8: memref<2x16x128xf32, #tpu.memory_space<vmem>>, %arg9: memref<2x16x128xf32, #tpu.memory_space<vmem>>, %arg10: memref<128x128xbf16, #tpu.memory_space<vmem>>, %arg11: memref<128x512xf32, #tpu.memory_space<vmem>>) attributes {dimension_semantics = [#tpu.dimension_semantics<arbitrary>], iteration_bounds = array<i64: 1>, scalar_prefetch = 0 : i64, scratch_operands = 4 : i64, tpu.core_type = #tpu.core_type<tc>, window_params = [{transform_indices = @transform_0, window_bounds = array<i64: 128, 128>}, {pipeline_mode = #tpu.pipeline_mode<synchronous>, transform_indices = @transform_1, window_bounds = array<i64: 2, 128, 512>}, {pipeline_mode = #tpu.pipeline_mode<synchronous>, transform_indices = @transform_2, window_bounds = array<i64: 2, 128, 512>}, {pipeline_mode = #tpu.pipeline_mode<synchronous>, transform_indices = @transform_3, window_bounds = array<i64: 2, 1, 512>}, {pipeline_mode = #tpu.pipeline_mode<synchronous>, transform_indices = @transform_4, window_bounds = array<i64: 128, 128>}, {pipeline_mode = #tpu.pipeline_mode<synchronous>, transform_indices = @transform_5, window_bounds = array<i64: 1, 128>}, {transform_indices = @transform_6, window_bounds = array<i64: 128, 128>}]} {
    %c0_i32 = arith.constant 0 : i32
    %0 = arith.cmpi eq, %arg0, %c0_i32 : i32
    %1 = arith.extui %0 : i1 to i32
    %c0_i32_0 = arith.constant 0 : i32
    %2 = arith.cmpi ne, %1, %c0_i32_0 : i32
    scf.if %2 {
      %cst_390 = arith.constant 0.000000e+00 : f32
      %780 = vector.broadcast %cst_390 : f32 to vector<2x16x128xf32>
      %c0_391 = arith.constant 0 : index
      %c0_392 = arith.constant 0 : index
      %c0_393 = arith.constant 0 : index
      %781 = vector.load %arg8[%c0_391, %c0_392, %c0_393] : memref<2x16x128xf32, #tpu.memory_space<vmem>>, vector<2x16x128xf32>
      tpu.vector_store %arg8[%c0_391, %c0_392, %c0_393], %780 {strides = array<i32>} : memref<2x16x128xf32, #tpu.memory_space<vmem>>, vector<2x16x128xf32>,
      %cst_394 = arith.constant 0.000000e+00 : f32
      %782 = vector.broadcast %cst_394 : f32 to vector<2x16x128xf32>
      %c0_395 = arith.constant 0 : index
      %c0_396 = arith.constant 0 : index
      %c0_397 = arith.constant 0 : index
      %783 = vector.load %arg9[%c0_395, %c0_396, %c0_397] : memref<2x16x128xf32, #tpu.memory_space<vmem>>, vector<2x16x128xf32>
      tpu.vector_store %arg9[%c0_395, %c0_396, %c0_397], %782 {strides = array<i32>} : memref<2x16x128xf32, #tpu.memory_space<vmem>>, vector<2x16x128xf32>,
    } else {
    }
    %c0 = arith.constant 0 : index
    %c0_1 = arith.constant 0 : index
    %3 = vector.load %arg1[%c0, %c0_1] : memref<128x128xbf16, #tpu.memory_space<vmem>>, vector<128x128xbf16>
    %c0_2 = arith.constant 0 : index
    %c0_3 = arith.constant 0 : index
    %c0_4 = arith.constant 0 : index
    %4 = vector.load %arg2[%c0_2, %c0_3, %c0_4] : memref<2x128x512xbf16, #tpu.memory_space<vmem>>, vector<1x128x512xbf16>
    %5 = vector.shape_cast %4 : vector<1x128x512xbf16> to vector<128x512xbf16>
    %cst = arith.constant dense<0.000000e+00> : vector<128x512xf32>
    %6 = tpu.matmul %3, %5, %cst {dimension_numbers = #tpu.dot_dimension_numbers<[1], [0], [0], [1], [0, 0, 1, 1], [], []>} : vector<128x128xbf16>, vector<128x512xbf16>, vector<128x512xf32> -> vector<128x512xf32>
    %c0_5 = arith.constant 0 : index
    %c0_6 = arith.constant 0 : index
    %c0_7 = arith.constant 0 : index
    %7 = vector.load %arg4[%c0_5, %c0_6, %c0_7] : memref<2x1x512xf32, #tpu.memory_space<vmem>>, vector<1x1x512xf32>
    %8 = vector.shape_cast %7 : vector<1x1x512xf32> to vector<1x512xf32>
    %9 = vector.broadcast %8 : vector<1x512xf32> to vector<128x512xf32>
    %10 = arith.addf %6, %9 : vector<128x512xf32>
    %c0_8 = arith.constant 0 : index
    %c0_9 = arith.constant 0 : index
    %11 = vector.load %arg11[%c0_8, %c0_9] : memref<128x512xf32, #tpu.memory_space<vmem>>, vector<128x512xf32>
    tpu.vector_store %arg11[%c0_8, %c0_9], %10 {strides = array<i32>} : memref<128x512xf32, #tpu.memory_space<vmem>>, vector<128x512xf32>,
    %c0_i32_10 = arith.constant 0 : i32
    %c16_i32 = arith.constant 16 : i32
    %12 = arith.muli %c0_i32_10, %c16_i32 : i32
    %13 = tpu.assume_multiple %12, 16 : i32
    %c0_11 = arith.constant 0 : index
    %c0_12 = arith.constant 0 : index
    %c0_13 = arith.constant 0 : index
    %14 = vector.load %arg8[%c0_11, %c0_12, %c0_13] : memref<2x16x128xf32, #tpu.memory_space<vmem>>, vector<1x16x128xf32>
    %15 = vector.shape_cast %14 : vector<1x16x128xf32> to vector<16x128xf32>
    %c0_14 = arith.constant 0 : index
    %c0_15 = arith.constant 0 : index
    %c0_16 = arith.constant 0 : index
    %16 = vector.load %arg9[%c0_14, %c0_15, %c0_16] : memref<2x16x128xf32, #tpu.memory_space<vmem>>, vector<1x16x128xf32>
    %17 = vector.shape_cast %16 : vector<1x16x128xf32> to vector<16x128xf32>
    %18 = arith.index_cast %13 : i32 to index
    %c0_17 = arith.constant 0 : index
    %19 = vector.load %arg11[%18, %c0_17] : memref<128x512xf32, #tpu.memory_space<vmem>>, vector<16x512xf32>
    %20 = arith.truncf %15 : vector<16x128xf32> to vector<16x128xbf16>
    %c0_18 = arith.constant 0 : index
    %c0_19 = arith.constant 0 : index
    %c0_20 = arith.constant 0 : index
    %21 = vector.load %arg3[%c0_18, %c0_19, %c0_20] : memref<2x128x512xbf16, #tpu.memory_space<vmem>>, vector<1x128x512xbf16>
    %22 = vector.shape_cast %21 : vector<1x128x512xbf16> to vector<128x512xbf16>
    %cst_21 = arith.constant dense<0.000000e+00> : vector<16x512xf32>
    %23 = tpu.matmul %20, %22, %cst_21 {dimension_numbers = #tpu.dot_dimension_numbers<[1], [0], [0], [1], [0, 0, 1, 1], [], []>} : vector<16x128xbf16>, vector<128x512xbf16>, vector<16x512xf32> -> vector<16x512xf32>
    %24 = arith.addf %19, %23 : vector<16x512xf32>
    %25 = vector.extract_strided_slice %24 {offsets = [0, 0], sizes = [16, 128], strides = [1, 1]} : vector<16x512xf32> to vector<16x128xf32>
    %26 = arith.negf %25 : vector<16x128xf32>
    %27 = math.exp %26 : vector<16x128xf32>
    %cst_22 = arith.constant 1.000000e+00 : f32
    %28 = vector.broadcast %cst_22 : f32 to vector<16x128xf32>
    %29 = arith.addf %28, %27 : vector<16x128xf32>
    %30 = arith.divf %28, %29 : vector<16x128xf32>
    %31 = vector.extract_strided_slice %24 {offsets = [0, 128], sizes = [16, 128], strides = [1, 1]} : vector<16x512xf32> to vector<16x128xf32>
    %32 = arith.negf %31 : vector<16x128xf32>
    %33 = math.exp %32 : vector<16x128xf32>
    %cst_23 = arith.constant 1.000000e+00 : f32
    %34 = vector.broadcast %cst_23 : f32 to vector<16x128xf32>
    %35 = arith.addf %34, %33 : vector<16x128xf32>
    %36 = arith.divf %34, %35 : vector<16x128xf32>
    %37 = vector.extract_strided_slice %24 {offsets = [0, 256], sizes = [16, 128], strides = [1, 1]} : vector<16x512xf32> to vector<16x128xf32>
    %38 = math.tanh %37 : vector<16x128xf32>
    %39 = vector.extract_strided_slice %24 {offsets = [0, 384], sizes = [16, 128], strides = [1, 1]} : vector<16x512xf32> to vector<16x128xf32>
    %40 = arith.negf %39 : vector<16x128xf32>
    %41 = math.exp %40 : vector<16x128xf32>
    %cst_24 = arith.constant 1.000000e+00 : f32
    %42 = vector.broadcast %cst_24 : f32 to vector<16x128xf32>
    %43 = arith.addf %42, %41 : vector<16x128xf32>
    %44 = arith.divf %42, %43 : vector<16x128xf32>
    %45 = arith.mulf %36, %17 : vector<16x128xf32>
    %46 = arith.mulf %30, %38 : vector<16x128xf32>
    %47 = arith.addf %45, %46 : vector<16x128xf32>
    %48 = math.tanh %47 : vector<16x128xf32>
    %49 = arith.mulf %44, %48 : vector<16x128xf32>
    %c0_25 = arith.constant 0 : index
    %c0_26 = arith.constant 0 : index
    %c0_27 = arith.constant 0 : index
    %50 = vector.load %arg8[%c0_25, %c0_26, %c0_27] : memref<2x16x128xf32, #tpu.memory_space<vmem>>, vector<1x16x128xf32>
    %51 = vector.shape_cast %50 : vector<1x16x128xf32> to vector<16x128xf32>
    %52 = vector.shape_cast %49 : vector<16x128xf32> to vector<1x16x128xf32>
    tpu.vector_store %arg8[%c0_25, %c0_26, %c0_27], %52 {strides = array<i32>} : memref<2x16x128xf32, #tpu.memory_space<vmem>>, vector<1x16x128xf32>,
    %c0_28 = arith.constant 0 : index
    %c0_29 = arith.constant 0 : index
    %c0_30 = arith.constant 0 : index
    %53 = vector.load %arg9[%c0_28, %c0_29, %c0_30] : memref<2x16x128xf32, #tpu.memory_space<vmem>>, vector<1x16x128xf32>
    %54 = vector.shape_cast %53 : vector<1x16x128xf32> to vector<16x128xf32>
    %55 = vector.shape_cast %47 : vector<16x128xf32> to vector<1x16x128xf32>
    tpu.vector_store %arg9[%c0_28, %c0_29, %c0_30], %55 {strides = array<i32>} : memref<2x16x128xf32, #tpu.memory_space<vmem>>, vector<1x16x128xf32>,
    %56 = arith.truncf %49 : vector<16x128xf32> to vector<16x128xbf16>
    %57 = arith.index_cast %13 : i32 to index
    %c0_31 = arith.constant 0 : index
    %58 = vector.load %arg10[%57, %c0_31] : memref<128x128xbf16, #tpu.memory_space<vmem>>, vector<16x128xbf16>
    tpu.vector_store %arg10[%57, %c0_31], %56 {strides = array<i32>} : memref<128x128xbf16, #tpu.memory_space<vmem>>, vector<16x128xbf16>,
    %c1_i32 = arith.constant 1 : i32
    %c16_i32_32 = arith.constant 16 : i32
    %59 = arith.muli %c1_i32, %c16_i32_32 : i32
    %60 = tpu.assume_multiple %59, 16 : i32
    %c0_33 = arith.constant 0 : index
    %c0_34 = arith.constant 0 : index
    %c0_35 = arith.constant 0 : index
    %61 = vector.load %arg8[%c0_33, %c0_34, %c0_35] : memref<2x16x128xf32, #tpu.memory_space<vmem>>, vector<1x16x128xf32>
    %62 = vector.shape_cast %61 : vector<1x16x128xf32> to vector<16x128xf32>
    %c0_36 = arith.constant 0 : index
    %c0_37 = arith.constant 0 : index
    %c0_38 = arith.constant 0 : index
    %63 = vector.load %arg9[%c0_36, %c0_37, %c0_38] : memref<2x16x128xf32, #tpu.memory_space<vmem>>, vector<1x16x128xf32>
    %64 = vector.shape_cast %63 : vector<1x16x128xf32> to vector<16x128xf32>
    %65 = arith.index_cast %60 : i32 to index
    %c0_39 = arith.constant 0 : index
    %66 = vector.load %arg11[%65, %c0_39] : memref<128x512xf32, #tpu.memory_space<vmem>>, vector<16x512xf32>
    %67 = arith.truncf %62 : vector<16x128xf32> to vector<16x128xbf16>
    %c0_40 = arith.constant 0 : index
    %c0_41 = arith.constant 0 : index
    %c0_42 = arith.constant 0 : index
    %68 = vector.load %arg3[%c0_40, %c0_41, %c0_42] : memref<2x128x512xbf16, #tpu.memory_space<vmem>>, vector<1x128x512xbf16>
    %69 = vector.shape_cast %68 : vector<1x128x512xbf16> to vector<128x512xbf16>
    %cst_43 = arith.constant dense<0.000000e+00> : vector<16x512xf32>
    %70 = tpu.matmul %67, %69, %cst_43 {dimension_numbers = #tpu.dot_dimension_numbers<[1], [0], [0], [1], [0, 0, 1, 1], [], []>} : vector<16x128xbf16>, vector<128x512xbf16>, vector<16x512xf32> -> vector<16x512xf32>
    %71 = arith.addf %66, %70 : vector<16x512xf32>
    %72 = vector.extract_strided_slice %71 {offsets = [0, 0], sizes = [16, 128], strides = [1, 1]} : vector<16x512xf32> to vector<16x128xf32>
    %73 = arith.negf %72 : vector<16x128xf32>
    %74 = math.exp %73 : vector<16x128xf32>
    %cst_44 = arith.constant 1.000000e+00 : f32
    %75 = vector.broadcast %cst_44 : f32 to vector<16x128xf32>
    %76 = arith.addf %75, %74 : vector<16x128xf32>
    %77 = arith.divf %75, %76 : vector<16x128xf32>
    %78 = vector.extract_strided_slice %71 {offsets = [0, 128], sizes = [16, 128], strides = [1, 1]} : vector<16x512xf32> to vector<16x128xf32>
    %79 = arith.negf %78 : vector<16x128xf32>
    %80 = math.exp %79 : vector<16x128xf32>
    %cst_45 = arith.constant 1.000000e+00 : f32
    %81 = vector.broadcast %cst_45 : f32 to vector<16x128xf32>
    %82 = arith.addf %81, %80 : vector<16x128xf32>
    %83 = arith.divf %81, %82 : vector<16x128xf32>
    %84 = vector.extract_strided_slice %71 {offsets = [0, 256], sizes = [16, 128], strides = [1, 1]} : vector<16x512xf32> to vector<16x128xf32>
    %85 = math.tanh %84 : vector<16x128xf32>
    %86 = vector.extract_strided_slice %71 {offsets = [0, 384], sizes = [16, 128], strides = [1, 1]} : vector<16x512xf32> to vector<16x128xf32>
    %87 = arith.negf %86 : vector<16x128xf32>
    %88 = math.exp %87 : vector<16x128xf32>
    %cst_46 = arith.constant 1.000000e+00 : f32
    %89 = vector.broadcast %cst_46 : f32 to vector<16x128xf32>
    %90 = arith.addf %89, %88 : vector<16x128xf32>
    %91 = arith.divf %89, %90 : vector<16x128xf32>
    %92 = arith.mulf %83, %64 : vector<16x128xf32>
    %93 = arith.mulf %77, %85 : vector<16x128xf32>
    %94 = arith.addf %92, %93 : vector<16x128xf32>
    %95 = math.tanh %94 : vector<16x128xf32>
    %96 = arith.mulf %91, %95 : vector<16x128xf32>
    %c0_47 = arith.constant 0 : index
    %c0_48 = arith.constant 0 : index
    %c0_49 = arith.constant 0 : index
    %97 = vector.load %arg8[%c0_47, %c0_48, %c0_49] : memref<2x16x128xf32, #tpu.memory_space<vmem>>, vector<1x16x128xf32>
    %98 = vector.shape_cast %97 : vector<1x16x128xf32> to vector<16x128xf32>
    %99 = vector.shape_cast %96 : vector<16x128xf32> to vector<1x16x128xf32>
    tpu.vector_store %arg8[%c0_47, %c0_48, %c0_49], %99 {strides = array<i32>} : memref<2x16x128xf32, #tpu.memory_space<vmem>>, vector<1x16x128xf32>,
    %c0_50 = arith.constant 0 : index
    %c0_51 = arith.constant 0 : index
    %c0_52 = arith.constant 0 : index
    %100 = vector.load %arg9[%c0_50, %c0_51, %c0_52] : memref<2x16x128xf32, #tpu.memory_space<vmem>>, vector<1x16x128xf32>
    %101 = vector.shape_cast %100 : vector<1x16x128xf32> to vector<16x128xf32>
    %102 = vector.shape_cast %94 : vector<16x128xf32> to vector<1x16x128xf32>
    tpu.vector_store %arg9[%c0_50, %c0_51, %c0_52], %102 {strides = array<i32>} : memref<2x16x128xf32, #tpu.memory_space<vmem>>, vector<1x16x128xf32>,
    %103 = arith.truncf %96 : vector<16x128xf32> to vector<16x128xbf16>
    %104 = arith.index_cast %60 : i32 to index
    %c0_53 = arith.constant 0 : index
    %105 = vector.load %arg10[%104, %c0_53] : memref<128x128xbf16, #tpu.memory_space<vmem>>, vector<16x128xbf16>
    tpu.vector_store %arg10[%104, %c0_53], %103 {strides = array<i32>} : memref<128x128xbf16, #tpu.memory_space<vmem>>, vector<16x128xbf16>,
    %c2_i32 = arith.constant 2 : i32
    %c16_i32_54 = arith.constant 16 : i32
    %106 = arith.muli %c2_i32, %c16_i32_54 : i32
    %107 = tpu.assume_multiple %106, 16 : i32
    %c0_55 = arith.constant 0 : index
    %c0_56 = arith.constant 0 : index
    %c0_57 = arith.constant 0 : index
    %108 = vector.load %arg8[%c0_55, %c0_56, %c0_57] : memref<2x16x128xf32, #tpu.memory_space<vmem>>, vector<1x16x128xf32>
    %109 = vector.shape_cast %108 : vector<1x16x128xf32> to vector<16x128xf32>
    %c0_58 = arith.constant 0 : index
    %c0_59 = arith.constant 0 : index
    %c0_60 = arith.constant 0 : index
    %110 = vector.load %arg9[%c0_58, %c0_59, %c0_60] : memref<2x16x128xf32, #tpu.memory_space<vmem>>, vector<1x16x128xf32>
    %111 = vector.shape_cast %110 : vector<1x16x128xf32> to vector<16x128xf32>
    %112 = arith.index_cast %107 : i32 to index
    %c0_61 = arith.constant 0 : index
    %113 = vector.load %arg11[%112, %c0_61] : memref<128x512xf32, #tpu.memory_space<vmem>>, vector<16x512xf32>
    %114 = arith.truncf %109 : vector<16x128xf32> to vector<16x128xbf16>
    %c0_62 = arith.constant 0 : index
    %c0_63 = arith.constant 0 : index
    %c0_64 = arith.constant 0 : index
    %115 = vector.load %arg3[%c0_62, %c0_63, %c0_64] : memref<2x128x512xbf16, #tpu.memory_space<vmem>>, vector<1x128x512xbf16>
    %116 = vector.shape_cast %115 : vector<1x128x512xbf16> to vector<128x512xbf16>
    %cst_65 = arith.constant dense<0.000000e+00> : vector<16x512xf32>
    %117 = tpu.matmul %114, %116, %cst_65 {dimension_numbers = #tpu.dot_dimension_numbers<[1], [0], [0], [1], [0, 0, 1, 1], [], []>} : vector<16x128xbf16>, vector<128x512xbf16>, vector<16x512xf32> -> vector<16x512xf32>
    %118 = arith.addf %113, %117 : vector<16x512xf32>
    %119 = vector.extract_strided_slice %118 {offsets = [0, 0], sizes = [16, 128], strides = [1, 1]} : vector<16x512xf32> to vector<16x128xf32>
    %120 = arith.negf %119 : vector<16x128xf32>
    %121 = math.exp %120 : vector<16x128xf32>
    %cst_66 = arith.constant 1.000000e+00 : f32
    %122 = vector.broadcast %cst_66 : f32 to vector<16x128xf32>
    %123 = arith.addf %122, %121 : vector<16x128xf32>
    %124 = arith.divf %122, %123 : vector<16x128xf32>
    %125 = vector.extract_strided_slice %118 {offsets = [0, 128], sizes = [16, 128], strides = [1, 1]} : vector<16x512xf32> to vector<16x128xf32>
    %126 = arith.negf %125 : vector<16x128xf32>
    %127 = math.exp %126 : vector<16x128xf32>
    %cst_67 = arith.constant 1.000000e+00 : f32
    %128 = vector.broadcast %cst_67 : f32 to vector<16x128xf32>
    %129 = arith.addf %128, %127 : vector<16x128xf32>
    %130 = arith.divf %128, %129 : vector<16x128xf32>
    %131 = vector.extract_strided_slice %118 {offsets = [0, 256], sizes = [16, 128], strides = [1, 1]} : vector<16x512xf32> to vector<16x128xf32>
    %132 = math.tanh %131 : vector<16x128xf32>
    %133 = vector.extract_strided_slice %118 {offsets = [0, 384], sizes = [16, 128], strides = [1, 1]} : vector<16x512xf32> to vector<16x128xf32>
    %134 = arith.negf %133 : vector<16x128xf32>
    %135 = math.exp %134 : vector<16x128xf32>
    %cst_68 = arith.constant 1.000000e+00 : f32
    %136 = vector.broadcast %cst_68 : f32 to vector<16x128xf32>
    %137 = arith.addf %136, %135 : vector<16x128xf32>
    %138 = arith.divf %136, %137 : vector<16x128xf32>
    %139 = arith.mulf %130, %111 : vector<16x128xf32>
    %140 = arith.mulf %124, %132 : vector<16x128xf32>
    %141 = arith.addf %139, %140 : vector<16x128xf32>
    %142 = math.tanh %141 : vector<16x128xf32>
    %143 = arith.mulf %138, %142 : vector<16x128xf32>
    %c0_69 = arith.constant 0 : index
    %c0_70 = arith.constant 0 : index
    %c0_71 = arith.constant 0 : index
    %144 = vector.load %arg8[%c0_69, %c0_70, %c0_71] : memref<2x16x128xf32, #tpu.memory_space<vmem>>, vector<1x16x128xf32>
    %145 = vector.shape_cast %144 : vector<1x16x128xf32> to vector<16x128xf32>
    %146 = vector.shape_cast %143 : vector<16x128xf32> to vector<1x16x128xf32>
    tpu.vector_store %arg8[%c0_69, %c0_70, %c0_71], %146 {strides = array<i32>} : memref<2x16x128xf32, #tpu.memory_space<vmem>>, vector<1x16x128xf32>,
    %c0_72 = arith.constant 0 : index
    %c0_73 = arith.constant 0 : index
    %c0_74 = arith.constant 0 : index
    %147 = vector.load %arg9[%c0_72, %c0_73, %c0_74] : memref<2x16x128xf32, #tpu.memory_space<vmem>>, vector<1x16x128xf32>
    %148 = vector.shape_cast %147 : vector<1x16x128xf32> to vector<16x128xf32>
    %149 = vector.shape_cast %141 : vector<16x128xf32> to vector<1x16x128xf32>
    tpu.vector_store %arg9[%c0_72, %c0_73, %c0_74], %149 {strides = array<i32>} : memref<2x16x128xf32, #tpu.memory_space<vmem>>, vector<1x16x128xf32>,
    %150 = arith.truncf %143 : vector<16x128xf32> to vector<16x128xbf16>
    %151 = arith.index_cast %107 : i32 to index
    %c0_75 = arith.constant 0 : index
    %152 = vector.load %arg10[%151, %c0_75] : memref<128x128xbf16, #tpu.memory_space<vmem>>, vector<16x128xbf16>
    tpu.vector_store %arg10[%151, %c0_75], %150 {strides = array<i32>} : memref<128x128xbf16, #tpu.memory_space<vmem>>, vector<16x128xbf16>,
    %c3_i32 = arith.constant 3 : i32
    %c16_i32_76 = arith.constant 16 : i32
    %153 = arith.muli %c3_i32, %c16_i32_76 : i32
    %154 = tpu.assume_multiple %153, 16 : i32
    %c0_77 = arith.constant 0 : index
    %c0_78 = arith.constant 0 : index
    %c0_79 = arith.constant 0 : index
    %155 = vector.load %arg8[%c0_77, %c0_78, %c0_79] : memref<2x16x128xf32, #tpu.memory_space<vmem>>, vector<1x16x128xf32>
    %156 = vector.shape_cast %155 : vector<1x16x128xf32> to vector<16x128xf32>
    %c0_80 = arith.constant 0 : index
    %c0_81 = arith.constant 0 : index
    %c0_82 = arith.constant 0 : index
    %157 = vector.load %arg9[%c0_80, %c0_81, %c0_82] : memref<2x16x128xf32, #tpu.memory_space<vmem>>, vector<1x16x128xf32>
    %158 = vector.shape_cast %157 : vector<1x16x128xf32> to vector<16x128xf32>
    %159 = arith.index_cast %154 : i32 to index
    %c0_83 = arith.constant 0 : index
    %160 = vector.load %arg11[%159, %c0_83] : memref<128x512xf32, #tpu.memory_space<vmem>>, vector<16x512xf32>
    %161 = arith.truncf %156 : vector<16x128xf32> to vector<16x128xbf16>
    %c0_84 = arith.constant 0 : index
    %c0_85 = arith.constant 0 : index
    %c0_86 = arith.constant 0 : index
    %162 = vector.load %arg3[%c0_84, %c0_85, %c0_86] : memref<2x128x512xbf16, #tpu.memory_space<vmem>>, vector<1x128x512xbf16>
    %163 = vector.shape_cast %162 : vector<1x128x512xbf16> to vector<128x512xbf16>
    %cst_87 = arith.constant dense<0.000000e+00> : vector<16x512xf32>
    %164 = tpu.matmul %161, %163, %cst_87 {dimension_numbers = #tpu.dot_dimension_numbers<[1], [0], [0], [1], [0, 0, 1, 1], [], []>} : vector<16x128xbf16>, vector<128x512xbf16>, vector<16x512xf32> -> vector<16x512xf32>
    %165 = arith.addf %160, %164 : vector<16x512xf32>
    %166 = vector.extract_strided_slice %165 {offsets = [0, 0], sizes = [16, 128], strides = [1, 1]} : vector<16x512xf32> to vector<16x128xf32>
    %167 = arith.negf %166 : vector<16x128xf32>
    %168 = math.exp %167 : vector<16x128xf32>
    %cst_88 = arith.constant 1.000000e+00 : f32
    %169 = vector.broadcast %cst_88 : f32 to vector<16x128xf32>
    %170 = arith.addf %169, %168 : vector<16x128xf32>
    %171 = arith.divf %169, %170 : vector<16x128xf32>
    %172 = vector.extract_strided_slice %165 {offsets = [0, 128], sizes = [16, 128], strides = [1, 1]} : vector<16x512xf32> to vector<16x128xf32>
    %173 = arith.negf %172 : vector<16x128xf32>
    %174 = math.exp %173 : vector<16x128xf32>
    %cst_89 = arith.constant 1.000000e+00 : f32
    %175 = vector.broadcast %cst_89 : f32 to vector<16x128xf32>
    %176 = arith.addf %175, %174 : vector<16x128xf32>
    %177 = arith.divf %175, %176 : vector<16x128xf32>
    %178 = vector.extract_strided_slice %165 {offsets = [0, 256], sizes = [16, 128], strides = [1, 1]} : vector<16x512xf32> to vector<16x128xf32>
    %179 = math.tanh %178 : vector<16x128xf32>
    %180 = vector.extract_strided_slice %165 {offsets = [0, 384], sizes = [16, 128], strides = [1, 1]} : vector<16x512xf32> to vector<16x128xf32>
    %181 = arith.negf %180 : vector<16x128xf32>
    %182 = math.exp %181 : vector<16x128xf32>
    %cst_90 = arith.constant 1.000000e+00 : f32
    %183 = vector.broadcast %cst_90 : f32 to vector<16x128xf32>
    %184 = arith.addf %183, %182 : vector<16x128xf32>
    %185 = arith.divf %183, %184 : vector<16x128xf32>
    %186 = arith.mulf %177, %158 : vector<16x128xf32>
    %187 = arith.mulf %171, %179 : vector<16x128xf32>
    %188 = arith.addf %186, %187 : vector<16x128xf32>
    %189 = math.tanh %188 : vector<16x128xf32>
    %190 = arith.mulf %185, %189 : vector<16x128xf32>
    %c0_91 = arith.constant 0 : index
    %c0_92 = arith.constant 0 : index
    %c0_93 = arith.constant 0 : index
    %191 = vector.load %arg8[%c0_91, %c0_92, %c0_93] : memref<2x16x128xf32, #tpu.memory_space<vmem>>, vector<1x16x128xf32>
    %192 = vector.shape_cast %191 : vector<1x16x128xf32> to vector<16x128xf32>
    %193 = vector.shape_cast %190 : vector<16x128xf32> to vector<1x16x128xf32>
    tpu.vector_store %arg8[%c0_91, %c0_92, %c0_93], %193 {strides = array<i32>} : memref<2x16x128xf32, #tpu.memory_space<vmem>>, vector<1x16x128xf32>,
    %c0_94 = arith.constant 0 : index
    %c0_95 = arith.constant 0 : index
    %c0_96 = arith.constant 0 : index
    %194 = vector.load %arg9[%c0_94, %c0_95, %c0_96] : memref<2x16x128xf32, #tpu.memory_space<vmem>>, vector<1x16x128xf32>
    %195 = vector.shape_cast %194 : vector<1x16x128xf32> to vector<16x128xf32>
    %196 = vector.shape_cast %188 : vector<16x128xf32> to vector<1x16x128xf32>
    tpu.vector_store %arg9[%c0_94, %c0_95, %c0_96], %196 {strides = array<i32>} : memref<2x16x128xf32, #tpu.memory_space<vmem>>, vector<1x16x128xf32>,
    %197 = arith.truncf %190 : vector<16x128xf32> to vector<16x128xbf16>
    %198 = arith.index_cast %154 : i32 to index
    %c0_97 = arith.constant 0 : index
    %199 = vector.load %arg10[%198, %c0_97] : memref<128x128xbf16, #tpu.memory_space<vmem>>, vector<16x128xbf16>
    tpu.vector_store %arg10[%198, %c0_97], %197 {strides = array<i32>} : memref<128x128xbf16, #tpu.memory_space<vmem>>, vector<16x128xbf16>,
    %c4_i32 = arith.constant 4 : i32
    %c16_i32_98 = arith.constant 16 : i32
    %200 = arith.muli %c4_i32, %c16_i32_98 : i32
    %201 = tpu.assume_multiple %200, 16 : i32
    %c0_99 = arith.constant 0 : index
    %c0_100 = arith.constant 0 : index
    %c0_101 = arith.constant 0 : index
    %202 = vector.load %arg8[%c0_99, %c0_100, %c0_101] : memref<2x16x128xf32, #tpu.memory_space<vmem>>, vector<1x16x128xf32>
    %203 = vector.shape_cast %202 : vector<1x16x128xf32> to vector<16x128xf32>
    %c0_102 = arith.constant 0 : index
    %c0_103 = arith.constant 0 : index
    %c0_104 = arith.constant 0 : index
    %204 = vector.load %arg9[%c0_102, %c0_103, %c0_104] : memref<2x16x128xf32, #tpu.memory_space<vmem>>, vector<1x16x128xf32>
    %205 = vector.shape_cast %204 : vector<1x16x128xf32> to vector<16x128xf32>
    %206 = arith.index_cast %201 : i32 to index
    %c0_105 = arith.constant 0 : index
    %207 = vector.load %arg11[%206, %c0_105] : memref<128x512xf32, #tpu.memory_space<vmem>>, vector<16x512xf32>
    %208 = arith.truncf %203 : vector<16x128xf32> to vector<16x128xbf16>
    %c0_106 = arith.constant 0 : index
    %c0_107 = arith.constant 0 : index
    %c0_108 = arith.constant 0 : index
    %209 = vector.load %arg3[%c0_106, %c0_107, %c0_108] : memref<2x128x512xbf16, #tpu.memory_space<vmem>>, vector<1x128x512xbf16>
    %210 = vector.shape_cast %209 : vector<1x128x512xbf16> to vector<128x512xbf16>
    %cst_109 = arith.constant dense<0.000000e+00> : vector<16x512xf32>
    %211 = tpu.matmul %208, %210, %cst_109 {dimension_numbers = #tpu.dot_dimension_numbers<[1], [0], [0], [1], [0, 0, 1, 1], [], []>} : vector<16x128xbf16>, vector<128x512xbf16>, vector<16x512xf32> -> vector<16x512xf32>
    %212 = arith.addf %207, %211 : vector<16x512xf32>
    %213 = vector.extract_strided_slice %212 {offsets = [0, 0], sizes = [16, 128], strides = [1, 1]} : vector<16x512xf32> to vector<16x128xf32>
    %214 = arith.negf %213 : vector<16x128xf32>
    %215 = math.exp %214 : vector<16x128xf32>
    %cst_110 = arith.constant 1.000000e+00 : f32
    %216 = vector.broadcast %cst_110 : f32 to vector<16x128xf32>
    %217 = arith.addf %216, %215 : vector<16x128xf32>
    %218 = arith.divf %216, %217 : vector<16x128xf32>
    %219 = vector.extract_strided_slice %212 {offsets = [0, 128], sizes = [16, 128], strides = [1, 1]} : vector<16x512xf32> to vector<16x128xf32>
    %220 = arith.negf %219 : vector<16x128xf32>
    %221 = math.exp %220 : vector<16x128xf32>
    %cst_111 = arith.constant 1.000000e+00 : f32
    %222 = vector.broadcast %cst_111 : f32 to vector<16x128xf32>
    %223 = arith.addf %222, %221 : vector<16x128xf32>
    %224 = arith.divf %222, %223 : vector<16x128xf32>
    %225 = vector.extract_strided_slice %212 {offsets = [0, 256], sizes = [16, 128], strides = [1, 1]} : vector<16x512xf32> to vector<16x128xf32>
    %226 = math.tanh %225 : vector<16x128xf32>
    %227 = vector.extract_strided_slice %212 {offsets = [0, 384], sizes = [16, 128], strides = [1, 1]} : vector<16x512xf32> to vector<16x128xf32>
    %228 = arith.negf %227 : vector<16x128xf32>
    %229 = math.exp %228 : vector<16x128xf32>
    %cst_112 = arith.constant 1.000000e+00 : f32
    %230 = vector.broadcast %cst_112 : f32 to vector<16x128xf32>
    %231 = arith.addf %230, %229 : vector<16x128xf32>
    %232 = arith.divf %230, %231 : vector<16x128xf32>
    %233 = arith.mulf %224, %205 : vector<16x128xf32>
    %234 = arith.mulf %218, %226 : vector<16x128xf32>
    %235 = arith.addf %233, %234 : vector<16x128xf32>
    %236 = math.tanh %235 : vector<16x128xf32>
    %237 = arith.mulf %232, %236 : vector<16x128xf32>
    %c0_113 = arith.constant 0 : index
    %c0_114 = arith.constant 0 : index
    %c0_115 = arith.constant 0 : index
    %238 = vector.load %arg8[%c0_113, %c0_114, %c0_115] : memref<2x16x128xf32, #tpu.memory_space<vmem>>, vector<1x16x128xf32>
    %239 = vector.shape_cast %238 : vector<1x16x128xf32> to vector<16x128xf32>
    %240 = vector.shape_cast %237 : vector<16x128xf32> to vector<1x16x128xf32>
    tpu.vector_store %arg8[%c0_113, %c0_114, %c0_115], %240 {strides = array<i32>} : memref<2x16x128xf32, #tpu.memory_space<vmem>>, vector<1x16x128xf32>,
    %c0_116 = arith.constant 0 : index
    %c0_117 = arith.constant 0 : index
    %c0_118 = arith.constant 0 : index
    %241 = vector.load %arg9[%c0_116, %c0_117, %c0_118] : memref<2x16x128xf32, #tpu.memory_space<vmem>>, vector<1x16x128xf32>
    %242 = vector.shape_cast %241 : vector<1x16x128xf32> to vector<16x128xf32>
    %243 = vector.shape_cast %235 : vector<16x128xf32> to vector<1x16x128xf32>
    tpu.vector_store %arg9[%c0_116, %c0_117, %c0_118], %243 {strides = array<i32>} : memref<2x16x128xf32, #tpu.memory_space<vmem>>, vector<1x16x128xf32>,
    %244 = arith.truncf %237 : vector<16x128xf32> to vector<16x128xbf16>
    %245 = arith.index_cast %201 : i32 to index
    %c0_119 = arith.constant 0 : index
    %246 = vector.load %arg10[%245, %c0_119] : memref<128x128xbf16, #tpu.memory_space<vmem>>, vector<16x128xbf16>
    tpu.vector_store %arg10[%245, %c0_119], %244 {strides = array<i32>} : memref<128x128xbf16, #tpu.memory_space<vmem>>, vector<16x128xbf16>,
    %c5_i32 = arith.constant 5 : i32
    %c16_i32_120 = arith.constant 16 : i32
    %247 = arith.muli %c5_i32, %c16_i32_120 : i32
    %248 = tpu.assume_multiple %247, 16 : i32
    %c0_121 = arith.constant 0 : index
    %c0_122 = arith.constant 0 : index
    %c0_123 = arith.constant 0 : index
    %249 = vector.load %arg8[%c0_121, %c0_122, %c0_123] : memref<2x16x128xf32, #tpu.memory_space<vmem>>, vector<1x16x128xf32>
    %250 = vector.shape_cast %249 : vector<1x16x128xf32> to vector<16x128xf32>
    %c0_124 = arith.constant 0 : index
    %c0_125 = arith.constant 0 : index
    %c0_126 = arith.constant 0 : index
    %251 = vector.load %arg9[%c0_124, %c0_125, %c0_126] : memref<2x16x128xf32, #tpu.memory_space<vmem>>, vector<1x16x128xf32>
    %252 = vector.shape_cast %251 : vector<1x16x128xf32> to vector<16x128xf32>
    %253 = arith.index_cast %248 : i32 to index
    %c0_127 = arith.constant 0 : index
    %254 = vector.load %arg11[%253, %c0_127] : memref<128x512xf32, #tpu.memory_space<vmem>>, vector<16x512xf32>
    %255 = arith.truncf %250 : vector<16x128xf32> to vector<16x128xbf16>
    %c0_128 = arith.constant 0 : index
    %c0_129 = arith.constant 0 : index
    %c0_130 = arith.constant 0 : index
    %256 = vector.load %arg3[%c0_128, %c0_129, %c0_130] : memref<2x128x512xbf16, #tpu.memory_space<vmem>>, vector<1x128x512xbf16>
    %257 = vector.shape_cast %256 : vector<1x128x512xbf16> to vector<128x512xbf16>
    %cst_131 = arith.constant dense<0.000000e+00> : vector<16x512xf32>
    %258 = tpu.matmul %255, %257, %cst_131 {dimension_numbers = #tpu.dot_dimension_numbers<[1], [0], [0], [1], [0, 0, 1, 1], [], []>} : vector<16x128xbf16>, vector<128x512xbf16>, vector<16x512xf32> -> vector<16x512xf32>
    %259 = arith.addf %254, %258 : vector<16x512xf32>
    %260 = vector.extract_strided_slice %259 {offsets = [0, 0], sizes = [16, 128], strides = [1, 1]} : vector<16x512xf32> to vector<16x128xf32>
    %261 = arith.negf %260 : vector<16x128xf32>
    %262 = math.exp %261 : vector<16x128xf32>
    %cst_132 = arith.constant 1.000000e+00 : f32
    %263 = vector.broadcast %cst_132 : f32 to vector<16x128xf32>
    %264 = arith.addf %263, %262 : vector<16x128xf32>
    %265 = arith.divf %263, %264 : vector<16x128xf32>
    %266 = vector.extract_strided_slice %259 {offsets = [0, 128], sizes = [16, 128], strides = [1, 1]} : vector<16x512xf32> to vector<16x128xf32>
    %267 = arith.negf %266 : vector<16x128xf32>
    %268 = math.exp %267 : vector<16x128xf32>
    %cst_133 = arith.constant 1.000000e+00 : f32
    %269 = vector.broadcast %cst_133 : f32 to vector<16x128xf32>
    %270 = arith.addf %269, %268 : vector<16x128xf32>
    %271 = arith.divf %269, %270 : vector<16x128xf32>
    %272 = vector.extract_strided_slice %259 {offsets = [0, 256], sizes = [16, 128], strides = [1, 1]} : vector<16x512xf32> to vector<16x128xf32>
    %273 = math.tanh %272 : vector<16x128xf32>
    %274 = vector.extract_strided_slice %259 {offsets = [0, 384], sizes = [16, 128], strides = [1, 1]} : vector<16x512xf32> to vector<16x128xf32>
    %275 = arith.negf %274 : vector<16x128xf32>
    %276 = math.exp %275 : vector<16x128xf32>
    %cst_134 = arith.constant 1.000000e+00 : f32
    %277 = vector.broadcast %cst_134 : f32 to vector<16x128xf32>
    %278 = arith.addf %277, %276 : vector<16x128xf32>
    %279 = arith.divf %277, %278 : vector<16x128xf32>
    %280 = arith.mulf %271, %252 : vector<16x128xf32>
    %281 = arith.mulf %265, %273 : vector<16x128xf32>
    %282 = arith.addf %280, %281 : vector<16x128xf32>
    %283 = math.tanh %282 : vector<16x128xf32>
    %284 = arith.mulf %279, %283 : vector<16x128xf32>
    %c0_135 = arith.constant 0 : index
    %c0_136 = arith.constant 0 : index
    %c0_137 = arith.constant 0 : index
    %285 = vector.load %arg8[%c0_135, %c0_136, %c0_137] : memref<2x16x128xf32, #tpu.memory_space<vmem>>, vector<1x16x128xf32>
    %286 = vector.shape_cast %285 : vector<1x16x128xf32> to vector<16x128xf32>
    %287 = vector.shape_cast %284 : vector<16x128xf32> to vector<1x16x128xf32>
    tpu.vector_store %arg8[%c0_135, %c0_136, %c0_137], %287 {strides = array<i32>} : memref<2x16x128xf32, #tpu.memory_space<vmem>>, vector<1x16x128xf32>,
    %c0_138 = arith.constant 0 : index
    %c0_139 = arith.constant 0 : index
    %c0_140 = arith.constant 0 : index
    %288 = vector.load %arg9[%c0_138, %c0_139, %c0_140] : memref<2x16x128xf32, #tpu.memory_space<vmem>>, vector<1x16x128xf32>
    %289 = vector.shape_cast %288 : vector<1x16x128xf32> to vector<16x128xf32>
    %290 = vector.shape_cast %282 : vector<16x128xf32> to vector<1x16x128xf32>
    tpu.vector_store %arg9[%c0_138, %c0_139, %c0_140], %290 {strides = array<i32>} : memref<2x16x128xf32, #tpu.memory_space<vmem>>, vector<1x16x128xf32>,
    %291 = arith.truncf %284 : vector<16x128xf32> to vector<16x128xbf16>
    %292 = arith.index_cast %248 : i32 to index
    %c0_141 = arith.constant 0 : index
    %293 = vector.load %arg10[%292, %c0_141] : memref<128x128xbf16, #tpu.memory_space<vmem>>, vector<16x128xbf16>
    tpu.vector_store %arg10[%292, %c0_141], %291 {strides = array<i32>} : memref<128x128xbf16, #tpu.memory_space<vmem>>, vector<16x128xbf16>,
    %c6_i32 = arith.constant 6 : i32
    %c16_i32_142 = arith.constant 16 : i32
    %294 = arith.muli %c6_i32, %c16_i32_142 : i32
    %295 = tpu.assume_multiple %294, 16 : i32
    %c0_143 = arith.constant 0 : index
    %c0_144 = arith.constant 0 : index
    %c0_145 = arith.constant 0 : index
    %296 = vector.load %arg8[%c0_143, %c0_144, %c0_145] : memref<2x16x128xf32, #tpu.memory_space<vmem>>, vector<1x16x128xf32>
    %297 = vector.shape_cast %296 : vector<1x16x128xf32> to vector<16x128xf32>
    %c0_146 = arith.constant 0 : index
    %c0_147 = arith.constant 0 : index
    %c0_148 = arith.constant 0 : index
    %298 = vector.load %arg9[%c0_146, %c0_147, %c0_148] : memref<2x16x128xf32, #tpu.memory_space<vmem>>, vector<1x16x128xf32>
    %299 = vector.shape_cast %298 : vector<1x16x128xf32> to vector<16x128xf32>
    %300 = arith.index_cast %295 : i32 to index
    %c0_149 = arith.constant 0 : index
    %301 = vector.load %arg11[%300, %c0_149] : memref<128x512xf32, #tpu.memory_space<vmem>>, vector<16x512xf32>
    %302 = arith.truncf %297 : vector<16x128xf32> to vector<16x128xbf16>
    %c0_150 = arith.constant 0 : index
    %c0_151 = arith.constant 0 : index
    %c0_152 = arith.constant 0 : index
    %303 = vector.load %arg3[%c0_150, %c0_151, %c0_152] : memref<2x128x512xbf16, #tpu.memory_space<vmem>>, vector<1x128x512xbf16>
    %304 = vector.shape_cast %303 : vector<1x128x512xbf16> to vector<128x512xbf16>
    %cst_153 = arith.constant dense<0.000000e+00> : vector<16x512xf32>
    %305 = tpu.matmul %302, %304, %cst_153 {dimension_numbers = #tpu.dot_dimension_numbers<[1], [0], [0], [1], [0, 0, 1, 1], [], []>} : vector<16x128xbf16>, vector<128x512xbf16>, vector<16x512xf32> -> vector<16x512xf32>
    %306 = arith.addf %301, %305 : vector<16x512xf32>
    %307 = vector.extract_strided_slice %306 {offsets = [0, 0], sizes = [16, 128], strides = [1, 1]} : vector<16x512xf32> to vector<16x128xf32>
    %308 = arith.negf %307 : vector<16x128xf32>
    %309 = math.exp %308 : vector<16x128xf32>
    %cst_154 = arith.constant 1.000000e+00 : f32
    %310 = vector.broadcast %cst_154 : f32 to vector<16x128xf32>
    %311 = arith.addf %310, %309 : vector<16x128xf32>
    %312 = arith.divf %310, %311 : vector<16x128xf32>
    %313 = vector.extract_strided_slice %306 {offsets = [0, 128], sizes = [16, 128], strides = [1, 1]} : vector<16x512xf32> to vector<16x128xf32>
    %314 = arith.negf %313 : vector<16x128xf32>
    %315 = math.exp %314 : vector<16x128xf32>
    %cst_155 = arith.constant 1.000000e+00 : f32
    %316 = vector.broadcast %cst_155 : f32 to vector<16x128xf32>
    %317 = arith.addf %316, %315 : vector<16x128xf32>
    %318 = arith.divf %316, %317 : vector<16x128xf32>
    %319 = vector.extract_strided_slice %306 {offsets = [0, 256], sizes = [16, 128], strides = [1, 1]} : vector<16x512xf32> to vector<16x128xf32>
    %320 = math.tanh %319 : vector<16x128xf32>
    %321 = vector.extract_strided_slice %306 {offsets = [0, 384], sizes = [16, 128], strides = [1, 1]} : vector<16x512xf32> to vector<16x128xf32>
    %322 = arith.negf %321 : vector<16x128xf32>
    %323 = math.exp %322 : vector<16x128xf32>
    %cst_156 = arith.constant 1.000000e+00 : f32
    %324 = vector.broadcast %cst_156 : f32 to vector<16x128xf32>
    %325 = arith.addf %324, %323 : vector<16x128xf32>
    %326 = arith.divf %324, %325 : vector<16x128xf32>
    %327 = arith.mulf %318, %299 : vector<16x128xf32>
    %328 = arith.mulf %312, %320 : vector<16x128xf32>
    %329 = arith.addf %327, %328 : vector<16x128xf32>
    %330 = math.tanh %329 : vector<16x128xf32>
    %331 = arith.mulf %326, %330 : vector<16x128xf32>
    %c0_157 = arith.constant 0 : index
    %c0_158 = arith.constant 0 : index
    %c0_159 = arith.constant 0 : index
    %332 = vector.load %arg8[%c0_157, %c0_158, %c0_159] : memref<2x16x128xf32, #tpu.memory_space<vmem>>, vector<1x16x128xf32>
    %333 = vector.shape_cast %332 : vector<1x16x128xf32> to vector<16x128xf32>
    %334 = vector.shape_cast %331 : vector<16x128xf32> to vector<1x16x128xf32>
    tpu.vector_store %arg8[%c0_157, %c0_158, %c0_159], %334 {strides = array<i32>} : memref<2x16x128xf32, #tpu.memory_space<vmem>>, vector<1x16x128xf32>,
    %c0_160 = arith.constant 0 : index
    %c0_161 = arith.constant 0 : index
    %c0_162 = arith.constant 0 : index
    %335 = vector.load %arg9[%c0_160, %c0_161, %c0_162] : memref<2x16x128xf32, #tpu.memory_space<vmem>>, vector<1x16x128xf32>
    %336 = vector.shape_cast %335 : vector<1x16x128xf32> to vector<16x128xf32>
    %337 = vector.shape_cast %329 : vector<16x128xf32> to vector<1x16x128xf32>
    tpu.vector_store %arg9[%c0_160, %c0_161, %c0_162], %337 {strides = array<i32>} : memref<2x16x128xf32, #tpu.memory_space<vmem>>, vector<1x16x128xf32>,
    %338 = arith.truncf %331 : vector<16x128xf32> to vector<16x128xbf16>
    %339 = arith.index_cast %295 : i32 to index
    %c0_163 = arith.constant 0 : index
    %340 = vector.load %arg10[%339, %c0_163] : memref<128x128xbf16, #tpu.memory_space<vmem>>, vector<16x128xbf16>
    tpu.vector_store %arg10[%339, %c0_163], %338 {strides = array<i32>} : memref<128x128xbf16, #tpu.memory_space<vmem>>, vector<16x128xbf16>,
    %c7_i32 = arith.constant 7 : i32
    %c16_i32_164 = arith.constant 16 : i32
    %341 = arith.muli %c7_i32, %c16_i32_164 : i32
    %342 = tpu.assume_multiple %341, 16 : i32
    %c0_165 = arith.constant 0 : index
    %c0_166 = arith.constant 0 : index
    %c0_167 = arith.constant 0 : index
    %343 = vector.load %arg8[%c0_165, %c0_166, %c0_167] : memref<2x16x128xf32, #tpu.memory_space<vmem>>, vector<1x16x128xf32>
    %344 = vector.shape_cast %343 : vector<1x16x128xf32> to vector<16x128xf32>
    %c0_168 = arith.constant 0 : index
    %c0_169 = arith.constant 0 : index
    %c0_170 = arith.constant 0 : index
    %345 = vector.load %arg9[%c0_168, %c0_169, %c0_170] : memref<2x16x128xf32, #tpu.memory_space<vmem>>, vector<1x16x128xf32>
    %346 = vector.shape_cast %345 : vector<1x16x128xf32> to vector<16x128xf32>
    %347 = arith.index_cast %342 : i32 to index
    %c0_171 = arith.constant 0 : index
    %348 = vector.load %arg11[%347, %c0_171] : memref<128x512xf32, #tpu.memory_space<vmem>>, vector<16x512xf32>
    %349 = arith.truncf %344 : vector<16x128xf32> to vector<16x128xbf16>
    %c0_172 = arith.constant 0 : index
    %c0_173 = arith.constant 0 : index
    %c0_174 = arith.constant 0 : index
    %350 = vector.load %arg3[%c0_172, %c0_173, %c0_174] : memref<2x128x512xbf16, #tpu.memory_space<vmem>>, vector<1x128x512xbf16>
    %351 = vector.shape_cast %350 : vector<1x128x512xbf16> to vector<128x512xbf16>
    %cst_175 = arith.constant dense<0.000000e+00> : vector<16x512xf32>
    %352 = tpu.matmul %349, %351, %cst_175 {dimension_numbers = #tpu.dot_dimension_numbers<[1], [0], [0], [1], [0, 0, 1, 1], [], []>} : vector<16x128xbf16>, vector<128x512xbf16>, vector<16x512xf32> -> vector<16x512xf32>
    %353 = arith.addf %348, %352 : vector<16x512xf32>
    %354 = vector.extract_strided_slice %353 {offsets = [0, 0], sizes = [16, 128], strides = [1, 1]} : vector<16x512xf32> to vector<16x128xf32>
    %355 = arith.negf %354 : vector<16x128xf32>
    %356 = math.exp %355 : vector<16x128xf32>
    %cst_176 = arith.constant 1.000000e+00 : f32
    %357 = vector.broadcast %cst_176 : f32 to vector<16x128xf32>
    %358 = arith.addf %357, %356 : vector<16x128xf32>
    %359 = arith.divf %357, %358 : vector<16x128xf32>
    %360 = vector.extract_strided_slice %353 {offsets = [0, 128], sizes = [16, 128], strides = [1, 1]} : vector<16x512xf32> to vector<16x128xf32>
    %361 = arith.negf %360 : vector<16x128xf32>
    %362 = math.exp %361 : vector<16x128xf32>
    %cst_177 = arith.constant 1.000000e+00 : f32
    %363 = vector.broadcast %cst_177 : f32 to vector<16x128xf32>
    %364 = arith.addf %363, %362 : vector<16x128xf32>
    %365 = arith.divf %363, %364 : vector<16x128xf32>
    %366 = vector.extract_strided_slice %353 {offsets = [0, 256], sizes = [16, 128], strides = [1, 1]} : vector<16x512xf32> to vector<16x128xf32>
    %367 = math.tanh %366 : vector<16x128xf32>
    %368 = vector.extract_strided_slice %353 {offsets = [0, 384], sizes = [16, 128], strides = [1, 1]} : vector<16x512xf32> to vector<16x128xf32>
    %369 = arith.negf %368 : vector<16x128xf32>
    %370 = math.exp %369 : vector<16x128xf32>
    %cst_178 = arith.constant 1.000000e+00 : f32
    %371 = vector.broadcast %cst_178 : f32 to vector<16x128xf32>
    %372 = arith.addf %371, %370 : vector<16x128xf32>
    %373 = arith.divf %371, %372 : vector<16x128xf32>
    %374 = arith.mulf %365, %346 : vector<16x128xf32>
    %375 = arith.mulf %359, %367 : vector<16x128xf32>
    %376 = arith.addf %374, %375 : vector<16x128xf32>
    %377 = math.tanh %376 : vector<16x128xf32>
    %378 = arith.mulf %373, %377 : vector<16x128xf32>
    %c0_179 = arith.constant 0 : index
    %c0_180 = arith.constant 0 : index
    %c0_181 = arith.constant 0 : index
    %379 = vector.load %arg8[%c0_179, %c0_180, %c0_181] : memref<2x16x128xf32, #tpu.memory_space<vmem>>, vector<1x16x128xf32>
    %380 = vector.shape_cast %379 : vector<1x16x128xf32> to vector<16x128xf32>
    %381 = vector.shape_cast %378 : vector<16x128xf32> to vector<1x16x128xf32>
    tpu.vector_store %arg8[%c0_179, %c0_180, %c0_181], %381 {strides = array<i32>} : memref<2x16x128xf32, #tpu.memory_space<vmem>>, vector<1x16x128xf32>,
    %c0_182 = arith.constant 0 : index
    %c0_183 = arith.constant 0 : index
    %c0_184 = arith.constant 0 : index
    %382 = vector.load %arg9[%c0_182, %c0_183, %c0_184] : memref<2x16x128xf32, #tpu.memory_space<vmem>>, vector<1x16x128xf32>
    %383 = vector.shape_cast %382 : vector<1x16x128xf32> to vector<16x128xf32>
    %384 = vector.shape_cast %376 : vector<16x128xf32> to vector<1x16x128xf32>
    tpu.vector_store %arg9[%c0_182, %c0_183, %c0_184], %384 {strides = array<i32>} : memref<2x16x128xf32, #tpu.memory_space<vmem>>, vector<1x16x128xf32>,
    %385 = arith.truncf %378 : vector<16x128xf32> to vector<16x128xbf16>
    %386 = arith.index_cast %342 : i32 to index
    %c0_185 = arith.constant 0 : index
    %387 = vector.load %arg10[%386, %c0_185] : memref<128x128xbf16, #tpu.memory_space<vmem>>, vector<16x128xbf16>
    tpu.vector_store %arg10[%386, %c0_185], %385 {strides = array<i32>} : memref<128x128xbf16, #tpu.memory_space<vmem>>, vector<16x128xbf16>,
    %c8_i32 = arith.constant 8 : i32
    %c0_186 = arith.constant 0 : index
    %c0_187 = arith.constant 0 : index
    %388 = vector.load %arg10[%c0_186, %c0_187] : memref<128x128xbf16, #tpu.memory_space<vmem>>, vector<128x128xbf16>
    %c1 = arith.constant 1 : index
    %c0_188 = arith.constant 0 : index
    %c0_189 = arith.constant 0 : index
    %389 = vector.load %arg2[%c1, %c0_188, %c0_189] : memref<2x128x512xbf16, #tpu.memory_space<vmem>>, vector<1x128x512xbf16>
    %390 = vector.shape_cast %389 : vector<1x128x512xbf16> to vector<128x512xbf16>
    %cst_190 = arith.constant dense<0.000000e+00> : vector<128x512xf32>
    %391 = tpu.matmul %388, %390, %cst_190 {dimension_numbers = #tpu.dot_dimension_numbers<[1], [0], [0], [1], [0, 0, 1, 1], [], []>} : vector<128x128xbf16>, vector<128x512xbf16>, vector<128x512xf32> -> vector<128x512xf32>
    %c1_191 = arith.constant 1 : index
    %c0_192 = arith.constant 0 : index
    %c0_193 = arith.constant 0 : index
    %392 = vector.load %arg4[%c1_191, %c0_192, %c0_193] : memref<2x1x512xf32, #tpu.memory_space<vmem>>, vector<1x1x512xf32>
    %393 = vector.shape_cast %392 : vector<1x1x512xf32> to vector<1x512xf32>
    %394 = vector.broadcast %393 : vector<1x512xf32> to vector<128x512xf32>
    %395 = arith.addf %391, %394 : vector<128x512xf32>
    %c0_194 = arith.constant 0 : index
    %c0_195 = arith.constant 0 : index
    %396 = vector.load %arg11[%c0_194, %c0_195] : memref<128x512xf32, #tpu.memory_space<vmem>>, vector<128x512xf32>
    tpu.vector_store %arg11[%c0_194, %c0_195], %395 {strides = array<i32>} : memref<128x512xf32, #tpu.memory_space<vmem>>, vector<128x512xf32>,
    %c0_i32_196 = arith.constant 0 : i32
    %c16_i32_197 = arith.constant 16 : i32
    %397 = arith.muli %c0_i32_196, %c16_i32_197 : i32
    %398 = tpu.assume_multiple %397, 16 : i32
    %c1_198 = arith.constant 1 : index
    %c0_199 = arith.constant 0 : index
    %c0_200 = arith.constant 0 : index
    %399 = vector.load %arg8[%c1_198, %c0_199, %c0_200] : memref<2x16x128xf32, #tpu.memory_space<vmem>>, vector<1x16x128xf32>
    %400 = vector.shape_cast %399 : vector<1x16x128xf32> to vector<16x128xf32>
    %c1_201 = arith.constant 1 : index
    %c0_202 = arith.constant 0 : index
    %c0_203 = arith.constant 0 : index
    %401 = vector.load %arg9[%c1_201, %c0_202, %c0_203] : memref<2x16x128xf32, #tpu.memory_space<vmem>>, vector<1x16x128xf32>
    %402 = vector.shape_cast %401 : vector<1x16x128xf32> to vector<16x128xf32>
    %403 = arith.index_cast %398 : i32 to index
    %c0_204 = arith.constant 0 : index
    %404 = vector.load %arg11[%403, %c0_204] : memref<128x512xf32, #tpu.memory_space<vmem>>, vector<16x512xf32>
    %405 = arith.truncf %400 : vector<16x128xf32> to vector<16x128xbf16>
    %c1_205 = arith.constant 1 : index
    %c0_206 = arith.constant 0 : index
    %c0_207 = arith.constant 0 : index
    %406 = vector.load %arg3[%c1_205, %c0_206, %c0_207] : memref<2x128x512xbf16, #tpu.memory_space<vmem>>, vector<1x128x512xbf16>
    %407 = vector.shape_cast %406 : vector<1x128x512xbf16> to vector<128x512xbf16>
    %cst_208 = arith.constant dense<0.000000e+00> : vector<16x512xf32>
    %408 = tpu.matmul %405, %407, %cst_208 {dimension_numbers = #tpu.dot_dimension_numbers<[1], [0], [0], [1], [0, 0, 1, 1], [], []>} : vector<16x128xbf16>, vector<128x512xbf16>, vector<16x512xf32> -> vector<16x512xf32>
    %409 = arith.addf %404, %408 : vector<16x512xf32>
    %410 = vector.extract_strided_slice %409 {offsets = [0, 0], sizes = [16, 128], strides = [1, 1]} : vector<16x512xf32> to vector<16x128xf32>
    %411 = arith.negf %410 : vector<16x128xf32>
    %412 = math.exp %411 : vector<16x128xf32>
    %cst_209 = arith.constant 1.000000e+00 : f32
    %413 = vector.broadcast %cst_209 : f32 to vector<16x128xf32>
    %414 = arith.addf %413, %412 : vector<16x128xf32>
    %415 = arith.divf %413, %414 : vector<16x128xf32>
    %416 = vector.extract_strided_slice %409 {offsets = [0, 128], sizes = [16, 128], strides = [1, 1]} : vector<16x512xf32> to vector<16x128xf32>
    %417 = arith.negf %416 : vector<16x128xf32>
    %418 = math.exp %417 : vector<16x128xf32>
    %cst_210 = arith.constant 1.000000e+00 : f32
    %419 = vector.broadcast %cst_210 : f32 to vector<16x128xf32>
    %420 = arith.addf %419, %418 : vector<16x128xf32>
    %421 = arith.divf %419, %420 : vector<16x128xf32>
    %422 = vector.extract_strided_slice %409 {offsets = [0, 256], sizes = [16, 128], strides = [1, 1]} : vector<16x512xf32> to vector<16x128xf32>
    %423 = math.tanh %422 : vector<16x128xf32>
    %424 = vector.extract_strided_slice %409 {offsets = [0, 384], sizes = [16, 128], strides = [1, 1]} : vector<16x512xf32> to vector<16x128xf32>
    %425 = arith.negf %424 : vector<16x128xf32>
    %426 = math.exp %425 : vector<16x128xf32>
    %cst_211 = arith.constant 1.000000e+00 : f32
    %427 = vector.broadcast %cst_211 : f32 to vector<16x128xf32>
    %428 = arith.addf %427, %426 : vector<16x128xf32>
    %429 = arith.divf %427, %428 : vector<16x128xf32>
    %430 = arith.mulf %421, %402 : vector<16x128xf32>
    %431 = arith.mulf %415, %423 : vector<16x128xf32>
    %432 = arith.addf %430, %431 : vector<16x128xf32>
    %433 = math.tanh %432 : vector<16x128xf32>
    %434 = arith.mulf %429, %433 : vector<16x128xf32>
    %c1_212 = arith.constant 1 : index
    %c0_213 = arith.constant 0 : index
    %c0_214 = arith.constant 0 : index
    %435 = vector.load %arg8[%c1_212, %c0_213, %c0_214] : memref<2x16x128xf32, #tpu.memory_space<vmem>>, vector<1x16x128xf32>
    %436 = vector.shape_cast %435 : vector<1x16x128xf32> to vector<16x128xf32>
    %437 = vector.shape_cast %434 : vector<16x128xf32> to vector<1x16x128xf32>
    tpu.vector_store %arg8[%c1_212, %c0_213, %c0_214], %437 {strides = array<i32>} : memref<2x16x128xf32, #tpu.memory_space<vmem>>, vector<1x16x128xf32>,
    %c1_215 = arith.constant 1 : index
    %c0_216 = arith.constant 0 : index
    %c0_217 = arith.constant 0 : index
    %438 = vector.load %arg9[%c1_215, %c0_216, %c0_217] : memref<2x16x128xf32, #tpu.memory_space<vmem>>, vector<1x16x128xf32>
    %439 = vector.shape_cast %438 : vector<1x16x128xf32> to vector<16x128xf32>
    %440 = vector.shape_cast %432 : vector<16x128xf32> to vector<1x16x128xf32>
    tpu.vector_store %arg9[%c1_215, %c0_216, %c0_217], %440 {strides = array<i32>} : memref<2x16x128xf32, #tpu.memory_space<vmem>>, vector<1x16x128xf32>,
    %441 = arith.truncf %434 : vector<16x128xf32> to vector<16x128xbf16>
    %442 = arith.index_cast %398 : i32 to index
    %c0_218 = arith.constant 0 : index
    %443 = vector.load %arg10[%442, %c0_218] : memref<128x128xbf16, #tpu.memory_space<vmem>>, vector<16x128xbf16>
    tpu.vector_store %arg10[%442, %c0_218], %441 {strides = array<i32>} : memref<128x128xbf16, #tpu.memory_space<vmem>>, vector<16x128xbf16>,
    %c1_i32_219 = arith.constant 1 : i32
    %c16_i32_220 = arith.constant 16 : i32
    %444 = arith.muli %c1_i32_219, %c16_i32_220 : i32
    %445 = tpu.assume_multiple %444, 16 : i32
    %c1_221 = arith.constant 1 : index
    %c0_222 = arith.constant 0 : index
    %c0_223 = arith.constant 0 : index
    %446 = vector.load %arg8[%c1_221, %c0_222, %c0_223] : memref<2x16x128xf32, #tpu.memory_space<vmem>>, vector<1x16x128xf32>
    %447 = vector.shape_cast %446 : vector<1x16x128xf32> to vector<16x128xf32>
    %c1_224 = arith.constant 1 : index
    %c0_225 = arith.constant 0 : index
    %c0_226 = arith.constant 0 : index
    %448 = vector.load %arg9[%c1_224, %c0_225, %c0_226] : memref<2x16x128xf32, #tpu.memory_space<vmem>>, vector<1x16x128xf32>
    %449 = vector.shape_cast %448 : vector<1x16x128xf32> to vector<16x128xf32>
    %450 = arith.index_cast %445 : i32 to index
    %c0_227 = arith.constant 0 : index
    %451 = vector.load %arg11[%450, %c0_227] : memref<128x512xf32, #tpu.memory_space<vmem>>, vector<16x512xf32>
    %452 = arith.truncf %447 : vector<16x128xf32> to vector<16x128xbf16>
    %c1_228 = arith.constant 1 : index
    %c0_229 = arith.constant 0 : index
    %c0_230 = arith.constant 0 : index
    %453 = vector.load %arg3[%c1_228, %c0_229, %c0_230] : memref<2x128x512xbf16, #tpu.memory_space<vmem>>, vector<1x128x512xbf16>
    %454 = vector.shape_cast %453 : vector<1x128x512xbf16> to vector<128x512xbf16>
    %cst_231 = arith.constant dense<0.000000e+00> : vector<16x512xf32>
    %455 = tpu.matmul %452, %454, %cst_231 {dimension_numbers = #tpu.dot_dimension_numbers<[1], [0], [0], [1], [0, 0, 1, 1], [], []>} : vector<16x128xbf16>, vector<128x512xbf16>, vector<16x512xf32> -> vector<16x512xf32>
    %456 = arith.addf %451, %455 : vector<16x512xf32>
    %457 = vector.extract_strided_slice %456 {offsets = [0, 0], sizes = [16, 128], strides = [1, 1]} : vector<16x512xf32> to vector<16x128xf32>
    %458 = arith.negf %457 : vector<16x128xf32>
    %459 = math.exp %458 : vector<16x128xf32>
    %cst_232 = arith.constant 1.000000e+00 : f32
    %460 = vector.broadcast %cst_232 : f32 to vector<16x128xf32>
    %461 = arith.addf %460, %459 : vector<16x128xf32>
    %462 = arith.divf %460, %461 : vector<16x128xf32>
    %463 = vector.extract_strided_slice %456 {offsets = [0, 128], sizes = [16, 128], strides = [1, 1]} : vector<16x512xf32> to vector<16x128xf32>
    %464 = arith.negf %463 : vector<16x128xf32>
    %465 = math.exp %464 : vector<16x128xf32>
    %cst_233 = arith.constant 1.000000e+00 : f32
    %466 = vector.broadcast %cst_233 : f32 to vector<16x128xf32>
    %467 = arith.addf %466, %465 : vector<16x128xf32>
    %468 = arith.divf %466, %467 : vector<16x128xf32>
    %469 = vector.extract_strided_slice %456 {offsets = [0, 256], sizes = [16, 128], strides = [1, 1]} : vector<16x512xf32> to vector<16x128xf32>
    %470 = math.tanh %469 : vector<16x128xf32>
    %471 = vector.extract_strided_slice %456 {offsets = [0, 384], sizes = [16, 128], strides = [1, 1]} : vector<16x512xf32> to vector<16x128xf32>
    %472 = arith.negf %471 : vector<16x128xf32>
    %473 = math.exp %472 : vector<16x128xf32>
    %cst_234 = arith.constant 1.000000e+00 : f32
    %474 = vector.broadcast %cst_234 : f32 to vector<16x128xf32>
    %475 = arith.addf %474, %473 : vector<16x128xf32>
    %476 = arith.divf %474, %475 : vector<16x128xf32>
    %477 = arith.mulf %468, %449 : vector<16x128xf32>
    %478 = arith.mulf %462, %470 : vector<16x128xf32>
    %479 = arith.addf %477, %478 : vector<16x128xf32>
    %480 = math.tanh %479 : vector<16x128xf32>
    %481 = arith.mulf %476, %480 : vector<16x128xf32>
    %c1_235 = arith.constant 1 : index
    %c0_236 = arith.constant 0 : index
    %c0_237 = arith.constant 0 : index
    %482 = vector.load %arg8[%c1_235, %c0_236, %c0_237] : memref<2x16x128xf32, #tpu.memory_space<vmem>>, vector<1x16x128xf32>
    %483 = vector.shape_cast %482 : vector<1x16x128xf32> to vector<16x128xf32>
    %484 = vector.shape_cast %481 : vector<16x128xf32> to vector<1x16x128xf32>
    tpu.vector_store %arg8[%c1_235, %c0_236, %c0_237], %484 {strides = array<i32>} : memref<2x16x128xf32, #tpu.memory_space<vmem>>, vector<1x16x128xf32>,
    %c1_238 = arith.constant 1 : index
    %c0_239 = arith.constant 0 : index
    %c0_240 = arith.constant 0 : index
    %485 = vector.load %arg9[%c1_238, %c0_239, %c0_240] : memref<2x16x128xf32, #tpu.memory_space<vmem>>, vector<1x16x128xf32>
    %486 = vector.shape_cast %485 : vector<1x16x128xf32> to vector<16x128xf32>
    %487 = vector.shape_cast %479 : vector<16x128xf32> to vector<1x16x128xf32>
    tpu.vector_store %arg9[%c1_238, %c0_239, %c0_240], %487 {strides = array<i32>} : memref<2x16x128xf32, #tpu.memory_space<vmem>>, vector<1x16x128xf32>,
    %488 = arith.truncf %481 : vector<16x128xf32> to vector<16x128xbf16>
    %489 = arith.index_cast %445 : i32 to index
    %c0_241 = arith.constant 0 : index
    %490 = vector.load %arg10[%489, %c0_241] : memref<128x128xbf16, #tpu.memory_space<vmem>>, vector<16x128xbf16>
    tpu.vector_store %arg10[%489, %c0_241], %488 {strides = array<i32>} : memref<128x128xbf16, #tpu.memory_space<vmem>>, vector<16x128xbf16>,
    %c2_i32_242 = arith.constant 2 : i32
    %c16_i32_243 = arith.constant 16 : i32
    %491 = arith.muli %c2_i32_242, %c16_i32_243 : i32
    %492 = tpu.assume_multiple %491, 16 : i32
    %c1_244 = arith.constant 1 : index
    %c0_245 = arith.constant 0 : index
    %c0_246 = arith.constant 0 : index
    %493 = vector.load %arg8[%c1_244, %c0_245, %c0_246] : memref<2x16x128xf32, #tpu.memory_space<vmem>>, vector<1x16x128xf32>
    %494 = vector.shape_cast %493 : vector<1x16x128xf32> to vector<16x128xf32>
    %c1_247 = arith.constant 1 : index
    %c0_248 = arith.constant 0 : index
    %c0_249 = arith.constant 0 : index
    %495 = vector.load %arg9[%c1_247, %c0_248, %c0_249] : memref<2x16x128xf32, #tpu.memory_space<vmem>>, vector<1x16x128xf32>
    %496 = vector.shape_cast %495 : vector<1x16x128xf32> to vector<16x128xf32>
    %497 = arith.index_cast %492 : i32 to index
    %c0_250 = arith.constant 0 : index
    %498 = vector.load %arg11[%497, %c0_250] : memref<128x512xf32, #tpu.memory_space<vmem>>, vector<16x512xf32>
    %499 = arith.truncf %494 : vector<16x128xf32> to vector<16x128xbf16>
    %c1_251 = arith.constant 1 : index
    %c0_252 = arith.constant 0 : index
    %c0_253 = arith.constant 0 : index
    %500 = vector.load %arg3[%c1_251, %c0_252, %c0_253] : memref<2x128x512xbf16, #tpu.memory_space<vmem>>, vector<1x128x512xbf16>
    %501 = vector.shape_cast %500 : vector<1x128x512xbf16> to vector<128x512xbf16>
    %cst_254 = arith.constant dense<0.000000e+00> : vector<16x512xf32>
    %502 = tpu.matmul %499, %501, %cst_254 {dimension_numbers = #tpu.dot_dimension_numbers<[1], [0], [0], [1], [0, 0, 1, 1], [], []>} : vector<16x128xbf16>, vector<128x512xbf16>, vector<16x512xf32> -> vector<16x512xf32>
    %503 = arith.addf %498, %502 : vector<16x512xf32>
    %504 = vector.extract_strided_slice %503 {offsets = [0, 0], sizes = [16, 128], strides = [1, 1]} : vector<16x512xf32> to vector<16x128xf32>
    %505 = arith.negf %504 : vector<16x128xf32>
    %506 = math.exp %505 : vector<16x128xf32>
    %cst_255 = arith.constant 1.000000e+00 : f32
    %507 = vector.broadcast %cst_255 : f32 to vector<16x128xf32>
    %508 = arith.addf %507, %506 : vector<16x128xf32>
    %509 = arith.divf %507, %508 : vector<16x128xf32>
    %510 = vector.extract_strided_slice %503 {offsets = [0, 128], sizes = [16, 128], strides = [1, 1]} : vector<16x512xf32> to vector<16x128xf32>
    %511 = arith.negf %510 : vector<16x128xf32>
    %512 = math.exp %511 : vector<16x128xf32>
    %cst_256 = arith.constant 1.000000e+00 : f32
    %513 = vector.broadcast %cst_256 : f32 to vector<16x128xf32>
    %514 = arith.addf %513, %512 : vector<16x128xf32>
    %515 = arith.divf %513, %514 : vector<16x128xf32>
    %516 = vector.extract_strided_slice %503 {offsets = [0, 256], sizes = [16, 128], strides = [1, 1]} : vector<16x512xf32> to vector<16x128xf32>
    %517 = math.tanh %516 : vector<16x128xf32>
    %518 = vector.extract_strided_slice %503 {offsets = [0, 384], sizes = [16, 128], strides = [1, 1]} : vector<16x512xf32> to vector<16x128xf32>
    %519 = arith.negf %518 : vector<16x128xf32>
    %520 = math.exp %519 : vector<16x128xf32>
    %cst_257 = arith.constant 1.000000e+00 : f32
    %521 = vector.broadcast %cst_257 : f32 to vector<16x128xf32>
    %522 = arith.addf %521, %520 : vector<16x128xf32>
    %523 = arith.divf %521, %522 : vector<16x128xf32>
    %524 = arith.mulf %515, %496 : vector<16x128xf32>
    %525 = arith.mulf %509, %517 : vector<16x128xf32>
    %526 = arith.addf %524, %525 : vector<16x128xf32>
    %527 = math.tanh %526 : vector<16x128xf32>
    %528 = arith.mulf %523, %527 : vector<16x128xf32>
    %c1_258 = arith.constant 1 : index
    %c0_259 = arith.constant 0 : index
    %c0_260 = arith.constant 0 : index
    %529 = vector.load %arg8[%c1_258, %c0_259, %c0_260] : memref<2x16x128xf32, #tpu.memory_space<vmem>>, vector<1x16x128xf32>
    %530 = vector.shape_cast %529 : vector<1x16x128xf32> to vector<16x128xf32>
    %531 = vector.shape_cast %528 : vector<16x128xf32> to vector<1x16x128xf32>
    tpu.vector_store %arg8[%c1_258, %c0_259, %c0_260], %531 {strides = array<i32>} : memref<2x16x128xf32, #tpu.memory_space<vmem>>, vector<1x16x128xf32>,
    %c1_261 = arith.constant 1 : index
    %c0_262 = arith.constant 0 : index
    %c0_263 = arith.constant 0 : index
    %532 = vector.load %arg9[%c1_261, %c0_262, %c0_263] : memref<2x16x128xf32, #tpu.memory_space<vmem>>, vector<1x16x128xf32>
    %533 = vector.shape_cast %532 : vector<1x16x128xf32> to vector<16x128xf32>
    %534 = vector.shape_cast %526 : vector<16x128xf32> to vector<1x16x128xf32>
    tpu.vector_store %arg9[%c1_261, %c0_262, %c0_263], %534 {strides = array<i32>} : memref<2x16x128xf32, #tpu.memory_space<vmem>>, vector<1x16x128xf32>,
    %535 = arith.truncf %528 : vector<16x128xf32> to vector<16x128xbf16>
    %536 = arith.index_cast %492 : i32 to index
    %c0_264 = arith.constant 0 : index
    %537 = vector.load %arg10[%536, %c0_264] : memref<128x128xbf16, #tpu.memory_space<vmem>>, vector<16x128xbf16>
    tpu.vector_store %arg10[%536, %c0_264], %535 {strides = array<i32>} : memref<128x128xbf16, #tpu.memory_space<vmem>>, vector<16x128xbf16>,
    %c3_i32_265 = arith.constant 3 : i32
    %c16_i32_266 = arith.constant 16 : i32
    %538 = arith.muli %c3_i32_265, %c16_i32_266 : i32
    %539 = tpu.assume_multiple %538, 16 : i32
    %c1_267 = arith.constant 1 : index
    %c0_268 = arith.constant 0 : index
    %c0_269 = arith.constant 0 : index
    %540 = vector.load %arg8[%c1_267, %c0_268, %c0_269] : memref<2x16x128xf32, #tpu.memory_space<vmem>>, vector<1x16x128xf32>
    %541 = vector.shape_cast %540 : vector<1x16x128xf32> to vector<16x128xf32>
    %c1_270 = arith.constant 1 : index
    %c0_271 = arith.constant 0 : index
    %c0_272 = arith.constant 0 : index
    %542 = vector.load %arg9[%c1_270, %c0_271, %c0_272] : memref<2x16x128xf32, #tpu.memory_space<vmem>>, vector<1x16x128xf32>
    %543 = vector.shape_cast %542 : vector<1x16x128xf32> to vector<16x128xf32>
    %544 = arith.index_cast %539 : i32 to index
    %c0_273 = arith.constant 0 : index
    %545 = vector.load %arg11[%544, %c0_273] : memref<128x512xf32, #tpu.memory_space<vmem>>, vector<16x512xf32>
    %546 = arith.truncf %541 : vector<16x128xf32> to vector<16x128xbf16>
    %c1_274 = arith.constant 1 : index
    %c0_275 = arith.constant 0 : index
    %c0_276 = arith.constant 0 : index
    %547 = vector.load %arg3[%c1_274, %c0_275, %c0_276] : memref<2x128x512xbf16, #tpu.memory_space<vmem>>, vector<1x128x512xbf16>
    %548 = vector.shape_cast %547 : vector<1x128x512xbf16> to vector<128x512xbf16>
    %cst_277 = arith.constant dense<0.000000e+00> : vector<16x512xf32>
    %549 = tpu.matmul %546, %548, %cst_277 {dimension_numbers = #tpu.dot_dimension_numbers<[1], [0], [0], [1], [0, 0, 1, 1], [], []>} : vector<16x128xbf16>, vector<128x512xbf16>, vector<16x512xf32> -> vector<16x512xf32>
    %550 = arith.addf %545, %549 : vector<16x512xf32>
    %551 = vector.extract_strided_slice %550 {offsets = [0, 0], sizes = [16, 128], strides = [1, 1]} : vector<16x512xf32> to vector<16x128xf32>
    %552 = arith.negf %551 : vector<16x128xf32>
    %553 = math.exp %552 : vector<16x128xf32>
    %cst_278 = arith.constant 1.000000e+00 : f32
    %554 = vector.broadcast %cst_278 : f32 to vector<16x128xf32>
    %555 = arith.addf %554, %553 : vector<16x128xf32>
    %556 = arith.divf %554, %555 : vector<16x128xf32>
    %557 = vector.extract_strided_slice %550 {offsets = [0, 128], sizes = [16, 128], strides = [1, 1]} : vector<16x512xf32> to vector<16x128xf32>
    %558 = arith.negf %557 : vector<16x128xf32>
    %559 = math.exp %558 : vector<16x128xf32>
    %cst_279 = arith.constant 1.000000e+00 : f32
    %560 = vector.broadcast %cst_279 : f32 to vector<16x128xf32>
    %561 = arith.addf %560, %559 : vector<16x128xf32>
    %562 = arith.divf %560, %561 : vector<16x128xf32>
    %563 = vector.extract_strided_slice %550 {offsets = [0, 256], sizes = [16, 128], strides = [1, 1]} : vector<16x512xf32> to vector<16x128xf32>
    %564 = math.tanh %563 : vector<16x128xf32>
    %565 = vector.extract_strided_slice %550 {offsets = [0, 384], sizes = [16, 128], strides = [1, 1]} : vector<16x512xf32> to vector<16x128xf32>
    %566 = arith.negf %565 : vector<16x128xf32>
    %567 = math.exp %566 : vector<16x128xf32>
    %cst_280 = arith.constant 1.000000e+00 : f32
    %568 = vector.broadcast %cst_280 : f32 to vector<16x128xf32>
    %569 = arith.addf %568, %567 : vector<16x128xf32>
    %570 = arith.divf %568, %569 : vector<16x128xf32>
    %571 = arith.mulf %562, %543 : vector<16x128xf32>
    %572 = arith.mulf %556, %564 : vector<16x128xf32>
    %573 = arith.addf %571, %572 : vector<16x128xf32>
    %574 = math.tanh %573 : vector<16x128xf32>
    %575 = arith.mulf %570, %574 : vector<16x128xf32>
    %c1_281 = arith.constant 1 : index
    %c0_282 = arith.constant 0 : index
    %c0_283 = arith.constant 0 : index
    %576 = vector.load %arg8[%c1_281, %c0_282, %c0_283] : memref<2x16x128xf32, #tpu.memory_space<vmem>>, vector<1x16x128xf32>
    %577 = vector.shape_cast %576 : vector<1x16x128xf32> to vector<16x128xf32>
    %578 = vector.shape_cast %575 : vector<16x128xf32> to vector<1x16x128xf32>
    tpu.vector_store %arg8[%c1_281, %c0_282, %c0_283], %578 {strides = array<i32>} : memref<2x16x128xf32, #tpu.memory_space<vmem>>, vector<1x16x128xf32>,
    %c1_284 = arith.constant 1 : index
    %c0_285 = arith.constant 0 : index
    %c0_286 = arith.constant 0 : index
    %579 = vector.load %arg9[%c1_284, %c0_285, %c0_286] : memref<2x16x128xf32, #tpu.memory_space<vmem>>, vector<1x16x128xf32>
    %580 = vector.shape_cast %579 : vector<1x16x128xf32> to vector<16x128xf32>
    %581 = vector.shape_cast %573 : vector<16x128xf32> to vector<1x16x128xf32>
    tpu.vector_store %arg9[%c1_284, %c0_285, %c0_286], %581 {strides = array<i32>} : memref<2x16x128xf32, #tpu.memory_space<vmem>>, vector<1x16x128xf32>,
    %582 = arith.truncf %575 : vector<16x128xf32> to vector<16x128xbf16>
    %583 = arith.index_cast %539 : i32 to index
    %c0_287 = arith.constant 0 : index
    %584 = vector.load %arg10[%583, %c0_287] : memref<128x128xbf16, #tpu.memory_space<vmem>>, vector<16x128xbf16>
    tpu.vector_store %arg10[%583, %c0_287], %582 {strides = array<i32>} : memref<128x128xbf16, #tpu.memory_space<vmem>>, vector<16x128xbf16>,
    %c4_i32_288 = arith.constant 4 : i32
    %c16_i32_289 = arith.constant 16 : i32
    %585 = arith.muli %c4_i32_288, %c16_i32_289 : i32
    %586 = tpu.assume_multiple %585, 16 : i32
    %c1_290 = arith.constant 1 : index
    %c0_291 = arith.constant 0 : index
    %c0_292 = arith.constant 0 : index
    %587 = vector.load %arg8[%c1_290, %c0_291, %c0_292] : memref<2x16x128xf32, #tpu.memory_space<vmem>>, vector<1x16x128xf32>
    %588 = vector.shape_cast %587 : vector<1x16x128xf32> to vector<16x128xf32>
    %c1_293 = arith.constant 1 : index
    %c0_294 = arith.constant 0 : index
    %c0_295 = arith.constant 0 : index
    %589 = vector.load %arg9[%c1_293, %c0_294, %c0_295] : memref<2x16x128xf32, #tpu.memory_space<vmem>>, vector<1x16x128xf32>
    %590 = vector.shape_cast %589 : vector<1x16x128xf32> to vector<16x128xf32>
    %591 = arith.index_cast %586 : i32 to index
    %c0_296 = arith.constant 0 : index
    %592 = vector.load %arg11[%591, %c0_296] : memref<128x512xf32, #tpu.memory_space<vmem>>, vector<16x512xf32>
    %593 = arith.truncf %588 : vector<16x128xf32> to vector<16x128xbf16>
    %c1_297 = arith.constant 1 : index
    %c0_298 = arith.constant 0 : index
    %c0_299 = arith.constant 0 : index
    %594 = vector.load %arg3[%c1_297, %c0_298, %c0_299] : memref<2x128x512xbf16, #tpu.memory_space<vmem>>, vector<1x128x512xbf16>
    %595 = vector.shape_cast %594 : vector<1x128x512xbf16> to vector<128x512xbf16>
    %cst_300 = arith.constant dense<0.000000e+00> : vector<16x512xf32>
    %596 = tpu.matmul %593, %595, %cst_300 {dimension_numbers = #tpu.dot_dimension_numbers<[1], [0], [0], [1], [0, 0, 1, 1], [], []>} : vector<16x128xbf16>, vector<128x512xbf16>, vector<16x512xf32> -> vector<16x512xf32>
    %597 = arith.addf %592, %596 : vector<16x512xf32>
    %598 = vector.extract_strided_slice %597 {offsets = [0, 0], sizes = [16, 128], strides = [1, 1]} : vector<16x512xf32> to vector<16x128xf32>
    %599 = arith.negf %598 : vector<16x128xf32>
    %600 = math.exp %599 : vector<16x128xf32>
    %cst_301 = arith.constant 1.000000e+00 : f32
    %601 = vector.broadcast %cst_301 : f32 to vector<16x128xf32>
    %602 = arith.addf %601, %600 : vector<16x128xf32>
    %603 = arith.divf %601, %602 : vector<16x128xf32>
    %604 = vector.extract_strided_slice %597 {offsets = [0, 128], sizes = [16, 128], strides = [1, 1]} : vector<16x512xf32> to vector<16x128xf32>
    %605 = arith.negf %604 : vector<16x128xf32>
    %606 = math.exp %605 : vector<16x128xf32>
    %cst_302 = arith.constant 1.000000e+00 : f32
    %607 = vector.broadcast %cst_302 : f32 to vector<16x128xf32>
    %608 = arith.addf %607, %606 : vector<16x128xf32>
    %609 = arith.divf %607, %608 : vector<16x128xf32>
    %610 = vector.extract_strided_slice %597 {offsets = [0, 256], sizes = [16, 128], strides = [1, 1]} : vector<16x512xf32> to vector<16x128xf32>
    %611 = math.tanh %610 : vector<16x128xf32>
    %612 = vector.extract_strided_slice %597 {offsets = [0, 384], sizes = [16, 128], strides = [1, 1]} : vector<16x512xf32> to vector<16x128xf32>
    %613 = arith.negf %612 : vector<16x128xf32>
    %614 = math.exp %613 : vector<16x128xf32>
    %cst_303 = arith.constant 1.000000e+00 : f32
    %615 = vector.broadcast %cst_303 : f32 to vector<16x128xf32>
    %616 = arith.addf %615, %614 : vector<16x128xf32>
    %617 = arith.divf %615, %616 : vector<16x128xf32>
    %618 = arith.mulf %609, %590 : vector<16x128xf32>
    %619 = arith.mulf %603, %611 : vector<16x128xf32>
    %620 = arith.addf %618, %619 : vector<16x128xf32>
    %621 = math.tanh %620 : vector<16x128xf32>
    %622 = arith.mulf %617, %621 : vector<16x128xf32>
    %c1_304 = arith.constant 1 : index
    %c0_305 = arith.constant 0 : index
    %c0_306 = arith.constant 0 : index
    %623 = vector.load %arg8[%c1_304, %c0_305, %c0_306] : memref<2x16x128xf32, #tpu.memory_space<vmem>>, vector<1x16x128xf32>
    %624 = vector.shape_cast %623 : vector<1x16x128xf32> to vector<16x128xf32>
    %625 = vector.shape_cast %622 : vector<16x128xf32> to vector<1x16x128xf32>
    tpu.vector_store %arg8[%c1_304, %c0_305, %c0_306], %625 {strides = array<i32>} : memref<2x16x128xf32, #tpu.memory_space<vmem>>, vector<1x16x128xf32>,
    %c1_307 = arith.constant 1 : index
    %c0_308 = arith.constant 0 : index
    %c0_309 = arith.constant 0 : index
    %626 = vector.load %arg9[%c1_307, %c0_308, %c0_309] : memref<2x16x128xf32, #tpu.memory_space<vmem>>, vector<1x16x128xf32>
    %627 = vector.shape_cast %626 : vector<1x16x128xf32> to vector<16x128xf32>
    %628 = vector.shape_cast %620 : vector<16x128xf32> to vector<1x16x128xf32>
    tpu.vector_store %arg9[%c1_307, %c0_308, %c0_309], %628 {strides = array<i32>} : memref<2x16x128xf32, #tpu.memory_space<vmem>>, vector<1x16x128xf32>,
    %629 = arith.truncf %622 : vector<16x128xf32> to vector<16x128xbf16>
    %630 = arith.index_cast %586 : i32 to index
    %c0_310 = arith.constant 0 : index
    %631 = vector.load %arg10[%630, %c0_310] : memref<128x128xbf16, #tpu.memory_space<vmem>>, vector<16x128xbf16>
    tpu.vector_store %arg10[%630, %c0_310], %629 {strides = array<i32>} : memref<128x128xbf16, #tpu.memory_space<vmem>>, vector<16x128xbf16>,
    %c5_i32_311 = arith.constant 5 : i32
    %c16_i32_312 = arith.constant 16 : i32
    %632 = arith.muli %c5_i32_311, %c16_i32_312 : i32
    %633 = tpu.assume_multiple %632, 16 : i32
    %c1_313 = arith.constant 1 : index
    %c0_314 = arith.constant 0 : index
    %c0_315 = arith.constant 0 : index
    %634 = vector.load %arg8[%c1_313, %c0_314, %c0_315] : memref<2x16x128xf32, #tpu.memory_space<vmem>>, vector<1x16x128xf32>
    %635 = vector.shape_cast %634 : vector<1x16x128xf32> to vector<16x128xf32>
    %c1_316 = arith.constant 1 : index
    %c0_317 = arith.constant 0 : index
    %c0_318 = arith.constant 0 : index
    %636 = vector.load %arg9[%c1_316, %c0_317, %c0_318] : memref<2x16x128xf32, #tpu.memory_space<vmem>>, vector<1x16x128xf32>
    %637 = vector.shape_cast %636 : vector<1x16x128xf32> to vector<16x128xf32>
    %638 = arith.index_cast %633 : i32 to index
    %c0_319 = arith.constant 0 : index
    %639 = vector.load %arg11[%638, %c0_319] : memref<128x512xf32, #tpu.memory_space<vmem>>, vector<16x512xf32>
    %640 = arith.truncf %635 : vector<16x128xf32> to vector<16x128xbf16>
    %c1_320 = arith.constant 1 : index
    %c0_321 = arith.constant 0 : index
    %c0_322 = arith.constant 0 : index
    %641 = vector.load %arg3[%c1_320, %c0_321, %c0_322] : memref<2x128x512xbf16, #tpu.memory_space<vmem>>, vector<1x128x512xbf16>
    %642 = vector.shape_cast %641 : vector<1x128x512xbf16> to vector<128x512xbf16>
    %cst_323 = arith.constant dense<0.000000e+00> : vector<16x512xf32>
    %643 = tpu.matmul %640, %642, %cst_323 {dimension_numbers = #tpu.dot_dimension_numbers<[1], [0], [0], [1], [0, 0, 1, 1], [], []>} : vector<16x128xbf16>, vector<128x512xbf16>, vector<16x512xf32> -> vector<16x512xf32>
    %644 = arith.addf %639, %643 : vector<16x512xf32>
    %645 = vector.extract_strided_slice %644 {offsets = [0, 0], sizes = [16, 128], strides = [1, 1]} : vector<16x512xf32> to vector<16x128xf32>
    %646 = arith.negf %645 : vector<16x128xf32>
    %647 = math.exp %646 : vector<16x128xf32>
    %cst_324 = arith.constant 1.000000e+00 : f32
    %648 = vector.broadcast %cst_324 : f32 to vector<16x128xf32>
    %649 = arith.addf %648, %647 : vector<16x128xf32>
    %650 = arith.divf %648, %649 : vector<16x128xf32>
    %651 = vector.extract_strided_slice %644 {offsets = [0, 128], sizes = [16, 128], strides = [1, 1]} : vector<16x512xf32> to vector<16x128xf32>
    %652 = arith.negf %651 : vector<16x128xf32>
    %653 = math.exp %652 : vector<16x128xf32>
    %cst_325 = arith.constant 1.000000e+00 : f32
    %654 = vector.broadcast %cst_325 : f32 to vector<16x128xf32>
    %655 = arith.addf %654, %653 : vector<16x128xf32>
    %656 = arith.divf %654, %655 : vector<16x128xf32>
    %657 = vector.extract_strided_slice %644 {offsets = [0, 256], sizes = [16, 128], strides = [1, 1]} : vector<16x512xf32> to vector<16x128xf32>
    %658 = math.tanh %657 : vector<16x128xf32>
    %659 = vector.extract_strided_slice %644 {offsets = [0, 384], sizes = [16, 128], strides = [1, 1]} : vector<16x512xf32> to vector<16x128xf32>
    %660 = arith.negf %659 : vector<16x128xf32>
    %661 = math.exp %660 : vector<16x128xf32>
    %cst_326 = arith.constant 1.000000e+00 : f32
    %662 = vector.broadcast %cst_326 : f32 to vector<16x128xf32>
    %663 = arith.addf %662, %661 : vector<16x128xf32>
    %664 = arith.divf %662, %663 : vector<16x128xf32>
    %665 = arith.mulf %656, %637 : vector<16x128xf32>
    %666 = arith.mulf %650, %658 : vector<16x128xf32>
    %667 = arith.addf %665, %666 : vector<16x128xf32>
    %668 = math.tanh %667 : vector<16x128xf32>
    %669 = arith.mulf %664, %668 : vector<16x128xf32>
    %c1_327 = arith.constant 1 : index
    %c0_328 = arith.constant 0 : index
    %c0_329 = arith.constant 0 : index
    %670 = vector.load %arg8[%c1_327, %c0_328, %c0_329] : memref<2x16x128xf32, #tpu.memory_space<vmem>>, vector<1x16x128xf32>
    %671 = vector.shape_cast %670 : vector<1x16x128xf32> to vector<16x128xf32>
    %672 = vector.shape_cast %669 : vector<16x128xf32> to vector<1x16x128xf32>
    tpu.vector_store %arg8[%c1_327, %c0_328, %c0_329], %672 {strides = array<i32>} : memref<2x16x128xf32, #tpu.memory_space<vmem>>, vector<1x16x128xf32>,
    %c1_330 = arith.constant 1 : index
    %c0_331 = arith.constant 0 : index
    %c0_332 = arith.constant 0 : index
    %673 = vector.load %arg9[%c1_330, %c0_331, %c0_332] : memref<2x16x128xf32, #tpu.memory_space<vmem>>, vector<1x16x128xf32>
    %674 = vector.shape_cast %673 : vector<1x16x128xf32> to vector<16x128xf32>
    %675 = vector.shape_cast %667 : vector<16x128xf32> to vector<1x16x128xf32>
    tpu.vector_store %arg9[%c1_330, %c0_331, %c0_332], %675 {strides = array<i32>} : memref<2x16x128xf32, #tpu.memory_space<vmem>>, vector<1x16x128xf32>,
    %676 = arith.truncf %669 : vector<16x128xf32> to vector<16x128xbf16>
    %677 = arith.index_cast %633 : i32 to index
    %c0_333 = arith.constant 0 : index
    %678 = vector.load %arg10[%677, %c0_333] : memref<128x128xbf16, #tpu.memory_space<vmem>>, vector<16x128xbf16>
    tpu.vector_store %arg10[%677, %c0_333], %676 {strides = array<i32>} : memref<128x128xbf16, #tpu.memory_space<vmem>>, vector<16x128xbf16>,
    %c6_i32_334 = arith.constant 6 : i32
    %c16_i32_335 = arith.constant 16 : i32
    %679 = arith.muli %c6_i32_334, %c16_i32_335 : i32
    %680 = tpu.assume_multiple %679, 16 : i32
    %c1_336 = arith.constant 1 : index
    %c0_337 = arith.constant 0 : index
    %c0_338 = arith.constant 0 : index
    %681 = vector.load %arg8[%c1_336, %c0_337, %c0_338] : memref<2x16x128xf32, #tpu.memory_space<vmem>>, vector<1x16x128xf32>
    %682 = vector.shape_cast %681 : vector<1x16x128xf32> to vector<16x128xf32>
    %c1_339 = arith.constant 1 : index
    %c0_340 = arith.constant 0 : index
    %c0_341 = arith.constant 0 : index
    %683 = vector.load %arg9[%c1_339, %c0_340, %c0_341] : memref<2x16x128xf32, #tpu.memory_space<vmem>>, vector<1x16x128xf32>
    %684 = vector.shape_cast %683 : vector<1x16x128xf32> to vector<16x128xf32>
    %685 = arith.index_cast %680 : i32 to index
    %c0_342 = arith.constant 0 : index
    %686 = vector.load %arg11[%685, %c0_342] : memref<128x512xf32, #tpu.memory_space<vmem>>, vector<16x512xf32>
    %687 = arith.truncf %682 : vector<16x128xf32> to vector<16x128xbf16>
    %c1_343 = arith.constant 1 : index
    %c0_344 = arith.constant 0 : index
    %c0_345 = arith.constant 0 : index
    %688 = vector.load %arg3[%c1_343, %c0_344, %c0_345] : memref<2x128x512xbf16, #tpu.memory_space<vmem>>, vector<1x128x512xbf16>
    %689 = vector.shape_cast %688 : vector<1x128x512xbf16> to vector<128x512xbf16>
    %cst_346 = arith.constant dense<0.000000e+00> : vector<16x512xf32>
    %690 = tpu.matmul %687, %689, %cst_346 {dimension_numbers = #tpu.dot_dimension_numbers<[1], [0], [0], [1], [0, 0, 1, 1], [], []>} : vector<16x128xbf16>, vector<128x512xbf16>, vector<16x512xf32> -> vector<16x512xf32>
    %691 = arith.addf %686, %690 : vector<16x512xf32>
    %692 = vector.extract_strided_slice %691 {offsets = [0, 0], sizes = [16, 128], strides = [1, 1]} : vector<16x512xf32> to vector<16x128xf32>
    %693 = arith.negf %692 : vector<16x128xf32>
    %694 = math.exp %693 : vector<16x128xf32>
    %cst_347 = arith.constant 1.000000e+00 : f32
    %695 = vector.broadcast %cst_347 : f32 to vector<16x128xf32>
    %696 = arith.addf %695, %694 : vector<16x128xf32>
    %697 = arith.divf %695, %696 : vector<16x128xf32>
    %698 = vector.extract_strided_slice %691 {offsets = [0, 128], sizes = [16, 128], strides = [1, 1]} : vector<16x512xf32> to vector<16x128xf32>
    %699 = arith.negf %698 : vector<16x128xf32>
    %700 = math.exp %699 : vector<16x128xf32>
    %cst_348 = arith.constant 1.000000e+00 : f32
    %701 = vector.broadcast %cst_348 : f32 to vector<16x128xf32>
    %702 = arith.addf %701, %700 : vector<16x128xf32>
    %703 = arith.divf %701, %702 : vector<16x128xf32>
    %704 = vector.extract_strided_slice %691 {offsets = [0, 256], sizes = [16, 128], strides = [1, 1]} : vector<16x512xf32> to vector<16x128xf32>
    %705 = math.tanh %704 : vector<16x128xf32>
    %706 = vector.extract_strided_slice %691 {offsets = [0, 384], sizes = [16, 128], strides = [1, 1]} : vector<16x512xf32> to vector<16x128xf32>
    %707 = arith.negf %706 : vector<16x128xf32>
    %708 = math.exp %707 : vector<16x128xf32>
    %cst_349 = arith.constant 1.000000e+00 : f32
    %709 = vector.broadcast %cst_349 : f32 to vector<16x128xf32>
    %710 = arith.addf %709, %708 : vector<16x128xf32>
    %711 = arith.divf %709, %710 : vector<16x128xf32>
    %712 = arith.mulf %703, %684 : vector<16x128xf32>
    %713 = arith.mulf %697, %705 : vector<16x128xf32>
    %714 = arith.addf %712, %713 : vector<16x128xf32>
    %715 = math.tanh %714 : vector<16x128xf32>
    %716 = arith.mulf %711, %715 : vector<16x128xf32>
    %c1_350 = arith.constant 1 : index
    %c0_351 = arith.constant 0 : index
    %c0_352 = arith.constant 0 : index
    %717 = vector.load %arg8[%c1_350, %c0_351, %c0_352] : memref<2x16x128xf32, #tpu.memory_space<vmem>>, vector<1x16x128xf32>
    %718 = vector.shape_cast %717 : vector<1x16x128xf32> to vector<16x128xf32>
    %719 = vector.shape_cast %716 : vector<16x128xf32> to vector<1x16x128xf32>
    tpu.vector_store %arg8[%c1_350, %c0_351, %c0_352], %719 {strides = array<i32>} : memref<2x16x128xf32, #tpu.memory_space<vmem>>, vector<1x16x128xf32>,
    %c1_353 = arith.constant 1 : index
    %c0_354 = arith.constant 0 : index
    %c0_355 = arith.constant 0 : index
    %720 = vector.load %arg9[%c1_353, %c0_354, %c0_355] : memref<2x16x128xf32, #tpu.memory_space<vmem>>, vector<1x16x128xf32>
    %721 = vector.shape_cast %720 : vector<1x16x128xf32> to vector<16x128xf32>
    %722 = vector.shape_cast %714 : vector<16x128xf32> to vector<1x16x128xf32>
    tpu.vector_store %arg9[%c1_353, %c0_354, %c0_355], %722 {strides = array<i32>} : memref<2x16x128xf32, #tpu.memory_space<vmem>>, vector<1x16x128xf32>,
    %723 = arith.truncf %716 : vector<16x128xf32> to vector<16x128xbf16>
    %724 = arith.index_cast %680 : i32 to index
    %c0_356 = arith.constant 0 : index
    %725 = vector.load %arg10[%724, %c0_356] : memref<128x128xbf16, #tpu.memory_space<vmem>>, vector<16x128xbf16>
    tpu.vector_store %arg10[%724, %c0_356], %723 {strides = array<i32>} : memref<128x128xbf16, #tpu.memory_space<vmem>>, vector<16x128xbf16>,
    %c7_i32_357 = arith.constant 7 : i32
    %c16_i32_358 = arith.constant 16 : i32
    %726 = arith.muli %c7_i32_357, %c16_i32_358 : i32
    %727 = tpu.assume_multiple %726, 16 : i32
    %c1_359 = arith.constant 1 : index
    %c0_360 = arith.constant 0 : index
    %c0_361 = arith.constant 0 : index
    %728 = vector.load %arg8[%c1_359, %c0_360, %c0_361] : memref<2x16x128xf32, #tpu.memory_space<vmem>>, vector<1x16x128xf32>
    %729 = vector.shape_cast %728 : vector<1x16x128xf32> to vector<16x128xf32>
    %c1_362 = arith.constant 1 : index
    %c0_363 = arith.constant 0 : index
    %c0_364 = arith.constant 0 : index
    %730 = vector.load %arg9[%c1_362, %c0_363, %c0_364] : memref<2x16x128xf32, #tpu.memory_space<vmem>>, vector<1x16x128xf32>
    %731 = vector.shape_cast %730 : vector<1x16x128xf32> to vector<16x128xf32>
    %732 = arith.index_cast %727 : i32 to index
    %c0_365 = arith.constant 0 : index
    %733 = vector.load %arg11[%732, %c0_365] : memref<128x512xf32, #tpu.memory_space<vmem>>, vector<16x512xf32>
    %734 = arith.truncf %729 : vector<16x128xf32> to vector<16x128xbf16>
    %c1_366 = arith.constant 1 : index
    %c0_367 = arith.constant 0 : index
    %c0_368 = arith.constant 0 : index
    %735 = vector.load %arg3[%c1_366, %c0_367, %c0_368] : memref<2x128x512xbf16, #tpu.memory_space<vmem>>, vector<1x128x512xbf16>
    %736 = vector.shape_cast %735 : vector<1x128x512xbf16> to vector<128x512xbf16>
    %cst_369 = arith.constant dense<0.000000e+00> : vector<16x512xf32>
    %737 = tpu.matmul %734, %736, %cst_369 {dimension_numbers = #tpu.dot_dimension_numbers<[1], [0], [0], [1], [0, 0, 1, 1], [], []>} : vector<16x128xbf16>, vector<128x512xbf16>, vector<16x512xf32> -> vector<16x512xf32>
    %738 = arith.addf %733, %737 : vector<16x512xf32>
    %739 = vector.extract_strided_slice %738 {offsets = [0, 0], sizes = [16, 128], strides = [1, 1]} : vector<16x512xf32> to vector<16x128xf32>
    %740 = arith.negf %739 : vector<16x128xf32>
    %741 = math.exp %740 : vector<16x128xf32>
    %cst_370 = arith.constant 1.000000e+00 : f32
    %742 = vector.broadcast %cst_370 : f32 to vector<16x128xf32>
    %743 = arith.addf %742, %741 : vector<16x128xf32>
    %744 = arith.divf %742, %743 : vector<16x128xf32>
    %745 = vector.extract_strided_slice %738 {offsets = [0, 128], sizes = [16, 128], strides = [1, 1]} : vector<16x512xf32> to vector<16x128xf32>
    %746 = arith.negf %745 : vector<16x128xf32>
    %747 = math.exp %746 : vector<16x128xf32>
    %cst_371 = arith.constant 1.000000e+00 : f32
    %748 = vector.broadcast %cst_371 : f32 to vector<16x128xf32>
    %749 = arith.addf %748, %747 : vector<16x128xf32>
    %750 = arith.divf %748, %749 : vector<16x128xf32>
    %751 = vector.extract_strided_slice %738 {offsets = [0, 256], sizes = [16, 128], strides = [1, 1]} : vector<16x512xf32> to vector<16x128xf32>
    %752 = math.tanh %751 : vector<16x128xf32>
    %753 = vector.extract_strided_slice %738 {offsets = [0, 384], sizes = [16, 128], strides = [1, 1]} : vector<16x512xf32> to vector<16x128xf32>
    %754 = arith.negf %753 : vector<16x128xf32>
    %755 = math.exp %754 : vector<16x128xf32>
    %cst_372 = arith.constant 1.000000e+00 : f32
    %756 = vector.broadcast %cst_372 : f32 to vector<16x128xf32>
    %757 = arith.addf %756, %755 : vector<16x128xf32>
    %758 = arith.divf %756, %757 : vector<16x128xf32>
    %759 = arith.mulf %750, %731 : vector<16x128xf32>
    %760 = arith.mulf %744, %752 : vector<16x128xf32>
    %761 = arith.addf %759, %760 : vector<16x128xf32>
    %762 = math.tanh %761 : vector<16x128xf32>
    %763 = arith.mulf %758, %762 : vector<16x128xf32>
    %c1_373 = arith.constant 1 : index
    %c0_374 = arith.constant 0 : index
    %c0_375 = arith.constant 0 : index
    %764 = vector.load %arg8[%c1_373, %c0_374, %c0_375] : memref<2x16x128xf32, #tpu.memory_space<vmem>>, vector<1x16x128xf32>
    %765 = vector.shape_cast %764 : vector<1x16x128xf32> to vector<16x128xf32>
    %766 = vector.shape_cast %763 : vector<16x128xf32> to vector<1x16x128xf32>
    tpu.vector_store %arg8[%c1_373, %c0_374, %c0_375], %766 {strides = array<i32>} : memref<2x16x128xf32, #tpu.memory_space<vmem>>, vector<1x16x128xf32>,
    %c1_376 = arith.constant 1 : index
    %c0_377 = arith.constant 0 : index
    %c0_378 = arith.constant 0 : index
    %767 = vector.load %arg9[%c1_376, %c0_377, %c0_378] : memref<2x16x128xf32, #tpu.memory_space<vmem>>, vector<1x16x128xf32>
    %768 = vector.shape_cast %767 : vector<1x16x128xf32> to vector<16x128xf32>
    %769 = vector.shape_cast %761 : vector<16x128xf32> to vector<1x16x128xf32>
    tpu.vector_store %arg9[%c1_376, %c0_377, %c0_378], %769 {strides = array<i32>} : memref<2x16x128xf32, #tpu.memory_space<vmem>>, vector<1x16x128xf32>,
    %770 = arith.truncf %763 : vector<16x128xf32> to vector<16x128xbf16>
    %771 = arith.index_cast %727 : i32 to index
    %c0_379 = arith.constant 0 : index
    %772 = vector.load %arg10[%771, %c0_379] : memref<128x128xbf16, #tpu.memory_space<vmem>>, vector<16x128xbf16>
    tpu.vector_store %arg10[%771, %c0_379], %770 {strides = array<i32>} : memref<128x128xbf16, #tpu.memory_space<vmem>>, vector<16x128xbf16>,
    %c8_i32_380 = arith.constant 8 : i32
    %c0_381 = arith.constant 0 : index
    %c0_382 = arith.constant 0 : index
    %773 = vector.load %arg10[%c0_381, %c0_382] : memref<128x128xbf16, #tpu.memory_space<vmem>>, vector<128x128xbf16>
    %c0_383 = arith.constant 0 : index
    %c0_384 = arith.constant 0 : index
    %774 = vector.load %arg5[%c0_383, %c0_384] : memref<128x128xbf16, #tpu.memory_space<vmem>>, vector<128x128xbf16>
    %cst_385 = arith.constant dense<0.000000e+00> : vector<128x128xf32>
    %775 = tpu.matmul %773, %774, %cst_385 {dimension_numbers = #tpu.dot_dimension_numbers<[1], [0], [0], [1], [0, 0, 1, 1], [], []>} : vector<128x128xbf16>, vector<128x128xbf16>, vector<128x128xf32> -> vector<128x128xf32>
    %c0_386 = arith.constant 0 : index
    %c0_387 = arith.constant 0 : index
    %776 = vector.load %arg6[%c0_386, %c0_387] : memref<1x128xf32, #tpu.memory_space<vmem>>, vector<1x128xf32>
    %777 = vector.broadcast %776 : vector<1x128xf32> to vector<128x128xf32>
    %778 = arith.addf %775, %777 : vector<128x128xf32>
    %c0_388 = arith.constant 0 : index
    %c0_389 = arith.constant 0 : index
    %779 = vector.load %arg7[%c0_388, %c0_389] : memref<128x128xf32, #tpu.memory_space<vmem>>, vector<128x128xf32>
    tpu.vector_store %arg7[%c0_388, %c0_389], %778 {strides = array<i32>} : memref<128x128xf32, #tpu.memory_space<vmem>>, vector<128x128xf32>,
    return
  }
  func.func @transform_0(%arg0: i32) -> (i32, i32) {
    %c0_i32 = arith.constant 0 : i32
    %c0_i32_0 = arith.constant 0 : i32
    return %arg0, %c0_i32 : i32, i32
  }
  func.func @transform_1(%arg0: i32) -> (i32, i32, i32) {
    %c0_i32 = arith.constant 0 : i32
    %c0_i32_0 = arith.constant 0 : i32
    %c0_i32_1 = arith.constant 0 : i32
    %c0_i32_2 = arith.constant 0 : i32
    return %c0_i32, %c0_i32_0, %c0_i32_1 : i32, i32, i32
  }
  func.func @transform_2(%arg0: i32) -> (i32, i32, i32) {
    %c0_i32 = arith.constant 0 : i32
    %c0_i32_0 = arith.constant 0 : i32
    %c0_i32_1 = arith.constant 0 : i32
    %c0_i32_2 = arith.constant 0 : i32
    return %c0_i32, %c0_i32_0, %c0_i32_1 : i32, i32, i32
  }
  func.func @transform_3(%arg0: i32) -> (i32, i32, i32) {
    %c0_i32 = arith.constant 0 : i32
    %c0_i32_0 = arith.constant 0 : i32
    %c0_i32_1 = arith.constant 0 : i32
    %c0_i32_2 = arith.constant 0 : i32
    return %c0_i32, %c0_i32_0, %c0_i32_1 : i32, i32, i32
  }
  func.func @transform_4(%arg0: i32) -> (i32, i32) {
    %c0_i32 = arith.constant 0 : i32
    %c0_i32_0 = arith.constant 0 : i32
    %c0_i32_1 = arith.constant 0 : i32
    return %c0_i32, %c0_i32_0 : i32, i32
  }
  func.func @transform_5(%arg0: i32) -> (i32, i32) {
    %c0_i32 = arith.constant 0 : i32
    %c0_i32_0 = arith.constant 0 : i32
    %c0_i32_1 = arith.constant 0 : i32
    return %c0_i32, %c0_i32_0 : i32, i32
  }
  func.func @transform_6(%arg0: i32) -> (i32, i32) {
    %c0_i32 = arith.constant 0 : i32
    %c0_i32_0 = arith.constant 0 : i32
    return %arg0, %c0_i32 : i32, i32
  }
}

</mosaic_0001>

<bundles_post_ra>
// kernel: forward.1
= control target key start
LH: loop header
LB: loop body
LE: loop exit
PB: predicated region body
PF: predicated region fallthrough
CT: control target
= control target key end

     0   :  { %11 = vsyncpa [#allocation7], 0  ;;  %s14006_s0 = inlined_call_operand.vmem [shape: bf16[128,128], index: 0, kind: input, shape index: {}]   ;;  %s14007_s1 = inlined_call_operand.hbm [shape: bf16[2,128,512], index: 1, kind: input, shape index: {}]   ;;  %s14008_s2 = inlined_call_operand.hbm [shape: bf16[2,128,512], index: 2, kind: input, shape index: {}]   ;;  %s14009_s3 = inlined_call_operand.vmem [shape: f32[2,1,512], index: 3, kind: input, shape index: {}]   ;;  %s14010_s4 = inlined_call_operand.vmem [shape: bf16[128,128], index: 4, kind: input, shape index: {}]   ;;  %s14011_s5 = inlined_call_operand.vmem [shape: f32[1,128], index: 5, kind: input, shape index: {}]   ;;  %s14012_s6 = inlined_call_operand.vmem [shape: f32[128,128], index: 6, kind: output, shape index: {}]  }
   0x1   :  { %s19_s23 = sshll.u32 %s14007_s1, 4  ;;  %s20_s23 = int_to_ptr.hbm [resolvable:$true] %s19_s23 }
   0x2   :  { %12 = vsyncpa [#allocation9], 0  ;;  %s11616_s24 = smov [#allocation6]   ;;  %s32_s28 = sshll.u32 %s14008_s2, 4  ;;  %s33_s28 = int_to_ptr.hbm [resolvable:$true] %s32_s28 }
   0x3   :  { %s21_s25 = sshll.u32 %s11616_s24, 4  ;;  %s11617_s29 = smov 256   ;;  %s22_s25 = int_to_ptr.vmem [resolvable:$true] %s21_s25 }
   0x4   :  { %s11618_s30 = smov 16   ;;  %s11619_s7 = smov [#allocation8]  }
   0x5   :  { %27 = dma.hbm_to_vmem [thread:$0]  %s20_s23, 8192, %s22_s25, [#allocation7], %s11617_s29, %s11617_s29, %s11618_s30  }
   0x6   :  { %s34_s8 = sshll.u32 %s11619_s7, 4  ;;  %s35_s8 = int_to_ptr.vmem [resolvable:$true] %s34_s8 }
   0x7   :  { %40 = dma.hbm_to_vmem [thread:$0]  %s33_s28, 8192, %s35_s8, [#allocation9], %s11617_s29, %s11617_s29, %s11618_s30  }
   0x8   :  { %11612 = dma.done.wait [#allocation7], 8192  }
   0x9   :  { %11613 = vsyncadd [#allocation7], 4294959104 }
   0xa   :  { %11614 = dma.done.wait [#allocation9], 8192  }
   0xb   :  { %11615 = vsyncadd [#allocation9], 4294959104  ;;  %v7959_v0 = vld [vmem:[#allocation6 + $0xe0] sm:$0xf]  ;;  %v10380_v1 = vld [vmem:[#allocation6 + $0xec] sm:$0xf0] }
   0xc   :  { %v8087_v2 = vld [vmem:[#allocation8 + $0xe0] sm:$0xf]  ;;  %v7960_v3 = vor.u32 %v10380_v1, %v7959_v0  ;;  %v10412_v4 = vld [vmem:[#allocation8 + $0xec] sm:$0xf0]  ;;  %v10378_v46 = vld [vmem:[#allocation6 + $0xe4] sm:$0xf] }
   0xd   :  { %v7943_v5 = vld [vmem:[#allocation6 + $0xc0] sm:$0xf]  ;;  %v10376_v6 = vld [vmem:[#allocation6 + $0xcc] sm:$0xf0]  ;;  %v8088_v7 = vor.u32 %v10412_v4, %v8087_v2  ;;  %v7961_v47 = vld [vmem:[#allocation6 + $0xf0] sm:$0xf0] }
   0xe   :  { %v8071_v8 = vld [vmem:[#allocation8 + $0xc0] sm:$0xf]  ;;  %v10408_v9 = vld [vmem:[#allocation8 + $0xcc] sm:$0xf0]  ;;  %333 = vmatpush.bf16.msra.mxu1 %v7960_v3  ;;  %11030 = vmatpush.bf16.msra.mxu2 %v7960_v3  ;;  %v7944_v10 = vor.u32 %v10376_v6, %v7943_v5  ;;  %v10379_v48 = vld [vmem:[#allocation6 + $0xec] sm:$0xf]  ;;  %v7964_v54 = vor.u32 %v10378_v46, %v7961_v47 }
   0xf   :  { %11031 = vmatpush.bf16.msra.mxu3 %v7960_v3  ;;  %801 = vmatpush.bf16.msra.mxu0 %v8088_v7  ;;  %v8072_v11 = vor.u32 %v10408_v9, %v8071_v8  ;;  %v7927_v12 = vld [vmem:[#allocation6 + $0xa0] sm:$0xf]  ;;  %v10372_v13 = vld [vmem:[#allocation6 + $0xac] sm:$0xf0]  ;;  %v7969_v49 = vld [vmem:[#allocation6 + $0xf8] sm:$0xf0] }
  0x10   :  { %v8055_v14 = vld [vmem:[#allocation8 + $0xa0] sm:$0xf]  ;;  %v10404_v15 = vld [vmem:[#allocation8 + $0xac] sm:$0xf0]  ;;  %v7928_v16 = vor.u32 %v10372_v13, %v7927_v12  ;;  %v11670_v53 = vld [vmem:[%s14006_s0 + $0x18] sm:$0xff]  ;;  %v7972_v55 = vor.u32 %v10379_v48, %v7969_v49  ;;  %v14013_v8 = vmov 0.0|0.0  }
  0x11   :  { %v8056_v17 = vor.u32 %v10404_v15, %v8055_v14  ;;  %v7911_v18 = vld [vmem:[#allocation6 + $0x80] sm:$0xf]  ;;  %v10368_v19 = vld [vmem:[#allocation6 + $0x8c] sm:$0xf0]  ;;  %v10375_v56 = vld [vmem:[#allocation6 + $0xcc] sm:$0xf] }
  0x12   :  { %334 = vmatpush.bf16.msra.mxu1 %v7944_v10  ;;  %11032 = vmatpush.bf16.msra.mxu2 %v7944_v10  ;;  %v8039_v20 = vld [vmem:[#allocation8 + $0x80] sm:$0xf]  ;;  %v10400_v21 = vld [vmem:[#allocation8 + $0x8c] sm:$0xf0]  ;;  %v7912_v22 = vor.u32 %v10368_v19, %v7911_v18  ;;  %v7967_v57 = vld [vmem:[#allocation6 + $0xe8] sm:$0xf] }
  0x13   :  { %11033 = vmatpush.bf16.msra.mxu3 %v7944_v10  ;;  %802 = vmatpush.bf16.msra.mxu0 %v8072_v11  ;;  %v8040_v23 = vor.u32 %v10400_v21, %v8039_v20  ;;  %v7895_v24 = vld [vmem:[#allocation6 + $0x60] sm:$0xf]  ;;  %v10364_v25 = vld [vmem:[#allocation6 + $0x6c] sm:$0xf0]  ;;  %v10381_v58 = vld [vmem:[#allocation6 + $0xf4] sm:$0xf0] }
  0x14   :  { %v8023_v26 = vld [vmem:[#allocation8 + $0x60] sm:$0xf]  ;;  %v10396_v27 = vld [vmem:[#allocation8 + $0x6c] sm:$0xf0]  ;;  %v7896_v28 = vor.u32 %v10364_v25, %v7895_v24  ;;  %v7953_v59 = vld [vmem:[#allocation6 + $0xd8] sm:$0xf0]  ;;  %v7968_v63 = vor.u32 %v10381_v58, %v7967_v57 }
  0x15   :  { %v8024_v29 = vor.u32 %v10396_v27, %v8023_v26  ;;  %v7879_v30 = vld [vmem:[#allocation6 + $0x40] sm:$0xf]  ;;  %v10360_v31 = vld [vmem:[#allocation6 + $0x4c] sm:$0xf0]  ;;  %v10374_v60 = vld [vmem:[#allocation6 + $0xc4] sm:$0xf]  ;;  %v7956_v0 = vor.u32 %v10375_v56, %v7953_v59 }
  0x16   :  { %335 = vmatpush.bf16.msra.mxu1 %v7928_v16  ;;  %11034 = vmatpush.bf16.msra.mxu2 %v7928_v16  ;;  %v8007_v32 = vld [vmem:[#allocation8 + $0x40] sm:$0xf]  ;;  %v10392_v33 = vld [vmem:[#allocation8 + $0x4c] sm:$0xf0]  ;;  %v7880_v34 = vor.u32 %v10360_v31, %v7879_v30  ;;  %v7945_v61 = vld [vmem:[#allocation6 + $0xd0] sm:$0xf0] }
  0x17   :  { %11035 = vmatpush.bf16.msra.mxu3 %v7928_v16  ;;  %803 = vmatpush.bf16.msra.mxu0 %v8056_v17  ;;  %v8008_v35 = vor.u32 %v10392_v33, %v8007_v32  ;;  %v7863_v36 = vld [vmem:[#allocation6 + $0x20] sm:$0xf]  ;;  %v10356_v37 = vld [vmem:[#allocation6 + $0x2c] sm:$0xf0]  ;;  %v7948_v1 = vor.u32 %v10374_v60, %v7945_v61  ;;  %v10371_v2 = vld [vmem:[#allocation6 + $0xac] sm:$0xf] }
  0x18   :  { %v7991_v38 = vld [vmem:[#allocation8 + $0x20] sm:$0xf]  ;;  %v10388_v39 = vld [vmem:[#allocation8 + $0x2c] sm:$0xf0]  ;;  %v7864_v40 = vor.u32 %v10356_v37, %v7863_v36  ;;  %v7951_v3 = vld [vmem:[#allocation6 + $0xc8] sm:$0xf] }
  0x19   :  { %v7992_v41 = vor.u32 %v10388_v39, %v7991_v38  ;;  %v7847_v42 = vld [vmem:[#allocation6] sm:$0xf]  ;;  %v10352_v43 = vld [vmem:[#allocation6 + $0xc] sm:$0xf0]  ;;  %v10377_v4 = vld [vmem:[#allocation6 + $0xd4] sm:$0xf0] }
  0x1a   :  { %336 = vmatpush.bf16.msra.mxu1 %v7912_v22  ;;  %11036 = vmatpush.bf16.msra.mxu2 %v7912_v22  ;;  %v7975_v44 = vld [vmem:[#allocation8] sm:$0xf]  ;;  %v10384_v45 = vld [vmem:[#allocation8 + $0xc] sm:$0xf0]  ;;  %v7848_v50 = vor.u32 %v10352_v43, %v7847_v42  ;;  %v7937_v5 = vld [vmem:[#allocation6 + $0xb8] sm:$0xf0]  ;;  %v7952_v9 = vor.u32 %v10377_v4, %v7951_v3 }
  0x1b   :  { %11037 = vmatpush.bf16.msra.mxu3 %v7912_v22  ;;  %804 = vmatpush.bf16.msra.mxu0 %v8040_v23  ;;  %v7976_v51 = vor.u32 %v10384_v45, %v7975_v44  ;;  %v11665_v52 = vld [vmem:[%s14006_s0] sm:$0xff]  ;;  %v11675_v62 = vld [vmem:[%s14006_s0 + $0x30] sm:$0xff]  ;;  %v7940_v10 = vor.u32 %v10371_v2, %v7937_v5  ;;  %v10367_v12 = vld [vmem:[#allocation6 + $0x8c] sm:$0xf] }
  0x1c   :  { %v10370_v6 = vld [vmem:[#allocation6 + $0xa4] sm:$0xf]  ;;  %v7929_v7 = vld [vmem:[#allocation6 + $0xb0] sm:$0xf0]  ;;  %v7935_v13 = vld [vmem:[#allocation6 + $0xa8] sm:$0xf] }
  0x1d   :  { %v7932_v11 = vor.u32 %v10370_v6, %v7929_v7  ;;  %v10373_v14 = vld [vmem:[#allocation6 + $0xb4] sm:$0xf0]  ;;  %v7921_v15 = vld [vmem:[#allocation6 + $0x98] sm:$0xf0]  ;;  %v10366_v16 = vld [vmem:[#allocation6 + $0x84] sm:$0xf] }
  0x1e   :  { %337 = vmatpush.bf16.msra.mxu1 %v7896_v28  ;;  %11038 = vmatpush.bf16.msra.mxu2 %v7896_v28  ;;  %v7913_v17 = vld [vmem:[#allocation6 + $0x90] sm:$0xf0]  ;;  %v7936_v18 = vor.u32 %v10373_v14, %v7935_v13  ;;  %v7924_v19 = vor.u32 %v10367_v12, %v7921_v15  ;;  %v10363_v20 = vld [vmem:[#allocation6 + $0x6c] sm:$0xf]  ;;  %v7919_v22 = vld [vmem:[#allocation6 + $0x88] sm:$0xf] }
  0x1f   :  { %11039 = vmatpush.bf16.msra.mxu3 %v7896_v28  ;;  %805 = vmatpush.bf16.msra.mxu0 %v8024_v29  ;;  %v7916_v21 = vor.u32 %v10366_v16, %v7913_v17  ;;  %v10369_v23 = vld [vmem:[#allocation6 + $0x94] sm:$0xf0]  ;;  %v7905_v24 = vld [vmem:[#allocation6 + $0x78] sm:$0xf0]  ;;  %v10362_v25 = vld [vmem:[#allocation6 + $0x64] sm:$0xf] }
  0x20   :  { %v7897_v26 = vld [vmem:[#allocation6 + $0x70] sm:$0xf0]  ;;  %v11684_v27 = vld [vmem:[%s14006_s0 + $0x8] sm:$0xff]  ;;  %v11689_v28 = vld [vmem:[%s14006_s0 + $0x20] sm:$0xff]  ;;  %v7920_v29 = vor.u32 %v10369_v23, %v7919_v22  ;;  %v7908_v30 = vor.u32 %v10363_v20, %v7905_v24 }
  0x21   :  { %v10359_v31 = vld [vmem:[#allocation6 + $0x4c] sm:$0xf]  ;;  %v7900_v32 = vor.u32 %v10362_v25, %v7897_v26  ;;  %v7903_v33 = vld [vmem:[#allocation6 + $0x68] sm:$0xf]  ;;  %v10358_v36 = vld [vmem:[#allocation6 + $0x44] sm:$0xf] }
  0x22   :  { %338 = vmatpush.bf16.msra.mxu1 %v7880_v34  ;;  %11040 = vmatpush.bf16.msra.mxu2 %v7880_v34  ;;  %v7881_v37 = vld [vmem:[#allocation6 + $0x50] sm:$0xf0]  ;;  %v11694_v38 = vld [vmem:[%s14006_s0 + $0x38] sm:$0xff]  ;;  %v7887_v43 = vld [vmem:[#allocation6 + $0x48] sm:$0xf] }
  0x23   :  { %11041 = vmatpush.bf16.msra.mxu3 %v7880_v34  ;;  %806 = vmatpush.bf16.msra.mxu0 %v8008_v35  ;;  %v10365_v34 = vld [vmem:[#allocation6 + $0x74] sm:$0xf0]  ;;  %v7889_v35 = vld [vmem:[#allocation6 + $0x58] sm:$0xf0]  ;;  %v7884_v42 = vor.u32 %v10358_v36, %v7881_v37  ;;  %v10354_v46 = vld [vmem:[#allocation6 + $0x24] sm:$0xf] }
  0x24   :  { %v7904_v39 = vor.u32 %v10365_v34, %v7903_v33  ;;  %v10361_v44 = vld [vmem:[#allocation6 + $0x54] sm:$0xf0]  ;;  %v7873_v45 = vld [vmem:[#allocation6 + $0x38] sm:$0xf0]  ;;  %v7865_v47 = vld [vmem:[#allocation6 + $0x30] sm:$0xf0] }
  0x25   :  { %v10351_v48 = vld [vmem:[#allocation6 + $0xc] sm:$0xf]  ;;  %v7888_v49 = vor.u32 %v10361_v44, %v7887_v43  ;;  %v10357_v56 = vld [vmem:[#allocation6 + $0x34] sm:$0xf0]  ;;  %v10350_v57 = vld [vmem:[#allocation6 + $0x4] sm:$0xf] }
  0x26   :  { %339 = vmatpush.bf16.msra.mxu1 %v7864_v40  ;;  %11042 = vmatpush.bf16.msra.mxu2 %v7864_v40  ;;  %v7849_v58 = vld [vmem:[#allocation6 + $0x10] sm:$0xf0]  ;;  %v10410_v59 = vld [vmem:[#allocation8 + $0xe4] sm:$0xf]  ;;  %v10411_v61 = vld [vmem:[#allocation8 + $0xec] sm:$0xf] }
  0x27   :  { %11043 = vmatpush.bf16.msra.mxu3 %v7864_v40  ;;  %807 = vmatpush.bf16.msra.mxu0 %v7992_v41  ;;  %v7892_v40 = vor.u32 %v10359_v31, %v7889_v35  ;;  %v10355_v41 = vld [vmem:[#allocation6 + $0x2c] sm:$0xf]  ;;  %v8089_v60 = vld [vmem:[#allocation8 + $0xf0] sm:$0xf0]  ;;  %v7852_v2 = vor.u32 %v10350_v57, %v7849_v58  ;;  %v7855_v3 = vld [vmem:[#allocation6 + $0x8] sm:$0xf] }
  0x28   :  { %v10353_v4 = vld [vmem:[#allocation6 + $0x14] sm:$0xf0]  ;;  %v8092_v5 = vor.u32 %v10410_v59, %v8089_v60  ;;  %v8095_v7 = vld [vmem:[#allocation8 + $0xe8] sm:$0xf]  ;;  %v10344_v12 = vld [vmem:[%s14006_s0 + $0x10] sm:$0xff] }
  0x29   :  { %v11705_v13 = vld [vmem:[%s14006_s0 + $0x28] sm:$0xff]  ;;  %v10406_v14 = vld [vmem:[#allocation8 + $0xc4] sm:$0xf]  ;;  %v8073_v15 = vld [vmem:[#allocation8 + $0xd0] sm:$0xf0] }
  0x2a   :  { %340 = vmatpush.bf16.msra.mxu1 %v7848_v50  ;;  %11044 = vmatpush.bf16.msra.mxu2 %v7848_v50  ;;  %v10407_v16 = vld [vmem:[#allocation8 + $0xcc] sm:$0xf]  ;;  %v8076_v17 = vor.u32 %v10406_v14, %v8073_v15  ;;  %v10409_v20 = vld [vmem:[#allocation8 + $0xd4] sm:$0xf0]  ;;  %v10402_v23 = vld [vmem:[#allocation8 + $0xa4] sm:$0xf] }
  0x2b   :  { %11045 = vmatpush.bf16.msra.mxu3 %v7848_v50  ;;  %808 = vmatpush.bf16.msra.mxu0 %v7976_v51  ;;  %v7876_v50 = vor.u32 %v10355_v41, %v7873_v45  ;;  %v7857_v51 = vld [vmem:[#allocation6 + $0x18] sm:$0xf0]  ;;  %v8057_v24 = vld [vmem:[#allocation8 + $0xb0] sm:$0xf0]  ;;  %v10403_v25 = vld [vmem:[#allocation8 + $0xac] sm:$0xf] }
  0x2c   :  { %v8060_v26 = vor.u32 %v10402_v23, %v8057_v24  ;;  %v10405_v31 = vld [vmem:[#allocation8 + $0xb4] sm:$0xf0]  ;;  %v8041_v34 = vld [vmem:[#allocation8 + $0x90] sm:$0xf0]  ;;  %v10399_v35 = vld [vmem:[#allocation8 + $0x8c] sm:$0xf] }
  0x2d   :  { %341 = vmatmul.bf16.vlgmr.msra.gmra.mxu1 %v11665_v52  ;;  %356 = vmatmul.bf16.vlgmr.msra.gmra.mxu2 %v11670_v53  ;;  %v8049_v37 = vld [vmem:[#allocation8 + $0x98] sm:$0xf0]  ;;  %v10394_v43 = vld [vmem:[#allocation8 + $0x64] sm:$0xf]  ;;  %v8025_v44 = vld [vmem:[#allocation8 + $0x70] sm:$0xf0] }
  0x2e   :  { %382 = vmatpush.bf16.msrb.mxu1 %v7964_v54  ;;  %371 = vmatmul.bf16.vlgmr.msra.gmra.mxu3 %v11675_v62  ;;  %v7868_v54 = vor.u32 %v10354_v46, %v7865_v47  ;;  %v8052_v41 = vor.u32 %v10399_v35, %v8049_v37  ;;  %v8028_v45 = vor.u32 %v10394_v43, %v8025_v44  ;;  %v8033_v46 = vld [vmem:[#allocation8 + $0x78] sm:$0xf0]  ;;  %v8009_v57 = vld [vmem:[#allocation8 + $0x50] sm:$0xf0]  ;;  %v10387_v58 = vld [vmem:[#allocation8 + $0x2c] sm:$0xf] }
  0x2f   :  { %480 = vmatpush.bf16.msrb.mxu3 %v7972_v55  ;;  %809 = vmatmul.bf16.vlgmr.msra.gmra.mxu0 %v14013_v8  ;;  %v7871_v55 = vld [vmem:[#allocation6 + $0x28] sm:$0xf]  ;;  %v8001_v59 = vld [vmem:[#allocation8 + $0x38] sm:$0xf0]  ;;  %v10385_v23 = vld [vmem:[#allocation8 + $0x14] sm:$0xf0] }
  0x30   :  { %431 = vmatpush.bf16.msrb.mxu2 %v7968_v63  ;;  %v8097_v63 = vld [vmem:[#allocation8 + $0xf8] sm:$0xf0]  ;;  %v8004_v60 = vor.u32 %v10387_v58, %v8001_v59 }
  0x31   :  { %v8100_v6 = vor.u32 %v10411_v61, %v8097_v63  ;;  %v10383_v61 = vld [vmem:[#allocation8 + $0xc] sm:$0xf] }
  0x32   :  { %383 = vmatpush.bf16.msrb.mxu1 %v7948_v1  ;;  %v7860_v1 = vor.u32 %v10351_v48, %v7857_v51  ;;  %v10391_v48 = vld [vmem:[#allocation8 + $0x4c] sm:$0xf]  ;;  %v8031_v51 = vld [vmem:[#allocation8 + $0x68] sm:$0xf] }
  0x33   :  { %481 = vmatpush.bf16.msrb.mxu3 %v7956_v0  ;;  %v7872_v0 = vor.u32 %v10357_v56, %v7871_v55  ;;  %v10390_v55 = vld [vmem:[#allocation8 + $0x44] sm:$0xf] }
  0x34   :  { %432 = vmatpush.bf16.msrb.mxu2 %v7952_v9  ;;  %v10413_v9 = vld [vmem:[#allocation8 + $0xf4] sm:$0xf0] }
  0x36   :  { %384 = vmatpush.bf16.msrb.mxu1 %v7932_v11  ;;  %v8096_v11 = vor.u32 %v10413_v9, %v8095_v7  ;;  %v7999_v7 = vld [vmem:[#allocation8 + $0x28] sm:$0xf]  ;;  %v10389_v9 = vld [vmem:[#allocation8 + $0x34] sm:$0xf0] }
  0x37   :  { %482 = vmatpush.bf16.msrb.mxu3 %v7940_v10  ;;  %v7856_v10 = vor.u32 %v10353_v4, %v7855_v3  ;;  %v10393_v3 = vld [vmem:[#allocation8 + $0x54] sm:$0xf0]  ;;  %v10386_v4 = vld [vmem:[#allocation8 + $0x24] sm:$0xf]  ;;  %v8000_v14 = vor.u32 %v10389_v9, %v7999_v7 }
  0x38   :  { %433 = vmatpush.bf16.msrb.mxu2 %v7936_v18  ;;  %v8081_v18 = vld [vmem:[#allocation8 + $0xd8] sm:$0xf0] }
  0x3a   :  { %385 = vmatpush.bf16.msrb.mxu1 %v7916_v21  ;;  %v8084_v21 = vor.u32 %v10407_v16, %v8081_v18 }
  0x3b   :  { %483 = vmatpush.bf16.msrb.mxu3 %v7924_v19  ;;  %v8079_v19 = vld [vmem:[#allocation8 + $0xc8] sm:$0xf] }
  0x3c   :  { %434 = vmatpush.bf16.msrb.mxu2 %v7920_v29  ;;  %v8080_v22 = vor.u32 %v10409_v20, %v8079_v19  ;;  %v8065_v29 = vld [vmem:[#allocation8 + $0xb8] sm:$0xf0] }
  0x3d   :  { %346 = vmatmul.bf16.gmra.mxu1 %v11684_v27  ;;  %361 = vmatmul.bf16.gmra.mxu2 %v11689_v28 }
  0x3e   :  { %386 = vmatpush.bf16.msrb.mxu1 %v7900_v32  ;;  %376 = vmatmul.bf16.gmra.mxu3 %v11694_v38  ;;  %v8068_v32 = vor.u32 %v10403_v25, %v8065_v29 }
  0x3f   :  { %484 = vmatpush.bf16.msrb.mxu3 %v7908_v30  ;;  %v8063_v30 = vld [vmem:[#allocation8 + $0xa8] sm:$0xf] }
  0x40   :  { %435 = vmatpush.bf16.msrb.mxu2 %v7904_v39  ;;  %v8064_v33 = vor.u32 %v10405_v31, %v8063_v30  ;;  %v8047_v39 = vld [vmem:[#allocation8 + $0x88] sm:$0xf] }
  0x42   :  { %387 = vmatpush.bf16.msrb.mxu1 %v7884_v42 }
  0x43   :  { %485 = vmatpush.bf16.msrb.mxu3 %v7892_v40  ;;  %v10401_v40 = vld [vmem:[#allocation8 + $0x94] sm:$0xf0] }
  0x44   :  { %436 = vmatpush.bf16.msrb.mxu2 %v7888_v49  ;;  %v8048_v42 = vor.u32 %v10401_v40, %v8047_v39  ;;  %v8017_v49 = vld [vmem:[#allocation8 + $0x58] sm:$0xf0] }
  0x46   :  { %388 = vmatpush.bf16.msrb.mxu1 %v7868_v54  ;;  %v10397_v54 = vld [vmem:[#allocation8 + $0x74] sm:$0xf0] }
  0x47   :  { %486 = vmatpush.bf16.msrb.mxu3 %v7876_v50  ;;  %v8020_v50 = vor.u32 %v10391_v48, %v8017_v49  ;;  %v8032_v56 = vor.u32 %v10397_v54, %v8031_v51 }
  0x48   :  { %437 = vmatpush.bf16.msrb.mxu2 %v7872_v0  ;;  %v11724_v0 = vld [vmem:[%s14009_s3] sm:$0xf] }
  0x49   :  { %v11732_v15 = vperm.slane %v11724_v0, 0 }
  0x4a   :  { %389 = vmatpush.bf16.msrb.mxu1 %v7852_v2  ;;  %v8015_v2 = vld [vmem:[#allocation8 + $0x48] sm:$0xf] }
  0x4b   :  { %487 = vmatpush.bf16.msrb.mxu3 %v7860_v1 }
  0x4c   :  { %438 = vmatpush.bf16.msrb.mxu2 %v7856_v10 }
  0x4d   :  { %351 = vmatmul.bf16.gmra.mxu1 %v10344_v12  ;;  %366 = vmatmul.bf16.gmra.mxu2 %v11705_v13 }
  0x4e   :  { %815 = vmatpush.bf16.msra.mxu1 %v8092_v5  ;;  %488 = vmatmul.bf16.vlgmr.msrb.gmra.mxu3 %v11665_v52  ;;  %v8016_v5 = vor.u32 %v10393_v3, %v8015_v2 }
  0x4f   :  { %843 = vmatpush.bf16.msra.mxu3 %v8100_v6  ;;  %v7993_v6 = vld [vmem:[#allocation8 + $0x30] sm:$0xf0] }
  0x50   :  { %829 = vmatpush.bf16.msra.mxu2 %v8096_v11  ;;  %v7996_v10 = vor.u32 %v10386_v4, %v7993_v6  ;;  %v10382_v11 = vld [vmem:[#allocation8 + $0x4] sm:$0xf] }
  0x52   :  { %816 = vmatpush.bf16.msra.mxu1 %v8076_v17 }
  0x53   :  { %844 = vmatpush.bf16.msra.mxu3 %v8084_v21 }
  0x54   :  { %830 = vmatpush.bf16.msra.mxu2 %v8080_v22  ;;  %v7983_v22 = vld [vmem:[#allocation8 + $0x8] sm:$0xf] }
  0x55   :  { %v7984_v25 = vor.u32 %v10385_v23, %v7983_v22 }
  0x56   :  { %817 = vmatpush.bf16.msra.mxu1 %v8060_v26 }
  0x57   :  { %845 = vmatpush.bf16.msra.mxu3 %v8068_v32 }
  0x58   :  { %831 = vmatpush.bf16.msra.mxu2 %v8064_v33 }
  0x5b   :  { %846 = vmatpush.bf16.msra.mxu3 %v8052_v41 }
  0x5c   :  { %832 = vmatpush.bf16.msra.mxu2 %v8048_v42 }
  0x5d   :  { %390 = vmatmul.bf16.vlgmr.msrb.gmra.mxu1 %v11665_v52  ;;  %439 = vmatmul.bf16.vlgmr.msrb.gmra.mxu2 %v11665_v52  ;;  %v10398_v52 = vld [vmem:[#allocation8 + $0x84] sm:$0xf] }
  0x5e   :  { %493 = vmatmul.bf16.gmra.mxu3 %v11684_v27  ;;  %v8044_v36 = vor.u32 %v10398_v52, %v8041_v34 }
  0x60   :  { %818 = vmatpush.bf16.msra.mxu1 %v8044_v36  ;;  %833 = vmatpush.bf16.msra.mxu2 %v8032_v56 }
  0x64   :  { %819 = vmatpush.bf16.msra.mxu1 %v8028_v45  ;;  %834 = vmatpush.bf16.msra.mxu2 %v8016_v5 }
  0x68   :  { %835 = vmatpush.bf16.msra.mxu2 %v8000_v14 }
  0x6c   :  { %836 = vmatpush.bf16.msra.mxu2 %v7984_v25 }
  0x6d   :  { %395 = vmatmul.bf16.gmra.mxu1 %v11684_v27  ;;  %444 = vmatmul.bf16.gmra.mxu2 %v11684_v27  ;;  %v10395_v27 = vld [vmem:[#allocation8 + $0x6c] sm:$0xf] }
  0x6e   :  { %498 = vmatmul.bf16.gmra.mxu3 %v10344_v12  ;;  %v8036_v47 = vor.u32 %v10395_v27, %v8033_v46 }
  0x70   :  { %847 = vmatpush.bf16.msra.mxu3 %v8036_v47 }
  0x74   :  { %848 = vmatpush.bf16.msra.mxu3 %v8020_v50 }
  0x78   :  { %849 = vmatpush.bf16.msra.mxu3 %v8004_v60 }
  0x7d   :  { %400 = vmatmul.bf16.gmra.mxu1 %v10344_v12  ;;  %449 = vmatmul.bf16.gmra.mxu2 %v10344_v12  ;;  %v7977_v12 = vld [vmem:[#allocation8 + $0x10] sm:$0xf0] }
  0x7e   :  { %503 = vmatmul.bf16.gmra.mxu3 %v11670_v53  ;;  %v7980_v16 = vor.u32 %v10382_v11, %v7977_v12 }
  0x8d   :  { %405 = vmatmul.bf16.gmra.mxu1 %v11670_v53  ;;  %454 = vmatmul.bf16.gmra.mxu2 %v11670_v53  ;;  %v8012_v53 = vor.u32 %v10390_v55, %v8009_v57 }
  0x8e   :  { %508 = vmatmul.bf16.gmra.mxu3 %v11689_v28 }
  0x8f   :  { %820 = vmatpush.bf16.msra.mxu1 %v8012_v53 }
  0x93   :  { %821 = vmatpush.bf16.msra.mxu1 %v7996_v10 }
  0x97   :  { %822 = vmatpush.bf16.msra.mxu1 %v7980_v16 }
  0x9d   :  { %410 = vmatmul.bf16.gmra.mxu1 %v11689_v28  ;;  %459 = vmatmul.bf16.gmra.mxu2 %v11689_v28  ;;  %v7985_v28 = vld [vmem:[#allocation8 + $0x18] sm:$0xf0] }
  0x9e   :  { %513 = vmatmul.bf16.gmra.mxu3 %v11705_v13  ;;  %v7988_v63 = vor.u32 %v10383_v61, %v7985_v28 }
  0xa0   :  { %850 = vmatpush.bf16.msra.mxu3 %v7988_v63 }
  0xaa   :  { %v11726_v1 = vpop.f32.mrf.mxu1 }
  0xac   :  { %v810_v22 = vpop.f32.mrf.mxu0 }
  0xad   :  { %415 = vmatmul.bf16.gmra.mxu1 %v11705_v13  ;;  %464 = vmatmul.bf16.gmra.mxu2 %v11705_v13 }
  0xae   :  { %518 = vmatmul.bf16.gmra.mxu3 %v11675_v62 }
  0xb0   :  { %v357_v17 = vpop.f32.mrf.mxu2 }
  0xb1   :  { %v11735_v18 = vadd.f32 %v357_v17, %v11732_v15  ;;  %v372_v19 = vpop.f32.mrf.mxu3 }
  0xb2   :  { %v11738_v20 = vadd.f32 %v372_v19, %v11732_v15  ;;  %v11740_v13 = vpop.f32.mrf.mxu1  ;;  %v343_v19 = vadd.f32 %v11726_v1, %v11732_v15 }
  0xb3   :  { %v345_v1 = vadd.f32 %v11740_v13, %v11732_v15  ;;  %v8221_v13 = vld [vmem:[#allocation8 + $0xe0] sm:$0xf] }
  0xb4   :  { %14015 = vst [vmem:[#allocation12_spill] sm:$0xff] %v11738_v20  ;;  %v857_v25 = vadd.f32 %v810_v22, %v343_v19 }
  0xb8   :  { %v11742_v21 = vpop.f32.mrf.mxu2 }
  0xb9   :  { %v11744_v24 = vpop.f32.mrf.mxu3 }
  0xba   :  { %14016 = vst [vmem:[#allocation13_spill] sm:$0xff] %v11744_v24  ;;  %v347_v26 = vpop.f32.mrf.mxu1  ;;  %v812_v24 = vpop.f32.mrf.mxu0 }
  0xbb   :  { %v11747_v29 = vadd.f32 %v347_v26, %v11732_v15 }
  0xbd   :  { %420 = vmatmul.bf16.gmra.mxu1 %v11675_v62  ;;  %469 = vmatmul.bf16.gmra.mxu2 %v11675_v62 }
  0xbe   :  { %523 = vmatmul.bf16.gmra.mxu3 %v11694_v38 }
  0xc0   :  { %v362_v30 = vpop.f32.mrf.mxu2 }
  0xc1   :  { %v11753_v31 = vadd.f32 %v362_v30, %v11732_v15  ;;  %v377_v32 = vpop.f32.mrf.mxu3 }
  0xc2   :  { %v11756_v33 = vadd.f32 %v377_v32, %v11732_v15  ;;  %v11758_v52 = vpop.f32.mrf.mxu1  ;;  %v8101_v32 = vmul.f32 -1.442695, %v857_v25  ;;  %v861_v25 = vadd.f32 %v812_v24, %v345_v1  ;;  %v10443_v1 = vld [vmem:[#allocation8 + $0xec] sm:$0xf] }
  0xc4   :  { %14017 = vst [vmem:[#allocation14_spill] sm:$0xff] %v11756_v33  ;;  %11052 = vpow2.f32 %v8101_v32  ;;  %v8102_v32 = vmul.f32 -1.442695, %v861_v25 }
  0xc8   :  { %v11760_v34 = vpop.f32.mrf.mxu2 }
  0xc9   :  { %v11762_v35 = vpop.f32.mrf.mxu3 }
  0xca   :  { %14018 = vst [vmem:[#allocation15_spill] sm:$0xff] %v11762_v35  ;;  %v352_v36 = vpop.f32.mrf.mxu1  ;;  %v11053_v35 = vpop.eup %11052 }
  0xcb   :  { %v11765_v37 = vadd.f32 %v352_v36, %v11732_v15  ;;  %v11871_v22 = vadd.f32 1.0, %v11053_v35  ;;  %v8223_v35 = vld [vmem:[#allocation8 + $0xf0] sm:$0xf0] }
  0xcd   :  { %425 = vmatmul.bf16.gmra.mxu1 %v11694_v38  ;;  %474 = vmatmul.bf16.gmra.mxu2 %v11694_v38  ;;  %11054 = vrcp.f32 %v11871_v22  ;;  %vm878_vm1 = vweird.f32 %v11871_v22 }
  0xce   :  { %851 = vmatmul.bf16.vlgmr.msra.gmra.mxu3 %v14013_v8  ;;  %11056 = vpow2.f32 %v8102_v32  ;;  %v11895_v32 = vperm.slane %v11724_v0, 2 }
  0xd0   :  { %v367_v62 = vpop.f32.mrf.mxu2 }
  0xd1   :  { %v11771_v39 = vadd.f32 %v367_v62, %v11732_v15  ;;  %v11773_v40 = vpop.f32.mrf.mxu3 }
  0xd2   :  { %v11775_v41 = vpop.f32.mrf.mxu1 }
  0xd3   :  { %14019 = vst [vmem:[#allocation16_spill] sm:$0xff] %v11771_v39  ;;  %v11883_v25 = vpop.eup %11054 }
  0xd4   :  { %vm879_vm0 = vweird.f32 %v11883_v25 }
  0xd5   :  { %vm11915_vm2 = vmor %vm878_vm1, %vm879_vm0 }
  0xd8   :  { %v11777_v42 = vpop.f32.mrf.mxu2 }
  0xd9   :  { %14020 = vst [vmem:[#allocation17_spill] sm:$0xff] %v11777_v42  ;;  %v11779_v43 = vpop.f32.mrf.mxu3  ;;  %v10440_v42 = vld [vmem:[#allocation8 + $0xcc] sm:$0xf0] }
  0xda   :  { %v11781_v44 = vpop.f32.mrf.mxu1 }
  0xdd   :  { %823 = vmatmul.bf16.vlgmr.msra.gmra.mxu1 %v14013_v8  ;;  %837 = vmatmul.bf16.vlgmr.msra.gmra.mxu2 %v14013_v8 }
  0xe0   :  { %v11785_v38 = vpop.f32.mrf.mxu2 }
  0xe1   :  { %v11787_v27 = vpop.f32.mrf.mxu3 }
  0xe2   :  { %v11789_v45 = vpop.f32.mrf.mxu1 }
  0xe8   :  { %v11791_v46 = vpop.f32.mrf.mxu2 }
  0xe9   :  { %v11793_v47 = vpop.f32.mrf.mxu3 }
  0xea   :  { %v11795_v48 = vpop.f32.mrf.mxu1 }
  0xf0   :  { %v11797_v49 = vpop.f32.mrf.mxu2 }
  0xf1   :  { %v11799_v50 = vpop.f32.mrf.mxu3 }
  0xf2   :  { %v11801_v51 = vpop.f32.mrf.mxu1 }
  0xf8   :  { %v11803_v54 = vpop.f32.mrf.mxu2 }
  0xf9   :  { %v11805_v55 = vpop.f32.mrf.mxu3 }
  0xfa   :  { %v11807_v56 = vpop.f32.mrf.mxu1 }
 0x100   :  { %v11809_v57 = vpop.f32.mrf.mxu2 }
 0x101   :  { %v11811_v58 = vpop.f32.mrf.mxu3 }
 0x102   :  { %v11813_v59 = vpop.f32.mrf.mxu1 }
 0x108   :  { %v11815_v53 = vpop.f32.mrf.mxu2 }
 0x109   :  { %v11817_v60 = vpop.f32.mrf.mxu3 }
 0x10a   :  { %v11819_v61 = vpop.f32.mrf.mxu1 }
 0x110   :  { %v11821_v28 = vpop.f32.mrf.mxu2 }
 0x111   :  { %v11823_v63 = vpop.f32.mrf.mxu3 }
 0x112   :  { %v11825_v2 = vpop.f32.mrf.mxu1 }
 0x118   :  { %v11827_v3 = vpop.f32.mrf.mxu2 }
 0x119   :  { %v11829_v4 = vpop.f32.mrf.mxu3 }
 0x11a   :  { %14021 = vst [vmem:[#allocation18_spill] sm:$0xff] %v11829_v4  ;;  %v11831_v5 = vpop.f32.mrf.mxu1 }
 0x120   :  { %v11833_v6 = vpop.f32.mrf.mxu2 }
 0x121   :  { %14022 = vst [vmem:[#allocation19_spill] sm:$0xff] %v11833_v6  ;;  %v11835_v7 = vpop.f32.mrf.mxu3 }
 0x122   :  { %14023 = vst [vmem:[#allocation20_spill] sm:$0xff] %v11835_v7  ;;  %v11837_v9 = vpop.f32.mrf.mxu1 }
 0x128   :  { %v11839_v10 = vpop.f32.mrf.mxu2 }
 0x129   :  { %14024 = vst [vmem:[#allocation21_spill] sm:$0xff] %v11839_v10  ;;  %v11841_v11 = vpop.f32.mrf.mxu3  ;;  %v8199_v10 = vld [vmem:[#allocation8 + $0xb8] sm:$0xf0] }
 0x12a   :  { %14025 = vst [vmem:[#allocation22_spill] sm:$0xff] %v11841_v11  ;;  %v11843_v12 = vpop.f32.mrf.mxu1  ;;  %v8231_v11 = vld [vmem:[#allocation8 + $0xf8] sm:$0xf0] }
 0x12b   :  { %14026 = vst [vmem:[#allocation23_spill] sm:$0xff] %v11843_v12  ;;  %v8197_v12 = vld [vmem:[#allocation8 + $0xa8] sm:$0xf] }
 0x130   :  { %v11845_v14 = vpop.f32.mrf.mxu2 }
 0x131   :  { %14027 = vst [vmem:[#allocation24_spill] sm:$0xff] %v11845_v14  ;;  %v11847_v16 = vpop.f32.mrf.mxu3  ;;  %v11886_v14 = vperm.slane %v11724_v0, 1 }
 0x132   :  { %14028 = vst [vmem:[#allocation25_spill] sm:$0xff] %v11847_v16  ;;  %v11849_v17 = vpop.f32.mrf.mxu1  ;;  %v10444_v16 = vld [vmem:[#allocation8 + $0xec] sm:$0xf0] }
 0x133   :  { %14029 = vst [vmem:[#allocation26_spill] sm:$0xff] %v11849_v17  ;;  %v8205_v17 = vld [vmem:[#allocation8 + $0xc0] sm:$0xf] }
 0x138   :  { %v11853_v23 = vpop.f32.mrf.mxu2 }
 0x139   :  { %14030 = vst [vmem:[#allocation27_spill] sm:$0xff] %v11853_v23  ;;  %v11855_v26 = vpop.f32.mrf.mxu3  ;;  %v10445_v23 = vld [vmem:[#allocation8 + $0xf4] sm:$0xf0] }
 0x13a   :  { %14031 = vst [vmem:[#allocation28_spill] sm:$0xff] %v11855_v26  ;;  %v11857_v30 = vpop.f32.mrf.mxu1 }
 0x13b   :  { %14032 = vst [vmem:[#allocation29_spill] sm:$0xff] %v11857_v30  ;;  %v8229_v30 = vld [vmem:[#allocation8 + $0xe8] sm:$0xf] }
 0x13c   :  { %v8230_v24 = vor.u32 %v10445_v23, %v8229_v30  ;;  %v8207_v23 = vld [vmem:[#allocation8 + $0xd0] sm:$0xf0]  ;;  %v8213_v30 = vld [vmem:[#allocation8 + $0xc8] sm:$0xf] }
 0x13e   :  { %1235 = vmatpush.bf16.msrb.mxu2 %v8230_v24 }
 0x140   :  { %v11859_v36 = vpop.f32.mrf.mxu2 }
 0x141   :  { %14033 = vst [vmem:[#allocation30_spill] sm:$0xff] %v11859_v36  ;;  %v11861_v62 = vpop.f32.mrf.mxu3 }
 0x142   :  { %14034 = vst [vmem:[#allocation31_spill] sm:$0xff] %v11861_v62  ;;  %v11863_v8 = vpop.f32.mrf.mxu1  ;;  %v11877_v62 = vperm.slane %v11724_v0, 3  ;;  %v8191_v0 = vld [vmem:[#allocation8 + $0xb0] sm:$0xf0] }
 0x143   :  { %14035 = vst [vmem:[#allocation32_spill] sm:$0xff] %v11863_v8 }
 0x144   :  { %v492_v24 = vadd.f32 %v11779_v43, %v11877_v62 }
 0x148   :  { %v11867_v33 = vpop.f32.mrf.mxu2 }
 0x149   :  { %14036 = vst [vmem:[#allocation33_spill] sm:$0xff] %v11867_v33  ;;  %v11869_v19 = vpop.f32.mrf.mxu3  ;;  %v10442_v33 = vld [vmem:[#allocation8 + $0xe4] sm:$0xf] }
 0x14a   :  { %14037 = vst [vmem:[#allocation34_spill] sm:$0xff] %v11869_v19  ;;  %v11873_v26 = vpop.f32.mrf.mxu1  ;;  %v8222_v19 = vor.u32 %v10444_v16, %v8221_v13  ;;  %v490_v16 = vadd.f32 %v11773_v40, %v11877_v62  ;;  %v10441_v13 = vld [vmem:[#allocation8 + $0xd4] sm:$0xf0] }
 0x14b   :  { %14038 = vst [vmem:[#allocation35_spill] sm:$0xff] %v11873_v26  ;;  %v8226_v26 = vor.u32 %v10442_v33, %v8223_v35  ;;  %v8206_v33 = vor.u32 %v10440_v42, %v8205_v17  ;;  %v874_v35 = vmul.f32 %v11883_v25, %v11871_v22  ;;  %v392_v17 = vadd.f32 %v11781_v44, %v11886_v14  ;;  %v11057_v44 = vpop.eup %11056 }
 0x14c   :  { %1207 = vmatpush.bf16.msrb.mxu0 %v8222_v19  ;;  %v8214_v19 = vor.u32 %v10441_v13, %v8213_v30  ;;  %v10434_v30 = vld [vmem:[#allocation8 + $0xa4] sm:$0xf] }
 0x14d   :  { %1221 = vmatpush.bf16.msrb.mxu1 %v8226_v26  ;;  %v8215_v26 = vld [vmem:[#allocation8 + $0xd8] sm:$0xf0] }
 0x14e   :  { %1236 = vmatpush.bf16.msrb.mxu2 %v8214_v19 }
 0x150   :  { %v11879_v36 = vpop.f32.mrf.mxu2  ;;  %1208 = vmatpush.bf16.msrb.mxu0 %v8206_v33  ;;  %v8194_v33 = vor.u32 %v10434_v30, %v8191_v0  ;;  %v10431_v30 = vld [vmem:[#allocation8 + $0x8c] sm:$0xf] }
 0x151   :  { %14039 = vst [vmem:[#allocation36_spill] sm:$0xff] %v11879_v36  ;;  %v852_v8 = vpop.f32.mrf.mxu3  ;;  %v8234_v36 = vor.u32 %v10443_v1, %v8231_v11  ;;  %v10439_v11 = vld [vmem:[#allocation8 + $0xcc] sm:$0xf] }
 0x152   :  { %v11881_v20 = vpop.f32.mrf.mxu1  ;;  %v860_v1 = vadd.f32 %v852_v8, %v490_v16  ;;  %v8218_v42 = vor.u32 %v10439_v11, %v8215_v26  ;;  %v10437_v8 = vld [vmem:[#allocation8 + $0xb4] sm:$0xf0]  ;;  %v875_v16 = vsub.f32 1.0, %v874_v35  ;;  %v10435_v26 = vld [vmem:[#allocation8 + $0xac] sm:$0xf] }
 0x153   :  { %14040 = vst [vmem:[#allocation37_spill] sm:$0xff] %v11881_v20  ;;  %v10438_v20 = vld [vmem:[#allocation8 + $0xc4] sm:$0xf]  ;;  %1249 = vmatpush.bf16.msrb.mxu3 %v8234_v36  ;;  %v8198_v11 = vor.u32 %v10437_v8, %v8197_v12  ;;  %v8181_v35 = vld [vmem:[#allocation8 + $0x88] sm:$0xf] }
 0x154   :  { %v8210_v7 = vor.u32 %v10438_v20, %v8207_v23  ;;  %v8189_v20 = vld [vmem:[#allocation8 + $0xa0] sm:$0xf]  ;;  %v10436_v23 = vld [vmem:[#allocation8 + $0xac] sm:$0xf0]  ;;  %v8105_v4 = vmul.f32 -1.442695, %v860_v1  ;;  %v876_v12 = vmul.f32 %v11883_v25, %v875_v16 }
 0x155   :  { %v8190_v43 = vor.u32 %v10436_v23, %v8189_v20  ;;  %1237 = vmatpush.bf16.msrb.mxu2 %v8198_v11  ;;  %v8175_v20 = vld [vmem:[#allocation8 + $0x90] sm:$0xf0]  ;;  %v11901_v23 = vadd.f32 1.0, %v11057_v44  ;;  %v10428_v11 = vld [vmem:[#allocation8 + $0x6c] sm:$0xf0] }
 0x156   :  { %1222 = vmatpush.bf16.msrb.mxu1 %v8210_v7  ;;  %v8202_v7 = vor.u32 %v10435_v26, %v8199_v10  ;;  %v10426_v26 = vld [vmem:[#allocation8 + $0x64] sm:$0xf]  ;;  %v8159_v44 = vld [vmem:[#allocation8 + $0x70] sm:$0xf0] }
 0x157   :  { %1250 = vmatpush.bf16.msrb.mxu3 %v8218_v42  ;;  %1209 = vmatpush.bf16.msrb.mxu0 %v8190_v43  ;;  %v10432_v42 = vld [vmem:[#allocation8 + $0x8c] sm:$0xf0]  ;;  %v394_v43 = vadd.f32 %v11789_v45, %v11886_v14  ;;  %vm893_vm9 = vweird.f32 %v11901_v23 }
 0x158   :  { %v11897_v40 = vpop.f32.mrf.mxu2 }
 0x159   :  { %14041 = vst [vmem:[#allocation38_spill] sm:$0xff] %v11897_v40  ;;  %v854_v36 = vpop.f32.mrf.mxu3 }
 0x15a   :  { %v864_v13 = vadd.f32 %v854_v36, %v492_v24  ;;  %v824_v39 = vpop.f32.mrf.mxu1  ;;  %1223 = vmatpush.bf16.msrb.mxu1 %v8194_v33  ;;  %v8173_v24 = vld [vmem:[#allocation8 + $0x80] sm:$0xf]  ;;  %v10430_v36 = vld [vmem:[#allocation8 + $0x84] sm:$0xf] }
 0x15b   :  { %v858_v40 = vadd.f32 %v824_v39, %v392_v17  ;;  %1251 = vmatpush.bf16.msrb.mxu3 %v8202_v7  ;;  %v441_v39 = vadd.f32 %v11785_v38, %v11895_v32  ;;  %v8174_v10 = vor.u32 %v10432_v42, %v8173_v24  ;;  %v8178_v17 = vor.u32 %v10430_v36, %v8175_v20  ;;  %v8157_v33 = vld [vmem:[#allocation8 + $0x60] sm:$0xf]  ;;  %v8165_v7 = vld [vmem:[#allocation8 + $0x68] sm:$0xf]  ;;  %v10429_v42 = vld [vmem:[#allocation8 + $0x74] sm:$0xf0] }
 0x15c   :  { %v8106_v19 = vmul.f32 -1.442695, %v864_v13  ;;  %v8183_v13 = vld [vmem:[#allocation8 + $0x98] sm:$0xf0]  ;;  %v8158_v16 = vor.u32 %v10428_v11, %v8157_v33  ;;  %v877_v24 = vadd.f32 %v11883_v25, %v876_v12  ;;  %v10427_v36 = vld [vmem:[#allocation8 + $0x6c] sm:$0xf] }
 0x15d   :  { %v8103_v6 = vmul.f32 -1.442695, %v858_v40  ;;  %v10433_v40 = vld [vmem:[#allocation8 + $0x94] sm:$0xf0]  ;;  %1210 = vmatpush.bf16.msrb.mxu0 %v8174_v10  ;;  %v8167_v20 = vld [vmem:[#allocation8 + $0x78] sm:$0xf0] }
 0x15e   :  { %v8182_v8 = vor.u32 %v10433_v40, %v8181_v35  ;;  %1224 = vmatpush.bf16.msrb.mxu1 %v8178_v17  ;;  %v8170_v35 = vor.u32 %v10427_v36, %v8167_v20  ;;  %v8141_v17 = vld [vmem:[#allocation8 + $0x40] sm:$0xf]  ;;  %v8149_v33 = vld [vmem:[#allocation8 + $0x48] sm:$0xf]  ;;  %v10418_v36 = vld [vmem:[#allocation8 + $0x24] sm:$0xf] }
 0x15f   :  { %11058 = vpow2.f32 %v8103_v6  ;;  %v8186_v6 = vor.u32 %v10431_v30, %v8183_v13  ;;  %v10424_v30 = vld [vmem:[#allocation8 + $0x4c] sm:$0xf0]  ;;  %v10422_v13 = vld [vmem:[#allocation8 + $0x44] sm:$0xf]  ;;  %v8127_v12 = vld [vmem:[#allocation8 + $0x30] sm:$0xf0] }
 0x160   :  { %v838_v1 = vpop.f32.mrf.mxu2  ;;  %11060 = vpow2.f32 %v8105_v4  ;;  %1238 = vmatpush.bf16.msrb.mxu2 %v8182_v8  ;;  %v8162_v4 = vor.u32 %v10426_v26, %v8159_v44  ;;  %v881_v8 = vsel %vm11915_vm2, %v11883_v25, %v877_v24  ;;  %v10425_v26 = vld [vmem:[#allocation8 + $0x54] sm:$0xf0]  ;;  %v10420_v24 = vld [vmem:[#allocation8 + $0x2c] sm:$0xf0] }
 0x161   :  { %v859_v0 = vadd.f32 %v838_v1, %v441_v39  ;;  %11062 = vpow2.f32 %v8106_v19  ;;  %v884_v19 = vand.u32 2147483648, %v11871_v22  ;;  %1252 = vmatpush.bf16.msrb.mxu3 %v8186_v6  ;;  %v8166_v39 = vor.u32 %v10429_v42, %v8165_v7  ;;  %1211 = vmatpush.bf16.msrb.mxu0 %v8158_v16  ;;  %v10423_v16 = vld [vmem:[#allocation8 + $0x4c] sm:$0xf]  ;;  %v8125_v42 = vld [vmem:[#allocation8 + $0x20] sm:$0xf] }
 0x162   :  { %v826_v38 = vpop.f32.mrf.mxu1  ;;  %v882_v1 = vand.u32 2147483647, %v11871_v22  ;;  %1225 = vmatpush.bf16.msrb.mxu1 %v8162_v4  ;;  %v8142_v22 = vor.u32 %v10424_v30, %v8141_v17  ;;  %v8151_v4 = vld [vmem:[#allocation8 + $0x58] sm:$0xf0]  ;;  %v8126_v17 = vor.u32 %v10420_v24, %v8125_v42  ;;  %v10421_v30 = vld [vmem:[#allocation8 + $0x34] sm:$0xf0] }
 0x163   :  { %11064 = vtanh.f32 %v859_v0  ;;  %v862_v45 = vadd.f32 %v826_v38, %v394_v43  ;;  %v8143_v43 = vld [vmem:[#allocation8 + $0x50] sm:$0xf0]  ;;  %v885_v6 = vor.u32 1.1754944e-38, %v884_v19  ;;  %v10417_v42 = vld [vmem:[#allocation8 + $0x14] sm:$0xf0] }
 0x164   :  { %11066 = vrcp.f32 %v11901_v23  ;;  %1239 = vmatpush.bf16.msrb.mxu2 %v8166_v39  ;;  %vm883_vm3 = vcmp.eq.f32.partialorder %v882_v1, 8.507059e+37  ;;  %v8146_v7 = vor.u32 %v10422_v13, %v8143_v43  ;;  %v8133_v1 = vld [vmem:[#allocation8 + $0x28] sm:$0xf]  ;;  %v10419_v13 = vld [vmem:[#allocation8 + $0x2c] sm:$0xf] }
 0x165   :  { %v8104_v10 = vmul.f32 -1.442695, %v862_v45  ;;  %v11059_v40 = vpop.eup %11058  ;;  %1253 = vmatpush.bf16.msrb.mxu3 %v8170_v35  ;;  %v8150_v45 = vor.u32 %v10425_v26, %v8149_v33  ;;  %v886_v25 = vsel %vm883_vm3, %v885_v6, %v881_v8  ;;  %1212 = vmatpush.bf16.msrb.mxu0 %v8142_v22  ;;  %v8154_v35 = vor.u32 %v10423_v16, %v8151_v4  ;;  %v8135_v8 = vld [vmem:[#allocation8 + $0x38] sm:$0xf0]  ;;  %v8109_v33 = vld [vmem:[#allocation8] sm:$0xf] }
 0x166   :  { %v11061_v0 = vpop.eup %11060  ;;  %v11923_v38 = vadd.f32 1.0, %v11059_v40  ;;  %1226 = vmatpush.bf16.msrb.mxu1 %v8146_v7  ;;  %v8130_v40 = vor.u32 %v10418_v36, %v8127_v12  ;;  %v8134_v43 = vor.u32 %v10421_v30, %v8133_v1  ;;  %v8138_v22 = vor.u32 %v10419_v13, %v8135_v8  ;;  %v10416_v26 = vld [vmem:[#allocation8 + $0xc] sm:$0xf0]  ;;  %v10414_v16 = vld [vmem:[#allocation8 + $0x4] sm:$0xf] }
 0x167   :  { %v11063_v11 = vpop.eup %11062  ;;  %11068 = vpow2.f32 %v8104_v10  ;;  %v11928_v19 = vadd.f32 1.0, %v11061_v0  ;;  %v8110_v7 = vor.u32 %v10416_v26, %v8109_v33  ;;  %v8117_v4 = vld [vmem:[#allocation8 + $0x8] sm:$0xf]  ;;  %v10415_v36 = vld [vmem:[#allocation8 + $0xc] sm:$0xf] }
 0x168   :  { %11070 = vrcp.f32 %v11923_v38  ;;  %1240 = vmatpush.bf16.msrb.mxu2 %v8150_v45  ;;  %v11932_v10 = vadd.f32 1.0, %v11063_v11  ;;  %v8118_v24 = vor.u32 %v10417_v42, %v8117_v4  ;;  %vm916_vm5 = vweird.f32 %v11923_v38 }
 0x169   :  { %v11065_v44 = vpop.eup %11064  ;;  %1254 = vmatpush.bf16.msrb.mxu3 %v8154_v35  ;;  %1213 = vmatpush.bf16.msrb.mxu0 %v8126_v17  ;;  %11072 = vrcp.f32 %v11928_v19  ;;  %v8119_v35 = vld [vmem:[#allocation8 + $0x18] sm:$0xf0]  ;;  %v840_v17 = vpop.f32.mrf.mxu2  ;;  %vm956_vm2 = vweird.f32 %v11928_v19 }
 0x16a   :  { %v11926_v20 = vpop.eup %11066  ;;  %v11930_v39 = vmul.f32 %v11065_v44, %v886_v25  ;;  %v8111_v44 = vld [vmem:[#allocation8 + $0x10] sm:$0xf0]  ;;  %1227 = vmatpush.bf16.msrb.mxu1 %v8130_v40  ;;  %11074 = vrcp.f32 %v11932_v10  ;;  %v443_v40 = vadd.f32 %v11791_v46, %v11895_v32  ;;  %v8122_v13 = vor.u32 %v10415_v36, %v8119_v35 }
 0x16b   :  { %v889_v0 = vmul.f32 %v11926_v20, %v11901_v23  ;;  %v8114_v45 = vor.u32 %v10414_v16, %v8111_v44  ;;  %vm894_vm8 = vweird.f32 %v11926_v20 }
 0x16c   :  { %1241 = vmatpush.bf16.msrb.mxu2 %v8134_v43  ;;  %v922_v43 = vand.u32 2147483648, %v11923_v38  ;;  %v863_v26 = vadd.f32 %v840_v17, %v443_v40  ;;  %v897_v40 = vand.u32 2147483647, %v11901_v23  ;;  %vm895_vm11 = vmor %vm893_vm9, %vm894_vm8 }
 0x16d   :  { %v11069_v6 = vpop.eup %11068  ;;  %1255 = vmatpush.bf16.msrb.mxu3 %v8138_v22  ;;  %v890_v1 = vsub.f32 1.0, %v889_v0  ;;  %1214 = vmatpush.bf16.msrb.mxu0 %v8110_v7 }
 0x16e   :  { %v11937_v11 = vadd.f32 1.0, %v11069_v6  ;;  %v11071_v25 = vpop.eup %11070  ;;  %1228 = vmatpush.bf16.msrb.mxu1 %v8114_v45  ;;  %v920_v6 = vand.u32 2147483647, %v11923_v38  ;;  %v923_v7 = vor.u32 1.1754944e-38, %v922_v43  ;;  %vm898_vm14 = vcmp.eq.f32.partialorder %v897_v40, 8.507059e+37 }
 0x16f   :  { %v912_v12 = vmul.f32 %v11071_v25, %v11923_v38  ;;  %v11945_v8 = vpop.eup %11072  ;;  %vm917_vm4 = vweird.f32 %v11071_v25  ;;  %v891_v22 = vmul.f32 %v11926_v20, %v890_v1  ;;  %v899_v1 = vand.u32 2147483648, %v11901_v23 }
 0x170   :  { %11076 = vrcp.f32 %v11937_v11  ;;  %1242 = vmatpush.bf16.msrb.mxu2 %v8118_v24  ;;  %v11948_v0 = vpop.eup %11074  ;;  %v952_v44 = vmul.f32 %v11945_v8, %v11928_v19  ;;  %vm918_vm6 = vmor %vm916_vm5, %vm917_vm4  ;;  %vm921_vm7 = vcmp.eq.f32.partialorder %v920_v6, 8.507059e+37  ;;  %vm931_vm12 = vweird.f32 %v11937_v11 }
 0x171   :  { %v913_v30 = vsub.f32 1.0, %v912_v12  ;;  %1256 = vmatpush.bf16.msrb.mxu3 %v8122_v13  ;;  %v967_v4 = vmul.f32 %v11948_v0, %v11932_v10  ;;  %11078 = vtanh.f32 %v863_v26  ;;  %v892_v35 = vadd.f32 %v11926_v20, %v891_v22 }
 0x172   :  { %v937_v12 = vand.u32 2147483648, %v11937_v11  ;;  %vm957_vm0 = vweird.f32 %v11945_v8  ;;  %vm972_vm1 = vweird.f32 %v11948_v0  ;;  %vm971_vm4 = vweird.f32 %v11932_v10 }
 0x173   :  { %v914_v33 = vmul.f32 %v11071_v25, %v913_v30  ;;  %v953_v30 = vsub.f32 1.0, %v952_v44  ;;  %v968_v13 = vsub.f32 1.0, %v967_v4  ;;  %vm958_vm3 = vmor %vm956_vm2, %vm957_vm0 }
 0x174   :  { %v938_v22 = vor.u32 1.1754944e-38, %v937_v12  ;;  %vm973_vm5 = vmor %vm971_vm4, %vm972_vm1 }
 0x175   :  { %v915_v46 = vadd.f32 %v11071_v25, %v914_v33  ;;  %v896_v33 = vsel %vm895_vm11, %v11926_v20, %v892_v35  ;;  %v969_v44 = vmul.f32 %v11948_v0, %v968_v13  ;;  %v960_v35 = vand.u32 2147483647, %v11928_v19 }
 0x176   :  { %v11077_v16 = vpop.eup %11076 }
 0x177   :  { %v927_v45 = vmul.f32 %v11077_v16, %v11937_v11  ;;  %v919_v42 = vsel %vm918_vm6, %v11071_v25, %v915_v46  ;;  %vm932_vm10 = vweird.f32 %v11077_v16  ;;  %v935_v25 = vand.u32 2147483647, %v11937_v11  ;;  %v11079_v26 = vpop.eup %11078 }
 0x178   :  { %v924_v24 = vsel %vm921_vm7, %v923_v7, %v919_v42  ;;  %v900_v46 = vor.u32 1.1754944e-38, %v899_v1  ;;  %vm933_vm13 = vmor %vm931_vm12, %vm932_vm10  ;;  %v954_v7 = vmul.f32 %v11945_v8, %v953_v30  ;;  %vm961_vm6 = vcmp.eq.f32.partialorder %v960_v35, 8.507059e+37 }
 0x179   :  { %v928_v36 = vsub.f32 1.0, %v927_v45  ;;  %v981_v38 = vmul.f32 0.0, %v924_v24  ;;  %vm936_vm15 = vcmp.eq.f32.partialorder %v935_v25, 8.507059e+37  ;;  %v970_v24 = vadd.f32 %v11948_v0, %v969_v44 }
 0x17a   :  { %v901_v45 = vsel %vm898_vm14, %v900_v46, %v896_v33  ;;  %v955_v11 = vadd.f32 %v11945_v8, %v954_v7  ;;  %v8357_v46 = vld [vmem:[#allocation8 + $0xf0] sm:$0xf0]  ;;  %v10477_v7 = vld [vmem:[#allocation8 + $0xf4] sm:$0xf0]  ;;  %v397_v44 = vadd.f32 %v11795_v48, %v11886_v14  ;;  %v8347_v48 = vld [vmem:[#allocation8 + $0xc8] sm:$0xf] }
 0x17b   :  { %v929_v17 = vmul.f32 %v11077_v16, %v928_v36  ;;  %v11965_v43 = vadd.f32 %v11930_v39, %v981_v38  ;;  %v984_v42 = vmul.f32 %v11079_v26, %v901_v45  ;;  %v977_v36 = vand.u32 2147483648, %v11932_v10 }
 0x17c   :  { %v975_v38 = vand.u32 2147483647, %v11932_v10  ;;  %v959_v12 = vsel %vm958_vm3, %v11945_v8, %v955_v11  ;;  %v974_v1 = vsel %vm973_vm5, %v11948_v0, %v970_v24  ;;  %v8355_v10 = vld [vmem:[#allocation8 + $0xe0] sm:$0xf]  ;;  %v10476_v8 = vld [vmem:[#allocation8 + $0xec] sm:$0xf0] }
 0x17d   :  { %v930_v6 = vadd.f32 %v11077_v16, %v929_v17  ;;  %11080 = vtanh.f32 %v11965_v43  ;;  %v978_v25 = vor.u32 1.1754944e-38, %v977_v36  ;;  %v8356_v0 = vor.u32 %v10476_v8, %v8355_v10  ;;  %v8323_v10 = vld [vmem:[#allocation8 + $0xa0] sm:$0xf]  ;;  %v10468_v8 = vld [vmem:[#allocation8 + $0xac] sm:$0xf0] }
 0x17e   :  { %vm976_vm7 = vcmp.eq.f32.partialorder %v975_v38, 8.507059e+37  ;;  %v8339_v38 = vld [vmem:[#allocation8 + $0xc0] sm:$0xf] }
 0x17f   :  { %v934_v23 = vsel %vm933_vm13, %v11077_v16, %v930_v6  ;;  %v962_v16 = vand.u32 2147483648, %v11928_v19  ;;  %v979_v33 = vsel %vm976_vm7, %v978_v25, %v974_v1  ;;  %1614 = vmatpush.bf16.msra.mxu0 %v8356_v0  ;;  %v10470_v1 = vld [vmem:[#allocation8 + $0xc4] sm:$0xf]  ;;  %v10473_v25 = vld [vmem:[#allocation8 + $0xd4] sm:$0xf0]  ;;  %v495_v0 = vadd.f32 %v11787_v27, %v11877_v62 }
 0x180   :  { %v939_v39 = vsel %vm936_vm15, %v938_v22, %v934_v23  ;;  %v10474_v22 = vld [vmem:[#allocation8 + $0xe4] sm:$0xf]  ;;  %v8363_v23 = vld [vmem:[#allocation8 + $0xe8] sm:$0xf] }
 0x181   :  { %v982_v4 = vmul.f32 0.0, %v939_v39  ;;  %v963_v40 = vor.u32 1.1754944e-38, %v962_v16  ;;  %v8360_v45 = vor.u32 %v10474_v22, %v8357_v46  ;;  %v8364_v39 = vor.u32 %v10477_v7, %v8363_v23  ;;  %v10466_v22 = vld [vmem:[#allocation8 + $0xa4] sm:$0xf]  ;;  %v8325_v23 = vld [vmem:[#allocation8 + $0xb0] sm:$0xf0] }
 0x182   :  { %v8324_v46 = vor.u32 %v10468_v8, %v8323_v10  ;;  %v8331_v7 = vld [vmem:[#allocation8 + $0xa8] sm:$0xf] }
 0x183   :  { %v11973_v20 = vadd.f32 %v984_v42, %v982_v4  ;;  %v11081_v17 = vpop.eup %11080  ;;  %v964_v13 = vsel %vm961_vm6, %v963_v40, %v959_v12  ;;  %v10475_v4 = vld [vmem:[#allocation8 + $0xec] sm:$0xf]  ;;  %v8365_v42 = vld [vmem:[#allocation8 + $0xf8] sm:$0xf0]  ;;  %1628 = vmatpush.bf16.msra.mxu1 %v8360_v45  ;;  %1642 = vmatpush.bf16.msra.mxu2 %v8364_v39  ;;  %v10472_v12 = vld [vmem:[#allocation8 + $0xcc] sm:$0xf0]  ;;  %v350_v45 = vadd.f32 %v11758_v52, %v11732_v15 }
 0x184   :  { %v989_v6 = vmul.f32 %v11081_v17, %v964_v13  ;;  %v8368_v16 = vor.u32 %v10475_v4, %v8365_v42  ;;  %v8340_v17 = vor.u32 %v10472_v12, %v8339_v38  ;;  %v8341_v40 = vld [vmem:[#allocation8 + $0xd0] sm:$0xf0]  ;;  %v399_v39 = vadd.f32 %v11801_v51, %v11886_v14  ;;  %v10464_v52 = vld [vmem:[#allocation8 + $0x8c] sm:$0xf0] }
 0x185   :  { %11082 = vtanh.f32 %v11973_v20  ;;  %v8328_v42 = vor.u32 %v10466_v22, %v8325_v23  ;;  %v10463_v22 = vld [vmem:[#allocation8 + $0x8c] sm:$0xf] }
 0x186   :  { %1656 = vmatpush.bf16.msra.mxu3 %v8368_v16  ;;  %1615 = vmatpush.bf16.msra.mxu0 %v8340_v17  ;;  %v8333_v16 = vld [vmem:[#allocation8 + $0xb8] sm:$0xf0]  ;;  %v8307_v17 = vld [vmem:[#allocation8 + $0x80] sm:$0xf] }
 0x187   :  { %v8308_v51 = vor.u32 %v10464_v52, %v8307_v17 }
 0x18a   :  { %1616 = vmatpush.bf16.msra.mxu0 %v8324_v46 }
 0x18b   :  { %v11083_v30 = vpop.eup %11082 }
 0x18c   :  { %v990_v26 = vmul.f32 %v11083_v30, %v979_v33  ;;  %v8344_v33 = vor.u32 %v10470_v1, %v8341_v40  ;;  %v10462_v40 = vld [vmem:[#allocation8 + $0x84] sm:$0xf] }
 0x18e   :  { %v10953_v19 = vpack.c.bf16 %v990_v26, %v989_v6  ;;  %v8348_v6 = vor.u32 %v10473_v25, %v8347_v48  ;;  %v10471_v26 = vld [vmem:[#allocation8 + $0xcc] sm:$0xf]  ;;  %1629 = vmatpush.bf16.msra.mxu1 %v8344_v33  ;;  %v8309_v25 = vld [vmem:[#allocation8 + $0x90] sm:$0xf0]  ;;  %1617 = vmatpush.bf16.msra.mxu0 %v8308_v51  ;;  %v10456_v51 = vld [vmem:[#allocation8 + $0x4c] sm:$0xf0] }
 0x190   :  { %10954 = vst [vmem:[#allocation4 + $0x30] sm:$0xff] %v10953_v19   ;;  %1215 = vmatmul.bf16.vlgmr.msrb.gmra.mxu0 %v10953_v19  ;;  %1229 = vmatmul.bf16.vlgmr.msrb.gmra.mxu1 %v10953_v19 }
 0x191   :  { %1243 = vmatmul.bf16.vlgmr.msrb.gmra.mxu2 %v10953_v19  ;;  %1257 = vmatmul.bf16.vlgmr.msrb.gmra.mxu3 %v10953_v19  ;;  %v8349_v19 = vld [vmem:[#allocation8 + $0xd8] sm:$0xf0] }
 0x192   :  { %1643 = vmatpush.bf16.msra.mxu2 %v8348_v6  ;;  %1630 = vmatpush.bf16.msra.mxu1 %v8328_v42  ;;  %v446_v42 = vadd.f32 %v11797_v49, %v11895_v32 }
 0x20d   :  { %v1216_v11 = vpop.f32.mrf.mxu0  ;;  %v1230_v24 = vpop.f32.mrf.mxu1 }
 0x20e   :  { %v1263_v36 = vadd.f32 %v1216_v11, %v11747_v29  ;;  %v1264_v35 = vadd.f32 %v1230_v24, %v397_v44  ;;  %v8352_v29 = vor.u32 %v10471_v26, %v8349_v19  ;;  %v10469_v44 = vld [vmem:[#allocation8 + $0xb4] sm:$0xf0]  ;;  %v10467_v24 = vld [vmem:[#allocation8 + $0xac] sm:$0xf]  ;;  %v8312_v26 = vor.u32 %v10462_v40, %v8309_v25  ;;  %v10454_v25 = vld [vmem:[#allocation8 + $0x44] sm:$0xf] }
 0x20f   :  { %v8332_v11 = vor.u32 %v10469_v44, %v8331_v7  ;;  %v8336_v38 = vor.u32 %v10467_v24, %v8333_v16  ;;  %v10465_v19 = vld [vmem:[#allocation8 + $0x94] sm:$0xf0]  ;;  %v8291_v44 = vld [vmem:[#allocation8 + $0x60] sm:$0xf]  ;;  %v8299_v24 = vld [vmem:[#allocation8 + $0x68] sm:$0xf] }
 0x210   :  { %v8235_v30 = vmul.f32 -1.442695, %v1263_v36  ;;  %v8237_v13 = vmul.f32 -1.442695, %v1264_v35  ;;  %1657 = vmatpush.bf16.msra.mxu3 %v8352_v29  ;;  %1631 = vmatpush.bf16.msra.mxu1 %v8312_v26  ;;  %v10461_v16 = vld [vmem:[#allocation8 + $0x74] sm:$0xf0] }
 0x211   :  { %1644 = vmatpush.bf16.msra.mxu2 %v8332_v11  ;;  %v8300_v52 = vor.u32 %v10461_v16, %v8299_v24 }
 0x212   :  { %11084 = vpow2.f32 %v8235_v30  ;;  %v8315_v30 = vld [vmem:[#allocation8 + $0x88] sm:$0xf] }
 0x213   :  { %11086 = vpow2.f32 %v8237_v13  ;;  %v8316_v8 = vor.u32 %v10465_v19, %v8315_v30 }
 0x214   :  { %v1258_v4 = vpop.f32.mrf.mxu3  ;;  %1658 = vmatpush.bf16.msra.mxu3 %v8336_v38  ;;  %v1244_v23 = vpop.f32.mrf.mxu2  ;;  %v8301_v38 = vld [vmem:[#allocation8 + $0x78] sm:$0xf0] }
 0x215   :  { %v1266_v36 = vadd.f32 %v1258_v4, %v495_v0  ;;  %v1218_v35 = vpop.f32.mrf.mxu0  ;;  %v1232_v27 = vpop.f32.mrf.mxu1  ;;  %v8317_v0 = vld [vmem:[#allocation8 + $0x98] sm:$0xf0]  ;;  %1645 = vmatpush.bf16.msra.mxu2 %v8316_v8  ;;  %v8293_v4 = vld [vmem:[#allocation8 + $0x70] sm:$0xf0] }
 0x216   :  { %v1267_v12 = vadd.f32 %v1218_v35, %v350_v45  ;;  %v1268_v1 = vadd.f32 %v1232_v27, %v399_v39  ;;  %v8320_v7 = vor.u32 %v10463_v22, %v8317_v0  ;;  %v10460_v45 = vld [vmem:[#allocation8 + $0x6c] sm:$0xf0]  ;;  %v10458_v39 = vld [vmem:[#allocation8 + $0x64] sm:$0xf]  ;;  %v10459_v27 = vld [vmem:[#allocation8 + $0x6c] sm:$0xf]  ;;  %v448_v22 = vadd.f32 %v11803_v54, %v11895_v32 }
 0x217   :  { %v8239_v48 = vmul.f32 -1.442695, %v1266_v36  ;;  %v497_v36 = vadd.f32 %v11793_v47, %v11877_v62  ;;  %v8292_v35 = vor.u32 %v10460_v45, %v8291_v44  ;;  %v8296_v17 = vor.u32 %v10458_v39, %v8293_v4 }
 0x218   :  { %v11085_v13 = vpop.eup %11084  ;;  %v8236_v33 = vmul.f32 -1.442695, %v1267_v12  ;;  %v8238_v6 = vmul.f32 -1.442695, %v1268_v1  ;;  %1659 = vmatpush.bf16.msra.mxu3 %v8320_v7  ;;  %v1265_v1 = vadd.f32 %v1244_v23, %v446_v42  ;;  %v8304_v40 = vor.u32 %v10459_v27, %v8301_v38 }
 0x219   :  { %v11087_v29 = vpop.eup %11086  ;;  %v11996_v10 = vadd.f32 1.0, %v11085_v13  ;;  %11088 = vpow2.f32 %v8239_v48  ;;  %v8275_v48 = vld [vmem:[#allocation8 + $0x40] sm:$0xf]  ;;  %1618 = vmatpush.bf16.msra.mxu0 %v8292_v35  ;;  %1632 = vmatpush.bf16.msra.mxu1 %v8296_v17  ;;  %v10457_v35 = vld [vmem:[#allocation8 + $0x54] sm:$0xf0] }
 0x21a   :  { %v11998_v46 = vadd.f32 1.0, %v11087_v29  ;;  %11090 = vpow2.f32 %v8236_v33  ;;  %v8276_v13 = vor.u32 %v10456_v51, %v8275_v48  ;;  %v8277_v33 = vld [vmem:[#allocation8 + $0x50] sm:$0xf0]  ;;  %1646 = vmatpush.bf16.msra.mxu2 %v8300_v52  ;;  %v8285_v52 = vld [vmem:[#allocation8 + $0x58] sm:$0xf0] }
 0x21b   :  { %11092 = vrcp.f32 %v11996_v10  ;;  %v1288_v47 = vand.u32 2147483647, %v11996_v10  ;;  %v8280_v29 = vor.u32 %v10454_v25, %v8277_v33  ;;  %v1290_v23 = vand.u32 2147483648, %v11996_v10  ;;  %v10452_v48 = vld [vmem:[#allocation8 + $0x2c] sm:$0xf0] }
 0x21c   :  { %11094 = vrcp.f32 %v11998_v46  ;;  %v1260_v11 = vpop.f32.mrf.mxu3  ;;  %1660 = vmatpush.bf16.msra.mxu3 %v8304_v40  ;;  %v1328_v45 = vand.u32 2147483648, %v11998_v46  ;;  %v1326_v39 = vand.u32 2147483647, %v11998_v46  ;;  %v1246_v54 = vpop.f32.mrf.mxu2  ;;  %vm1322_vm11 = vweird.f32 %v11998_v46  ;;  %v8259_v40 = vld [vmem:[#allocation8 + $0x20] sm:$0xf] }
 0x21d   :  { %11096 = vpow2.f32 %v8238_v6  ;;  %v1270_v49 = vadd.f32 %v1260_v11, %v497_v36  ;;  %1619 = vmatpush.bf16.msra.mxu0 %v8276_v13  ;;  %vm12028_vm9 = vcmp.eq.f32.partialorder %v1288_v47, 8.507059e+37  ;;  %1633 = vmatpush.bf16.msra.mxu1 %v8280_v29  ;;  %v8283_v36 = vld [vmem:[#allocation8 + $0x48] sm:$0xf]  ;;  %v1291_v38 = vor.u32 1.1754944e-38, %v1290_v23  ;;  %v10450_v13 = vld [vmem:[#allocation8 + $0x24] sm:$0xf] }
 0x21e   :  { %11098 = vtanh.f32 %v1265_v1  ;;  %vm1284_vm12 = vweird.f32 %v11996_v10  ;;  %v1269_v17 = vadd.f32 %v1246_v54, %v448_v22  ;;  %v1329_v51 = vor.u32 1.1754944e-38, %v1328_v45  ;;  %v8261_v33 = vld [vmem:[#allocation8 + $0x30] sm:$0xf0]  ;;  %v8267_v23 = vld [vmem:[#allocation8 + $0x28] sm:$0xf] }
 0x21f   :  { %v11089_v12 = vpop.eup %11088  ;;  %v8240_v11 = vmul.f32 -1.442695, %v1270_v49  ;;  %v8284_v49 = vor.u32 %v10457_v35, %v8283_v36  ;;  %vm12053_vm15 = vcmp.eq.f32.partialorder %v1326_v39, 8.507059e+37  ;;  %v10453_v54 = vld [vmem:[#allocation8 + $0x34] sm:$0xf0]  ;;  %v8264_v16 = vor.u32 %v10450_v13, %v8261_v33 }
 0x220   :  { %v11091_v30 = vpop.eup %11090  ;;  %v12009_v26 = vadd.f32 1.0, %v11089_v12  ;;  %v10455_v12 = vld [vmem:[#allocation8 + $0x4c] sm:$0xf]  ;;  %v8269_v39 = vld [vmem:[#allocation8 + $0x38] sm:$0xf0] }
 0x221   :  { %v12006_v6 = vpop.eup %11092  ;;  %v12011_v19 = vadd.f32 1.0, %v11091_v30  ;;  %1647 = vmatpush.bf16.msra.mxu2 %v8284_v49  ;;  %v8288_v45 = vor.u32 %v10455_v12, %v8285_v52  ;;  %v10446_v12 = vld [vmem:[#allocation8 + $0x4] sm:$0xf]  ;;  %1634 = vmatpush.bf16.msra.mxu1 %v8264_v16 }
 0x222   :  { %v12013_v8 = vpop.eup %11094  ;;  %v1280_v0 = vmul.f32 %v12006_v6, %v11996_v10  ;;  %vm1285_vm8 = vweird.f32 %v12006_v6 }
 0x223   :  { %v11097_v7 = vpop.eup %11096  ;;  %v1318_v44 = vmul.f32 %v12013_v8, %v11998_v46  ;;  %11100 = vrcp.f32 %v12011_v19  ;;  %vm1323_vm10 = vweird.f32 %v12013_v8  ;;  %vm12042_vm13 = vmor %vm1284_vm12, %vm1285_vm8  ;;  %vm1299_vm0 = vweird.f32 %v12011_v19  ;;  %1661 = vmatpush.bf16.msra.mxu3 %v8288_v45 }
 0x224   :  { %v1281_v4 = vsub.f32 1.0, %v1280_v0  ;;  %v12025_v42 = vadd.f32 1.0, %v11097_v7  ;;  %11102 = vrcp.f32 %v12009_v26  ;;  %v11099_v46 = vpop.eup %11098  ;;  %vm12048_vm14 = vmor %vm1322_vm11, %vm1323_vm10  ;;  %v1305_v10 = vand.u32 2147483648, %v12011_v19 }
 0x225   :  { %v1319_v24 = vsub.f32 1.0, %v1318_v44 }
 0x226   :  { %v1282_v27 = vmul.f32 %v12006_v6, %v1281_v4  ;;  %11104 = vrcp.f32 %v12025_v42  ;;  %v8260_v4 = vor.u32 %v10452_v48, %v8259_v40  ;;  %vm1337_vm3 = vweird.f32 %v12025_v42 }
 0x227   :  { %v1320_v1 = vmul.f32 %v12013_v8, %v1319_v24  ;;  %11106 = vpow2.f32 %v8240_v11  ;;  %v10451_v11 = vld [vmem:[#allocation8 + $0x2c] sm:$0xf] }
 0x228   :  { %v1283_v25 = vadd.f32 %v12006_v6, %v1282_v27  ;;  %11108 = vtanh.f32 %v1269_v17  ;;  %1620 = vmatpush.bf16.msra.mxu0 %v8260_v4  ;;  %v8272_v45 = vor.u32 %v10451_v11, %v8269_v39  ;;  %v1306_v11 = vor.u32 1.1754944e-38, %v1305_v10 }
 0x229   :  { %v1321_v47 = vadd.f32 %v12013_v8, %v1320_v1  ;;  %v12059_v7 = vpop.eup %11100  ;;  %v10448_v1 = vld [vmem:[#allocation8 + $0xc] sm:$0xf0] }
 0x22a   :  { %v1287_v44 = vsel %vm12042_vm13, %v12006_v6, %v1283_v25  ;;  %v12064_v24 = vpop.eup %11102  ;;  %v1295_v27 = vmul.f32 %v12059_v7, %v12011_v19  ;;  %v8243_v6 = vld [vmem:[#allocation8] sm:$0xf]  ;;  %v8251_v25 = vld [vmem:[#allocation8 + $0x8] sm:$0xf]  ;;  %vm1300_vm1 = vweird.f32 %v12059_v7  ;;  %1662 = vmatpush.bf16.msra.mxu3 %v8272_v45 }
 0x22b   :  { %v1292_v36 = vsel %vm12028_vm9, %v1291_v38, %v1287_v44  ;;  %v1325_v35 = vsel %vm12048_vm14, %v12013_v8, %v1321_v47  ;;  %v8245_v38 = vld [vmem:[#allocation8 + $0x10] sm:$0xf0]  ;;  %v10449_v8 = vld [vmem:[#allocation8 + $0x14] sm:$0xf0]  ;;  %v10447_v47 = vld [vmem:[#allocation8 + $0xc] sm:$0xf]  ;;  %v8244_v13 = vor.u32 %v10448_v1, %v8243_v6  ;;  %vm1363_vm8 = vweird.f32 %v12064_v24 }
 0x22c   :  { %v11105_v52 = vpop.eup %11104  ;;  %v1330_v40 = vsel %vm12053_vm15, %v1329_v51, %v1325_v35  ;;  %v1389_v48 = vmul.f32 %v11099_v46, %v1292_v36  ;;  %v1296_v49 = vsub.f32 1.0, %v1295_v27  ;;  %v8253_v44 = vld [vmem:[#allocation8 + $0x18] sm:$0xf0]  ;;  %v1358_v51 = vmul.f32 %v12064_v24, %v12009_v26  ;;  %vm1301_vm4 = vmor %vm1299_vm0, %vm1300_vm1 }
 0x22d   :  { %v1387_v30 = vmul.f32 %v1330_v40, %v11965_v43  ;;  %v1333_v17 = vmul.f32 %v11105_v52, %v12025_v42  ;;  %v11107_v29 = vpop.eup %11106  ;;  %v8268_v46 = vor.u32 %v10453_v54, %v8267_v23  ;;  %v8248_v35 = vor.u32 %v10446_v12, %v8245_v38  ;;  %1621 = vmatpush.bf16.msra.mxu0 %v8244_v13 }
 0x22e   :  { %v1297_v43 = vmul.f32 %v12059_v7, %v1296_v49  ;;  %v1356_v36 = vadd.f32 1.0, %v11107_v29  ;;  %v8252_v27 = vor.u32 %v10449_v8, %v8251_v25  ;;  %v8256_v40 = vor.u32 %v10447_v47, %v8253_v44  ;;  %v11109_v22 = vpop.eup %11108 }
 0x22f   :  { %v12081_v33 = vadd.f32 %v1389_v48, %v1387_v30  ;;  %v1334_v4 = vsub.f32 1.0, %v1333_v17  ;;  %1648 = vmatpush.bf16.msra.mxu2 %v8268_v46  ;;  %vm1338_vm2 = vweird.f32 %v11105_v52  ;;  %v1341_v54 = vand.u32 2147483647, %v12025_v42  ;;  %1635 = vmatpush.bf16.msra.mxu1 %v8248_v35 }
 0x230   :  { %v1298_v23 = vadd.f32 %v12059_v7, %v1297_v43  ;;  %11110 = vrcp.f32 %v1356_v36  ;;  %v1359_v39 = vsub.f32 1.0, %v1358_v51  ;;  %v14052_v1 = vand.u32 2147483647, %v12011_v19  ;;  %vm1339_vm6 = vmor %vm1337_vm3, %vm1338_vm2  ;;  %1663 = vmatpush.bf16.msra.mxu3 %v8256_v40 }
 0x231   :  { %v1335_v0 = vmul.f32 %v11105_v52, %v1334_v4  ;;  %v14053_v48 = vand.u32 2147483648, %v12025_v42  ;;  %vm1342_vm7 = vcmp.eq.f32.partialorder %v1341_v54, 8.507059e+37  ;;  %11112 = vtanh.f32 %v12081_v33  ;;  %v10506_v54 = vld [vmem:[#allocation8 + $0xe4] sm:$0xf] }
 0x232   :  { %v1302_v6 = vsel %vm1301_vm4, %v12059_v7, %v1298_v23  ;;  %vm1304_vm5 = vcmp.eq.f32.partialorder %v14052_v1, 8.507059e+37  ;;  %v1360_v49 = vmul.f32 %v12064_v24, %v1359_v39  ;;  %vm1362_vm9 = vweird.f32 %v12009_v26  ;;  %v8491_v39 = vld [vmem:[#allocation8 + $0xf0] sm:$0xf0]  ;;  %v10509_v1 = vld [vmem:[#allocation8 + $0xf4] sm:$0xf0] }
 0x233   :  { %v1336_v12 = vadd.f32 %v11105_v52, %v1335_v0  ;;  %v1344_v16 = vor.u32 1.1754944e-38, %v14053_v48  ;;  %v1307_v38 = vsel %vm1304_vm5, %v1306_v11, %v1302_v6  ;;  %1649 = vmatpush.bf16.msra.mxu2 %v8252_v27  ;;  %v1381_v44 = vand.u32 2147483647, %v1356_v36  ;;  %vm1364_vm11 = vmor %vm1362_vm9, %vm1363_vm8  ;;  %v8497_v6 = vld [vmem:[#allocation8 + $0xe8] sm:$0xf] }
 0x234   :  { %v1390_v8 = vmul.f32 %v11109_v22, %v1307_v38  ;;  %v1361_v42 = vadd.f32 %v12064_v24, %v1360_v49  ;;  %v1368_v22 = vand.u32 2147483648, %v12009_v26  ;;  %vm1377_vm12 = vweird.f32 %v1356_v36  ;;  %v10507_v38 = vld [vmem:[#allocation8 + $0xec] sm:$0xf] }
 0x235   :  { %v1340_v25 = vsel %vm1339_vm6, %v11105_v52, %v1336_v12  ;;  %v1383_v52 = vand.u32 2147483648, %v1356_v36  ;;  %vm1382_vm15 = vcmp.eq.f32.partialorder %v1381_v44, 8.507059e+37  ;;  %v402_v12 = vadd.f32 %v11807_v56, %v11886_v14  ;;  %v8481_v56 = vld [vmem:[#allocation8 + $0xc8] sm:$0xf] }
 0x236   :  { %v1345_v30 = vsel %vm1342_vm7, %v1344_v16, %v1340_v25  ;;  %v11111_v7 = vpop.eup %11110  ;;  %v1365_v51 = vsel %vm1364_vm11, %v12064_v24, %v1361_v42  ;;  %v1369_v45 = vor.u32 1.1754944e-38, %v1368_v22  ;;  %v10508_v24 = vld [vmem:[#allocation8 + $0xec] sm:$0xf0]  ;;  %v8494_v48 = vor.u32 %v10506_v54, %v8491_v39  ;;  %v8499_v25 = vld [vmem:[#allocation8 + $0xf8] sm:$0xf0] }
 0x237   :  { %v1388_v17 = vmul.f32 %v1345_v30, %v11973_v20  ;;  %v1373_v19 = vmul.f32 %v11111_v7, %v1356_v36  ;;  %v1366_v20 = vand.u32 2147483647, %v12009_v26  ;;  %vm1378_vm10 = vweird.f32 %v11111_v7  ;;  %v11113_v46 = vpop.eup %11112  ;;  %v8489_v36 = vld [vmem:[#allocation8 + $0xe0] sm:$0xf]  ;;  %v10504_v42 = vld [vmem:[#allocation8 + $0xcc] sm:$0xf0] }
 0x238   :  { %vm1379_vm13 = vmor %vm1377_vm12, %vm1378_vm10  ;;  %v1384_v13 = vor.u32 1.1754944e-38, %v1383_v52  ;;  %v8490_v11 = vor.u32 %v10508_v24, %v8489_v36  ;;  %v8498_v16 = vor.u32 %v10509_v1, %v8497_v6  ;;  %v8502_v49 = vor.u32 %v10507_v38, %v8499_v25  ;;  %2035 = vmatpush.bf16.msrb.mxu1 %v8494_v48  ;;  %v8475_v52 = vld [vmem:[#allocation8 + $0xd0] sm:$0xf0]  ;;  %v10499_v6 = vld [vmem:[#allocation8 + $0xac] sm:$0xf] }
 0x239   :  { %v12097_v10 = vadd.f32 %v1390_v8, %v1388_v17  ;;  %v1374_v0 = vsub.f32 1.0, %v1373_v19  ;;  %vm1367_vm14 = vcmp.eq.f32.partialorder %v1366_v20, 8.507059e+37  ;;  %v8473_v19 = vld [vmem:[#allocation8 + $0xc0] sm:$0xf]  ;;  %v10505_v20 = vld [vmem:[#allocation8 + $0xd4] sm:$0xf0]  ;;  %v355_v36 = vadd.f32 %v11775_v41, %v11732_v15 }
 0x23a   :  { %v1370_v35 = vsel %vm1367_vm14, %v1369_v45, %v1365_v51  ;;  %2021 = vmatpush.bf16.msrb.mxu0 %v8490_v11  ;;  %2049 = vmatpush.bf16.msrb.mxu2 %v8498_v16  ;;  %v8474_v22 = vor.u32 %v10504_v42, %v8473_v19  ;;  %v8482_v51 = vor.u32 %v10505_v20, %v8481_v56  ;;  %v8483_v45 = vld [vmem:[#allocation8 + $0xd8] sm:$0xf0]  ;;  %v10496_v41 = vld [vmem:[#allocation8 + $0x8c] sm:$0xf0] }
 0x23b   :  { %11114 = vtanh.f32 %v12097_v10  ;;  %v1375_v47 = vmul.f32 %v11111_v7, %v1374_v0  ;;  %v1395_v40 = vmul.f32 %v11113_v46, %v1370_v35  ;;  %v10502_v0 = vld [vmem:[#allocation8 + $0xc4] sm:$0xf]  ;;  %2063 = vmatpush.bf16.msrb.mxu3 %v8502_v49  ;;  %v10503_v46 = vld [vmem:[#allocation8 + $0xcc] sm:$0xf]  ;;  %v500_v35 = vadd.f32 %v11799_v50, %v11877_v62  ;;  %v8467_v1 = vld [vmem:[#allocation8 + $0xb8] sm:$0xf0] }
 0x23c   :  { %v404_v24 = vadd.f32 %v11813_v59, %v11886_v14  ;;  %v8470_v16 = vor.u32 %v10499_v6, %v8467_v1 }
 0x23d   :  { %v1376_v29 = vadd.f32 %v11111_v7, %v1375_v47 }
 0x23e   :  { %2022 = vmatpush.bf16.msrb.mxu0 %v8474_v22  ;;  %2050 = vmatpush.bf16.msrb.mxu2 %v8482_v51 }
 0x23f   :  { %v1380_v43 = vsel %vm1379_vm13, %v11111_v7, %v1376_v29  ;;  %v8478_v29 = vor.u32 %v10502_v0, %v8475_v52  ;;  %v10497_v52 = vld [vmem:[#allocation8 + $0x94] sm:$0xf0] }
 0x240   :  { %v1385_v27 = vsel %vm1382_vm15, %v1384_v13, %v1380_v43  ;;  %v8457_v13 = vld [vmem:[#allocation8 + $0xa0] sm:$0xf]  ;;  %v10498_v43 = vld [vmem:[#allocation8 + $0xa4] sm:$0xf] }
 0x241   :  { %v11115_v4 = vpop.eup %11114  ;;  %2036 = vmatpush.bf16.msrb.mxu1 %v8478_v29  ;;  %v8451_v29 = vld [vmem:[#allocation8 + $0x98] sm:$0xf0] }
 0x242   :  { %v1396_v26 = vmul.f32 %v11115_v4, %v1385_v27  ;;  %v10500_v4 = vld [vmem:[#allocation8 + $0xac] sm:$0xf0] }
 0x243   :  { %v8458_v27 = vor.u32 %v10500_v4, %v8457_v13  ;;  %v10492_v13 = vld [vmem:[#allocation8 + $0x6c] sm:$0xf0]  ;;  %v10490_v4 = vld [vmem:[#allocation8 + $0x64] sm:$0xf] }
 0x244   :  { %v10958_v23 = vpack.c.bf16 %v1396_v26, %v1395_v40  ;;  %v8459_v40 = vld [vmem:[#allocation8 + $0xb0] sm:$0xf0]  ;;  %v8465_v26 = vld [vmem:[#allocation8 + $0xa8] sm:$0xf] }
 0x245   :  { %v8462_v11 = vor.u32 %v10498_v43, %v8459_v40  ;;  %2023 = vmatpush.bf16.msrb.mxu0 %v8458_v27  ;;  %v8427_v43 = vld [vmem:[#allocation8 + $0x70] sm:$0xf0]  ;;  %v8433_v40 = vld [vmem:[#allocation8 + $0x68] sm:$0xf] }
 0x246   :  { %10959 = vst [vmem:[#allocation4] sm:$0xff] %v10958_v23   ;;  %1622 = vmatmul.bf16.vlgmr.msra.gmra.mxu0 %v10958_v23  ;;  %1636 = vmatmul.bf16.vlgmr.msra.gmra.mxu1 %v10958_v23  ;;  %v8430_v6 = vor.u32 %v10490_v4, %v8427_v43 }
 0x247   :  { %1650 = vmatmul.bf16.vlgmr.msra.gmra.mxu2 %v10958_v23  ;;  %1664 = vmatmul.bf16.vlgmr.msra.gmra.mxu3 %v10958_v23  ;;  %v10501_v23 = vld [vmem:[#allocation8 + $0xb4] sm:$0xf0] }
 0x248   :  { %v8466_v39 = vor.u32 %v10501_v23, %v8465_v26  ;;  %2037 = vmatpush.bf16.msrb.mxu1 %v8462_v11  ;;  %v10493_v26 = vld [vmem:[#allocation8 + $0x74] sm:$0xf0]  ;;  %v502_v23 = vadd.f32 %v11805_v55, %v11877_v62 }
 0x249   :  { %v8434_v1 = vor.u32 %v10493_v26, %v8433_v40  ;;  %v8419_v26 = vld [vmem:[#allocation8 + $0x58] sm:$0xf0] }
 0x24a   :  { %2051 = vmatpush.bf16.msrb.mxu2 %v8466_v39 }
 0x2c3   :  { %v1623_v8 = vpop.f32.mrf.mxu0  ;;  %v1637_v30 = vpop.f32.mrf.mxu1 }
 0x2c4   :  { %v1670_v17 = vadd.f32 %v1623_v8, %v11765_v37  ;;  %v1671_v7 = vadd.f32 %v1637_v30, %v402_v12  ;;  %v8486_v37 = vor.u32 %v10503_v46, %v8483_v45  ;;  %v8441_v8 = vld [vmem:[#allocation8 + $0x80] sm:$0xf]  ;;  %v10494_v30 = vld [vmem:[#allocation8 + $0x84] sm:$0xf] }
 0x2c5   :  { %v8442_v59 = vor.u32 %v10496_v41, %v8441_v8  ;;  %v8411_v8 = vld [vmem:[#allocation8 + $0x50] sm:$0xf0] }
 0x2c6   :  { %v8369_v47 = vmul.f32 -1.442695, %v1670_v17  ;;  %v8371_v44 = vmul.f32 -1.442695, %v1671_v7  ;;  %2064 = vmatpush.bf16.msrb.mxu3 %v8486_v37  ;;  %v8443_v17 = vld [vmem:[#allocation8 + $0x90] sm:$0xf0] }
 0x2c7   :  { %v8449_v7 = vld [vmem:[#allocation8 + $0x88] sm:$0xf]  ;;  %v8446_v22 = vor.u32 %v10494_v30, %v8443_v17  ;;  %2024 = vmatpush.bf16.msrb.mxu0 %v8442_v59  ;;  %v8425_v37 = vld [vmem:[#allocation8 + $0x60] sm:$0xf] }
 0x2c8   :  { %11116 = vpow2.f32 %v8369_v47  ;;  %v8450_v47 = vor.u32 %v10497_v52, %v8449_v7  ;;  %v453_v7 = vadd.f32 %v11815_v53, %v11895_v32 }
 0x2c9   :  { %11118 = vpow2.f32 %v8371_v44  ;;  %v10495_v44 = vld [vmem:[#allocation8 + $0x8c] sm:$0xf]  ;;  %2038 = vmatpush.bf16.msrb.mxu1 %v8446_v22 }
 0x2ca   :  { %v1665_v54 = vpop.f32.mrf.mxu3  ;;  %2065 = vmatpush.bf16.msrb.mxu3 %v8470_v16  ;;  %v1651_v46 = vpop.f32.mrf.mxu2  ;;  %v8454_v45 = vor.u32 %v10495_v44, %v8451_v29  ;;  %2052 = vmatpush.bf16.msrb.mxu2 %v8450_v47  ;;  %v10486_v16 = vld [vmem:[#allocation8 + $0x44] sm:$0xf] }
 0x2cb   :  { %v1673_v12 = vadd.f32 %v1665_v54, %v500_v35  ;;  %v1625_v48 = vpop.f32.mrf.mxu0  ;;  %v1639_v50 = vpop.f32.mrf.mxu1  ;;  %v451_v35 = vadd.f32 %v11809_v57, %v11895_v32  ;;  %v8435_v54 = vld [vmem:[#allocation8 + $0x78] sm:$0xf0]  ;;  %v8414_v59 = vor.u32 %v10486_v16, %v8411_v8 }
 0x2cc   :  { %v1674_v38 = vadd.f32 %v1625_v48, %v355_v36  ;;  %v1675_v25 = vadd.f32 %v1639_v50, %v404_v24  ;;  %v8426_v36 = vor.u32 %v10492_v13, %v8425_v37  ;;  %v10491_v24 = vld [vmem:[#allocation8 + $0x6c] sm:$0xf]  ;;  %v8409_v48 = vld [vmem:[#allocation8 + $0x40] sm:$0xf]  ;;  %v10488_v50 = vld [vmem:[#allocation8 + $0x4c] sm:$0xf0] }
 0x2cd   :  { %v8373_v49 = vmul.f32 -1.442695, %v1673_v12  ;;  %v1672_v39 = vadd.f32 %v1651_v46, %v451_v35  ;;  %v8438_v12 = vor.u32 %v10491_v24, %v8435_v54  ;;  %2039 = vmatpush.bf16.msrb.mxu1 %v8430_v6  ;;  %v8417_v37 = vld [vmem:[#allocation8 + $0x48] sm:$0xf]  ;;  %v10489_v13 = vld [vmem:[#allocation8 + $0x54] sm:$0xf0] }
 0x2ce   :  { %v11117_v19 = vpop.eup %11116  ;;  %v8370_v42 = vmul.f32 -1.442695, %v1674_v38  ;;  %v8372_v0 = vmul.f32 -1.442695, %v1675_v25  ;;  %2066 = vmatpush.bf16.msrb.mxu3 %v8454_v45  ;;  %2025 = vmatpush.bf16.msrb.mxu0 %v8426_v36  ;;  %v8410_v25 = vor.u32 %v10488_v50, %v8409_v48  ;;  %v10487_v35 = vld [vmem:[#allocation8 + $0x4c] sm:$0xf] }
 0x2cf   :  { %v11119_v56 = vpop.eup %11118  ;;  %v12116_v20 = vadd.f32 1.0, %v11117_v19  ;;  %11120 = vpow2.f32 %v8373_v49  ;;  %2053 = vmatpush.bf16.msrb.mxu2 %v8434_v1  ;;  %v10484_v36 = vld [vmem:[#allocation8 + $0x2c] sm:$0xf0]  ;;  %v10482_v6 = vld [vmem:[#allocation8 + $0x24] sm:$0xf]  ;;  %v8422_v8 = vor.u32 %v10487_v35, %v8419_v26 }
 0x2d0   :  { %v12118_v51 = vadd.f32 1.0, %v11119_v56  ;;  %11122 = vpow2.f32 %v8370_v42  ;;  %v8395_v1 = vld [vmem:[#allocation8 + $0x30] sm:$0xf0]  ;;  %v8387_v26 = vld [vmem:[#allocation8 + $0x18] sm:$0xf0] }
 0x2d1   :  { %11124 = vrcp.f32 %v12116_v20  ;;  %v1695_v55 = vand.u32 2147483647, %v12116_v20  ;;  %v1697_v42 = vand.u32 2147483648, %v12116_v20  ;;  %2040 = vmatpush.bf16.msrb.mxu1 %v8414_v59  ;;  %vm1691_vm4 = vweird.f32 %v12116_v20  ;;  %v10485_v59 = vld [vmem:[#allocation8 + $0x34] sm:$0xf0] }
 0x2d2   :  { %11126 = vrcp.f32 %v12118_v51  ;;  %v1667_v27 = vpop.f32.mrf.mxu3  ;;  %2067 = vmatpush.bf16.msrb.mxu3 %v8438_v12  ;;  %v1735_v52 = vand.u32 2147483648, %v12118_v51  ;;  %v1733_v56 = vand.u32 2147483647, %v12118_v51  ;;  %v1653_v53 = vpop.f32.mrf.mxu2  ;;  %2026 = vmatpush.bf16.msrb.mxu0 %v8410_v25  ;;  %vm1729_vm3 = vweird.f32 %v12118_v51 }
 0x2d3   :  { %11128 = vpow2.f32 %v8372_v0  ;;  %v1677_v57 = vadd.f32 %v1667_v27, %v502_v23  ;;  %vm12148_vm1 = vcmp.eq.f32.partialorder %v1695_v55, 8.507059e+37  ;;  %v1698_v43 = vor.u32 1.1754944e-38, %v1697_v42  ;;  %v8393_v23 = vld [vmem:[#allocation8 + $0x20] sm:$0xf] }
 0x2d4   :  { %11130 = vtanh.f32 %v1672_v39  ;;  %v1676_v40 = vadd.f32 %v1653_v53, %v453_v7  ;;  %v1736_v24 = vor.u32 1.1754944e-38, %v1735_v52  ;;  %v8418_v39 = vor.u32 %v10489_v13, %v8417_v37  ;;  %v10483_v7 = vld [vmem:[#allocation8 + $0x2c] sm:$0xf]  ;;  %v8379_v37 = vld [vmem:[#allocation8 + $0x10] sm:$0xf0] }
 0x2d5   :  { %v11121_v11 = vpop.eup %11120  ;;  %v8374_v29 = vmul.f32 -1.442695, %v1677_v57  ;;  %vm12173_vm7 = vcmp.eq.f32.partialorder %v1733_v56, 8.507059e+37  ;;  %v8394_v55 = vor.u32 %v10484_v36, %v8393_v23  ;;  %v10480_v56 = vld [vmem:[#allocation8 + $0xc] sm:$0xf0]  ;;  %v8398_v45 = vor.u32 %v10482_v6, %v8395_v1 }
 0x2d6   :  { %v11123_v38 = vpop.eup %11122  ;;  %v12129_v30 = vadd.f32 1.0, %v11121_v11  ;;  %2054 = vmatpush.bf16.msrb.mxu2 %v8418_v39  ;;  %2068 = vmatpush.bf16.msrb.mxu3 %v8422_v8  ;;  %v8385_v13 = vld [vmem:[#allocation8 + $0x8] sm:$0xf] }
 0x2d7   :  { %v12126_v41 = vpop.eup %11124  ;;  %v12131_v49 = vadd.f32 1.0, %v11123_v38  ;;  %v8401_v38 = vld [vmem:[#allocation8 + $0x28] sm:$0xf]  ;;  %2027 = vmatpush.bf16.msrb.mxu0 %v8394_v55  ;;  %2041 = vmatpush.bf16.msrb.mxu1 %v8398_v45 }
 0x2d8   :  { %v12133_v17 = vpop.eup %11126  ;;  %v1687_v19 = vmul.f32 %v12126_v41, %v12116_v20  ;;  %vm1692_vm0 = vweird.f32 %v12126_v41 }
 0x2d9   :  { %v11129_v0 = vpop.eup %11128  ;;  %v1725_v22 = vmul.f32 %v12133_v17, %v12118_v51  ;;  %11132 = vrcp.f32 %v12131_v49  ;;  %vm1730_vm2 = vweird.f32 %v12133_v17  ;;  %vm12162_vm5 = vmor %vm1691_vm4, %vm1692_vm0  ;;  %v1710_v16 = vand.u32 2147483647, %v12131_v49 }
 0x2da   :  { %v1688_v47 = vsub.f32 1.0, %v1687_v19  ;;  %v12145_v44 = vadd.f32 1.0, %v11129_v0  ;;  %11134 = vrcp.f32 %v12129_v30  ;;  %v11131_v51 = vpop.eup %11130  ;;  %vm12168_vm6 = vmor %vm1729_vm3, %vm1730_vm2  ;;  %v8403_v19 = vld [vmem:[#allocation8 + $0x38] sm:$0xf0]  ;;  %vm1706_vm8 = vweird.f32 %v12131_v49 }
 0x2db   :  { %v1726_v46 = vsub.f32 1.0, %v1725_v22  ;;  %vm1711_vm13 = vcmp.eq.f32.partialorder %v1710_v16, 8.507059e+37  ;;  %v1775_v16 = vand.u32 2147483648, %v12129_v30 }
 0x2dc   :  { %v1689_v4 = vmul.f32 %v12126_v41, %v1688_v47  ;;  %11136 = vrcp.f32 %v12145_v44  ;;  %v1750_v50 = vand.u32 2147483648, %v12145_v44  ;;  %v10478_v47 = vld [vmem:[#allocation8 + $0x4] sm:$0xf]  ;;  %v1748_v8 = vand.u32 2147483647, %v12145_v44 }
 0x2dd   :  { %v1727_v27 = vmul.f32 %v12133_v17, %v1726_v46  ;;  %11138 = vpow2.f32 %v8374_v29  ;;  %vm1744_vm11 = vweird.f32 %v12145_v44 }
 0x2de   :  { %v1690_v54 = vadd.f32 %v12126_v41, %v1689_v4  ;;  %11140 = vtanh.f32 %v1676_v40  ;;  %v10479_v40 = vld [vmem:[#allocation8 + $0xc] sm:$0xf]  ;;  %vm1749_vm15 = vcmp.eq.f32.partialorder %v1748_v8, 8.507059e+37 }
 0x2df   :  { %v1728_v12 = vadd.f32 %v12133_v17, %v1727_v27  ;;  %v12179_v57 = vpop.eup %11132  ;;  %v1712_v27 = vand.u32 2147483648, %v12131_v49 }
 0x2e0   :  { %v1694_v25 = vsel %vm12162_vm5, %v12126_v41, %v1690_v54  ;;  %v12184_v42 = vpop.eup %11134  ;;  %v1702_v52 = vmul.f32 %v12179_v57, %v12131_v49  ;;  %v8377_v41 = vld [vmem:[#allocation8] sm:$0xf]  ;;  %v8406_v54 = vor.u32 %v10483_v7, %v8403_v19  ;;  %vm1707_vm9 = vweird.f32 %v12179_v57 }
 0x2e1   :  { %v1699_v0 = vsel %vm12148_vm1, %v1698_v43, %v1694_v25  ;;  %v1732_v22 = vsel %vm12168_vm6, %v12133_v17, %v1728_v12  ;;  %v10481_v17 = vld [vmem:[#allocation8 + $0x14] sm:$0xf0]  ;;  %v1765_v36 = vmul.f32 %v12184_v42, %v12129_v30  ;;  %v8378_v11 = vor.u32 %v10480_v56, %v8377_v41  ;;  %vm1708_vm12 = vmor %vm1706_vm8, %vm1707_vm9 }
 0x2e2   :  { %v11137_v53 = vpop.eup %11136  ;;  %v1737_v29 = vsel %vm12173_vm7, %v1736_v24, %v1732_v22  ;;  %v1796_v46 = vmul.f32 %v11131_v51, %v1699_v0  ;;  %v1703_v43 = vsub.f32 1.0, %v1702_v52  ;;  %v8402_v24 = vor.u32 %v10485_v59, %v8401_v38  ;;  %2069 = vmatpush.bf16.msrb.mxu3 %v8406_v54  ;;  %v8623_v54 = vld [vmem:[#allocation8 + $0xe0] sm:$0xf] }
 0x2e3   :  { %v1794_v4 = vmul.f32 %v1737_v29, %v12081_v33  ;;  %v1740_v35 = vmul.f32 %v11137_v53, %v12145_v44  ;;  %v11139_v23 = vpop.eup %11138  ;;  %v8382_v51 = vor.u32 %v10478_v47, %v8379_v37  ;;  %v8386_v20 = vor.u32 %v10481_v17, %v8385_v13  ;;  %2028 = vmatpush.bf16.msrb.mxu0 %v8378_v11  ;;  %v10538_v11 = vld [vmem:[#allocation8 + $0xe4] sm:$0xf] }
 0x2e4   :  { %v1704_v33 = vmul.f32 %v12179_v57, %v1703_v43  ;;  %v1763_v1 = vadd.f32 1.0, %v11139_v23  ;;  %2055 = vmatpush.bf16.msrb.mxu2 %v8402_v24  ;;  %v8390_v12 = vor.u32 %v10479_v40, %v8387_v26  ;;  %v11141_v48 = vpop.eup %11140  ;;  %vm1745_vm10 = vweird.f32 %v11137_v53 }
 0x2e5   :  { %v12201_v39 = vadd.f32 %v1796_v46, %v1794_v4  ;;  %v1741_v6 = vsub.f32 1.0, %v1740_v35  ;;  %v1713_v55 = vor.u32 1.1754944e-38, %v1712_v27  ;;  %2042 = vmatpush.bf16.msrb.mxu1 %v8382_v51  ;;  %v1766_v59 = vsub.f32 1.0, %v1765_v36  ;;  %vm1746_vm14 = vmor %vm1744_vm11, %vm1745_vm10  ;;  %v10541_v51 = vld [vmem:[#allocation8 + $0xf4] sm:$0xf0] }
 0x2e6   :  { %v1705_v38 = vadd.f32 %v12179_v57, %v1704_v33  ;;  %11142 = vrcp.f32 %v1763_v1  ;;  %v1751_v0 = vor.u32 1.1754944e-38, %v1750_v50  ;;  %2070 = vmatpush.bf16.msrb.mxu3 %v8390_v12  ;;  %vm1770_vm0 = vweird.f32 %v12184_v42  ;;  %v8625_v33 = vld [vmem:[#allocation8 + $0xf0] sm:$0xf0] }
 0x2e7   :  { %v1742_v25 = vmul.f32 %v11137_v53, %v1741_v6  ;;  %v1767_v47 = vmul.f32 %v12184_v42, %v1766_v59  ;;  %11144 = vtanh.f32 %v12201_v39  ;;  %vm1769_vm1 = vweird.f32 %v12129_v30 }
 0x2e8   :  { %v1709_v7 = vsel %vm1708_vm12, %v12179_v57, %v1705_v38  ;;  %2056 = vmatpush.bf16.msrb.mxu2 %v8386_v20  ;;  %v1788_v37 = vand.u32 2147483647, %v1763_v1  ;;  %vm1771_vm3 = vmor %vm1769_vm1, %vm1770_vm0  ;;  %vm1784_vm4 = vweird.f32 %v1763_v1  ;;  %v1776_v43 = vor.u32 1.1754944e-38, %v1775_v16  ;;  %v8633_v38 = vld [vmem:[#allocation8 + $0xf8] sm:$0xf0] }
 0x2e9   :  { %v1743_v19 = vadd.f32 %v11137_v53, %v1742_v25  ;;  %v1714_v22 = vsel %vm1711_vm13, %v1713_v55, %v1709_v7  ;;  %v1768_v44 = vadd.f32 %v12184_v42, %v1767_v47  ;;  %v407_v20 = vadd.f32 %v11819_v61, %v11886_v14  ;;  %v10539_v25 = vld [vmem:[#allocation8 + $0xec] sm:$0xf]  ;;  %v8615_v61 = vld [vmem:[#allocation8 + $0xc8] sm:$0xf]  ;;  %v10537_v47 = vld [vmem:[#allocation8 + $0xd4] sm:$0xf0] }
 0x2ea   :  { %v1797_v41 = vmul.f32 %v11141_v48, %v1714_v22  ;;  %vm1789_vm7 = vcmp.eq.f32.partialorder %v1788_v37, 8.507059e+37  ;;  %v8628_v12 = vor.u32 %v10538_v11, %v8625_v33  ;;  %v8636_v59 = vor.u32 %v10539_v25, %v8633_v38  ;;  %v10536_v22 = vld [vmem:[#allocation8 + $0xcc] sm:$0xf0]  ;;  %v8617_v16 = vld [vmem:[#allocation8 + $0xd8] sm:$0xf0] }
 0x2eb   :  { %v1747_v52 = vsel %vm1746_vm14, %v11137_v53, %v1743_v19  ;;  %v1790_v53 = vand.u32 2147483648, %v1763_v1  ;;  %v1772_v17 = vsel %vm1771_vm3, %v12184_v42, %v1768_v44  ;;  %v10540_v42 = vld [vmem:[#allocation8 + $0xec] sm:$0xf0]  ;;  %v8616_v44 = vor.u32 %v10537_v47, %v8615_v61  ;;  %v8575_v33 = vld [vmem:[#allocation8 + $0x80] sm:$0xf] }
 0x2ec   :  { %v1752_v56 = vsel %vm1749_vm15, %v1751_v0, %v1747_v52  ;;  %v11143_v57 = vpop.eup %11142  ;;  %v8624_v6 = vor.u32 %v10540_v42, %v8623_v54  ;;  %2442 = vmatpush.bf16.msra.mxu1 %v8628_v12  ;;  %v8607_v0 = vld [vmem:[#allocation8 + $0xc0] sm:$0xf]  ;;  %v10534_v52 = vld [vmem:[#allocation8 + $0xc4] sm:$0xf]  ;;  %2470 = vmatpush.bf16.msra.mxu3 %v8636_v59  ;;  %v505_v37 = vadd.f32 %v11811_v58, %v11877_v62  ;;  %v8583_v12 = vld [vmem:[#allocation8 + $0x88] sm:$0xf] }
 0x2ed   :  { %v1795_v29 = vmul.f32 %v1752_v56, %v12097_v10  ;;  %v1780_v49 = vmul.f32 %v11143_v57, %v1763_v1  ;;  %v1773_v10 = vand.u32 2147483647, %v12129_v30  ;;  %vm1785_vm2 = vweird.f32 %v11143_v57  ;;  %v11145_v4 = vpop.eup %11144  ;;  %v8631_v1 = vld [vmem:[#allocation8 + $0xe8] sm:$0xf]  ;;  %v8609_v56 = vld [vmem:[#allocation8 + $0xd0] sm:$0xf0] }
 0x2ee   :  { %vm1786_vm5 = vmor %vm1784_vm4, %vm1785_vm2  ;;  %v1791_v35 = vor.u32 1.1754944e-38, %v1790_v53  ;;  %v8632_v48 = vor.u32 %v10541_v51, %v8631_v1  ;;  %2428 = vmatpush.bf16.msra.mxu0 %v8624_v6  ;;  %v8591_v53 = vld [vmem:[#allocation8 + $0xa0] sm:$0xf]  ;;  %v10526_v1 = vld [vmem:[#allocation8 + $0x84] sm:$0xf] }
 0x2ef   :  { %v12217_v46 = vadd.f32 %v1797_v41, %v1795_v29  ;;  %v1781_v50 = vsub.f32 1.0, %v1780_v49  ;;  %vm1774_vm6 = vcmp.eq.f32.partialorder %v1773_v10, 8.507059e+37  ;;  %v8608_v41 = vor.u32 %v10536_v22, %v8607_v0  ;;  %v10532_v10 = vld [vmem:[#allocation8 + $0xac] sm:$0xf0]  ;;  %v10527_v0 = vld [vmem:[#allocation8 + $0x8c] sm:$0xf] }
 0x2f0   :  { %v1777_v26 = vsel %vm1774_vm6, %v1776_v43, %v1772_v17  ;;  %2456 = vmatpush.bf16.msra.mxu2 %v8632_v48  ;;  %v8612_v49 = vor.u32 %v10534_v52, %v8609_v56  ;;  %v8593_v17 = vld [vmem:[#allocation8 + $0xb0] sm:$0xf0]  ;;  %v10533_v43 = vld [vmem:[#allocation8 + $0xb4] sm:$0xf0]  ;;  %v8585_v22 = vld [vmem:[#allocation8 + $0x98] sm:$0xf0] }
 0x2f1   :  { %11146 = vtanh.f32 %v12217_v46  ;;  %v1782_v45 = vmul.f32 %v11143_v57, %v1781_v50  ;;  %v1802_v36 = vmul.f32 %v11145_v4, %v1777_v26  ;;  %v10535_v50 = vld [vmem:[#allocation8 + $0xcc] sm:$0xf]  ;;  %v8599_v4 = vld [vmem:[#allocation8 + $0xa8] sm:$0xf]  ;;  %v8588_v56 = vor.u32 %v10527_v0, %v8585_v22  ;;  %v8559_v61 = vld [vmem:[#allocation8 + $0x60] sm:$0xf] }
 0x2f2   :  { %2429 = vmatpush.bf16.msra.mxu0 %v8608_v41  ;;  %2443 = vmatpush.bf16.msra.mxu1 %v8612_v49  ;;  %v10524_v47 = vld [vmem:[#allocation8 + $0x6c] sm:$0xf0]  ;;  %v456_v49 = vadd.f32 %v11821_v28, %v11895_v32  ;;  %v10519_v0 = vld [vmem:[#allocation8 + $0x4c] sm:$0xf] }
 0x2f3   :  { %v1783_v13 = vadd.f32 %v11143_v57, %v1782_v45  ;;  %v10530_v45 = vld [vmem:[#allocation8 + $0xa4] sm:$0xf] }
 0x2f4   :  { %2457 = vmatpush.bf16.msra.mxu2 %v8616_v44  ;;  %v8596_v26 = vor.u32 %v10530_v45, %v8593_v17  ;;  %v8569_v45 = vld [vmem:[#allocation8 + $0x78] sm:$0xf0] }
 0x2f5   :  { %v1787_v40 = vsel %vm1786_vm5, %v11143_v57, %v1783_v13  ;;  %v8592_v13 = vor.u32 %v10532_v10, %v8591_v53  ;;  %v8560_v53 = vor.u32 %v10524_v47, %v8559_v61  ;;  %v10523_v10 = vld [vmem:[#allocation8 + $0x6c] sm:$0xf]  ;;  %v8527_v61 = vld [vmem:[#allocation8 + $0x20] sm:$0xf]  ;;  %v10516_v47 = vld [vmem:[#allocation8 + $0x2c] sm:$0xf0] }
 0x2f6   :  { %v1792_v23 = vsel %vm1789_vm7, %v1791_v35, %v1787_v40  ;;  %v360_v35 = vadd.f32 %v11742_v21, %v11732_v15  ;;  %2444 = vmatpush.bf16.msra.mxu1 %v8596_v26  ;;  %v10528_v21 = vld [vmem:[#allocation8 + $0x8c] sm:$0xf0] }
 0x2f7   :  { %v11147_v27 = vpop.eup %11146  ;;  %2430 = vmatpush.bf16.msra.mxu0 %v8592_v13 }
 0x2f8   :  { %v1803_v30 = vmul.f32 %v11147_v27, %v1792_v23  ;;  %v409_v27 = vadd.f32 %v11825_v2, %v11886_v14  ;;  %v8600_v23 = vor.u32 %v10533_v43, %v8599_v4  ;;  %v8576_v2 = vor.u32 %v10528_v21, %v8575_v33 }
 0x2f9   :  { %v8572_v43 = vor.u32 %v10523_v10, %v8569_v45 }
 0x2fa   :  { %v10963_v24 = vpack.c.bf16 %v1803_v30, %v1802_v36  ;;  %v10531_v36 = vld [vmem:[#allocation8 + $0xac] sm:$0xf]  ;;  %v8601_v30 = vld [vmem:[#allocation8 + $0xb8] sm:$0xf0]  ;;  %2458 = vmatpush.bf16.msra.mxu2 %v8600_v23 }
 0x2fb   :  { %v8604_v42 = vor.u32 %v10531_v36, %v8601_v30  ;;  %2431 = vmatpush.bf16.msra.mxu0 %v8576_v2  ;;  %v8545_v36 = vld [vmem:[#allocation8 + $0x50] sm:$0xf0] }
 0x2fc   :  { %10964 = vst [vmem:[#allocation4 + $0x18] sm:$0xff] %v10963_v24   ;;  %2029 = vmatmul.bf16.vlgmr.msrb.gmra.mxu0 %v10963_v24  ;;  %2043 = vmatmul.bf16.vlgmr.msrb.gmra.mxu1 %v10963_v24 }
 0x2fd   :  { %2057 = vmatmul.bf16.vlgmr.msrb.gmra.mxu2 %v10963_v24  ;;  %2071 = vmatmul.bf16.vlgmr.msrb.gmra.mxu3 %v10963_v24 }
 0x2ff   :  { %2432 = vmatpush.bf16.msra.mxu0 %v8560_v53 }
 0x379   :  { %v2030_v8 = vpop.f32.mrf.mxu0  ;;  %v2044_v55 = vpop.f32.mrf.mxu1 }
 0x37a   :  { %v2077_v7 = vadd.f32 %v2030_v8, %v11735_v18  ;;  %v2078_v19 = vadd.f32 %v2044_v55, %v407_v20  ;;  %v8620_v18 = vor.u32 %v10535_v50, %v8617_v16  ;;  %v8577_v20 = vld [vmem:[#allocation8 + $0x90] sm:$0xf0]  ;;  %v10529_v55 = vld [vmem:[#allocation8 + $0x94] sm:$0xf0]  ;;  %v8567_v50 = vld [vmem:[#allocation8 + $0x68] sm:$0xf] }
 0x37b   :  { %v8580_v8 = vor.u32 %v10526_v1, %v8577_v20  ;;  %v10525_v16 = vld [vmem:[#allocation8 + $0x74] sm:$0xf0] }
 0x37c   :  { %v8503_v29 = vmul.f32 -1.442695, %v2077_v7  ;;  %v8505_v57 = vmul.f32 -1.442695, %v2078_v19  ;;  %2471 = vmatpush.bf16.msra.mxu3 %v8620_v18  ;;  %v8584_v19 = vor.u32 %v10529_v55, %v8583_v12  ;;  %v507_v18 = vadd.f32 %v11817_v60, %v11877_v62  ;;  %v10521_v55 = vld [vmem:[#allocation8 + $0x54] sm:$0xf0] }
 0x37d   :  { %2445 = vmatpush.bf16.msra.mxu1 %v8580_v8  ;;  %v8568_v4 = vor.u32 %v10525_v16, %v8567_v50  ;;  %v8551_v8 = vld [vmem:[#allocation8 + $0x48] sm:$0xf]  ;;  %v10514_v50 = vld [vmem:[#allocation8 + $0x24] sm:$0xf]  ;;  %v8529_v16 = vld [vmem:[#allocation8 + $0x30] sm:$0xf0] }
 0x37e   :  { %11148 = vpow2.f32 %v8503_v29  ;;  %2459 = vmatpush.bf16.msra.mxu2 %v8584_v19  ;;  %v10522_v29 = vld [vmem:[#allocation8 + $0x64] sm:$0xf] }
 0x37f   :  { %11150 = vpow2.f32 %v8505_v57  ;;  %v8561_v57 = vld [vmem:[#allocation8 + $0x70] sm:$0xf0] }
 0x380   :  { %v2072_v40 = vpop.f32.mrf.mxu3  ;;  %2472 = vmatpush.bf16.msra.mxu3 %v8604_v42  ;;  %v2058_v41 = vpop.f32.mrf.mxu2  ;;  %v8564_v17 = vor.u32 %v10522_v29, %v8561_v57 }
 0x381   :  { %v2080_v24 = vadd.f32 %v2072_v40, %v505_v37  ;;  %v2032_v54 = vpop.f32.mrf.mxu0  ;;  %v2046_v58 = vpop.f32.mrf.mxu1  ;;  %v2079_v13 = vadd.f32 %v2058_v41, %v456_v49  ;;  %v10518_v40 = vld [vmem:[#allocation8 + $0x44] sm:$0xf] }
 0x382   :  { %v2081_v11 = vadd.f32 %v2032_v54, %v360_v35  ;;  %v2082_v6 = vadd.f32 %v2046_v58, %v409_v27  ;;  %v8543_v35 = vld [vmem:[#allocation8 + $0x40] sm:$0xf]  ;;  %v10520_v27 = vld [vmem:[#allocation8 + $0x4c] sm:$0xf0]  ;;  %2446 = vmatpush.bf16.msra.mxu1 %v8564_v17  ;;  %2460 = vmatpush.bf16.msra.mxu2 %v8568_v4  ;;  %v8548_v58 = vor.u32 %v10518_v40, %v8545_v36  ;;  %v8537_v40 = vld [vmem:[#allocation8 + $0x38] sm:$0xf0] }
 0x383   :  { %v8507_v51 = vmul.f32 -1.442695, %v2080_v24  ;;  %v8544_v23 = vor.u32 %v10520_v27, %v8543_v35  ;;  %v10517_v35 = vld [vmem:[#allocation8 + $0x34] sm:$0xf0]  ;;  %v10515_v27 = vld [vmem:[#allocation8 + $0x2c] sm:$0xf] }
 0x384   :  { %v11149_v48 = vpop.eup %11148  ;;  %v8504_v25 = vmul.f32 -1.442695, %v2081_v11  ;;  %v8506_v38 = vmul.f32 -1.442695, %v2082_v6  ;;  %2473 = vmatpush.bf16.msra.mxu3 %v8588_v56  ;;  %v458_v11 = vadd.f32 %v11827_v3, %v11895_v32  ;;  %v8553_v56 = vld [vmem:[#allocation8 + $0x58] sm:$0xf0] }
 0x385   :  { %v11151_v59 = vpop.eup %11150  ;;  %v12236_v7 = vadd.f32 1.0, %v11149_v48  ;;  %11152 = vpow2.f32 %v8507_v51  ;;  %2433 = vmatpush.bf16.msra.mxu0 %v8544_v23  ;;  %v8556_v4 = vor.u32 %v10519_v0, %v8553_v56 }
 0x386   :  { %v12238_v52 = vadd.f32 1.0, %v11151_v59  ;;  %11154 = vpow2.f32 %v8504_v25  ;;  %2447 = vmatpush.bf16.msra.mxu1 %v8548_v58  ;;  %v10510_v58 = vld [vmem:[#allocation8 + $0x4] sm:$0xf] }
 0x387   :  { %11156 = vrcp.f32 %v12236_v7  ;;  %v2102_v60 = vand.u32 2147483647, %v12236_v7  ;;  %v2104_v33 = vand.u32 2147483648, %v12236_v7  ;;  %vm2098_vm12 = vweird.f32 %v12236_v7 }
 0x388   :  { %11158 = vrcp.f32 %v12238_v52  ;;  %v2074_v44 = vpop.f32.mrf.mxu3  ;;  %2474 = vmatpush.bf16.msra.mxu3 %v8572_v43  ;;  %v2142_v51 = vand.u32 2147483648, %v12238_v52  ;;  %v2140_v2 = vand.u32 2147483647, %v12238_v52  ;;  %v2060_v3 = vpop.f32.mrf.mxu2  ;;  %vm2136_vm11 = vweird.f32 %v12238_v52 }
 0x389   :  { %11160 = vpow2.f32 %v8506_v38  ;;  %v2084_v28 = vadd.f32 %v2074_v44, %v507_v18  ;;  %vm12268_vm9 = vcmp.eq.f32.partialorder %v2102_v60, 8.507059e+37  ;;  %v2105_v19 = vor.u32 1.1754944e-38, %v2104_v33  ;;  %v10512_v60 = vld [vmem:[#allocation8 + $0xc] sm:$0xf0]  ;;  %v8521_v38 = vld [vmem:[#allocation8 + $0x18] sm:$0xf0] }
 0x38a   :  { %11162 = vtanh.f32 %v2079_v13  ;;  %v2083_v41 = vadd.f32 %v2060_v3, %v458_v11  ;;  %v2143_v29 = vor.u32 1.1754944e-38, %v2142_v51  ;;  %v8552_v44 = vor.u32 %v10521_v55, %v8551_v8  ;;  %v8519_v51 = vld [vmem:[#allocation8 + $0x8] sm:$0xf] }
 0x38b   :  { %v11153_v37 = vpop.eup %11152  ;;  %v8508_v48 = vmul.f32 -1.442695, %v2084_v28  ;;  %vm12293_vm15 = vcmp.eq.f32.partialorder %v2140_v2, 8.507059e+37  ;;  %v8528_v43 = vor.u32 %v10516_v47, %v8527_v61 }
 0x38c   :  { %v11155_v26 = vpop.eup %11154  ;;  %v12249_v24 = vadd.f32 1.0, %v11153_v37  ;;  %v8535_v37 = vld [vmem:[#allocation8 + $0x28] sm:$0xf]  ;;  %2461 = vmatpush.bf16.msra.mxu2 %v8552_v44  ;;  %2475 = vmatpush.bf16.msra.mxu3 %v8556_v4 }
 0x38d   :  { %v12246_v30 = vpop.eup %11156  ;;  %v12251_v54 = vadd.f32 1.0, %v11155_v26  ;;  %2434 = vmatpush.bf16.msra.mxu0 %v8528_v43 }
 0x38e   :  { %v12253_v42 = vpop.eup %11158  ;;  %v2094_v6 = vmul.f32 %v12246_v30, %v12236_v7  ;;  %vm2099_vm8 = vweird.f32 %v12246_v30 }
 0x38f   :  { %v11161_v21 = vpop.eup %11160  ;;  %v2132_v1 = vmul.f32 %v12253_v42, %v12238_v52  ;;  %11164 = vrcp.f32 %v12251_v54  ;;  %vm2137_vm10 = vweird.f32 %v12253_v42  ;;  %vm12282_vm13 = vmor %vm2098_vm12, %vm2099_vm8  ;;  %v2117_v45 = vand.u32 2147483647, %v12251_v54 }
 0x390   :  { %v2095_v20 = vsub.f32 1.0, %v2094_v6  ;;  %v12265_v12 = vadd.f32 1.0, %v11161_v21  ;;  %11166 = vrcp.f32 %v12249_v24  ;;  %v11163_v52 = vpop.eup %11162  ;;  %vm12288_vm14 = vmor %vm2136_vm11, %vm2137_vm10  ;;  %vm2113_vm0 = vweird.f32 %v12251_v54 }
 0x391   :  { %v2133_v25 = vsub.f32 1.0, %v2132_v1  ;;  %v8532_v21 = vor.u32 %v10514_v50, %v8529_v16  ;;  %v8513_v1 = vld [vmem:[#allocation8 + $0x10] sm:$0xf0]  ;;  %vm2118_vm5 = vcmp.eq.f32.partialorder %v2117_v45, 8.507059e+37  ;;  %v2182_v45 = vand.u32 2147483648, %v12249_v24 }
 0x392   :  { %v2096_v59 = vmul.f32 %v12246_v30, %v2095_v20  ;;  %11168 = vrcp.f32 %v12265_v12  ;;  %v2157_v10 = vand.u32 2147483648, %v12265_v12  ;;  %v8516_v61 = vor.u32 %v10510_v58, %v8513_v1 }
 0x393   :  { %v2134_v22 = vmul.f32 %v12253_v42, %v2133_v25  ;;  %11170 = vpow2.f32 %v8508_v48  ;;  %v2119_v48 = vand.u32 2147483648, %v12251_v54  ;;  %v10511_v25 = vld [vmem:[#allocation8 + $0xc] sm:$0xf]  ;;  %2448 = vmatpush.bf16.msra.mxu1 %v8532_v21  ;;  %v2155_v50 = vand.u32 2147483647, %v12265_v12 }
 0x394   :  { %v2097_v57 = vadd.f32 %v12246_v30, %v2096_v59  ;;  %11172 = vtanh.f32 %v2083_v41  ;;  %v8536_v59 = vor.u32 %v10517_v35, %v8535_v37  ;;  %vm2151_vm3 = vweird.f32 %v12265_v12 }
 0x395   :  { %v2135_v18 = vadd.f32 %v12253_v42, %v2134_v22  ;;  %v12299_v13 = vpop.eup %11164  ;;  %v2120_v16 = vor.u32 1.1754944e-38, %v2119_v48  ;;  %v2158_v53 = vor.u32 1.1754944e-38, %v2157_v10  ;;  %vm2156_vm7 = vcmp.eq.f32.partialorder %v2155_v50, 8.507059e+37 }
 0x396   :  { %v2101_v17 = vsel %vm12282_vm13, %v12246_v30, %v2097_v57  ;;  %v12304_v26 = vpop.eup %11166  ;;  %v2109_v36 = vmul.f32 %v12299_v13, %v12251_v54  ;;  %v8511_v30 = vld [vmem:[#allocation8] sm:$0xf]  ;;  %vm2114_vm1 = vweird.f32 %v12299_v13  ;;  %2462 = vmatpush.bf16.msra.mxu2 %v8536_v59 }
 0x397   :  { %v2106_v28 = vsel %vm12268_vm9, %v2105_v19, %v2101_v17  ;;  %v2139_v23 = vsel %vm12288_vm14, %v12253_v42, %v2135_v18  ;;  %v10513_v42 = vld [vmem:[#allocation8 + $0x14] sm:$0xf0]  ;;  %v2172_v55 = vmul.f32 %v12304_v26, %v12249_v24  ;;  %v8540_v19 = vor.u32 %v10515_v27, %v8537_v40  ;;  %vm2115_vm4 = vmor %vm2113_vm0, %vm2114_vm1  ;;  %2449 = vmatpush.bf16.msra.mxu1 %v8516_v61 }
 0x398   :  { %v11169_v11 = vpop.eup %11168  ;;  %v2144_v6 = vsel %vm12293_vm15, %v2143_v29, %v2139_v23  ;;  %v2203_v33 = vmul.f32 %v11163_v52, %v2106_v28  ;;  %v2110_v20 = vsub.f32 1.0, %v2109_v36  ;;  %v8512_v0 = vor.u32 %v10512_v60, %v8511_v30 }
 0x399   :  { %v2201_v2 = vmul.f32 %v2144_v6, %v12201_v39  ;;  %v2147_v3 = vmul.f32 %v11169_v11, %v12265_v12  ;;  %v11171_v8 = vpop.eup %11170  ;;  %2476 = vmatpush.bf16.msra.mxu3 %v8540_v19  ;;  %v8520_v47 = vor.u32 %v10513_v42, %v8519_v51  ;;  %v8524_v29 = vor.u32 %v10511_v25, %v8521_v38  ;;  %v8759_v25 = vld [vmem:[#allocation8 + $0xf0] sm:$0xf0]  ;;  %v8765_v38 = vld [vmem:[#allocation8 + $0xe8] sm:$0xf] }
 0x39a   :  { %v2111_v39 = vmul.f32 %v12299_v13, %v2110_v20  ;;  %v2170_v56 = vadd.f32 1.0, %v11171_v8  ;;  %v11173_v57 = vpop.eup %11172  ;;  %vm2152_vm2 = vweird.f32 %v11169_v11  ;;  %2435 = vmatpush.bf16.msra.mxu0 %v8512_v0  ;;  %v2173_v52 = vsub.f32 1.0, %v2172_v55  ;;  %v8757_v20 = vld [vmem:[#allocation8 + $0xe0] sm:$0xf]  ;;  %v10573_v8 = vld [vmem:[#allocation8 + $0xf4] sm:$0xf0] }
 0x39b   :  { %v12321_v22 = vadd.f32 %v2203_v33, %v2201_v2  ;;  %v2148_v41 = vsub.f32 1.0, %v2147_v3  ;;  %vm2153_vm6 = vmor %vm2151_vm3, %vm2152_vm2  ;;  %2463 = vmatpush.bf16.msra.mxu2 %v8520_v47  ;;  %vm2177_vm8 = vweird.f32 %v12304_v26  ;;  %vm2176_vm9 = vweird.f32 %v12249_v24  ;;  %v10570_v3 = vld [vmem:[#allocation8 + $0xe4] sm:$0xf]  ;;  %v10571_v0 = vld [vmem:[#allocation8 + $0xec] sm:$0xf] }
 0x39c   :  { %v2112_v44 = vadd.f32 %v12299_v13, %v2111_v39  ;;  %11174 = vrcp.f32 %v2170_v56  ;;  %v2174_v35 = vmul.f32 %v12304_v26, %v2173_v52  ;;  %v2197_v28 = vand.u32 2147483648, %v2170_v56  ;;  %vm2178_vm11 = vmor %vm2176_vm9, %vm2177_vm8  ;;  %v10569_v52 = vld [vmem:[#allocation8 + $0xd4] sm:$0xf0] }
 0x39d   :  { %v2149_v49 = vmul.f32 %v11169_v11, %v2148_v41  ;;  %2477 = vmatpush.bf16.msra.mxu3 %v8524_v29  ;;  %11176 = vtanh.f32 %v12321_v22  ;;  %v2195_v36 = vand.u32 2147483647, %v2170_v56  ;;  %vm2191_vm12 = vweird.f32 %v2170_v56  ;;  %v8767_v41 = vld [vmem:[#allocation8 + $0xf8] sm:$0xf0] }
 0x39e   :  { %v2116_v7 = vsel %vm2115_vm4, %v12299_v13, %v2112_v44  ;;  %v2175_v12 = vadd.f32 %v12304_v26, %v2174_v35  ;;  %v2198_v6 = vor.u32 1.1754944e-38, %v2197_v28  ;;  %v412_v55 = vadd.f32 %v11831_v5, %v11886_v14  ;;  %v10566_v44 = vld [vmem:[#allocation8 + $0xc4] sm:$0xf]  ;;  %v8749_v5 = vld [vmem:[#allocation8 + $0xc8] sm:$0xf] }
 0x39f   :  { %v2150_v18 = vadd.f32 %v11169_v11, %v2149_v49  ;;  %v2121_v37 = vsel %vm2118_vm5, %v2120_v16, %v2116_v7  ;;  %vm2196_vm15 = vcmp.eq.f32.partialorder %v2195_v36, 8.507059e+37  ;;  %v8762_v59 = vor.u32 %v10570_v3, %v8759_v25  ;;  %v10568_v49 = vld [vmem:[#allocation8 + $0xcc] sm:$0xf0]  ;;  %v8743_v16 = vld [vmem:[#allocation8 + $0xd0] sm:$0xf0] }
 0x3a0   :  { %v2204_v4 = vmul.f32 %v11173_v57, %v2121_v37  ;;  %v2179_v60 = vsel %vm2178_vm11, %v12304_v26, %v2175_v12  ;;  %v10572_v26 = vld [vmem:[#allocation8 + $0xec] sm:$0xf0]  ;;  %v8766_v19 = vor.u32 %v10573_v8, %v8765_v38  ;;  %v8770_v61 = vor.u32 %v10571_v0, %v8767_v41  ;;  %v8741_v57 = vld [vmem:[#allocation8 + $0xc0] sm:$0xf]  ;;  %v8727_v12 = vld [vmem:[#allocation8 + $0xb0] sm:$0xf0] }
 0x3a1   :  { %v2154_v17 = vsel %vm2153_vm6, %v11169_v11, %v2150_v18  ;;  %v2183_v11 = vor.u32 1.1754944e-38, %v2182_v45  ;;  %v8758_v48 = vor.u32 %v10572_v26, %v8757_v20  ;;  %2849 = vmatpush.bf16.msrb.mxu1 %v8762_v59  ;;  %v8742_v50 = vor.u32 %v10568_v49, %v8741_v57  ;;  %v10564_v35 = vld [vmem:[#allocation8 + $0xac] sm:$0xf0]  ;;  %v10565_v45 = vld [vmem:[#allocation8 + $0xb4] sm:$0xf0] }
 0x3a2   :  { %v2159_v43 = vsel %vm2156_vm7, %v2158_v53, %v2154_v17  ;;  %v11175_v13 = vpop.eup %11174  ;;  %2863 = vmatpush.bf16.msrb.mxu2 %v8766_v19  ;;  %2877 = vmatpush.bf16.msrb.mxu3 %v8770_v61  ;;  %v8746_v53 = vor.u32 %v10566_v44, %v8743_v16  ;;  %v8750_v37 = vor.u32 %v10569_v52, %v8749_v5  ;;  %v10567_v17 = vld [vmem:[#allocation8 + $0xcc] sm:$0xf]  ;;  %v8717_v20 = vld [vmem:[#allocation8 + $0x88] sm:$0xf]  ;;  %v10561_v38 = vld [vmem:[#allocation8 + $0x94] sm:$0xf0] }
 0x3a3   :  { %v2202_v27 = vmul.f32 %v2159_v43, %v12217_v46  ;;  %v2187_v54 = vmul.f32 %v11175_v13, %v2170_v56  ;;  %v2180_v46 = vand.u32 2147483647, %v12249_v24  ;;  %vm2192_vm10 = vweird.f32 %v11175_v13  ;;  %v11177_v58 = vpop.eup %11176  ;;  %2835 = vmatpush.bf16.msrb.mxu0 %v8758_v48  ;;  %v8725_v43 = vld [vmem:[#allocation8 + $0xa0] sm:$0xf]  ;;  %v10559_v19 = vld [vmem:[#allocation8 + $0x8c] sm:$0xf] }
 0x3a4   :  { %vm2193_vm13 = vmor %vm2191_vm12, %vm2192_vm10  ;;  %v365_v28 = vadd.f32 %v11760_v34, %v11732_v15  ;;  %v10560_v34 = vld [vmem:[#allocation8 + $0x8c] sm:$0xf0]  ;;  %v8718_v59 = vor.u32 %v10561_v38, %v8717_v20  ;;  %v8719_v0 = vld [vmem:[#allocation8 + $0x98] sm:$0xf0] }
 0x3a5   :  { %v12337_v40 = vadd.f32 %v2204_v4, %v2202_v27  ;;  %v2188_v10 = vsub.f32 1.0, %v2187_v54  ;;  %vm2181_vm14 = vcmp.eq.f32.partialorder %v2180_v46, 8.507059e+37  ;;  %v8751_v4 = vld [vmem:[#allocation8 + $0xd8] sm:$0xf0]  ;;  %2850 = vmatpush.bf16.msrb.mxu1 %v8746_v53  ;;  %v10562_v27 = vld [vmem:[#allocation8 + $0xa4] sm:$0xf]  ;;  %v8726_v54 = vor.u32 %v10564_v35, %v8725_v43 }
 0x3a6   :  { %v2184_v1 = vsel %vm2181_vm14, %v2183_v11, %v2179_v60  ;;  %2864 = vmatpush.bf16.msrb.mxu2 %v8750_v37  ;;  %v414_v46 = vadd.f32 %v11837_v9, %v11886_v14  ;;  %v8730_v36 = vor.u32 %v10562_v27, %v8727_v12  ;;  %v10563_v60 = vld [vmem:[#allocation8 + $0xac] sm:$0xf]  ;;  %v8693_v61 = vld [vmem:[#allocation8 + $0x60] sm:$0xf]  ;;  %v8695_v57 = vld [vmem:[#allocation8 + $0x70] sm:$0xf0] }
 0x3a7   :  { %11178 = vtanh.f32 %v12337_v40  ;;  %v2189_v23 = vmul.f32 %v11175_v13, %v2188_v10  ;;  %v2209_v42 = vmul.f32 %v11177_v58, %v2184_v1  ;;  %2836 = vmatpush.bf16.msrb.mxu0 %v8742_v50  ;;  %v8733_v10 = vld [vmem:[#allocation8 + $0xa8] sm:$0xf]  ;;  %v8735_v58 = vld [vmem:[#allocation8 + $0xb8] sm:$0xf0]  ;;  %v10557_v5 = vld [vmem:[#allocation8 + $0x74] sm:$0xf0] }
 0x3a8   :  { %v14070_v49 = vld [vmem:[#allocation19_spill] sm:$0xff]  ;;  %v8701_v16 = vld [vmem:[#allocation8 + $0x68] sm:$0xf]  ;;  %v14071_v52 = vld [vmem:[#allocation18_spill] sm:$0xff] }
 0x3a9   :  { %v2190_v30 = vadd.f32 %v11175_v13, %v2189_v23  ;;  %2851 = vmatpush.bf16.msrb.mxu1 %v8730_v36  ;;  %v461_v44 = vadd.f32 %v14070_v49, %v11895_v32  ;;  %v10555_v53 = vld [vmem:[#allocation8 + $0x6c] sm:$0xf]  ;;  %v8703_v37 = vld [vmem:[#allocation8 + $0x78] sm:$0xf0]  ;;  %v8702_v43 = vor.u32 %v10557_v5, %v8701_v16  ;;  %v8677_v27 = vld [vmem:[#allocation8 + $0x40] sm:$0xf] }
 0x3aa   :  { %v8706_v35 = vor.u32 %v10555_v53, %v8703_v37  ;;  %v10546_v49 = vld [vmem:[#allocation8 + $0x24] sm:$0xf] }
 0x3ab   :  { %v2194_v21 = vsel %vm2193_vm13, %v11175_v13, %v2190_v30  ;;  %v510_v13 = vadd.f32 %v11823_v63, %v11877_v62  ;;  %v8734_v30 = vor.u32 %v10565_v45, %v8733_v10  ;;  %2837 = vmatpush.bf16.msrb.mxu0 %v8726_v54  ;;  %v10550_v54 = vld [vmem:[#allocation8 + $0x44] sm:$0xf] }
 0x3ac   :  { %v2199_v51 = vsel %vm2196_vm15, %v2198_v6, %v2194_v21 }
 0x3ad   :  { %v11179_v33 = vpop.eup %11178  ;;  %2865 = vmatpush.bf16.msrb.mxu2 %v8734_v30 }
 0x3ae   :  { %v2210_v24 = vmul.f32 %v11179_v33, %v2199_v51  ;;  %v8738_v33 = vor.u32 %v10563_v60, %v8735_v58  ;;  %v8709_v51 = vld [vmem:[#allocation8 + $0x80] sm:$0xf] }
 0x3af   :  { %v8710_v9 = vor.u32 %v10560_v34, %v8709_v51 }
 0x3b0   :  { %v10968_v2 = vpack.c.bf16 %v2210_v24, %v2209_v42  ;;  %v10558_v42 = vld [vmem:[#allocation8 + $0x84] sm:$0xf] }
 0x3b1   :  { %2838 = vmatpush.bf16.msrb.mxu0 %v8710_v9  ;;  %2866 = vmatpush.bf16.msrb.mxu2 %v8718_v59 }
 0x3b2   :  { %10969 = vst [vmem:[#allocation4 + $0x10] sm:$0xff] %v10968_v2   ;;  %2436 = vmatmul.bf16.vlgmr.msra.gmra.mxu0 %v10968_v2  ;;  %2450 = vmatmul.bf16.vlgmr.msra.gmra.mxu1 %v10968_v2 }
 0x3b3   :  { %2464 = vmatmul.bf16.vlgmr.msra.gmra.mxu2 %v10968_v2  ;;  %2478 = vmatmul.bf16.vlgmr.msra.gmra.mxu3 %v10968_v2  ;;  %v8711_v2 = vld [vmem:[#allocation8 + $0x90] sm:$0xf0] }
 0x3b4   :  { %v8714_v25 = vor.u32 %v10558_v42, %v8711_v2 }
 0x3b5   :  { %2867 = vmatpush.bf16.msrb.mxu2 %v8702_v43  ;;  %v8671_v43 = vld [vmem:[#allocation8 + $0x38] sm:$0xf0] }
 0x3b6   :  { %2852 = vmatpush.bf16.msrb.mxu1 %v8714_v25 }
 0x42f   :  { %v2437_v39 = vpop.f32.mrf.mxu0  ;;  %v2451_v56 = vpop.f32.mrf.mxu1 }
 0x430   :  { %v2484_v47 = vadd.f32 %v2437_v39, %v11753_v31  ;;  %v2485_v29 = vadd.f32 %v2451_v56, %v412_v55  ;;  %v8754_v31 = vor.u32 %v10567_v17, %v8751_v4  ;;  %v8722_v56 = vor.u32 %v10559_v19, %v8719_v0  ;;  %v8687_v0 = vld [vmem:[#allocation8 + $0x58] sm:$0xf0] }
 0x432   :  { %v8637_v7 = vmul.f32 -1.442695, %v2484_v47  ;;  %v8639_v18 = vmul.f32 -1.442695, %v2485_v29  ;;  %2878 = vmatpush.bf16.msrb.mxu3 %v8754_v31  ;;  %v10556_v47 = vld [vmem:[#allocation8 + $0x6c] sm:$0xf0] }
 0x433   :  { %v10554_v29 = vld [vmem:[#allocation8 + $0x64] sm:$0xf] }
 0x434   :  { %11180 = vpow2.f32 %v8637_v7  ;;  %v512_v7 = vadd.f32 %v14071_v52, %v11877_v62  ;;  %v8698_v31 = vor.u32 %v10554_v29, %v8695_v57 }
 0x435   :  { %11182 = vpow2.f32 %v8639_v18  ;;  %v8694_v18 = vor.u32 %v10556_v47, %v8693_v61 }
 0x436   :  { %v2479_v23 = vpop.f32.mrf.mxu3  ;;  %2879 = vmatpush.bf16.msrb.mxu3 %v8738_v33  ;;  %v2465_v39 = vpop.f32.mrf.mxu2  ;;  %2853 = vmatpush.bf16.msrb.mxu1 %v8698_v31  ;;  %v10547_v31 = vld [vmem:[#allocation8 + $0x2c] sm:$0xf] }
 0x437   :  { %v2487_v11 = vadd.f32 %v2479_v23, %v510_v13  ;;  %v2439_v6 = vpop.f32.mrf.mxu0  ;;  %v2453_v63 = vpop.f32.mrf.mxu1  ;;  %v2486_v4 = vadd.f32 %v2465_v39, %v461_v44  ;;  %v10552_v13 = vld [vmem:[#allocation8 + $0x4c] sm:$0xf0]  ;;  %2839 = vmatpush.bf16.msrb.mxu0 %v8694_v18  ;;  %v8661_v39 = vld [vmem:[#allocation8 + $0x20] sm:$0xf]  ;;  %v8663_v44 = vld [vmem:[#allocation8 + $0x30] sm:$0xf0] }
 0x438   :  { %v2488_v21 = vadd.f32 %v2439_v6, %v365_v28  ;;  %v2489_v1 = vadd.f32 %v2453_v63, %v414_v46  ;;  %v8678_v45 = vor.u32 %v10552_v13, %v8677_v27  ;;  %v8679_v28 = vld [vmem:[#allocation8 + $0x50] sm:$0xf0] }
 0x439   :  { %v8641_v24 = vmul.f32 -1.442695, %v2487_v11  ;;  %v8682_v60 = vor.u32 %v10550_v54, %v8679_v28  ;;  %v14072_v11 = vld [vmem:[#allocation21_spill] sm:$0xff] }
 0x43a   :  { %v11181_v26 = vpop.eup %11180  ;;  %v8638_v3 = vmul.f32 -1.442695, %v2488_v21  ;;  %v8640_v48 = vmul.f32 -1.442695, %v2489_v1  ;;  %2880 = vmatpush.bf16.msrb.mxu3 %v8722_v56  ;;  %v463_v6 = vadd.f32 %v14072_v11, %v11895_v32  ;;  %v10548_v56 = vld [vmem:[#allocation8 + $0x2c] sm:$0xf0] }
 0x43b   :  { %v11183_v8 = vpop.eup %11182  ;;  %v12356_v55 = vadd.f32 1.0, %v11181_v26  ;;  %11184 = vpow2.f32 %v8641_v24  ;;  %2840 = vmatpush.bf16.msrb.mxu0 %v8678_v45  ;;  %2854 = vmatpush.bf16.msrb.mxu1 %v8682_v60  ;;  %v10542_v45 = vld [vmem:[#allocation8 + $0x4] sm:$0xf]  ;;  %v8666_v60 = vor.u32 %v10546_v49, %v8663_v44  ;;  %v8647_v11 = vld [vmem:[#allocation8 + $0x10] sm:$0xf0] }
 0x43c   :  { %v12358_v41 = vadd.f32 1.0, %v11183_v8  ;;  %11186 = vpow2.f32 %v8638_v3  ;;  %v8685_v3 = vld [vmem:[#allocation8 + $0x48] sm:$0xf]  ;;  %v10551_v8 = vld [vmem:[#allocation8 + $0x4c] sm:$0xf] }
 0x43d   :  { %11188 = vrcp.f32 %v12356_v55  ;;  %v2509_v23 = vand.u32 2147483647, %v12356_v55  ;;  %v2511_v33 = vand.u32 2147483648, %v12356_v55  ;;  %vm2505_vm4 = vweird.f32 %v12356_v55 }
 0x43e   :  { %11190 = vrcp.f32 %v12358_v41  ;;  %v2481_v50 = vpop.f32.mrf.mxu3  ;;  %2881 = vmatpush.bf16.msrb.mxu3 %v8706_v35  ;;  %v2549_v51 = vand.u32 2147483648, %v12358_v41  ;;  %v2547_v34 = vand.u32 2147483647, %v12358_v41  ;;  %v2467_v9 = vpop.f32.mrf.mxu2  ;;  %vm2543_vm3 = vweird.f32 %v12358_v41 }
 0x43f   :  { %11192 = vpow2.f32 %v8640_v48  ;;  %v2491_v10 = vadd.f32 %v2481_v50, %v512_v7  ;;  %vm12388_vm1 = vcmp.eq.f32.partialorder %v2509_v23, 8.507059e+37  ;;  %v10553_v48 = vld [vmem:[#allocation8 + $0x54] sm:$0xf0]  ;;  %v2512_v38 = vor.u32 1.1754944e-38, %v2511_v33  ;;  %v8669_v7 = vld [vmem:[#allocation8 + $0x28] sm:$0xf]  ;;  %2855 = vmatpush.bf16.msrb.mxu1 %v8666_v60 }
 0x440   :  { %11194 = vtanh.f32 %v2486_v4  ;;  %v2490_v19 = vadd.f32 %v2467_v9, %v463_v6  ;;  %v2550_v61 = vor.u32 1.1754944e-38, %v2549_v51  ;;  %v8686_v57 = vor.u32 %v10553_v48, %v8685_v3  ;;  %v10549_v4 = vld [vmem:[#allocation8 + $0x34] sm:$0xf0]  ;;  %v8653_v6 = vld [vmem:[#allocation8 + $0x8] sm:$0xf] }
 0x441   :  { %v11185_v17 = vpop.eup %11184  ;;  %v8642_v2 = vmul.f32 -1.442695, %v2491_v10  ;;  %vm12413_vm7 = vcmp.eq.f32.partialorder %v2547_v34, 8.507059e+37  ;;  %v8690_v37 = vor.u32 %v10551_v8, %v8687_v0  ;;  %v10544_v10 = vld [vmem:[#allocation8 + $0xc] sm:$0xf0] }
 0x442   :  { %v11187_v12 = vpop.eup %11186  ;;  %v12369_v36 = vadd.f32 1.0, %v11185_v17  ;;  %2868 = vmatpush.bf16.msrb.mxu2 %v8686_v57  ;;  %v8662_v17 = vor.u32 %v10548_v56, %v8661_v39  ;;  %v10543_v51 = vld [vmem:[#allocation8 + $0xc] sm:$0xf]  ;;  %v8655_v34 = vld [vmem:[#allocation8 + $0x18] sm:$0xf0] }
 0x443   :  { %v12366_v46 = vpop.eup %11188  ;;  %v12371_v30 = vadd.f32 1.0, %v11187_v12  ;;  %v8645_v12 = vld [vmem:[#allocation8] sm:$0xf]  ;;  %2882 = vmatpush.bf16.msrb.mxu3 %v8690_v37 }
 0x444   :  { %v12373_v58 = vpop.eup %11190  ;;  %v2501_v63 = vmul.f32 %v12366_v46, %v12356_v55  ;;  %vm2506_vm0 = vweird.f32 %v12366_v46  ;;  %2841 = vmatpush.bf16.msrb.mxu0 %v8662_v17  ;;  %v8646_v26 = vor.u32 %v10544_v10, %v8645_v12  ;;  %v8891_v60 = vld [vmem:[#allocation8 + $0xe0] sm:$0xf] }
 0x445   :  { %v11193_v21 = vpop.eup %11192  ;;  %v2539_v1 = vmul.f32 %v12373_v58, %v12358_v41  ;;  %11196 = vrcp.f32 %v12371_v30  ;;  %vm2544_vm2 = vweird.f32 %v12373_v58  ;;  %vm12402_vm5 = vmor %vm2505_vm4, %vm2506_vm0  ;;  %v2524_v52 = vand.u32 2147483647, %v12371_v30 }
 0x446   :  { %v2502_v42 = vsub.f32 1.0, %v2501_v63  ;;  %v12385_v24 = vadd.f32 1.0, %v11193_v21  ;;  %11198 = vrcp.f32 %v12369_v36  ;;  %v11195_v41 = vpop.eup %11194  ;;  %vm12408_vm6 = vmor %vm2543_vm3, %vm2544_vm2  ;;  %vm2520_vm8 = vweird.f32 %v12371_v30 }
 0x447   :  { %v2540_v20 = vsub.f32 1.0, %v2539_v1  ;;  %v2526_v1 = vand.u32 2147483648, %v12371_v30  ;;  %vm2525_vm13 = vcmp.eq.f32.partialorder %v2524_v52, 8.507059e+37  ;;  %v2589_v52 = vand.u32 2147483648, %v12369_v36 }
 0x448   :  { %v2503_v25 = vmul.f32 %v12366_v46, %v2502_v42  ;;  %11200 = vrcp.f32 %v12385_v24  ;;  %v2564_v5 = vand.u32 2147483648, %v12385_v24  ;;  %v2562_v56 = vand.u32 2147483647, %v12385_v24  ;;  %2842 = vmatpush.bf16.msrb.mxu0 %v8646_v26 }
 0x449   :  { %v2541_v59 = vmul.f32 %v12373_v58, %v2540_v20  ;;  %11202 = vpow2.f32 %v8642_v2  ;;  %v8670_v2 = vor.u32 %v10549_v4, %v8669_v7  ;;  %v8674_v20 = vor.u32 %v10547_v31, %v8671_v43 }
 0x44a   :  { %v2504_v47 = vadd.f32 %v12366_v46, %v2503_v25  ;;  %11204 = vtanh.f32 %v2490_v19  ;;  %vm2558_vm11 = vweird.f32 %v12385_v24  ;;  %v2565_v49 = vor.u32 1.1754944e-38, %v2564_v5 }
 0x44b   :  { %v2542_v50 = vadd.f32 %v12373_v58, %v2541_v59  ;;  %v12419_v18 = vpop.eup %11196  ;;  %2869 = vmatpush.bf16.msrb.mxu2 %v8670_v2  ;;  %2883 = vmatpush.bf16.msrb.mxu3 %v8674_v20  ;;  %v8658_v59 = vor.u32 %v10543_v51, %v8655_v34  ;;  %vm2563_vm15 = vcmp.eq.f32.partialorder %v2562_v56, 8.507059e+37  ;;  %v10601_v56 = vld [vmem:[#allocation8 + $0xd4] sm:$0xf0] }
 0x44c   :  { %v2508_v53 = vsel %vm12402_vm5, %v12366_v46, %v2504_v47  ;;  %v12424_v35 = vpop.eup %11198  ;;  %v2516_v54 = vmul.f32 %v12419_v18, %v12371_v30  ;;  %vm2521_vm9 = vweird.f32 %v12419_v18 }
 0x44d   :  { %v2513_v27 = vsel %vm12388_vm1, %v2512_v38, %v2508_v53  ;;  %v2546_v13 = vsel %vm12408_vm6, %v12373_v58, %v2542_v50  ;;  %v10545_v58 = vld [vmem:[#allocation8 + $0x14] sm:$0xf0]  ;;  %v2579_v9 = vmul.f32 %v12424_v35, %v12369_v36  ;;  %v8650_v38 = vor.u32 %v10542_v45, %v8647_v11  ;;  %vm2522_vm12 = vmor %vm2520_vm8, %vm2521_vm9  ;;  %v10602_v11 = vld [vmem:[#allocation8 + $0xe4] sm:$0xf] }
 0x44e   :  { %v11201_v28 = vpop.eup %11200  ;;  %v2551_v46 = vsel %vm12413_vm7, %v2550_v61, %v2546_v13  ;;  %v2610_v23 = vmul.f32 %v11195_v41, %v2513_v27  ;;  %v2517_v33 = vsub.f32 1.0, %v2516_v54  ;;  %v8654_v8 = vor.u32 %v10545_v58, %v8653_v6  ;;  %v8893_v58 = vld [vmem:[#allocation8 + $0xf0] sm:$0xf0] }
 0x44f   :  { %v2608_v63 = vmul.f32 %v2551_v46, %v12321_v22  ;;  %v2554_v21 = vmul.f32 %v11201_v28, %v12385_v24  ;;  %v11203_v42 = vpop.eup %11202  ;;  %vm2559_vm10 = vweird.f32 %v11201_v28  ;;  %v2527_v61 = vor.u32 1.1754944e-38, %v2526_v1  ;;  %2856 = vmatpush.bf16.msrb.mxu1 %v8650_v38  ;;  %2884 = vmatpush.bf16.msrb.mxu3 %v8658_v59  ;;  %v8875_v38 = vld [vmem:[#allocation8 + $0xc0] sm:$0xf]  ;;  %v10598_v59 = vld [vmem:[#allocation8 + $0xc4] sm:$0xf] }
 0x450   :  { %v2518_v22 = vmul.f32 %v12419_v18, %v2517_v33  ;;  %v2577_v25 = vadd.f32 1.0, %v11203_v42  ;;  %v11205_v19 = vpop.eup %11204  ;;  %v2580_v47 = vsub.f32 1.0, %v2579_v9  ;;  %vm2560_vm14 = vmor %vm2558_vm11, %vm2559_vm10  ;;  %2870 = vmatpush.bf16.msrb.mxu2 %v8654_v8  ;;  %vm2584_vm0 = vweird.f32 %v12424_v35  ;;  %v10605_v33 = vld [vmem:[#allocation8 + $0xf4] sm:$0xf0]  ;;  %v10603_v42 = vld [vmem:[#allocation8 + $0xec] sm:$0xf] }
 0x451   :  { %v12441_v3 = vadd.f32 %v2610_v23, %v2608_v63  ;;  %v2555_v48 = vsub.f32 1.0, %v2554_v21  ;;  %vm2583_vm1 = vweird.f32 %v12369_v36  ;;  %v2590_v13 = vor.u32 1.1754944e-38, %v2589_v52  ;;  %v8899_v63 = vld [vmem:[#allocation8 + $0xe8] sm:$0xf]  ;;  %v14081_v21 = vld [vmem:[#allocation23_spill] sm:$0xff] }
 0x452   :  { %v2519_v39 = vadd.f32 %v12419_v18, %v2518_v22  ;;  %11206 = vrcp.f32 %v2577_v25  ;;  %v2581_v16 = vmul.f32 %v12424_v35, %v2580_v47  ;;  %v2604_v37 = vand.u32 2147483648, %v2577_v25  ;;  %vm2585_vm3 = vmor %vm2583_vm1, %vm2584_vm0  ;;  %v8901_v9 = vld [vmem:[#allocation8 + $0xf8] sm:$0xf0]  ;;  %v10600_v8 = vld [vmem:[#allocation8 + $0xcc] sm:$0xf0] }
 0x453   :  { %v2556_v0 = vmul.f32 %v11201_v28, %v2555_v48  ;;  %11208 = vtanh.f32 %v12441_v3  ;;  %v2602_v4 = vand.u32 2147483647, %v2577_v25  ;;  %vm2598_vm4 = vweird.f32 %v2577_v25  ;;  %v14082_v48 = vld [vmem:[#allocation16_spill] sm:$0xff]  ;;  %v10597_v52 = vld [vmem:[#allocation8 + $0xb4] sm:$0xf0] }
 0x454   :  { %v2523_v29 = vsel %vm2522_vm12, %v12419_v18, %v2519_v39  ;;  %v2582_v24 = vadd.f32 %v12424_v35, %v2581_v16  ;;  %v2605_v54 = vor.u32 1.1754944e-38, %v2604_v37  ;;  %v417_v1 = vadd.f32 %v14081_v21, %v11886_v14  ;;  %v8883_v39 = vld [vmem:[#allocation8 + $0xc8] sm:$0xf]  ;;  %v10594_v16 = vld [vmem:[#allocation8 + $0xa4] sm:$0xf] }
 0x455   :  { %v2557_v57 = vadd.f32 %v11201_v28, %v2556_v0  ;;  %v2528_v44 = vsel %vm2525_vm13, %v2527_v61, %v2523_v29  ;;  %vm2603_vm7 = vcmp.eq.f32.partialorder %v2602_v4, 8.507059e+37  ;;  %v8896_v51 = vor.u32 %v10602_v11, %v8893_v58  ;;  %v8877_v0 = vld [vmem:[#allocation8 + $0xd0] sm:$0xf0]  ;;  %v14084_v37 = vld [vmem:[#allocation17_spill] sm:$0xff] }
 0x456   :  { %v2611_v55 = vmul.f32 %v11205_v19, %v2528_v44  ;;  %v2586_v43 = vsel %vm2585_vm3, %v12424_v35, %v2582_v24  ;;  %v10604_v35 = vld [vmem:[#allocation8 + $0xec] sm:$0xf0]  ;;  %v8900_v34 = vor.u32 %v10605_v33, %v8899_v63  ;;  %v8904_v26 = vor.u32 %v10603_v42, %v8901_v9  ;;  %v8885_v44 = vld [vmem:[#allocation8 + $0xd8] sm:$0xf0]  ;;  %v8861_v24 = vld [vmem:[#allocation8 + $0xb0] sm:$0xf0] }
 0x457   :  { %v2561_v41 = vsel %vm2560_vm14, %v11201_v28, %v2557_v57  ;;  %v8892_v6 = vor.u32 %v10604_v35, %v8891_v60  ;;  %3256 = vmatpush.bf16.msra.mxu1 %v8896_v51  ;;  %v8876_v19 = vor.u32 %v10600_v8, %v8875_v38  ;;  %v8880_v29 = vor.u32 %v10598_v59, %v8877_v0  ;;  %v10592_v60 = vld [vmem:[#allocation8 + $0x8c] sm:$0xf0]  ;;  %v10590_v35 = vld [vmem:[#allocation8 + $0x84] sm:$0xf]  ;;  %v8845_v58 = vld [vmem:[#allocation8 + $0x90] sm:$0xf0] }
 0x458   :  { %v2566_v50 = vsel %vm2563_vm15, %v2565_v49, %v2561_v41  ;;  %v11207_v18 = vpop.eup %11206  ;;  %3270 = vmatpush.bf16.msra.mxu2 %v8900_v34  ;;  %3284 = vmatpush.bf16.msra.mxu3 %v8904_v26  ;;  %v8884_v57 = vor.u32 %v10601_v56, %v8883_v39  ;;  %v10599_v49 = vld [vmem:[#allocation8 + $0xcc] sm:$0xf]  ;;  %v8851_v63 = vld [vmem:[#allocation8 + $0x88] sm:$0xf]  ;;  %v8848_v51 = vor.u32 %v10590_v35, %v8845_v58  ;;  %v10593_v34 = vld [vmem:[#allocation8 + $0x94] sm:$0xf0] }
 0x459   :  { %v2609_v7 = vmul.f32 %v2566_v50, %v12337_v40  ;;  %v2594_v30 = vmul.f32 %v11207_v18, %v2577_v25  ;;  %v2587_v40 = vand.u32 2147483647, %v12369_v36  ;;  %vm2599_vm2 = vweird.f32 %v11207_v18  ;;  %v11209_v27 = vpop.eup %11208  ;;  %3242 = vmatpush.bf16.msra.mxu0 %v8892_v6  ;;  %v10596_v50 = vld [vmem:[#allocation8 + $0xac] sm:$0xf0]  ;;  %v8853_v26 = vld [vmem:[#allocation8 + $0x98] sm:$0xf0] }
 0x45a   :  { %vm2600_vm5 = vmor %vm2598_vm4, %vm2599_vm2  ;;  %v8888_v41 = vor.u32 %v10599_v49, %v8885_v44  ;;  %v8827_v38 = vld [vmem:[#allocation8 + $0x60] sm:$0xf]  ;;  %v10588_v8 = vld [vmem:[#allocation8 + $0x6c] sm:$0xf0] }
 0x45b   :  { %v12457_v53 = vadd.f32 %v2611_v55, %v2609_v7  ;;  %v2595_v5 = vsub.f32 1.0, %v2594_v30  ;;  %vm2588_vm6 = vcmp.eq.f32.partialorder %v2587_v40, 8.507059e+37  ;;  %3257 = vmatpush.bf16.msra.mxu1 %v8880_v29  ;;  %v8859_v55 = vld [vmem:[#allocation8 + $0xa0] sm:$0xf]  ;;  %v370_v40 = vadd.f32 %v14084_v37, %v11732_v15  ;;  %v10586_v59 = vld [vmem:[#allocation8 + $0x64] sm:$0xf] }
 0x45c   :  { %v2591_v45 = vsel %vm2588_vm6, %v2590_v13, %v2586_v43  ;;  %3271 = vmatpush.bf16.msra.mxu2 %v8884_v57  ;;  %v14083_v7 = vld [vmem:[#allocation20_spill] sm:$0xff]  ;;  %v8860_v30 = vor.u32 %v10596_v50, %v8859_v55  ;;  %3285 = vmatpush.bf16.msra.mxu3 %v8888_v41  ;;  %v8864_v43 = vor.u32 %v10594_v16, %v8861_v24  ;;  %v10595_v13 = vld [vmem:[#allocation8 + $0xac] sm:$0xf]  ;;  %v14087_v29 = vld [vmem:[#allocation22_spill] sm:$0xff] }
 0x45d   :  { %11210 = vtanh.f32 %v12457_v53  ;;  %v2596_v17 = vmul.f32 %v11207_v18, %v2595_v5  ;;  %v2616_v46 = vmul.f32 %v11209_v27, %v2591_v45  ;;  %3243 = vmatpush.bf16.msra.mxu0 %v8876_v19  ;;  %v8867_v5 = vld [vmem:[#allocation8 + $0xa8] sm:$0xf]  ;;  %v8829_v19 = vld [vmem:[#allocation8 + $0x70] sm:$0xf0]  ;;  %v14086_v0 = vld [vmem:[#allocation24_spill] sm:$0xff]  ;;  %v517_v57 = vadd.f32 %v14087_v29, %v11877_v62 }
 0x45e   :  { %v8868_v27 = vor.u32 %v10597_v52, %v8867_v5  ;;  %v466_v39 = vadd.f32 %v14086_v0, %v11895_v32  ;;  %v8828_v49 = vor.u32 %v10588_v8, %v8827_v38  ;;  %v10587_v44 = vld [vmem:[#allocation8 + $0x6c] sm:$0xf]  ;;  %v8837_v41 = vld [vmem:[#allocation8 + $0x78] sm:$0xf0]  ;;  %v8832_v16 = vor.u32 %v10586_v59, %v8829_v19  ;;  %v10584_v24 = vld [vmem:[#allocation8 + $0x4c] sm:$0xf0] }
 0x45f   :  { %v2597_v31 = vadd.f32 %v11207_v18, %v2596_v17  ;;  %v14085_v17 = vld [vmem:[#allocation26_spill] sm:$0xff]  ;;  %3258 = vmatpush.bf16.msra.mxu1 %v8864_v43  ;;  %v10582_v5 = vld [vmem:[#allocation8 + $0x44] sm:$0xf] }
 0x460   :  { %v419_v4 = vadd.f32 %v14085_v17, %v11886_v14  ;;  %3272 = vmatpush.bf16.msra.mxu2 %v8868_v27  ;;  %v8813_v17 = vld [vmem:[#allocation8 + $0x50] sm:$0xf0]  ;;  %v10578_v0 = vld [vmem:[#allocation8 + $0x24] sm:$0xf] }
 0x461   :  { %v2601_v10 = vsel %vm2600_vm5, %v11207_v18, %v2597_v31  ;;  %v515_v18 = vadd.f32 %v14083_v7, %v11877_v62  ;;  %3244 = vmatpush.bf16.msra.mxu0 %v8860_v30  ;;  %v8811_v30 = vld [vmem:[#allocation8 + $0x40] sm:$0xf] }
 0x462   :  { %v2606_v28 = vsel %vm2603_vm7, %v2605_v54, %v2601_v10  ;;  %v8869_v54 = vld [vmem:[#allocation8 + $0xb8] sm:$0xf0] }
 0x463   :  { %v11211_v12 = vpop.eup %11210  ;;  %3259 = vmatpush.bf16.msra.mxu1 %v8848_v51 }
 0x464   :  { %v2617_v36 = vmul.f32 %v11211_v12, %v2606_v28  ;;  %v8872_v28 = vor.u32 %v10595_v13, %v8869_v54  ;;  %v8816_v13 = vor.u32 %v10582_v5, %v8813_v17 }
 0x466   :  { %v10973_v23 = vpack.c.bf16 %v2617_v36, %v2616_v46  ;;  %3286 = vmatpush.bf16.msra.mxu3 %v8872_v28 }
 0x467   :  { %3260 = vmatpush.bf16.msra.mxu1 %v8832_v16  ;;  %v10579_v16 = vld [vmem:[#allocation8 + $0x2c] sm:$0xf] }
 0x468   :  { %10974 = vst [vmem:[#allocation4 + $0x8] sm:$0xff] %v10973_v23   ;;  %2843 = vmatmul.bf16.vlgmr.msrb.gmra.mxu0 %v10973_v23  ;;  %2857 = vmatmul.bf16.vlgmr.msrb.gmra.mxu1 %v10973_v23 }
 0x469   :  { %2871 = vmatmul.bf16.vlgmr.msrb.gmra.mxu2 %v10973_v23  ;;  %2885 = vmatmul.bf16.vlgmr.msrb.gmra.mxu3 %v10973_v23  ;;  %v8843_v23 = vld [vmem:[#allocation8 + $0x80] sm:$0xf] }
 0x46a   :  { %v8844_v6 = vor.u32 %v10592_v60, %v8843_v23 }
 0x46b   :  { %3261 = vmatpush.bf16.msra.mxu1 %v8816_v13 }
 0x46c   :  { %3245 = vmatpush.bf16.msra.mxu0 %v8844_v6 }
 0x470   :  { %3246 = vmatpush.bf16.msra.mxu0 %v8828_v49 }
 0x4e5   :  { %v2844_v2 = vpop.f32.mrf.mxu0  ;;  %v2858_v20 = vpop.f32.mrf.mxu1 }
 0x4e6   :  { %v2891_v22 = vadd.f32 %v2844_v2, %v14082_v48  ;;  %v2892_v25 = vadd.f32 %v2858_v20, %v417_v1  ;;  %v8852_v2 = vor.u32 %v10593_v34, %v8851_v63  ;;  %v10591_v20 = vld [vmem:[#allocation8 + $0x8c] sm:$0xf] }
 0x4e8   :  { %v8771_v61 = vmul.f32 -1.442695, %v2891_v22  ;;  %v8773_v47 = vmul.f32 -1.442695, %v2892_v25  ;;  %v8856_v25 = vor.u32 %v10591_v20, %v8853_v26  ;;  %3273 = vmatpush.bf16.msra.mxu2 %v8852_v2  ;;  %v8821_v26 = vld [vmem:[#allocation8 + $0x58] sm:$0xf0] }
 0x4ea   :  { %11212 = vpow2.f32 %v8771_v61  ;;  %3287 = vmatpush.bf16.msra.mxu3 %v8856_v25  ;;  %v8835_v61 = vld [vmem:[#allocation8 + $0x68] sm:$0xf]  ;;  %v10580_v25 = vld [vmem:[#allocation8 + $0x2c] sm:$0xf0] }
 0x4eb   :  { %11214 = vpow2.f32 %v8773_v47  ;;  %v10589_v47 = vld [vmem:[#allocation8 + $0x74] sm:$0xf0] }
 0x4ec   :  { %v2886_v31 = vpop.f32.mrf.mxu3  ;;  %v2872_v22 = vpop.f32.mrf.mxu2  ;;  %v8836_v7 = vor.u32 %v10589_v47, %v8835_v61 }
 0x4ed   :  { %v2894_v12 = vadd.f32 %v2886_v31, %v515_v18  ;;  %v2846_v10 = vpop.f32.mrf.mxu0  ;;  %v2860_v45 = vpop.f32.mrf.mxu1  ;;  %v2893_v50 = vadd.f32 %v2872_v22, %v466_v39  ;;  %v8840_v18 = vor.u32 %v10587_v44, %v8837_v41  ;;  %v8795_v22 = vld [vmem:[#allocation8 + $0x20] sm:$0xf]  ;;  %v8797_v39 = vld [vmem:[#allocation8 + $0x30] sm:$0xf0] }
 0x4ee   :  { %v2895_v46 = vadd.f32 %v2846_v10, %v370_v40  ;;  %v2896_v36 = vadd.f32 %v2860_v45, %v419_v4  ;;  %v8812_v40 = vor.u32 %v10584_v24, %v8811_v30  ;;  %3274 = vmatpush.bf16.msra.mxu2 %v8836_v7  ;;  %v8805_v7 = vld [vmem:[#allocation8 + $0x38] sm:$0xf0]  ;;  %v8800_v13 = vor.u32 %v10578_v0, %v8797_v39 }
 0x4ef   :  { %v8775_v11 = vmul.f32 -1.442695, %v2894_v12  ;;  %v14088_v12 = vld [vmem:[#allocation27_spill] sm:$0xff]  ;;  %3288 = vmatpush.bf16.msra.mxu3 %v8840_v18 }
 0x4f0   :  { %v11213_v33 = vpop.eup %11212  ;;  %v8772_v21 = vmul.f32 -1.442695, %v2895_v46  ;;  %v8774_v1 = vmul.f32 -1.442695, %v2896_v36  ;;  %v468_v10 = vadd.f32 %v14088_v12, %v11895_v32  ;;  %3247 = vmatpush.bf16.msra.mxu0 %v8812_v40  ;;  %v10574_v40 = vld [vmem:[#allocation8 + $0x4] sm:$0xf]  ;;  %3262 = vmatpush.bf16.msra.mxu1 %v8800_v13 }
 0x4f1   :  { %v11215_v42 = vpop.eup %11214  ;;  %v12476_v9 = vadd.f32 1.0, %v11213_v33  ;;  %11216 = vpow2.f32 %v8775_v11  ;;  %v8781_v12 = vld [vmem:[#allocation8 + $0x10] sm:$0xf0]  ;;  %v9025_v13 = vld [vmem:[#allocation8 + $0xe0] sm:$0xf] }
 0x4f2   :  { %v12478_v48 = vadd.f32 1.0, %v11215_v42  ;;  %11218 = vpow2.f32 %v8772_v21  ;;  %v8819_v21 = vld [vmem:[#allocation8 + $0x48] sm:$0xf]  ;;  %v10583_v42 = vld [vmem:[#allocation8 + $0x4c] sm:$0xf] }
 0x4f3   :  { %11220 = vrcp.f32 %v12476_v9  ;;  %v2916_v31 = vand.u32 2147483647, %v12476_v9  ;;  %v2918_v28 = vand.u32 2147483648, %v12476_v9  ;;  %vm2912_vm12 = vweird.f32 %v12476_v9 }
 0x4f4   :  { %11222 = vrcp.f32 %v12478_v48  ;;  %v2888_v56 = vpop.f32.mrf.mxu3  ;;  %v2956_v23 = vand.u32 2147483648, %v12478_v48  ;;  %v2954_v60 = vand.u32 2147483647, %v12478_v48  ;;  %v2874_v6 = vpop.f32.mrf.mxu2  ;;  %vm2950_vm11 = vweird.f32 %v12478_v48 }
 0x4f5   :  { %11224 = vpow2.f32 %v8774_v1  ;;  %v2898_v37 = vadd.f32 %v2888_v56, %v517_v57  ;;  %vm12508_vm9 = vcmp.eq.f32.partialorder %v2916_v31, 8.507059e+37  ;;  %v10585_v1 = vld [vmem:[#allocation8 + $0x54] sm:$0xf0]  ;;  %v2919_v34 = vor.u32 1.1754944e-38, %v2918_v28  ;;  %v8803_v57 = vld [vmem:[#allocation8 + $0x28] sm:$0xf] }
 0x4f6   :  { %11226 = vtanh.f32 %v2893_v50  ;;  %v2897_v20 = vadd.f32 %v2874_v6, %v468_v10  ;;  %v2957_v38 = vor.u32 1.1754944e-38, %v2956_v23  ;;  %v8820_v19 = vor.u32 %v10585_v1, %v8819_v21  ;;  %v10581_v50 = vld [vmem:[#allocation8 + $0x34] sm:$0xf0]  ;;  %v8787_v10 = vld [vmem:[#allocation8 + $0x8] sm:$0xf] }
 0x4f7   :  { %v11217_v55 = vpop.eup %11216  ;;  %v8776_v58 = vmul.f32 -1.442695, %v2898_v37  ;;  %vm12533_vm15 = vcmp.eq.f32.partialorder %v2954_v60, 8.507059e+37  ;;  %v8824_v41 = vor.u32 %v10583_v42, %v8821_v26  ;;  %v10576_v37 = vld [vmem:[#allocation8 + $0xc] sm:$0xf0] }
 0x4f8   :  { %v11219_v52 = vpop.eup %11218  ;;  %v12489_v43 = vadd.f32 1.0, %v11217_v55  ;;  %3275 = vmatpush.bf16.msra.mxu2 %v8820_v19  ;;  %v8796_v55 = vor.u32 %v10580_v25, %v8795_v22  ;;  %v10575_v23 = vld [vmem:[#allocation8 + $0xc] sm:$0xf]  ;;  %v8789_v60 = vld [vmem:[#allocation8 + $0x18] sm:$0xf0] }
 0x4f9   :  { %v12486_v4 = vpop.eup %11220  ;;  %v12491_v27 = vadd.f32 1.0, %v11219_v52  ;;  %v8779_v52 = vld [vmem:[#allocation8] sm:$0xf]  ;;  %3289 = vmatpush.bf16.msra.mxu3 %v8824_v41 }
 0x4fa   :  { %v12493_v54 = vpop.eup %11222  ;;  %v2908_v45 = vmul.f32 %v12486_v4, %v12476_v9  ;;  %vm2913_vm8 = vweird.f32 %v12486_v4  ;;  %3248 = vmatpush.bf16.msra.mxu0 %v8796_v55  ;;  %v8780_v33 = vor.u32 %v10576_v37, %v8779_v52 }
 0x4fb   :  { %v11225_v46 = vpop.eup %11224  ;;  %v2946_v36 = vmul.f32 %v12493_v54, %v12478_v48  ;;  %11228 = vrcp.f32 %v12491_v27  ;;  %vm2951_vm10 = vweird.f32 %v12493_v54  ;;  %vm12522_vm13 = vmor %vm2912_vm12, %vm2913_vm8  ;;  %v2931_v29 = vand.u32 2147483647, %v12491_v27 }
 0x4fc   :  { %v2909_v35 = vsub.f32 1.0, %v2908_v45  ;;  %v12505_v11 = vadd.f32 1.0, %v11225_v46  ;;  %11230 = vrcp.f32 %v12489_v43  ;;  %v11227_v48 = vpop.eup %11226  ;;  %vm12528_vm14 = vmor %vm2950_vm11, %vm2951_vm10  ;;  %vm2927_vm0 = vweird.f32 %v12491_v27 }
 0x4fd   :  { %v2947_v63 = vsub.f32 1.0, %v2946_v36  ;;  %v2933_v36 = vand.u32 2147483648, %v12491_v27  ;;  %vm2932_vm5 = vcmp.eq.f32.partialorder %v2931_v29, 8.507059e+37  ;;  %v2996_v29 = vand.u32 2147483648, %v12489_v43 }
 0x4fe   :  { %v2910_v51 = vmul.f32 %v12486_v4, %v2909_v35  ;;  %11232 = vrcp.f32 %v12505_v11  ;;  %v2971_v47 = vand.u32 2147483648, %v12505_v11  ;;  %v2969_v25 = vand.u32 2147483647, %v12505_v11  ;;  %3249 = vmatpush.bf16.msra.mxu0 %v8780_v33 }
 0x4ff   :  { %v2948_v2 = vmul.f32 %v12493_v54, %v2947_v63  ;;  %11234 = vpow2.f32 %v8776_v58  ;;  %v8804_v58 = vor.u32 %v10581_v50, %v8803_v57  ;;  %v8808_v63 = vor.u32 %v10579_v16, %v8805_v7 }
 0x500   :  { %v2911_v8 = vadd.f32 %v12486_v4, %v2910_v51  ;;  %11236 = vtanh.f32 %v2897_v20  ;;  %vm2965_vm3 = vweird.f32 %v12505_v11  ;;  %v2972_v0 = vor.u32 1.1754944e-38, %v2971_v47 }
 0x501   :  { %v2949_v56 = vadd.f32 %v12493_v54, %v2948_v2  ;;  %v12539_v49 = vpop.eup %11228  ;;  %3276 = vmatpush.bf16.msra.mxu2 %v8804_v58  ;;  %3290 = vmatpush.bf16.msra.mxu3 %v8808_v63  ;;  %v8792_v2 = vor.u32 %v10575_v23, %v8789_v60  ;;  %vm2970_vm7 = vcmp.eq.f32.partialorder %v2969_v25, 8.507059e+37  ;;  %v10635_v23 = vld [vmem:[#allocation8 + $0xec] sm:$0xf]  ;;  %v9035_v60 = vld [vmem:[#allocation8 + $0xf8] sm:$0xf0] }
 0x502   :  { %v2915_v44 = vsel %vm12522_vm13, %v12486_v4, %v2911_v8  ;;  %v12544_v18 = vpop.eup %11230  ;;  %v2923_v5 = vmul.f32 %v12539_v49, %v12491_v27  ;;  %vm2928_vm1 = vweird.f32 %v12539_v49  ;;  %v10632_v58 = vld [vmem:[#allocation8 + $0xcc] sm:$0xf0]  ;;  %v10630_v63 = vld [vmem:[#allocation8 + $0xc4] sm:$0xf] }
 0x503   :  { %v2920_v30 = vsel %vm12508_vm9, %v2919_v34, %v2915_v44  ;;  %v2953_v24 = vsel %vm12528_vm14, %v12493_v54, %v2949_v56  ;;  %v10577_v54 = vld [vmem:[#allocation8 + $0x14] sm:$0xf0]  ;;  %v2986_v6 = vmul.f32 %v12544_v18, %v12489_v43  ;;  %v8784_v34 = vor.u32 %v10574_v40, %v8781_v12  ;;  %vm2929_vm4 = vmor %vm2927_vm0, %vm2928_vm1  ;;  %v10634_v12 = vld [vmem:[#allocation8 + $0xe4] sm:$0xf] }
 0x504   :  { %v11233_v17 = vpop.eup %11232  ;;  %v2958_v4 = vsel %vm12533_vm15, %v2957_v38, %v2953_v24  ;;  %v3017_v31 = vmul.f32 %v11227_v48, %v2920_v30  ;;  %v2924_v28 = vsub.f32 1.0, %v2923_v5  ;;  %v8788_v42 = vor.u32 %v10577_v54, %v8787_v10  ;;  %v9027_v54 = vld [vmem:[#allocation8 + $0xf0] sm:$0xf0]  ;;  %v10628_v25 = vld [vmem:[#allocation8 + $0xac] sm:$0xf0] }
 0x505   :  { %v3015_v45 = vmul.f32 %v2958_v4, %v12441_v3  ;;  %v2961_v46 = vmul.f32 %v11233_v17, %v12505_v11  ;;  %v11235_v35 = vpop.eup %11234  ;;  %vm2966_vm2 = vweird.f32 %v11233_v17  ;;  %v2934_v38 = vor.u32 1.1754944e-38, %v2933_v36  ;;  %3263 = vmatpush.bf16.msra.mxu1 %v8784_v34  ;;  %3291 = vmatpush.bf16.msra.mxu3 %v8792_v2  ;;  %v10631_v2 = vld [vmem:[#allocation8 + $0xcc] sm:$0xf] }
 0x506   :  { %v2925_v3 = vmul.f32 %v12539_v49, %v2924_v28  ;;  %v2984_v51 = vadd.f32 1.0, %v11235_v35  ;;  %v11237_v20 = vpop.eup %11236  ;;  %v2987_v8 = vsub.f32 1.0, %v2986_v6  ;;  %vm2967_vm6 = vmor %vm2965_vm3, %vm2966_vm2  ;;  %3277 = vmatpush.bf16.msra.mxu2 %v8788_v42  ;;  %vm2991_vm8 = vweird.f32 %v12544_v18  ;;  %v10637_v28 = vld [vmem:[#allocation8 + $0xf4] sm:$0xf0]  ;;  %v9009_v6 = vld [vmem:[#allocation8 + $0xc0] sm:$0xf] }
 0x507   :  { %v12561_v21 = vadd.f32 %v3017_v31, %v3015_v45  ;;  %v2962_v1 = vsub.f32 1.0, %v2961_v46  ;;  %vm2990_vm9 = vweird.f32 %v12489_v43  ;;  %v2997_v24 = vor.u32 1.1754944e-38, %v2996_v29  ;;  %v9033_v45 = vld [vmem:[#allocation8 + $0xe8] sm:$0xf] }
 0x508   :  { %v2926_v22 = vadd.f32 %v12539_v49, %v2925_v3  ;;  %11238 = vrcp.f32 %v2984_v51  ;;  %v2988_v61 = vmul.f32 %v12544_v18, %v2987_v8  ;;  %v3011_v41 = vand.u32 2147483648, %v2984_v51  ;;  %vm2992_vm11 = vmor %vm2990_vm9, %vm2991_vm8  ;;  %v9017_v3 = vld [vmem:[#allocation8 + $0xc8] sm:$0xf] }
 0x509   :  { %v2963_v26 = vmul.f32 %v11233_v17, %v2962_v1  ;;  %11240 = vtanh.f32 %v12561_v21  ;;  %v3009_v50 = vand.u32 2147483647, %v2984_v51  ;;  %vm3005_vm12 = vweird.f32 %v2984_v51  ;;  %v9011_v1 = vld [vmem:[#allocation8 + $0xd0] sm:$0xf0]  ;;  %v8985_v29 = vld [vmem:[#allocation8 + $0x88] sm:$0xf] }
 0x50a   :  { %v2930_v59 = vsel %vm2929_vm4, %v12539_v49, %v2926_v22  ;;  %v2989_v11 = vadd.f32 %v12544_v18, %v2988_v61  ;;  %v3012_v5 = vor.u32 1.1754944e-38, %v3011_v41  ;;  %v9030_v46 = vor.u32 %v10634_v12, %v9027_v54  ;;  %v8993_v22 = vld [vmem:[#allocation8 + $0xa0] sm:$0xf]  ;;  %v10625_v41 = vld [vmem:[#allocation8 + $0x94] sm:$0xf0] }
 0x50b   :  { %v2964_v19 = vadd.f32 %v11233_v17, %v2963_v26  ;;  %v2935_v39 = vsel %vm2932_vm5, %v2934_v38, %v2930_v59  ;;  %vm3010_vm15 = vcmp.eq.f32.partialorder %v3009_v50, 8.507059e+37  ;;  %v9034_v36 = vor.u32 %v10637_v28, %v9033_v45  ;;  %v10626_v38 = vld [vmem:[#allocation8 + $0xa4] sm:$0xf]  ;;  %v8995_v59 = vld [vmem:[#allocation8 + $0xb0] sm:$0xf0] }
 0x50c   :  { %v3018_v9 = vmul.f32 %v11237_v20, %v2935_v39  ;;  %v2993_v7 = vsel %vm2992_vm11, %v12544_v18, %v2989_v11  ;;  %v10636_v18 = vld [vmem:[#allocation8 + $0xec] sm:$0xf0]  ;;  %v9038_v35 = vor.u32 %v10635_v23, %v9035_v60  ;;  %3663 = vmatpush.bf16.msrb.mxu1 %v9030_v46  ;;  %v9010_v33 = vor.u32 %v10632_v58, %v9009_v6  ;;  %v9019_v20 = vld [vmem:[#allocation8 + $0xd8] sm:$0xf0]  ;;  %v10623_v50 = vld [vmem:[#allocation8 + $0x8c] sm:$0xf] }
 0x50d   :  { %v2968_v48 = vsel %vm2967_vm6, %v11233_v17, %v2964_v19  ;;  %v9026_v10 = vor.u32 %v10636_v18, %v9025_v13  ;;  %3677 = vmatpush.bf16.msrb.mxu2 %v9034_v36  ;;  %v9014_v34 = vor.u32 %v10630_v63, %v9011_v1  ;;  %v9022_v26 = vor.u32 %v10631_v2, %v9019_v20  ;;  %v9001_v19 = vld [vmem:[#allocation8 + $0xa8] sm:$0xf]  ;;  %v8963_v18 = vld [vmem:[#allocation8 + $0x70] sm:$0xf0]  ;;  %v10619_v28 = vld [vmem:[#allocation8 + $0x6c] sm:$0xf] }
 0x50e   :  { %v2973_v56 = vsel %vm2970_vm7, %v2972_v0, %v2968_v48  ;;  %v11239_v49 = vpop.eup %11238  ;;  %3691 = vmatpush.bf16.msrb.mxu3 %v9038_v35  ;;  %v8994_v8 = vor.u32 %v10628_v25, %v8993_v22  ;;  %v10629_v0 = vld [vmem:[#allocation8 + $0xb4] sm:$0xf0]  ;;  %v8998_v39 = vor.u32 %v10626_v38, %v8995_v59  ;;  %v8969_v12 = vld [vmem:[#allocation8 + $0x68] sm:$0xf]  ;;  %v8971_v46 = vld [vmem:[#allocation8 + $0x78] sm:$0xf0] }
 0x50f   :  { %v3016_v57 = vmul.f32 %v2973_v56, %v12457_v53  ;;  %v3001_v27 = vmul.f32 %v11239_v49, %v2984_v51  ;;  %v2994_v53 = vand.u32 2147483647, %v12489_v43  ;;  %vm3006_vm10 = vweird.f32 %v11239_v49  ;;  %v11241_v30 = vpop.eup %11240  ;;  %3649 = vmatpush.bf16.msrb.mxu0 %v9026_v10  ;;  %v10633_v51 = vld [vmem:[#allocation8 + $0xd4] sm:$0xf0]  ;;  %v9003_v56 = vld [vmem:[#allocation8 + $0xb8] sm:$0xf0] }
 0x510   :  { %vm3007_vm13 = vmor %vm3005_vm12, %vm3006_vm10  ;;  %v9018_v42 = vor.u32 %v10633_v51, %v9017_v3  ;;  %3664 = vmatpush.bf16.msrb.mxu1 %v9014_v34  ;;  %v9002_v48 = vor.u32 %v10629_v0, %v9001_v19  ;;  %v10621_v10 = vld [vmem:[#allocation8 + $0x74] sm:$0xf0]  ;;  %v8974_v60 = vor.u32 %v10619_v28, %v8971_v46  ;;  %v8945_v35 = vld [vmem:[#allocation8 + $0x40] sm:$0xf] }
 0x511   :  { %v12577_v44 = vadd.f32 %v3018_v9, %v3016_v57  ;;  %v3002_v47 = vsub.f32 1.0, %v3001_v27  ;;  %vm2995_vm14 = vcmp.eq.f32.partialorder %v2994_v53, 8.507059e+37  ;;  %v10627_v9 = vld [vmem:[#allocation8 + $0xac] sm:$0xf]  ;;  %v8977_v57 = vld [vmem:[#allocation8 + $0x80] sm:$0xf]  ;;  %v8970_v45 = vor.u32 %v10621_v10, %v8969_v12 }
 0x512   :  { %v2998_v40 = vsel %vm2995_vm14, %v2997_v24, %v2993_v7  ;;  %3678 = vmatpush.bf16.msrb.mxu2 %v9018_v42  ;;  %3692 = vmatpush.bf16.msrb.mxu3 %v9022_v26  ;;  %v9006_v61 = vor.u32 %v10627_v9, %v9003_v56  ;;  %v10622_v27 = vld [vmem:[#allocation8 + $0x84] sm:$0xf]  ;;  %v14097_v7 = vld [vmem:[#allocation29_spill] sm:$0xff]  ;;  %v10616_v6 = vld [vmem:[#allocation8 + $0x4c] sm:$0xf0] }
 0x513   :  { %11242 = vtanh.f32 %v12577_v44  ;;  %v3003_v55 = vmul.f32 %v11239_v49, %v3002_v47  ;;  %v3023_v4 = vmul.f32 %v11241_v30, %v2998_v40  ;;  %3650 = vmatpush.bf16.msrb.mxu0 %v9010_v33  ;;  %v8979_v47 = vld [vmem:[#allocation8 + $0x90] sm:$0xf0]  ;;  %v422_v30 = vadd.f32 %v14097_v7, %v11886_v14  ;;  %v10620_v40 = vld [vmem:[#allocation8 + $0x6c] sm:$0xf0]  ;;  %v10614_v58 = vld [vmem:[#allocation8 + $0x44] sm:$0xf] }
 0x514   :  { %3665 = vmatpush.bf16.msrb.mxu1 %v8998_v39  ;;  %v8982_v53 = vor.u32 %v10622_v27, %v8979_v47  ;;  %v8946_v63 = vor.u32 %v10616_v6, %v8945_v35  ;;  %v8947_v33 = vld [vmem:[#allocation8 + $0x50] sm:$0xf0]  ;;  %v8953_v1 = vld [vmem:[#allocation8 + $0x48] sm:$0xf]  ;;  %v10617_v3 = vld [vmem:[#allocation8 + $0x54] sm:$0xf0] }
 0x515   :  { %v3004_v16 = vadd.f32 %v11239_v49, %v3003_v55  ;;  %v8986_v55 = vor.u32 %v10625_v41, %v8985_v29  ;;  %v14099_v51 = vld [vmem:[#allocation25_spill] sm:$0xff]  ;;  %v8950_v42 = vor.u32 %v10614_v58, %v8947_v33  ;;  %v8954_v2 = vor.u32 %v10617_v3, %v8953_v1  ;;  %v8955_v26 = vld [vmem:[#allocation8 + $0x58] sm:$0xf0]  ;;  %v14101_v38 = vld [vmem:[#allocation32_spill] sm:$0xff] }
 0x516   :  { %3679 = vmatpush.bf16.msrb.mxu2 %v9002_v48  ;;  %3693 = vmatpush.bf16.msrb.mxu3 %v9006_v61  ;;  %v520_v34 = vadd.f32 %v14099_v51, %v11877_v62  ;;  %v10615_v20 = vld [vmem:[#allocation8 + $0x4c] sm:$0xf]  ;;  %v8929_v9 = vld [vmem:[#allocation8 + $0x20] sm:$0xf]  ;;  %v10612_v56 = vld [vmem:[#allocation8 + $0x2c] sm:$0xf0] }
 0x517   :  { %v3008_v37 = vsel %vm3007_vm13, %v11239_v49, %v3004_v16  ;;  %3651 = vmatpush.bf16.msrb.mxu0 %v8994_v8  ;;  %v10624_v49 = vld [vmem:[#allocation8 + $0x8c] sm:$0xf0]  ;;  %v8987_v16 = vld [vmem:[#allocation8 + $0x98] sm:$0xf0]  ;;  %v14100_v22 = vld [vmem:[#allocation13_spill] sm:$0xff]  ;;  %v424_v8 = vadd.f32 %v14101_v38, %v11886_v14  ;;  %v8958_v19 = vor.u32 %v10615_v20, %v8955_v26  ;;  %v8930_v27 = vor.u32 %v10612_v56, %v8929_v9 }
 0x518   :  { %v3013_v17 = vsel %vm3010_vm15, %v3012_v5, %v3008_v37  ;;  %v8978_v11 = vor.u32 %v10624_v49, %v8977_v57  ;;  %v8990_v24 = vor.u32 %v10623_v50, %v8987_v16  ;;  %3666 = vmatpush.bf16.msrb.mxu1 %v8982_v53  ;;  %v8961_v37 = vld [vmem:[#allocation8 + $0x60] sm:$0xf]  ;;  %v375_v25 = vadd.f32 %v14100_v22, %v11732_v15  ;;  %v10610_v61 = vld [vmem:[#allocation8 + $0x24] sm:$0xf]  ;;  %v8937_v47 = vld [vmem:[#allocation8 + $0x28] sm:$0xf] }
 0x519   :  { %v11243_v52 = vpop.eup %11242  ;;  %v8962_v13 = vor.u32 %v10620_v40, %v8961_v37  ;;  %v10613_v29 = vld [vmem:[#allocation8 + $0x34] sm:$0xf0]  ;;  %v10611_v50 = vld [vmem:[#allocation8 + $0x2c] sm:$0xf]  ;;  %v8939_v16 = vld [vmem:[#allocation8 + $0x38] sm:$0xf0] }
 0x51a   :  { %v3024_v43 = vmul.f32 %v11243_v52, %v3013_v17  ;;  %3680 = vmatpush.bf16.msrb.mxu2 %v8986_v55  ;;  %v10618_v17 = vld [vmem:[#allocation8 + $0x64] sm:$0xf]  ;;  %3694 = vmatpush.bf16.msrb.mxu3 %v8990_v24  ;;  %v8938_v55 = vor.u32 %v10613_v29, %v8937_v47  ;;  %v8921_v12 = vld [vmem:[#allocation8 + $0x8] sm:$0xf]  ;;  %v10609_v10 = vld [vmem:[#allocation8 + $0x14] sm:$0xf0] }
 0x51b   :  { %3652 = vmatpush.bf16.msrb.mxu0 %v8978_v11  ;;  %v8966_v54 = vor.u32 %v10618_v17, %v8963_v18  ;;  %v8931_v11 = vld [vmem:[#allocation8 + $0x30] sm:$0xf0]  ;;  %v8913_v17 = vld [vmem:[#allocation8] sm:$0xf]  ;;  %v10607_v46 = vld [vmem:[#allocation8 + $0xc] sm:$0xf]  ;;  %v8922_v3 = vor.u32 %v10609_v10, %v8921_v12 }
 0x51c   :  { %v10978_v31 = vpack.c.bf16 %v3024_v43, %v3023_v4  ;;  %v14098_v4 = vld [vmem:[#allocation12_spill] sm:$0xff]  ;;  %v8934_v53 = vor.u32 %v10610_v61, %v8931_v11  ;;  %v8915_v18 = vld [vmem:[#allocation8 + $0x10] sm:$0xf0]  ;;  %v9200_v20 = vld [vmem:[#allocation6 + $0x1e8] sm:$0xf] }
 0x51d   :  { %3667 = vmatpush.bf16.msrb.mxu1 %v8966_v54  ;;  %v14102_v54 = vld [vmem:[#allocation30_spill] sm:$0xff]  ;;  %v9192_v58 = vld [vmem:[#allocation6 + $0x1e0] sm:$0xf]  ;;  %v14104_v9 = vld [vmem:[#allocation33_spill] sm:$0xff] }
 0x51e   :  { %10979 = vst [vmem:[#allocation4 + $0x20] sm:$0xff] %v10978_v31   ;;  %3250 = vmatmul.bf16.vlgmr.msra.gmra.mxu0 %v10978_v31  ;;  %3264 = vmatmul.bf16.vlgmr.msra.gmra.mxu1 %v10978_v31  ;;  %v473_v56 = vadd.f32 %v14104_v9, %v11895_v32 }
 0x51f   :  { %3278 = vmatmul.bf16.vlgmr.msra.gmra.mxu2 %v10978_v31  ;;  %3292 = vmatmul.bf16.vlgmr.msra.gmra.mxu3 %v10978_v31 }
 0x520   :  { %3653 = vmatpush.bf16.msrb.mxu0 %v8962_v13  ;;  %3681 = vmatpush.bf16.msrb.mxu2 %v8970_v45  ;;  %v10606_v13 = vld [vmem:[#allocation8 + $0x4] sm:$0xf]  ;;  %v471_v45 = vadd.f32 %v14102_v54, %v11895_v32  ;;  %v9152_v54 = vld [vmem:[#allocation6 + $0x188] sm:$0xf] }
 0x521   :  { %3695 = vmatpush.bf16.msrb.mxu3 %v8974_v60  ;;  %3668 = vmatpush.bf16.msrb.mxu1 %v8950_v42  ;;  %v8918_v6 = vor.u32 %v10606_v13, %v8915_v18  ;;  %v10674_v42 = vld [vmem:[#allocation6 + $0x1e4] sm:$0xf]  ;;  %v9178_v18 = vld [vmem:[#allocation6 + $0x1d0] sm:$0xf0] }
 0x522   :  { %v10670_v13 = vld [vmem:[#allocation6 + $0x1c4] sm:$0xf] }
 0x524   :  { %3654 = vmatpush.bf16.msrb.mxu0 %v8946_v63  ;;  %3682 = vmatpush.bf16.msrb.mxu2 %v8954_v2  ;;  %v10676_v63 = vld [vmem:[#allocation6 + $0x1ec] sm:$0xf0]  ;;  %v9194_v2 = vld [vmem:[#allocation6 + $0x1f0] sm:$0xf0] }
 0x525   :  { %3696 = vmatpush.bf16.msrb.mxu3 %v8958_v19  ;;  %3669 = vmatpush.bf16.msrb.mxu1 %v8934_v53  ;;  %v9197_v38 = vor.u32 %v10674_v42, %v9194_v2  ;;  %v9160_v42 = vld [vmem:[#allocation6 + $0x1a0] sm:$0xf]  ;;  %v10668_v2 = vld [vmem:[#allocation6 + $0x1ac] sm:$0xf0] }
 0x528   :  { %3655 = vmatpush.bf16.msrb.mxu0 %v8930_v27  ;;  %3683 = vmatpush.bf16.msrb.mxu2 %v8938_v55 }
 0x529   :  { %3670 = vmatpush.bf16.msrb.mxu1 %v8918_v6 }
 0x52c   :  { %3684 = vmatpush.bf16.msrb.mxu2 %v8922_v3 }
 0x52d   :  { %4165 = vmatpush.bf16.msra.mxu1 %v9197_v38 }
 0x59b   :  { %v3251_v5 = vpop.f32.mrf.mxu0  ;;  %v3265_v52 = vpop.f32.mrf.mxu1 }
 0x59c   :  { %v3298_v43 = vadd.f32 %v3251_v5, %v14098_v4  ;;  %v3299_v31 = vadd.f32 %v3265_v52, %v422_v30  ;;  %v8942_v52 = vor.u32 %v10611_v50, %v8939_v16  ;;  %v10608_v4 = vld [vmem:[#allocation8 + $0xc] sm:$0xf0] }
 0x59e   :  { %v8905_v36 = vmul.f32 -1.442695, %v3298_v43  ;;  %v8907_v23 = vmul.f32 -1.442695, %v3299_v31  ;;  %3697 = vmatpush.bf16.msrb.mxu3 %v8942_v52  ;;  %v8914_v31 = vor.u32 %v10608_v4, %v8913_v17  ;;  %v10672_v17 = vld [vmem:[#allocation6 + $0x1cc] sm:$0xf0] }
 0x5a0   :  { %11244 = vpow2.f32 %v8905_v36  ;;  %3656 = vmatpush.bf16.msrb.mxu0 %v8914_v31  ;;  %v8923_v36 = vld [vmem:[#allocation8 + $0x18] sm:$0xf0] }
 0x5a1   :  { %11246 = vpow2.f32 %v8907_v23  ;;  %v14103_v23 = vld [vmem:[#allocation28_spill] sm:$0xff]  ;;  %v8926_v51 = vor.u32 %v10607_v46, %v8923_v36  ;;  %v10673_v46 = vld [vmem:[#allocation6 + $0x1d4] sm:$0xf0] }
 0x5a2   :  { %v3293_v59 = vpop.f32.mrf.mxu3  ;;  %v3279_v30 = vpop.f32.mrf.mxu2  ;;  %v522_v60 = vadd.f32 %v14103_v23, %v11877_v62 }
 0x5a3   :  { %v3301_v0 = vadd.f32 %v3293_v59, %v520_v34  ;;  %v3253_v39 = vpop.f32.mrf.mxu0  ;;  %v3267_v48 = vpop.f32.mrf.mxu1  ;;  %v3300_v1 = vadd.f32 %v3279_v30, %v471_v45  ;;  %v9193_v34 = vor.u32 %v10676_v63, %v9192_v58  ;;  %3698 = vmatpush.bf16.msrb.mxu3 %v8926_v51  ;;  %v10675_v30 = vld [vmem:[#allocation6 + $0x1ec] sm:$0xf]  ;;  %v9186_v63 = vld [vmem:[#allocation6 + $0x1d8] sm:$0xf0] }
 0x5a4   :  { %v3302_v57 = vadd.f32 %v3253_v39, %v375_v25  ;;  %v3303_v49 = vadd.f32 %v3267_v48, %v424_v8  ;;  %v10677_v8 = vld [vmem:[#allocation6 + $0x1f4] sm:$0xf0]  ;;  %v10671_v58 = vld [vmem:[#allocation6 + $0x1cc] sm:$0xf] }
 0x5a5   :  { %v8909_v41 = vmul.f32 -1.442695, %v3301_v0  ;;  %v9201_v39 = vor.u32 %v10677_v8, %v9200_v20  ;;  %4116 = vmatpush.bf16.msra.mxu0 %v9193_v34  ;;  %v9181_v34 = vor.u32 %v10670_v13, %v9178_v18  ;;  %v10666_v8 = vld [vmem:[#allocation6 + $0x1a4] sm:$0xf] }
 0x5a6   :  { %v11245_v7 = vpop.eup %11244  ;;  %v8906_v24 = vmul.f32 -1.442695, %v3302_v57  ;;  %v8908_v5 = vmul.f32 -1.442695, %v3303_v49 }
 0x5a7   :  { %v11247_v37 = vpop.eup %11246  ;;  %v12596_v40 = vadd.f32 1.0, %v11245_v7  ;;  %11248 = vpow2.f32 %v8909_v41  ;;  %4214 = vmatpush.bf16.msra.mxu2 %v9201_v39  ;;  %4166 = vmatpush.bf16.msra.mxu1 %v9181_v34  ;;  %v9130_v34 = vld [vmem:[#allocation6 + $0x170] sm:$0xf0] }
 0x5a8   :  { %v12598_v43 = vadd.f32 1.0, %v11247_v37  ;;  %11250 = vpow2.f32 %v8906_v24  ;;  %v9202_v24 = vld [vmem:[#allocation6 + $0x1f8] sm:$0xf0]  ;;  %v9176_v37 = vld [vmem:[#allocation6 + $0x1c0] sm:$0xf] }
 0x5a9   :  { %11252 = vrcp.f32 %v12596_v40  ;;  %v3323_v35 = vand.u32 2147483647, %v12596_v40  ;;  %v3325_v19 = vand.u32 2147483648, %v12596_v40  ;;  %vm3319_vm1 = vweird.f32 %v12596_v40 }
 0x5aa   :  { %11254 = vrcp.f32 %v12598_v43  ;;  %v3295_v28 = vpop.f32.mrf.mxu3  ;;  %v3363_v57 = vand.u32 2147483648, %v12598_v43  ;;  %v3281_v49 = vpop.f32.mrf.mxu2  ;;  %v3361_v29 = vand.u32 2147483647, %v12598_v43  ;;  %vm3357_vm3 = vweird.f32 %v12598_v43 }
 0x5ab   :  { %11256 = vpow2.f32 %v8908_v5  ;;  %v3305_v25 = vadd.f32 %v3295_v28, %v522_v60  ;;  %vm12624_vm0 = vcmp.eq.f32.partialorder %v3323_v35, 8.507059e+37  ;;  %v3326_v16 = vor.u32 1.1754944e-38, %v3325_v19  ;;  %v9184_v28 = vld [vmem:[#allocation6 + $0x1c8] sm:$0xf] }
 0x5ac   :  { %v3304_v7 = vadd.f32 %v3281_v49, %v473_v56  ;;  %v3364_v5 = vor.u32 1.1754944e-38, %v3363_v57  ;;  %vm12643_vm5 = vcmp.eq.f32.partialorder %v3361_v29, 8.507059e+37  ;;  %v9205_v45 = vor.u32 %v10675_v30, %v9202_v24  ;;  %v9168_v19 = vld [vmem:[#allocation6 + $0x1a8] sm:$0xf]  ;;  %v10667_v57 = vld [vmem:[#allocation6 + $0x1ac] sm:$0xf] }
 0x5ad   :  { %v11249_v33 = vpop.eup %11248  ;;  %v8910_v55 = vmul.f32 -1.442695, %v3305_v25  ;;  %v9177_v51 = vor.u32 %v10672_v17, %v9176_v37  ;;  %v9185_v56 = vor.u32 %v10673_v46, %v9184_v28  ;;  %v9170_v49 = vld [vmem:[#allocation6 + $0x1b8] sm:$0xf0]  ;;  %v10662_v24 = vld [vmem:[#allocation6 + $0x184] sm:$0xf] }
 0x5ae   :  { %v11251_v26 = vpop.eup %11250  ;;  %v12607_v22 = vadd.f32 1.0, %v11249_v33  ;;  %4263 = vmatpush.bf16.msra.mxu3 %v9205_v45  ;;  %v9173_v18 = vor.u32 %v10667_v57, %v9170_v49  ;;  %v10665_v45 = vld [vmem:[#allocation6 + $0x194] sm:$0xf0] }
 0x5af   :  { %v12609_v59 = vpop.eup %11252  ;;  %v12612_v0 = vadd.f32 1.0, %v11251_v26  ;;  %4117 = vmatpush.bf16.msra.mxu0 %v9177_v51  ;;  %4215 = vmatpush.bf16.msra.mxu2 %v9185_v56  ;;  %v9153_v51 = vor.u32 %v10665_v45, %v9152_v54 }
 0x5b0   :  { %v12614_v48 = vpop.eup %11254  ;;  %v3315_v61 = vmul.f32 %v12609_v59, %v12596_v40  ;;  %11258 = vrcp.f32 %v12607_v22  ;;  %vm3320_vm2 = vweird.f32 %v12609_v59  ;;  %v10658_v40 = vld [vmem:[#allocation6 + $0x164] sm:$0xf] }
 0x5b1   :  { %v11257_v27 = vpop.eup %11256  ;;  %v3353_v11 = vmul.f32 %v12614_v48, %v12598_v43  ;;  %11260 = vtanh.f32 %v3300_v1  ;;  %vm3358_vm4 = vweird.f32 %v12614_v48  ;;  %v3338_v31 = vand.u32 2147483647, %v12612_v0  ;;  %vm12651_vm6 = vmor %vm3319_vm1, %vm3320_vm2 }
 0x5b2   :  { %v3316_v41 = vsub.f32 1.0, %v3315_v61  ;;  %11262 = vrcp.f32 %v12612_v0  ;;  %v12630_v53 = vadd.f32 1.0, %v11257_v27  ;;  %v3340_v6 = vand.u32 2147483648, %v12612_v0  ;;  %vm12664_vm7 = vmor %vm3357_vm3, %vm3358_vm4  ;;  %v10669_v61 = vld [vmem:[#allocation6 + $0x1b4] sm:$0xf0] }
 0x5b3   :  { %v3354_v50 = vsub.f32 1.0, %v3353_v11  ;;  %vm12683_vm8 = vcmp.eq.f32.partialorder %v3338_v31, 8.507059e+37  ;;  %vm3334_vm9 = vweird.f32 %v12612_v0  ;;  %v9169_v13 = vor.u32 %v10669_v61, %v9168_v19 }
 0x5b4   :  { %v3317_v52 = vmul.f32 %v12609_v59, %v3316_v41  ;;  %11264 = vrcp.f32 %v12630_v53  ;;  %v3378_v35 = vand.u32 2147483648, %v12630_v53  ;;  %v3376_v3 = vand.u32 2147483647, %v12630_v53  ;;  %v9144_v41 = vld [vmem:[#allocation6 + $0x180] sm:$0xf] }
 0x5b5   :  { %v3355_v4 = vmul.f32 %v12614_v48, %v3354_v50  ;;  %11266 = vpow2.f32 %v8910_v55  ;;  %v3341_v29 = vor.u32 1.1754944e-38, %v3340_v6  ;;  %v10664_v55 = vld [vmem:[#allocation6 + $0x18c] sm:$0xf0]  ;;  %v9154_v6 = vld [vmem:[#allocation6 + $0x198] sm:$0xf0]  ;;  %4216 = vmatpush.bf16.msra.mxu2 %v9169_v13  ;;  %vm3372_vm13 = vweird.f32 %v12630_v53 }
 0x5b6   :  { %v12640_v12 = vpop.eup %11258  ;;  %v3318_v10 = vadd.f32 %v12609_v59, %v3317_v52  ;;  %11268 = vtanh.f32 %v3304_v7  ;;  %v9161_v7 = vor.u32 %v10668_v2, %v9160_v42  ;;  %v9136_v42 = vld [vmem:[#allocation6 + $0x168] sm:$0xf]  ;;  %v10661_v2 = vld [vmem:[#allocation6 + $0x174] sm:$0xf0]  ;;  %vm3377_vm15 = vcmp.eq.f32.partialorder %v3376_v3, 8.507059e+37 }
 0x5b7   :  { %v11261_v36 = vpop.eup %11260  ;;  %v3356_v60 = vadd.f32 %v12614_v48, %v3355_v4  ;;  %v12679_v26 = vmul.f32 %v12640_v12, %v12607_v22  ;;  %v9133_v38 = vor.u32 %v10658_v40, %v9130_v34  ;;  %v9137_v61 = vor.u32 %v10661_v2, %v9136_v42  ;;  %v9114_v3 = vld [vmem:[#allocation6 + $0x150] sm:$0xf0]  ;;  %v9088_v42 = vld [vmem:[#allocation6 + $0x108] sm:$0xf]  ;;  %v10649_v2 = vld [vmem:[#allocation6 + $0x114] sm:$0xf0] }
 0x5b8   :  { %v12658_v33 = vpop.eup %11262  ;;  %v3322_v1 = vsel %vm12651_vm6, %v12609_v59, %v3318_v10  ;;  %v9162_v59 = vld [vmem:[#allocation6 + $0x1b0] sm:$0xf0]  ;;  %4118 = vmatpush.bf16.msra.mxu0 %v9161_v7  ;;  %v9145_v10 = vor.u32 %v10664_v55, %v9144_v41  ;;  %v10655_v55 = vld [vmem:[#allocation6 + $0x14c] sm:$0xf]  ;;  %vm3397_vm1 = vweird.f32 %v12607_v22 }
 0x5b9   :  { %v3327_v20 = vsel %vm12624_vm0, %v3326_v16, %v3322_v1  ;;  %v3360_v43 = vsel %vm12664_vm7, %v12614_v48, %v3356_v60  ;;  %v3330_v25 = vmul.f32 %v12658_v33, %v12612_v0  ;;  %vm3335_vm10 = vweird.f32 %v12658_v33  ;;  %v10663_v60 = vld [vmem:[#allocation6 + $0x18c] sm:$0xf]  ;;  %4217 = vmatpush.bf16.msra.mxu2 %v9153_v51  ;;  %v9082_v51 = vld [vmem:[#allocation6 + $0x110] sm:$0xf0] }
 0x5ba   :  { %v12687_v39 = vpop.eup %11264  ;;  %v3365_v9 = vsel %vm12643_vm5, %v3364_v5, %v3360_v43  ;;  %v3424_v48 = vmul.f32 %v11261_v36, %v3327_v20  ;;  %v9189_v16 = vor.u32 %v10671_v58, %v9186_v63  ;;  %v9165_v30 = vor.u32 %v10666_v8, %v9162_v59  ;;  %v9146_v5 = vld [vmem:[#allocation6 + $0x190] sm:$0xf0]  ;;  %vm12709_vm12 = vmor %vm3334_vm9, %vm3335_vm10  ;;  %v9128_v58 = vld [vmem:[#allocation6 + $0x160] sm:$0xf] }
 0x5bb   :  { %v3422_v27 = vmul.f32 %v3365_v9, %v12561_v21  ;;  %v3331_v11 = vsub.f32 1.0, %v3330_v25  ;;  %v3368_v47 = vmul.f32 %v12687_v39, %v12630_v53  ;;  %v11267_v50 = vpop.eup %11266  ;;  %v3394_v21 = vsub.f32 1.0, %v12679_v26  ;;  %v10660_v63 = vld [vmem:[#allocation6 + $0x16c] sm:$0xf0]  ;;  %v10659_v25 = vld [vmem:[#allocation6 + $0x16c] sm:$0xf] }
 0x5bc   :  { %v11269_v52 = vpop.eup %11268  ;;  %v12700_v31 = vadd.f32 1.0, %v11267_v50  ;;  %4264 = vmatpush.bf16.msra.mxu3 %v9189_v16  ;;  %vm3373_vm11 = vweird.f32 %v12687_v39  ;;  %4167 = vmatpush.bf16.msra.mxu1 %v9165_v30  ;;  %v9149_v23 = vor.u32 %v10662_v24, %v9146_v5  ;;  %v3379_v43 = vor.u32 1.1754944e-38, %v3378_v35  ;;  %v9138_v9 = vld [vmem:[#allocation6 + $0x178] sm:$0xf0]  ;;  %v10656_v35 = vld [vmem:[#allocation6 + $0x14c] sm:$0xf0] }
 0x5bd   :  { %v12696_v37 = vadd.f32 %v3424_v48, %v3422_v27  ;;  %v3369_v17 = vsub.f32 1.0, %v3368_v47  ;;  %v3332_v4 = vmul.f32 %v12658_v33, %v3331_v11  ;;  %vm12721_vm14 = vmor %vm3372_vm13, %vm3373_vm11  ;;  %4119 = vmatpush.bf16.msra.mxu0 %v9145_v10  ;;  %v9129_v19 = vor.u32 %v10660_v63, %v9128_v58  ;;  %v9112_v48 = vld [vmem:[#allocation6 + $0x140] sm:$0xf]  ;;  %v10654_v53 = vld [vmem:[#allocation6 + $0x144] sm:$0xf]  ;;  %4218 = vmatpush.bf16.msra.mxu2 %v9137_v61 }
 0x5be   :  { %11270 = vrcp.f32 %v12700_v31  ;;  %v3395_v57 = vmul.f32 %v12640_v12, %v3394_v21  ;;  %v9120_v27 = vld [vmem:[#allocation6 + $0x148] sm:$0xf]  ;;  %v10657_v11 = vld [vmem:[#allocation6 + $0x154] sm:$0xf0]  ;;  %v9113_v41 = vor.u32 %v10656_v35, %v9112_v48  ;;  %v9117_v7 = vor.u32 %v10654_v53, %v9114_v3  ;;  %v9122_v30 = vld [vmem:[#allocation6 + $0x158] sm:$0xf0] }
 0x5bf   :  { %v3370_v28 = vmul.f32 %v12687_v39, %v3369_v17  ;;  %v3333_v46 = vadd.f32 %v12658_v33, %v3332_v4  ;;  %v10652_v24 = vld [vmem:[#allocation6 + $0x12c] sm:$0xf0]  ;;  %11272 = vtanh.f32 %v12696_v37  ;;  %v3403_v5 = vand.u32 2147483648, %v12607_v22  ;;  %v10650_v21 = vld [vmem:[#allocation6 + $0x124] sm:$0xf] }
 0x5c0   :  { %4265 = vmatpush.bf16.msra.mxu3 %v9173_v18  ;;  %4168 = vmatpush.bf16.msra.mxu1 %v9149_v23  ;;  %v9098_v17 = vld [vmem:[#allocation6 + $0x130] sm:$0xf0]  ;;  %v3396_v4 = vadd.f32 %v12640_v12, %v3395_v57  ;;  %vm3398_vm0 = vweird.f32 %v12640_v12  ;;  %v9104_v18 = vld [vmem:[#allocation6 + $0x128] sm:$0xf]  ;;  %v10653_v10 = vld [vmem:[#allocation6 + $0x134] sm:$0xf0]  ;;  %vm3412_vm4 = vweird.f32 %v12700_v31 }
 0x5c1   :  { %v3337_v0 = vsel %vm12709_vm12, %v12658_v33, %v3333_v46  ;;  %v3371_v1 = vadd.f32 %v12687_v39, %v3370_v28  ;;  %v9157_v33 = vor.u32 %v10663_v60, %v9154_v6  ;;  %4120 = vmatpush.bf16.msra.mxu0 %v9129_v19  ;;  %v3416_v54 = vand.u32 2147483647, %v12700_v31  ;;  %v10651_v36 = vld [vmem:[#allocation6 + $0x12c] sm:$0xf]  ;;  %v9106_v6 = vld [vmem:[#allocation6 + $0x138] sm:$0xf0]  ;;  %vm12755_vm3 = vmor %vm3397_vm1, %vm3398_vm0 }
 0x5c2   :  { %v3342_v26 = vsel %vm12683_vm8, %v3341_v29, %v3337_v0  ;;  %v9141_v29 = vor.u32 %v10659_v25, %v9138_v9  ;;  %v3418_v45 = vand.u32 2147483648, %v12700_v31  ;;  %v9125_v28 = vor.u32 %v10655_v55, %v9122_v30  ;;  %v9080_v58 = vld [vmem:[#allocation6 + $0x100] sm:$0xf]  ;;  %v10648_v63 = vld [vmem:[#allocation6 + $0x10c] sm:$0xf0] }
 0x5c3   :  { %v3375_v8 = vsel %vm12721_vm14, %v12687_v39, %v3371_v1  ;;  %v3425_v59 = vmul.f32 %v11269_v52, %v3342_v26  ;;  %v3401_v39 = vand.u32 2147483647, %v12607_v22  ;;  %v9121_v52 = vor.u32 %v10657_v11, %v9120_v27  ;;  %v10646_v1 = vld [vmem:[#allocation6 + $0x104] sm:$0xf]  ;;  %v10647_v48 = vld [vmem:[#allocation6 + $0x10c] sm:$0xf] }
 0x5c4   :  { %v3380_v56 = vsel %vm3377_vm15, %v3379_v43, %v3375_v8  ;;  %v12736_v47 = vpop.eup %11270  ;;  %4266 = vmatpush.bf16.msra.mxu3 %v9157_v33  ;;  %4169 = vmatpush.bf16.msra.mxu1 %v9133_v38  ;;  %v9101_v60 = vor.u32 %v10650_v21, %v9098_v17  ;;  %v9105_v0 = vor.u32 %v10653_v10, %v9104_v18  ;;  %v3404_v43 = vor.u32 1.1754944e-38, %v3403_v5  ;;  %v9090_v35 = vld [vmem:[#allocation6 + $0x118] sm:$0xf0]  ;;  %v10638_v3 = vld [vmem:[#allocation4 + $0x30] sm:$0xff]  ;;  %v10639_v57 = vld [vmem:[#allocation4] sm:$0xff] }
 0x5c5   :  { %v3423_v49 = vmul.f32 %v3380_v56, %v12577_v44  ;;  %v3408_v16 = vmul.f32 %v12736_v47, %v12700_v31  ;;  %v9096_v44 = vld [vmem:[#allocation6 + $0x120] sm:$0xf]  ;;  %4121 = vmatpush.bf16.msra.mxu0 %v9113_v41  ;;  %vm3413_vm2 = vweird.f32 %v12736_v47  ;;  %4219 = vmatpush.bf16.msra.mxu2 %v9121_v52  ;;  %v3400_v34 = vsel %vm12755_vm3, %v12640_v12, %v3396_v4  ;;  %v11273_v20 = vpop.eup %11272  ;;  %v10708_v27 = vld [vmem:[#allocation8 + $0x1ec] sm:$0xf0]  ;;  %v10706_v11 = vld [vmem:[#allocation8 + $0x1e4] sm:$0xf] }
 0x5c6   :  { %v9097_v46 = vor.u32 %v10652_v24, %v9096_v44  ;;  %vm3414_vm5 = vmor %vm3412_vm4, %vm3413_vm2  ;;  %v3419_v26 = vor.u32 1.1754944e-38, %v3418_v45  ;;  %v9109_v33 = vor.u32 %v10651_v36, %v9106_v6  ;;  %v9081_v25 = vor.u32 %v10648_v63, %v9080_v58  ;;  %v10640_v41 = vld [vmem:[#allocation4 + $0x18] sm:$0xff]  ;;  %v10707_v55 = vld [vmem:[#allocation8 + $0x1ec] sm:$0xf] }
 0x5c7   :  { %v12739_v50 = vadd.f32 %v3425_v59, %v3423_v49  ;;  %v3409_v13 = vsub.f32 1.0, %v3408_v16  ;;  %vm3402_vm6 = vcmp.eq.f32.partialorder %v3401_v39, 8.507059e+37  ;;  %vm3417_vm7 = vcmp.eq.f32.partialorder %v3416_v54, 8.507059e+37  ;;  %v9320_v49 = vld [vmem:[#allocation8 + $0x1e0] sm:$0xf]  ;;  %v10641_v18 = vld [vmem:[#allocation4 + $0x10] sm:$0xff] }
 0x5c8   :  { %4267 = vmatpush.bf16.msra.mxu3 %v9141_v29  ;;  %4170 = vmatpush.bf16.msra.mxu1 %v9117_v7  ;;  %v9085_v59 = vor.u32 %v10646_v1, %v9082_v51  ;;  %v3405_v12 = vsel %vm3402_vm6, %v3404_v43, %v3400_v34  ;;  %v9089_v9 = vor.u32 %v10649_v2, %v9088_v42  ;;  %v9322_v39 = vld [vmem:[#allocation8 + $0x1f0] sm:$0xf0]  ;;  %v9330_v16 = vld [vmem:[#allocation8 + $0x1f8] sm:$0xf0]  ;;  %v9328_v7 = vld [vmem:[#allocation8 + $0x1e8] sm:$0xf] }
 0x5c9   :  { %11274 = vtanh.f32 %v12739_v50  ;;  %v3410_v23 = vmul.f32 %v12736_v47, %v3409_v13  ;;  %4122 = vmatpush.bf16.msra.mxu0 %v9097_v46  ;;  %4220 = vmatpush.bf16.msra.mxu2 %v9105_v0  ;;  %v3430_v56 = vmul.f32 %v11273_v20, %v3405_v12  ;;  %v9093_v53 = vor.u32 %v10647_v48, %v9090_v35  ;;  %v10709_v44 = vld [vmem:[#allocation8 + $0x1f4] sm:$0xf0]  ;;  %v9304_v24 = vld [vmem:[#allocation8 + $0x1c0] sm:$0xf]  ;;  %v10704_v5 = vld [vmem:[#allocation8 + $0x1cc] sm:$0xf0] }
 0x5ca   :  { %v9325_v29 = vor.u32 %v10706_v11, %v9322_v39  ;;  %v9333_v30 = vor.u32 %v10707_v55, %v9330_v16  ;;  %v9329_v52 = vor.u32 %v10709_v44, %v9328_v7  ;;  %v9305_v21 = vor.u32 %v10704_v5, %v9304_v24  ;;  %v10702_v17 = vld [vmem:[#allocation8 + $0x1c4] sm:$0xf]  ;;  %v9306_v4 = vld [vmem:[#allocation8 + $0x1d0] sm:$0xf0]  ;;  %v10703_v10 = vld [vmem:[#allocation8 + $0x1cc] sm:$0xf] }
 0x5cb   :  { %v3411_v22 = vadd.f32 %v12736_v47, %v3410_v23  ;;  %v9309_v13 = vor.u32 %v10702_v17, %v9306_v4  ;;  %v9314_v54 = vld [vmem:[#allocation8 + $0x1d8] sm:$0xf0]  ;;  %v9312_v45 = vld [vmem:[#allocation8 + $0x1c8] sm:$0xf]  ;;  %v10705_v46 = vld [vmem:[#allocation8 + $0x1d4] sm:$0xf0] }
 0x5cc   :  { %4268 = vmatpush.bf16.msra.mxu3 %v9125_v28  ;;  %4171 = vmatpush.bf16.msra.mxu1 %v9101_v60  ;;  %v9317_v28 = vor.u32 %v10703_v10, %v9314_v54  ;;  %v9288_v36 = vld [vmem:[#allocation8 + $0x1a0] sm:$0xf]  ;;  %v10700_v23 = vld [vmem:[#allocation8 + $0x1ac] sm:$0xf0]  ;;  %v9313_v60 = vor.u32 %v10705_v46, %v9312_v45  ;;  %v10698_v58 = vld [vmem:[#allocation8 + $0x1a4] sm:$0xf] }
 0x5cd   :  { %v3415_v31 = vsel %vm3414_vm5, %v12736_v47, %v3411_v22  ;;  %4123 = vmatpush.bf16.msra.mxu0 %v9081_v25  ;;  %4221 = vmatpush.bf16.msra.mxu2 %v9089_v9  ;;  %v9321_v47 = vor.u32 %v10708_v27, %v9320_v49  ;;  %v9289_v6 = vor.u32 %v10700_v23, %v9288_v36  ;;  %v9290_v63 = vld [vmem:[#allocation8 + $0x1b0] sm:$0xf0]  ;;  %v10642_v0 = vld [vmem:[#allocation4 + $0x8] sm:$0xff]  ;;  %v9298_v51 = vld [vmem:[#allocation8 + $0x1b8] sm:$0xf0] }
 0x5ce   :  { %v3420_v19 = vsel %vm3417_vm7, %v3419_v26, %v3415_v31  ;;  %v9293_v40 = vor.u32 %v10698_v58, %v9290_v63  ;;  %v10699_v1 = vld [vmem:[#allocation8 + $0x1ac] sm:$0xf]  ;;  %v9296_v22 = vld [vmem:[#allocation8 + $0x1a8] sm:$0xf]  ;;  %v10701_v42 = vld [vmem:[#allocation8 + $0x1b4] sm:$0xf0] }
 0x5cf   :  { %v11275_v8 = vpop.eup %11274  ;;  %v9301_v34 = vor.u32 %v10699_v1, %v9298_v51  ;;  %v9297_v2 = vor.u32 %v10701_v42, %v9296_v22  ;;  %v10643_v20 = vld [vmem:[#allocation4 + $0x20] sm:$0xff]  ;;  %v9274_v31 = vld [vmem:[#allocation8 + $0x190] sm:$0xf0]  ;;  %v9282_v12 = vld [vmem:[#allocation8 + $0x198] sm:$0xf0] }
 0x5d0   :  { %v3431_v38 = vmul.f32 %v11275_v8, %v3420_v19  ;;  %4269 = vmatpush.bf16.msra.mxu3 %v9109_v33  ;;  %4172 = vmatpush.bf16.msra.mxu1 %v9085_v59  ;;  %v9272_v26 = vld [vmem:[#allocation8 + $0x180] sm:$0xf]  ;;  %v10696_v33 = vld [vmem:[#allocation8 + $0x18c] sm:$0xf0]  ;;  %v10694_v25 = vld [vmem:[#allocation8 + $0x184] sm:$0xf] }
 0x5d1   :  { %v9273_v8 = vor.u32 %v10696_v33, %v9272_v26  ;;  %v10695_v59 = vld [vmem:[#allocation8 + $0x18c] sm:$0xf]  ;;  %v9277_v19 = vor.u32 %v10694_v25, %v9274_v31  ;;  %v14121_v48 = vld [vmem:[#allocation35_spill] sm:$0xff] }
 0x5d2   :  { %v10983_v61 = vpack.c.bf16 %v3431_v38, %v3430_v56  ;;  %v9285_v9 = vor.u32 %v10695_v59, %v9282_v12  ;;  %v427_v35 = vadd.f32 %v14121_v48, %v11886_v14  ;;  %v14123_v27 = vld [vmem:[#allocation31_spill] sm:$0xff] }
 0x5d3   :  { %v525_v11 = vadd.f32 %v14123_v27, %v11877_v62 }
 0x5d4   :  { %10984 = vst [vmem:[#allocation4 + $0x28] sm:$0xff] %v10983_v61   ;;  %3657 = vmatmul.bf16.vlgmr.msrb.gmra.mxu0 %v10983_v61  ;;  %3671 = vmatmul.bf16.vlgmr.msrb.gmra.mxu1 %v10983_v61 }
 0x5d5   :  { %3685 = vmatmul.bf16.vlgmr.msrb.gmra.mxu2 %v10983_v61  ;;  %3699 = vmatmul.bf16.vlgmr.msrb.gmra.mxu3 %v10983_v61  ;;  %v14122_v61 = vld [vmem:[#allocation14_spill] sm:$0xff] }
 0x5d6   :  { %4270 = vmatpush.bf16.msra.mxu3 %v9093_v53  ;;  %4584 = vmatpush.bf16.msrb.mxu0 %v9321_v47  ;;  %v14124_v47 = vld [vmem:[#allocation15_spill] sm:$0xff] }
 0x5d7   :  { %4598 = vmatpush.bf16.msrb.mxu1 %v9325_v29  ;;  %4612 = vmatpush.bf16.msrb.mxu2 %v9329_v52  ;;  %v380_v39 = vadd.f32 %v14124_v47, %v11732_v15  ;;  %v14125_v29 = vld [vmem:[#allocation37_spill] sm:$0xff]  ;;  %v14126_v15 = vld [vmem:[#allocation36_spill] sm:$0xff]  ;;  %v10692_v47 = vld [vmem:[#allocation8 + $0x16c] sm:$0xf0] }
 0x5d8   :  { %v476_v54 = vadd.f32 %v14126_v15, %v11895_v32 }
 0x5da   :  { %4626 = vmatpush.bf16.msrb.mxu3 %v9333_v30  ;;  %4585 = vmatpush.bf16.msrb.mxu0 %v9305_v21 }
 0x5db   :  { %4599 = vmatpush.bf16.msrb.mxu1 %v9309_v13  ;;  %4613 = vmatpush.bf16.msrb.mxu2 %v9313_v60  ;;  %v10644_v43 = vld [vmem:[#allocation4 + $0x28] sm:$0xff] }
 0x5de   :  { %4627 = vmatpush.bf16.msrb.mxu3 %v9317_v28  ;;  %4586 = vmatpush.bf16.msrb.mxu0 %v9289_v6  ;;  %v14127_v28 = vld [vmem:[#allocation34_spill] sm:$0xff] }
 0x5df   :  { %4600 = vmatpush.bf16.msrb.mxu1 %v9293_v40  ;;  %4614 = vmatpush.bf16.msrb.mxu2 %v9297_v2  ;;  %v527_v46 = vadd.f32 %v14127_v28, %v11877_v62  ;;  %v14128_v40 = vld [vmem:[#allocation38_spill] sm:$0xff] }
 0x5e2   :  { %4628 = vmatpush.bf16.msrb.mxu3 %v9301_v34  ;;  %4587 = vmatpush.bf16.msrb.mxu0 %v9273_v8 }
 0x5e3   :  { %4601 = vmatpush.bf16.msrb.mxu1 %v9277_v19 }
 0x5e4   :  { %4124 = vmatmul.bf16.vlgmr.msra.gmra.mxu0 %v10638_v3  ;;  %4173 = vmatmul.bf16.vlgmr.msra.gmra.mxu1 %v10638_v3 }
 0x5e5   :  { %4222 = vmatmul.bf16.vlgmr.msra.gmra.mxu2 %v10638_v3  ;;  %4271 = vmatmul.bf16.vlgmr.msra.gmra.mxu3 %v10638_v3 }
 0x5e6   :  { %4629 = vmatpush.bf16.msrb.mxu3 %v9285_v9 }
 0x5f4   :  { %4129 = vmatmul.bf16.gmra.mxu0 %v10639_v57  ;;  %4178 = vmatmul.bf16.gmra.mxu1 %v10639_v57 }
 0x5f5   :  { %4227 = vmatmul.bf16.gmra.mxu2 %v10639_v57  ;;  %4276 = vmatmul.bf16.gmra.mxu3 %v10639_v57 }
 0x604   :  { %4134 = vmatmul.bf16.gmra.mxu0 %v10640_v41  ;;  %4183 = vmatmul.bf16.gmra.mxu1 %v10640_v41 }
 0x605   :  { %4232 = vmatmul.bf16.gmra.mxu2 %v10640_v41  ;;  %4281 = vmatmul.bf16.gmra.mxu3 %v10640_v41  ;;  %v429_v41 = vadd.f32 %v14125_v29, %v11886_v14 }
 0x614   :  { %4139 = vmatmul.bf16.gmra.mxu0 %v10641_v18  ;;  %4188 = vmatmul.bf16.gmra.mxu1 %v10641_v18 }
 0x615   :  { %4237 = vmatmul.bf16.gmra.mxu2 %v10641_v18  ;;  %4286 = vmatmul.bf16.gmra.mxu3 %v10641_v18 }
 0x624   :  { %4144 = vmatmul.bf16.gmra.mxu0 %v10642_v0  ;;  %4193 = vmatmul.bf16.gmra.mxu1 %v10642_v0 }
 0x625   :  { %4242 = vmatmul.bf16.gmra.mxu2 %v10642_v0  ;;  %4291 = vmatmul.bf16.gmra.mxu3 %v10642_v0  ;;  %v478_v0 = vadd.f32 %v14128_v40, %v11895_v32 }
 0x634   :  { %4149 = vmatmul.bf16.gmra.mxu0 %v10643_v20  ;;  %4198 = vmatmul.bf16.gmra.mxu1 %v10643_v20 }
 0x635   :  { %4247 = vmatmul.bf16.gmra.mxu2 %v10643_v20  ;;  %4296 = vmatmul.bf16.gmra.mxu3 %v10643_v20 }
 0x644   :  { %4154 = vmatmul.bf16.gmra.mxu0 %v10644_v43  ;;  %4203 = vmatmul.bf16.gmra.mxu1 %v10644_v43 }
 0x645   :  { %4252 = vmatmul.bf16.gmra.mxu2 %v10644_v43  ;;  %4301 = vmatmul.bf16.gmra.mxu3 %v10644_v43 }
 0x651   :  { %v3658_v56 = vpop.f32.mrf.mxu0  ;;  %v3672_v38 = vpop.f32.mrf.mxu1 }
 0x652   :  { %v3705_v53 = vadd.f32 %v3658_v56, %v14122_v61  ;;  %v3706_v3 = vadd.f32 %v3672_v38, %v427_v35  ;;  %v9280_v35 = vld [vmem:[#allocation8 + $0x188] sm:$0xf] }
 0x654   :  { %v9039_v57 = vmul.f32 -1.442695, %v3705_v53  ;;  %v9041_v49 = vmul.f32 -1.442695, %v3706_v3  ;;  %v10697_v3 = vld [vmem:[#allocation8 + $0x194] sm:$0xf0] }
 0x656   :  { %11276 = vpow2.f32 %v9039_v57  ;;  %v9256_v57 = vld [vmem:[#allocation8 + $0x160] sm:$0xf] }
 0x657   :  { %11278 = vpow2.f32 %v9041_v49 }
 0x658   :  { %v3700_v55 = vpop.f32.mrf.mxu3  ;;  %v3686_v44 = vpop.f32.mrf.mxu2 }
 0x659   :  { %v3708_v16 = vadd.f32 %v3700_v55, %v525_v11  ;;  %v3660_v7 = vpop.f32.mrf.mxu0  ;;  %v3674_v30 = vpop.f32.mrf.mxu1  ;;  %v3707_v14 = vadd.f32 %v3686_v44, %v476_v54 }
 0x65a   :  { %v3709_v24 = vadd.f32 %v3660_v7, %v380_v39  ;;  %v3710_v5 = vadd.f32 %v3674_v30, %v429_v41  ;;  %v10690_v39 = vld [vmem:[#allocation8 + $0x164] sm:$0xf]  ;;  %v9257_v7 = vor.u32 %v10692_v47, %v9256_v57  ;;  %v9258_v30 = vld [vmem:[#allocation8 + $0x170] sm:$0xf0]  ;;  %v10689_v57 = vld [vmem:[#allocation8 + $0x154] sm:$0xf0] }
 0x65b   :  { %v9043_v52 = vmul.f32 -1.442695, %v3708_v16  ;;  %v9281_v16 = vor.u32 %v10697_v3, %v9280_v35  ;;  %v9261_v15 = vor.u32 %v10690_v39, %v9258_v30 }
 0x65c   :  { %v11277_v21 = vpop.eup %11276  ;;  %v9040_v17 = vmul.f32 -1.442695, %v3709_v24  ;;  %v9042_v18 = vmul.f32 -1.442695, %v3710_v5  ;;  %4588 = vmatpush.bf16.msrb.mxu0 %v9257_v7 }
 0x65d   :  { %v11279_v4 = vpop.eup %11278  ;;  %v3719_v13 = vadd.f32 1.0, %v11277_v21  ;;  %11280 = vpow2.f32 %v9043_v52  ;;  %v10691_v21 = vld [vmem:[#allocation8 + $0x16c] sm:$0xf]  ;;  %4615 = vmatpush.bf16.msrb.mxu2 %v9281_v16  ;;  %4602 = vmatpush.bf16.msrb.mxu1 %v9261_v15 }
 0x65e   :  { %v3757_v10 = vadd.f32 1.0, %v11279_v4  ;;  %11282 = vpow2.f32 %v9040_v17  ;;  %v9266_v17 = vld [vmem:[#allocation8 + $0x178] sm:$0xf0] }
 0x65f   :  { %11284 = vrcp.f32 %v3719_v13  ;;  %v3730_v1 = vand.u32 2147483647, %v3719_v13  ;;  %v3732_v42 = vand.u32 2147483648, %v3719_v13  ;;  %vm3726_vm9 = vweird.f32 %v3719_v13 }
 0x660   :  { %11286 = vrcp.f32 %v3757_v10  ;;  %v3702_v45 = vpop.f32.mrf.mxu3  ;;  %v3688_v6 = vpop.f32.mrf.mxu2  ;;  %v3770_v20 = vand.u32 2147483648, %v3757_v10  ;;  %v3768_v43 = vand.u32 2147483647, %v3757_v10  ;;  %vm3764_vm8 = vweird.f32 %v3757_v10 }
 0x661   :  { %11288 = vpow2.f32 %v9042_v18  ;;  %v3712_v58 = vadd.f32 %v3702_v45, %v527_v46  ;;  %v3711_v26 = vadd.f32 %v3688_v6, %v478_v0  ;;  %vm12790_vm10 = vcmp.eq.f32.partialorder %v3730_v1, 8.507059e+37 }
 0x662   :  { %11290 = vtanh.f32 %v3707_v14  ;;  %v3733_v48 = vor.u32 1.1754944e-38, %v3732_v42  ;;  %v3771_v38 = vor.u32 1.1754944e-38, %v3770_v20  ;;  %vm12798_vm13 = vcmp.eq.f32.partialorder %v3768_v43, 8.507059e+37  ;;  %v9264_v42 = vld [vmem:[#allocation8 + $0x168] sm:$0xf] }
 0x663   :  { %v11281_v36 = vpop.eup %11280  ;;  %v9044_v32 = vmul.f32 -1.442695, %v3712_v58  ;;  %v9240_v43 = vld [vmem:[#allocation8 + $0x140] sm:$0xf] }
 0x664   :  { %v11283_v23 = vpop.eup %11282  ;;  %v12780_v60 = vadd.f32 1.0, %v11281_v36 }
 0x665   :  { %v11285_v63 = vpop.eup %11284  ;;  %v12784_v51 = vadd.f32 1.0, %v11283_v23 }
 0x666   :  { %v11287_v22 = vpop.eup %11286  ;;  %v3722_v34 = vmul.f32 %v11285_v63, %v3719_v13  ;;  %11292 = vrcp.f32 %v12780_v60  ;;  %vm3727_vm11 = vweird.f32 %v11285_v63  ;;  %v3810_v12 = vand.u32 2147483648, %v12780_v60 }
 0x667   :  { %v11289_v62 = vpop.eup %11288  ;;  %v3760_v2 = vmul.f32 %v11287_v22, %v3757_v10  ;;  %11294 = vrcp.f32 %v12784_v51  ;;  %vm3765_vm12 = vweird.f32 %v11287_v22  ;;  %vm3728_vm14 = vmor %vm3726_vm9, %vm3727_vm11  ;;  %vm3804_vm15 = vweird.f32 %v12780_v60 }
 0x668   :  { %v3723_v33 = vsub.f32 1.0, %v3722_v34  ;;  %v12788_v25 = vadd.f32 1.0, %v11289_v62  ;;  %v11291_v19 = vpop.eup %11290  ;;  %v3808_v11 = vand.u32 2147483647, %v12780_v60  ;;  %vm3766_vm0 = vmor %vm3764_vm8, %vm3765_vm12  ;;  %v12812_v55 = vor.u32 1.1754944e-38, %v3810_v12 }
 0x669   :  { %v3761_v8 = vsub.f32 1.0, %v3760_v2  ;;  %v3745_v10 = vand.u32 2147483647, %v12784_v51  ;;  %v3747_v6 = vand.u32 2147483648, %v12784_v51  ;;  %vm3741_vm4 = vweird.f32 %v12784_v51  ;;  %v10693_v62 = vld [vmem:[#allocation8 + $0x174] sm:$0xf0] }
 0x66a   :  { %v3724_v59 = vmul.f32 %v11285_v63, %v3723_v33  ;;  %11296 = vrcp.f32 %v12788_v25  ;;  %vm12828_vm2 = vcmp.eq.f32.partialorder %v3808_v11, 8.507059e+37  ;;  %v3783_v58 = vand.u32 2147483647, %v12788_v25  ;;  %v9242_v12 = vld [vmem:[#allocation8 + $0x150] sm:$0xf0] }
 0x66b   :  { %v3762_v9 = vmul.f32 %v11287_v22, %v3761_v8  ;;  %11298 = vtanh.f32 %v3711_v26  ;;  %vm3746_vm8 = vcmp.eq.f32.partialorder %v3745_v10, 8.507059e+37  ;;  %v3748_v33 = vor.u32 1.1754944e-38, %v3747_v6  ;;  %v10678_v10 = vld [vmem:[#allocation8 + $0x104] sm:$0xf]  ;;  %v9216_v6 = vld [vmem:[#allocation8 + $0x108] sm:$0xf]  ;;  %v12876_v26 = vpop.f32.mrf.mxu0 }
 0x66c   :  { %v12796_v56 = vpop.eup %11292  ;;  %v3725_v61 = vadd.f32 %v11285_v63, %v3724_v59  ;;  %11300 = vpow2.f32 %v9044_v32  ;;  %v10686_v32 = vld [vmem:[#allocation8 + $0x144] sm:$0xf]  ;;  %vm3779_vm9 = vweird.f32 %v12788_v25  ;;  %v9265_v59 = vor.u32 %v10693_v62, %v9264_v42 }
 0x66d   :  { %v3763_v49 = vadd.f32 %v11287_v22, %v3762_v9  ;;  %v3800_v27 = vmul.f32 %v12796_v56, %v12780_v60  ;;  %v12808_v29 = vpop.eup %11294  ;;  %vm3805_vm1 = vweird.f32 %v12796_v56  ;;  %v10688_v60 = vld [vmem:[#allocation8 + $0x14c] sm:$0xf0]  ;;  %v9250_v9 = vld [vmem:[#allocation8 + $0x158] sm:$0xf0]  ;;  %vm3784_vm11 = vcmp.eq.f32.partialorder %v3783_v58, 8.507059e+37 }
 0x66e   :  { %v3729_v41 = vsel %vm3728_vm14, %v11285_v63, %v3725_v61  ;;  %v3737_v52 = vmul.f32 %v12808_v29, %v12784_v51  ;;  %v9269_v63 = vor.u32 %v10691_v21, %v9266_v17  ;;  %vm3742_vm3 = vweird.f32 %v12808_v29  ;;  %vm12845_vm5 = vmor %vm3804_vm15, %vm3805_vm1  ;;  %4616 = vmatpush.bf16.msrb.mxu2 %v9265_v59  ;;  %v10681_v58 = vld [vmem:[#allocation8 + $0x114] sm:$0xf0] }
 0x66f   :  { %v3734_v44 = vsel %vm12790_vm10, %v3733_v48, %v3729_v41  ;;  %v3767_v24 = vsel %vm3766_vm0, %v11287_v22, %v3763_v49  ;;  %v3801_v5 = vsub.f32 1.0, %v3800_v27  ;;  %v3785_v22 = vand.u32 2147483648, %v12788_v25  ;;  %vm12852_vm7 = vmor %vm3741_vm4, %vm3742_vm3  ;;  %v9224_v49 = vld [vmem:[#allocation8 + $0x120] sm:$0xf]  ;;  %v10684_v27 = vld [vmem:[#allocation8 + $0x12c] sm:$0xf0] }
 0x670   :  { %v12818_v4 = vpop.eup %11296  ;;  %v3772_v13 = vsel %vm12798_vm13, %v3771_v38, %v3767_v24  ;;  %v3831_v18 = vmul.f32 %v11291_v19, %v3734_v44  ;;  %v3738_v28 = vsub.f32 1.0, %v3737_v52  ;;  %4630 = vmatpush.bf16.msrb.mxu3 %v9269_v63  ;;  %v10687_v19 = vld [vmem:[#allocation8 + $0x14c] sm:$0xf]  ;;  %v9241_v3 = vor.u32 %v10688_v60, %v9240_v43  ;;  %v9234_v44 = vld [vmem:[#allocation8 + $0x138] sm:$0xf0] }
 0x671   :  { %v11299_v54 = vpop.eup %11298  ;;  %v3829_v14 = vmul.f32 %v3772_v13, %v12696_v37  ;;  %v3802_v45 = vmul.f32 %v12796_v56, %v3801_v5  ;;  %v3775_v46 = vmul.f32 %v12818_v4, %v12788_v25  ;;  %vm3780_vm6 = vweird.f32 %v12818_v4  ;;  %v9248_v25 = vld [vmem:[#allocation8 + $0x148] sm:$0xf]  ;;  %v10683_v41 = vld [vmem:[#allocation8 + $0x12c] sm:$0xf]  ;;  %v10685_v5 = vld [vmem:[#allocation8 + $0x134] sm:$0xf0] }
 0x672   :  { %v11301_v36 = vpop.eup %11300  ;;  %v3739_v0 = vmul.f32 %v12808_v29, %v3738_v28  ;;  %vm3781_vm10 = vmor %vm3779_vm9, %vm3780_vm6  ;;  %v3786_v35 = vor.u32 1.1754944e-38, %v3785_v22  ;;  %v9245_v47 = vor.u32 %v10686_v32, %v9242_v12  ;;  %v9253_v39 = vor.u32 %v10687_v19, %v9250_v9  ;;  %4589 = vmatpush.bf16.msrb.mxu0 %v9241_v3  ;;  %v9232_v24 = vld [vmem:[#allocation8 + $0x128] sm:$0xf]  ;;  %v9208_v13 = vld [vmem:[#allocation8 + $0x100] sm:$0xf]  ;;  %v12880_v32 = vpop.f32.mrf.mxu3 }
 0x673   :  { %v3833_v37 = vadd.f32 %v3831_v18, %v3829_v14  ;;  %v3776_v40 = vsub.f32 1.0, %v3775_v46  ;;  %v3803_v1 = vadd.f32 %v12796_v56, %v3802_v45  ;;  %v12839_v34 = vadd.f32 1.0, %v11301_v36  ;;  %v10680_v18 = vld [vmem:[#allocation8 + $0x10c] sm:$0xf0]  ;;  %v10679_v45 = vld [vmem:[#allocation8 + $0x10c] sm:$0xf] }
 0x674   :  { %v3740_v51 = vadd.f32 %v12808_v29, %v3739_v0  ;;  %4603 = vmatpush.bf16.msrb.mxu1 %v9245_v47  ;;  %4631 = vmatpush.bf16.msrb.mxu3 %v9253_v39  ;;  %v9249_v17 = vor.u32 %v10689_v57, %v9248_v25  ;;  %v9237_v28 = vor.u32 %v10683_v41, %v9234_v44  ;;  %v14139_v25 = vmov 0.0|0.0  }
 0x675   :  { %11302 = vtanh.f32 %v3833_v37  ;;  %v3777_v20 = vmul.f32 %v12818_v4, %v3776_v40  ;;  %v3807_v48 = vsel %vm12845_vm5, %v12796_v56, %v3803_v1  ;;  %v9226_v56 = vld [vmem:[#allocation8 + $0x130] sm:$0xf0]  ;;  %v9233_v46 = vor.u32 %v10685_v5, %v9232_v24 }
 0x676   :  { %11304 = vrcp.f32 %v12839_v34  ;;  %v3744_v8 = vsel %vm12852_vm7, %v12808_v29, %v3740_v51  ;;  %v10682_v29 = vld [vmem:[#allocation8 + $0x124] sm:$0xf]  ;;  %v3812_v7 = vsel %vm12828_vm2, %v12812_v55, %v3807_v48  ;;  %v9210_v55 = vld [vmem:[#allocation8 + $0x110] sm:$0xf0]  ;;  %4617 = vmatpush.bf16.msrb.mxu2 %v9249_v17  ;;  %v9209_v23 = vor.u32 %v10680_v18, %v9208_v13 }
 0x677   :  { %v3778_v31 = vadd.f32 %v12818_v4, %v3777_v20  ;;  %v3749_v38 = vsel %vm3746_vm8, %v3748_v33, %v3744_v8  ;;  %v9229_v14 = vor.u32 %v10682_v29, %v9226_v56  ;;  %v3825_v63 = vand.u32 2147483648, %v12839_v34  ;;  %v12878_v33 = vpop.f32.mrf.mxu1  ;;  %v12884_v8 = vpop.f32.mrf.mxu0 }
 0x678   :  { %v3832_v53 = vmul.f32 %v11299_v54, %v3749_v38  ;;  %4632 = vmatpush.bf16.msrb.mxu3 %v9237_v28  ;;  %v9213_v37 = vor.u32 %v10678_v10, %v9210_v55  ;;  %v3823_v1 = vand.u32 2147483647, %v12839_v34  ;;  %v9217_v22 = vor.u32 %v10681_v58, %v9216_v6 }
 0x679   :  { %v3782_v61 = vsel %vm3781_vm10, %v12818_v4, %v3778_v31  ;;  %v9225_v4 = vor.u32 %v10684_v27, %v9224_v49  ;;  %4604 = vmatpush.bf16.msrb.mxu1 %v9229_v14  ;;  %vm3819_vm13 = vweird.f32 %v12839_v34  ;;  %v3826_v62 = vor.u32 1.1754944e-38, %v3825_v63 }
 0x67a   :  { %v3787_v11 = vsel %vm3784_vm11, %v3786_v35, %v3782_v61  ;;  %4618 = vmatpush.bf16.msrb.mxu2 %v9233_v46  ;;  %vm3824_vm15 = vcmp.eq.f32.partialorder %v3823_v1, 8.507059e+37  ;;  %v12888_v12 = vpop.f32.mrf.mxu3 }
 0x67b   :  { %v11303_v16 = vpop.eup %11302  ;;  %v3830_v30 = vmul.f32 %v3787_v11, %v12739_v50  ;;  %v9218_v50 = vld [vmem:[#allocation8 + $0x118] sm:$0xf0]  ;;  %4590 = vmatpush.bf16.msrb.mxu0 %v9225_v4 }
 0x67c   :  { %v11305_v52 = vpop.eup %11304  ;;  %v3837_v21 = vmul.f32 %v11303_v16, %v3812_v7  ;;  %v9221_v40 = vor.u32 %v10679_v45, %v9218_v50 }
 0x67d   :  { %v3834_v15 = vadd.f32 %v3832_v53, %v3830_v30  ;;  %v3815_v54 = vmul.f32 %v11305_v52, %v12839_v34  ;;  %vm3820_vm12 = vweird.f32 %v11305_v52  ;;  %4605 = vmatpush.bf16.msrb.mxu1 %v9213_v37  ;;  %v12882_v34 = vpop.f32.mrf.mxu2 }
 0x67e   :  { %vm3821_vm14 = vmor %vm3819_vm13, %vm3820_vm12  ;;  %4633 = vmatpush.bf16.msrb.mxu3 %v9221_v40  ;;  %4619 = vmatpush.bf16.msrb.mxu2 %v9217_v22 }
 0x67f   :  { %11306 = vtanh.f32 %v3834_v15  ;;  %v3816_v36 = vsub.f32 1.0, %v3815_v54  ;;  %4591 = vmatpush.bf16.msrb.mxu0 %v9209_v23  ;;  %v12886_v31 = vpop.f32.mrf.mxu1  ;;  %v12892_v9 = vpop.f32.mrf.mxu0 }
 0x681   :  { %v3817_v0 = vmul.f32 %v11305_v52, %v3816_v36 }
 0x682   :  { %v12896_v35 = vpop.f32.mrf.mxu3 }
 0x683   :  { %v3818_v42 = vadd.f32 %v11305_v52, %v3817_v0 }
 0x685   :  { %v11307_v2 = vpop.eup %11306  ;;  %v3822_v20 = vsel %vm3821_vm14, %v11305_v52, %v3818_v42  ;;  %v12890_v19 = vpop.f32.mrf.mxu2 }
 0x686   :  { %v3827_v51 = vsel %vm3824_vm15, %v3826_v62, %v3822_v20 }
 0x687   :  { %v3838_v43 = vmul.f32 %v11307_v2, %v3827_v51  ;;  %v12894_v48 = vpop.f32.mrf.mxu1  ;;  %v12902_v61 = vpop.f32.mrf.mxu0  ;;  %v13001_v51 = vld [vmem:[%s14009_s3 + $0x4] sm:$0xf] }
 0x689   :  { %v10988_v60 = vpack.c.bf16 %v3838_v43, %v3837_v21 }
 0x68a   :  { %v12908_v3 = vpop.f32.mrf.mxu3 }
 0x68b   :  { %10989 = vst [vmem:[#allocation4 + $0x38] sm:$0xff] %v10988_v60  }
 0x68d   :  { %v12898_v38 = vpop.f32.mrf.mxu2 }
 0x68f   :  { %v12904_v53 = vpop.f32.mrf.mxu1  ;;  %v12912_v49 = vpop.f32.mrf.mxu0 }
 0x692   :  { %v10645_v59 = vld [vmem:[#allocation4 + $0x38] sm:$0xff]  ;;  %v12916_v11 = vpop.f32.mrf.mxu3 }
 0x693   :  { %4159 = vmatmul.bf16.gmra.mxu0 %v10645_v59  ;;  %4208 = vmatmul.bf16.gmra.mxu1 %v10645_v59 }
 0x694   :  { %4257 = vmatmul.bf16.gmra.mxu2 %v10645_v59  ;;  %4306 = vmatmul.bf16.gmra.mxu3 %v10645_v59 }
 0x695   :  { %v12910_v57 = vpop.f32.mrf.mxu2 }
 0x697   :  { %v12914_v27 = vpop.f32.mrf.mxu1  ;;  %v12920_v39 = vpop.f32.mrf.mxu0 }
 0x69a   :  { %v12924_v56 = vpop.f32.mrf.mxu3 }
 0x69d   :  { %v12918_v47 = vpop.f32.mrf.mxu2 }
 0x69f   :  { %v12922_v29 = vpop.f32.mrf.mxu1  ;;  %v12928_v16 = vpop.f32.mrf.mxu0 }
 0x6a2   :  { %v12932_v30 = vpop.f32.mrf.mxu3 }
 0x6a3   :  { %4592 = vmatmul.bf16.vlgmr.msrb.gmra.mxu0 %v14139_v25  ;;  %4606 = vmatmul.bf16.vlgmr.msrb.gmra.mxu1 %v14139_v25 }
 0x6a4   :  { %4620 = vmatmul.bf16.vlgmr.msrb.gmra.mxu2 %v14139_v25  ;;  %4634 = vmatmul.bf16.vlgmr.msrb.gmra.mxu3 %v14139_v25  ;;  %v13010_v25 = vperm.slane %v13001_v51, 0 }
 0x6a5   :  { %v12926_v41 = vpop.f32.mrf.mxu2 }
 0x6a7   :  { %v12930_v7 = vpop.f32.mrf.mxu1  ;;  %v12936_v24 = vpop.f32.mrf.mxu0 }
 0x6aa   :  { %v12940_v52 = vpop.f32.mrf.mxu3 }
 0x6ab   :  { %14140 = vst [vmem:[#allocation19_spill] sm:$0xff] %v12940_v52 }
 0x6ad   :  { %v12934_v44 = vpop.f32.mrf.mxu2 }
 0x6af   :  { %v12938_v5 = vpop.f32.mrf.mxu1  ;;  %v12944_v17 = vpop.f32.mrf.mxu0 }
 0x6b0   :  { %14142 = vst [vmem:[#allocation21_spill] sm:$0xff] %v12944_v17  ;;  %v9352_v17 = vld [vmem:[#allocation8 + $0x118] sm:$0xf0] }
 0x6b2   :  { %v12948_v13 = vpop.f32.mrf.mxu3 }
 0x6b3   :  { %14144 = vst [vmem:[#allocation16_spill] sm:$0xff] %v12948_v13  ;;  %v10712_v13 = vld [vmem:[#allocation8 + $0x10c] sm:$0xf0] }
 0x6b5   :  { %v12942_v21 = vpop.f32.mrf.mxu2 }
 0x6b6   :  { %14141 = vst [vmem:[#allocation18_spill] sm:$0xff] %v12942_v21 }
 0x6b7   :  { %v12946_v4 = vpop.f32.mrf.mxu1  ;;  %v12952_v10 = vpop.f32.mrf.mxu0 }
 0x6b8   :  { %14143 = vst [vmem:[#allocation23_spill] sm:$0xff] %v12946_v4  ;;  %v10710_v4 = vld [vmem:[#allocation8 + $0x104] sm:$0xf] }
 0x6b9   :  { %14146 = vst [vmem:[#allocation17_spill] sm:$0xff] %v12952_v10 }
 0x6ba   :  { %v12956_v54 = vpop.f32.mrf.mxu3 }
 0x6bb   :  { %14148 = vst [vmem:[#allocation24_spill] sm:$0xff] %v12956_v54 }
 0x6bd   :  { %v12950_v18 = vpop.f32.mrf.mxu2 }
 0x6be   :  { %14145 = vst [vmem:[#allocation20_spill] sm:$0xff] %v12950_v18 }
 0x6bf   :  { %v12954_v15 = vpop.f32.mrf.mxu1  ;;  %v12960_v55 = vpop.f32.mrf.mxu0 }
 0x6c0   :  { %14147 = vst [vmem:[#allocation26_spill] sm:$0xff] %v12954_v15 }
 0x6c1   :  { %14150 = vst [vmem:[#allocation27_spill] sm:$0xff] %v12960_v55 }
 0x6c2   :  { %v12964_v50 = vpop.f32.mrf.mxu3 }
 0x6c3   :  { %14152 = vst [vmem:[#allocation12_spill] sm:$0xff] %v12964_v50  ;;  %v10736_v50 = vld [vmem:[#allocation8 + $0x1cc] sm:$0xf0] }
 0x6c5   :  { %v12958_v14 = vpop.f32.mrf.mxu2 }
 0x6c6   :  { %14149 = vst [vmem:[#allocation22_spill] sm:$0xff] %v12958_v14 }
 0x6c7   :  { %v12962_v45 = vpop.f32.mrf.mxu1  ;;  %v12968_v46 = vpop.f32.mrf.mxu0 }
 0x6c8   :  { %14151 = vst [vmem:[#allocation29_spill] sm:$0xff] %v12962_v45 }
 0x6c9   :  { %14154 = vst [vmem:[#allocation13_spill] sm:$0xff] %v12968_v46 }
 0x6ca   :  { %v12972_v23 = vpop.f32.mrf.mxu3 }
 0x6cb   :  { %14156 = vst [vmem:[#allocation30_spill] sm:$0xff] %v12972_v23  ;;  %v13022_v23 = vperm.slane %v13001_v51, 3 }
 0x6cd   :  { %v12966_v28 = vpop.f32.mrf.mxu2 }
 0x6ce   :  { %14153 = vst [vmem:[#allocation25_spill] sm:$0xff] %v12966_v28 }
 0x6cf   :  { %v12970_v36 = vpop.f32.mrf.mxu1  ;;  %v12976_v58 = vpop.f32.mrf.mxu0 }
 0x6d0   :  { %14155 = vst [vmem:[#allocation32_spill] sm:$0xff] %v12970_v36 }
 0x6d1   :  { %14158 = vst [vmem:[#allocation33_spill] sm:$0xff] %v12976_v58  ;;  %v10739_v58 = vld [vmem:[#allocation8 + $0x1ec] sm:$0xf] }
 0x6d2   :  { %v12980_v37 = vpop.f32.mrf.mxu3 }
 0x6d3   :  { %14160 = vst [vmem:[#allocation14_spill] sm:$0xff] %v12980_v37 }
 0x6d5   :  { %v12974_v6 = vpop.f32.mrf.mxu2 }
 0x6d6   :  { %14157 = vst [vmem:[#allocation28_spill] sm:$0xff] %v12974_v6  ;;  %v9464_v6 = vld [vmem:[#allocation8 + $0x1f8] sm:$0xf0] }
 0x6d7   :  { %v12978_v63 = vpop.f32.mrf.mxu1  ;;  %v12984_v0 = vpop.f32.mrf.mxu0 }
 0x6d8   :  { %14159 = vst [vmem:[#allocation35_spill] sm:$0xff] %v12978_v63 }
 0x6d9   :  { %14162 = vst [vmem:[#allocation15_spill] sm:$0xff] %v12984_v0  ;;  %v10741_v0 = vld [vmem:[#allocation8 + $0x1f4] sm:$0xf0] }
 0x6da   :  { %v12988_v22 = vpop.f32.mrf.mxu3 }
 0x6db   :  { %14164 = vst [vmem:[#allocation36_spill] sm:$0xff] %v12988_v22 }
 0x6dd   :  { %v12982_v40 = vpop.f32.mrf.mxu2 }
 0x6de   :  { %14161 = vst [vmem:[#allocation31_spill] sm:$0xff] %v12982_v40  ;;  %v9456_v40 = vld [vmem:[#allocation8 + $0x1f0] sm:$0xf0] }
 0x6df   :  { %v12986_v1 = vpop.f32.mrf.mxu1 }
 0x6e0   :  { %14163 = vst [vmem:[#allocation37_spill] sm:$0xff] %v12986_v1  ;;  %v9462_v1 = vld [vmem:[#allocation8 + $0x1e8] sm:$0xf] }
 0x6e1   :  { %v9463_v63 = vor.u32 %v10741_v0, %v9462_v1  ;;  %v9446_v0 = vld [vmem:[#allocation8 + $0x1c8] sm:$0xf]  ;;  %v10737_v1 = vld [vmem:[#allocation8 + $0x1d4] sm:$0xf0] }
 0x6e2   :  { %v9447_v54 = vor.u32 %v10737_v1, %v9446_v0 }
 0x6e3   :  { %5015 = vmatpush.bf16.msra.mxu2 %v9463_v63  ;;  %v10732_v63 = vld [vmem:[#allocation8 + $0x1ac] sm:$0xf0] }
 0x6e5   :  { %v12994_v2 = vpop.f32.mrf.mxu2 }
 0x6e6   :  { %14167 = vst [vmem:[#allocation39_spill] sm:$0xff] %v12994_v2  ;;  %v10740_v2 = vld [vmem:[#allocation8 + $0x1ec] sm:$0xf0] }
 0x6e7   :  { %5016 = vmatpush.bf16.msra.mxu2 %v9447_v54 }
 0x710   :  { %v12990_v42 = vpop.f32.mrf.mxu0  ;;  %v12992_v62 = vpop.f32.mrf.mxu1 }
 0x711   :  { %14165 = vst [vmem:[#allocation34_spill] sm:$0xff] %v12990_v42  ;;  %v9454_v42 = vld [vmem:[#allocation8 + $0x1e0] sm:$0xf] }
 0x712   :  { %14166 = vst [vmem:[#allocation38_spill] sm:$0xff] %v12992_v62  ;;  %v13013_v62 = vperm.slane %v13001_v51, 1  ;;  %v9455_v22 = vor.u32 %v10740_v2, %v9454_v42  ;;  %v9467_v2 = vor.u32 %v10739_v58, %v9464_v6  ;;  %v9422_v58 = vld [vmem:[#allocation8 + $0x1a0] sm:$0xf] }
 0x714   :  { %4987 = vmatpush.bf16.msra.mxu0 %v9455_v22  ;;  %5029 = vmatpush.bf16.msra.mxu3 %v9467_v2  ;;  %v10735_v22 = vld [vmem:[#allocation8 + $0x1cc] sm:$0xf] }
 0x715   :  { %v10731_v2 = vld [vmem:[#allocation8 + $0x1ac] sm:$0xf] }
 0x717   :  { %v12996_v20 = vpop.f32.mrf.mxu3  ;;  %v13007_v59 = vpop.f32.mrf.mxu2 }
 0x718   :  { %14168 = vst [vmem:[#allocation40_spill] sm:$0xff] %v12996_v20  ;;  %v13003_v43 = vpop.f32.mrf.mxu0  ;;  %v13005_v60 = vpop.f32.mrf.mxu1  ;;  %v10738_v20 = vld [vmem:[#allocation8 + $0x1e4] sm:$0xf] }
 0x719   :  { %14169 = vst [vmem:[#allocation41_spill] sm:$0xff] %v13003_v43  ;;  %v4126_v43 = vadd.f32 %v12876_v26, %v13010_v25  ;;  %v9459_v37 = vor.u32 %v10738_v20, %v9456_v40  ;;  %v9438_v26 = vld [vmem:[#allocation8 + $0x1c0] sm:$0xf]  ;;  %v9440_v40 = vld [vmem:[#allocation8 + $0x1d0] sm:$0xf0] }
 0x71a   :  { %14170 = vst [vmem:[#allocation42_spill] sm:$0xff] %v13005_v60  ;;  %v4175_v60 = vadd.f32 %v12878_v33, %v13013_v62  ;;  %v10734_v33 = vld [vmem:[#allocation8 + $0x1c4] sm:$0xf] }
 0x71b   :  { %14171 = vst [vmem:[#allocation43_spill] sm:$0xff] %v13007_v59  ;;  %5001 = vmatpush.bf16.msra.mxu1 %v9459_v37  ;;  %v9443_v14 = vor.u32 %v10734_v33, %v9440_v40  ;;  %v10730_v37 = vld [vmem:[#allocation8 + $0x1a4] sm:$0xf] }
 0x71f   :  { %v13019_v59 = vpop.f32.mrf.mxu3  ;;  %v13024_v20 = vpop.f32.mrf.mxu2  ;;  %5002 = vmatpush.bf16.msra.mxu1 %v9443_v14 }
 0x720   :  { %14172 = vst [vmem:[#allocation44_spill] sm:$0xff] %v13019_v59  ;;  %v4593_v28 = vpop.f32.mrf.mxu0  ;;  %v4607_v42 = vpop.f32.mrf.mxu1  ;;  %v9439_v59 = vor.u32 %v10736_v50, %v9438_v26  ;;  %v4273_v50 = vadd.f32 %v12880_v32, %v13022_v23  ;;  %v9432_v26 = vld [vmem:[#allocation8 + $0x1b8] sm:$0xf0] }
 0x721   :  { %v4640_v36 = vadd.f32 %v4593_v28, %v4126_v43  ;;  %v4641_v46 = vadd.f32 %v4607_v42, %v4175_v60  ;;  %14173 = vst [vmem:[#allocation45_spill] sm:$0xff] %v13024_v20  ;;  %v9448_v28 = vld [vmem:[#allocation8 + $0x1d8] sm:$0xf0]  ;;  %v9423_v43 = vor.u32 %v10732_v63, %v9422_v58  ;;  %v9424_v60 = vld [vmem:[#allocation8 + $0x1b0] sm:$0xf0]  ;;  %v4128_v42 = vadd.f32 %v12884_v8, %v13010_v25 }
 0x722   :  { %4988 = vmatpush.bf16.msra.mxu0 %v9439_v59  ;;  %v9451_v6 = vor.u32 %v10735_v22, %v9448_v28  ;;  %v9427_v54 = vor.u32 %v10730_v37, %v9424_v60  ;;  %v9406_v22 = vld [vmem:[#allocation8 + $0x180] sm:$0xf]  ;;  %v10728_v8 = vld [vmem:[#allocation8 + $0x18c] sm:$0xf0]  ;;  %v10726_v28 = vld [vmem:[#allocation8 + $0x184] sm:$0xf] }
 0x723   :  { %v9334_v45 = vmul.f32 -1.442695, %v4640_v36  ;;  %v9336_v55 = vmul.f32 -1.442695, %v4641_v46  ;;  %v9430_v36 = vld [vmem:[#allocation8 + $0x1a8] sm:$0xf] }
 0x724   :  { %v10733_v46 = vld [vmem:[#allocation8 + $0x1b4] sm:$0xf0]  ;;  %5030 = vmatpush.bf16.msra.mxu3 %v9451_v6  ;;  %5003 = vmatpush.bf16.msra.mxu1 %v9427_v54  ;;  %v9408_v63 = vld [vmem:[#allocation8 + $0x190] sm:$0xf0]  ;;  %v9414_v6 = vld [vmem:[#allocation8 + $0x188] sm:$0xf] }
 0x725   :  { %11308 = vpow2.f32 %v9334_v45  ;;  %v4177_v45 = vadd.f32 %v12886_v31, %v13013_v62  ;;  %v9431_v59 = vor.u32 %v10733_v46, %v9430_v36  ;;  %v9407_v31 = vor.u32 %v10728_v8, %v9406_v22  ;;  %v10729_v46 = vld [vmem:[#allocation8 + $0x194] sm:$0xf0]  ;;  %v10727_v54 = vld [vmem:[#allocation8 + $0x18c] sm:$0xf]  ;;  %v9398_v22 = vld [vmem:[#allocation8 + $0x168] sm:$0xf] }
 0x726   :  { %11310 = vpow2.f32 %v9336_v55  ;;  %4989 = vmatpush.bf16.msra.mxu0 %v9423_v43  ;;  %v9435_v55 = vor.u32 %v10731_v2, %v9432_v26  ;;  %v13033_v43 = vperm.slane %v13001_v51, 2  ;;  %v10722_v51 = vld [vmem:[#allocation8 + $0x164] sm:$0xf]  ;;  %v10725_v8 = vld [vmem:[#allocation8 + $0x174] sm:$0xf0] }
 0x727   :  { %v4635_v14 = vpop.f32.mrf.mxu3  ;;  %5017 = vmatpush.bf16.msra.mxu2 %v9431_v59  ;;  %v9416_v59 = vld [vmem:[#allocation8 + $0x198] sm:$0xf0]  ;;  %v4621_v26 = vpop.f32.mrf.mxu2  ;;  %v9376_v20 = vld [vmem:[#allocation8 + $0x150] sm:$0xf0] }
 0x728   :  { %v4643_v33 = vadd.f32 %v4635_v14, %v4273_v50  ;;  %v4595_v40 = vpop.f32.mrf.mxu0  ;;  %v4609_v32 = vpop.f32.mrf.mxu1  ;;  %5031 = vmatpush.bf16.msra.mxu3 %v9435_v55  ;;  %v9411_v50 = vor.u32 %v10726_v28, %v9408_v63  ;;  %v9392_v55 = vld [vmem:[#allocation8 + $0x170] sm:$0xf0]  ;;  %v4275_v28 = vadd.f32 %v12888_v12, %v13022_v23  ;;  %v10723_v63 = vld [vmem:[#allocation8 + $0x16c] sm:$0xf] }
 0x729   :  { %v4644_v0 = vadd.f32 %v4595_v40, %v4128_v42  ;;  %v4645_v1 = vadd.f32 %v4609_v32, %v4177_v45  ;;  %v9415_v45 = vor.u32 %v10729_v46, %v9414_v6  ;;  %v9390_v40 = vld [vmem:[#allocation8 + $0x160] sm:$0xf]  ;;  %v10724_v32 = vld [vmem:[#allocation8 + $0x16c] sm:$0xf0]  ;;  %v9400_v6 = vld [vmem:[#allocation8 + $0x178] sm:$0xf0]  ;;  %v9399_v46 = vor.u32 %v10725_v8, %v9398_v22 }
 0x72a   :  { %v9338_v58 = vmul.f32 -1.442695, %v4643_v33  ;;  %4990 = vmatpush.bf16.msra.mxu0 %v9407_v31  ;;  %5004 = vmatpush.bf16.msra.mxu1 %v9411_v50  ;;  %v9419_v33 = vor.u32 %v10727_v54, %v9416_v59  ;;  %v9391_v31 = vor.u32 %v10724_v32, %v9390_v40  ;;  %v9395_v50 = vor.u32 %v10722_v51, %v9392_v55  ;;  %v10720_v54 = vld [vmem:[#allocation8 + $0x14c] sm:$0xf0] }
 0x72b   :  { %v11309_v37 = vpop.eup %11308  ;;  %v9335_v60 = vmul.f32 -1.442695, %v4644_v0  ;;  %v9337_v36 = vmul.f32 -1.442695, %v4645_v1  ;;  %5018 = vmatpush.bf16.msra.mxu2 %v9415_v45  ;;  %v4224_v0 = vadd.f32 %v12882_v34, %v13033_v43  ;;  %v9374_v45 = vld [vmem:[#allocation8 + $0x140] sm:$0xf] }
 0x72c   :  { %v11311_v14 = vpop.eup %11310  ;;  %v13035_v42 = vadd.f32 1.0, %v11309_v37  ;;  %11312 = vpow2.f32 %v9338_v58  ;;  %5032 = vmatpush.bf16.msra.mxu3 %v9419_v33  ;;  %v10718_v34 = vld [vmem:[#allocation8 + $0x144] sm:$0xf]  ;;  %v9375_v33 = vor.u32 %v10720_v54, %v9374_v45  ;;  %v10719_v54 = vld [vmem:[#allocation8 + $0x14c] sm:$0xf] }
 0x72d   :  { %v13037_v2 = vadd.f32 1.0, %v11311_v14  ;;  %11314 = vpow2.f32 %v9335_v60  ;;  %v4642_v60 = vadd.f32 %v4621_v26, %v4224_v0  ;;  %v9403_v14 = vor.u32 %v10723_v63, %v9400_v6 }
 0x72e   :  { %11316 = vrcp.f32 %v13035_v42  ;;  %v4665_v58 = vand.u32 2147483647, %v13035_v42  ;;  %4991 = vmatpush.bf16.msra.mxu0 %v9391_v31  ;;  %v4667_v12 = vand.u32 2147483648, %v13035_v42  ;;  %5005 = vmatpush.bf16.msra.mxu1 %v9395_v50  ;;  %v9379_v26 = vor.u32 %v10718_v34, %v9376_v20 }
 0x72f   :  { %11318 = vrcp.f32 %v13037_v2  ;;  %v4637_v1 = vpop.f32.mrf.mxu3  ;;  %5019 = vmatpush.bf16.msra.mxu2 %v9399_v46  ;;  %v4705_v0 = vand.u32 2147483648, %v13037_v2  ;;  %v4623_v63 = vpop.f32.mrf.mxu2  ;;  %vm4661_vm2 = vweird.f32 %v13035_v42  ;;  %vm4699_vm4 = vweird.f32 %v13037_v2 }
 0x730   :  { %11320 = vpow2.f32 %v9337_v36  ;;  %v4647_v59 = vadd.f32 %v4637_v1, %v4275_v28  ;;  %5033 = vmatpush.bf16.msra.mxu3 %v9403_v14  ;;  %vm13060_vm0 = vcmp.eq.f32.partialorder %v4665_v58, 8.507059e+37  ;;  %v4703_v28 = vand.u32 2147483647, %v13037_v2  ;;  %v9382_v58 = vld [vmem:[#allocation8 + $0x148] sm:$0xf] }
 0x731   :  { %11322 = vtanh.f32 %v4642_v60  ;;  %v4668_v46 = vor.u32 1.1754944e-38, %v4667_v12  ;;  %v10721_v14 = vld [vmem:[#allocation8 + $0x154] sm:$0xf0]  ;;  %v4706_v45 = vor.u32 1.1754944e-38, %v4705_v0  ;;  %v10714_v0 = vld [vmem:[#allocation8 + $0x124] sm:$0xf] }
 0x732   :  { %v11313_v37 = vpop.eup %11312  ;;  %v9339_v6 = vmul.f32 -1.442695, %v4647_v59  ;;  %4992 = vmatpush.bf16.msra.mxu0 %v9375_v33  ;;  %5006 = vmatpush.bf16.msra.mxu1 %v9379_v26  ;;  %v9358_v59 = vld [vmem:[#allocation8 + $0x120] sm:$0xf]  ;;  %v10716_v33 = vld [vmem:[#allocation8 + $0x12c] sm:$0xf0] }
 0x733   :  { %v11315_v36 = vpop.eup %11314  ;;  %v13049_v40 = vadd.f32 1.0, %v11313_v37  ;;  %v4226_v37 = vadd.f32 %v12890_v19, %v13033_v43  ;;  %vm13087_vm6 = vcmp.eq.f32.partialorder %v4703_v28, 8.507059e+37  ;;  %v9368_v26 = vld [vmem:[#allocation8 + $0x138] sm:$0xf0] }
 0x734   :  { %v13046_v18 = vpop.eup %11316  ;;  %v13051_v32 = vadd.f32 1.0, %v11315_v36  ;;  %v9384_v36 = vld [vmem:[#allocation8 + $0x158] sm:$0xf0] }
 0x735   :  { %v13053_v51 = vpop.eup %11318  ;;  %v4657_v55 = vmul.f32 %v13046_v18, %v13035_v42  ;;  %vm4662_vm1 = vweird.f32 %v13046_v18  ;;  %v4646_v19 = vadd.f32 %v4623_v63, %v4226_v37  ;;  %v9366_v37 = vld [vmem:[#allocation8 + $0x128] sm:$0xf]  ;;  %v9342_v42 = vld [vmem:[#allocation8 + $0x100] sm:$0xf] }
 0x736   :  { %v11321_v1 = vpop.eup %11320  ;;  %v4695_v22 = vmul.f32 %v13053_v51, %v13037_v2  ;;  %11324 = vrcp.f32 %v13051_v32  ;;  %vm4700_vm3 = vweird.f32 %v13053_v51  ;;  %vm13082_vm5 = vmor %vm4661_vm2, %vm4662_vm1  ;;  %v4682_v28 = vand.u32 2147483648, %v13051_v32 }
 0x737   :  { %v4658_v20 = vsub.f32 1.0, %v4657_v55  ;;  %v13066_v31 = vadd.f32 1.0, %v11321_v1  ;;  %11326 = vrcp.f32 %v13049_v40  ;;  %v9383_v55 = vor.u32 %v10721_v14, %v9382_v58  ;;  %v9360_v1 = vld [vmem:[#allocation8 + $0x130] sm:$0xf0]  ;;  %vm13099_vm7 = vmor %vm4699_vm4, %vm4700_vm3  ;;  %v10711_v14 = vld [vmem:[#allocation8 + $0x10c] sm:$0xf] }
 0x738   :  { %v4696_v50 = vsub.f32 1.0, %v4695_v22  ;;  %v11323_v22 = vpop.eup %11322  ;;  %v9363_v8 = vor.u32 %v10714_v0, %v9360_v1  ;;  %vm4676_vm8 = vweird.f32 %v13051_v32  ;;  %vm4739_vm1 = vweird.f32 %v13049_v40 }
 0x739   :  { %v4659_v60 = vmul.f32 %v13046_v18, %v4658_v20  ;;  %11328 = vrcp.f32 %v13066_v31  ;;  %5020 = vmatpush.bf16.msra.mxu2 %v9383_v55  ;;  %vm4714_vm11 = vweird.f32 %v13066_v31 }
 0x73a   :  { %v4697_v34 = vmul.f32 %v13053_v51, %v4696_v50  ;;  %11330 = vpow2.f32 %v9339_v6  ;;  %v10717_v50 = vld [vmem:[#allocation8 + $0x134] sm:$0xf0]  ;;  %v10715_v6 = vld [vmem:[#allocation8 + $0x12c] sm:$0xf]  ;;  %5007 = vmatpush.bf16.msra.mxu1 %v9363_v8 }
 0x73b   :  { %v4660_v12 = vadd.f32 %v13046_v18, %v4659_v60  ;;  %v9387_v60 = vor.u32 %v10719_v54, %v9384_v36  ;;  %11332 = vtanh.f32 %v4646_v19  ;;  %v9371_v19 = vor.u32 %v10715_v6, %v9368_v26 }
 0x73c   :  { %v4698_v20 = vadd.f32 %v13053_v51, %v4697_v34  ;;  %v13092_v58 = vpop.eup %11324  ;;  %v9359_v34 = vor.u32 %v10716_v33, %v9358_v59  ;;  %v9350_v59 = vld [vmem:[#allocation8 + $0x108] sm:$0xf]  ;;  %v10713_v33 = vld [vmem:[#allocation8 + $0x114] sm:$0xf0]  ;;  %v4718_v26 = vand.u32 2147483647, %v13066_v31 }
 0x73d   :  { %v4664_v2 = vsel %vm13082_vm5, %v13046_v18, %v4660_v12  ;;  %v13104_v15 = vpop.eup %11326  ;;  %v4672_v12 = vmul.f32 %v13092_v58, %v13051_v32  ;;  %5034 = vmatpush.bf16.msra.mxu3 %v9387_v60  ;;  %vm4677_vm9 = vweird.f32 %v13092_v58  ;;  %v4683_v6 = vor.u32 1.1754944e-38, %v4682_v28 }
 0x73e   :  { %v4669_v10 = vsel %vm13060_vm0, %v4668_v46, %v4664_v2  ;;  %v4702_v18 = vsel %vm13099_vm7, %v13053_v51, %v4698_v20  ;;  %4993 = vmatpush.bf16.msra.mxu0 %v9359_v34  ;;  %v9344_v46 = vld [vmem:[#allocation8 + $0x110] sm:$0xf0]  ;;  %vm4678_vm12 = vmor %vm4676_vm8, %vm4677_vm9  ;;  %vm4719_vm15 = vcmp.eq.f32.partialorder %v4718_v26, 8.507059e+37  ;;  %vm4740_vm0 = vweird.f32 %v13104_v15 }
 0x73f   :  { %v11329_v55 = vpop.eup %11328  ;;  %v4707_v54 = vsel %vm13087_vm6, %v4706_v45, %v4702_v18  ;;  %v4766_v36 = vmul.f32 %v11323_v22, %v4669_v10  ;;  %v4673_v51 = vsub.f32 1.0, %v4672_v12  ;;  %v4735_v45 = vmul.f32 %v13104_v15, %v13049_v40  ;;  %vm4741_vm3 = vmor %vm4739_vm1, %vm4740_vm0 }
 0x740   :  { %v4764_v2 = vmul.f32 0.0, %v4707_v54  ;;  %v4710_v20 = vmul.f32 %v11329_v55, %v13066_v31  ;;  %v11331_v21 = vpop.eup %11330  ;;  %v9367_v10 = vor.u32 %v10717_v50, %v9366_v37  ;;  %v9343_v22 = vor.u32 %v10712_v13, %v9342_v42 }
 0x741   :  { %v4674_v63 = vmul.f32 %v13092_v58, %v4673_v51  ;;  %v4733_v60 = vadd.f32 1.0, %v11331_v21  ;;  %5035 = vmatpush.bf16.msra.mxu3 %v9371_v19  ;;  %v9347_v34 = vor.u32 %v10710_v4, %v9344_v46  ;;  %v9351_v18 = vor.u32 %v10713_v33, %v9350_v59  ;;  %v11333_v13 = vpop.eup %11332 }
 0x742   :  { %v13119_v0 = vadd.f32 %v4766_v36, %v4764_v2  ;;  %v4711_v1 = vsub.f32 1.0, %v4710_v20  ;;  %5021 = vmatpush.bf16.msra.mxu2 %v9367_v10  ;;  %v9355_v12 = vor.u32 %v10711_v14, %v9352_v17  ;;  %vm4715_vm10 = vweird.f32 %v11329_v55  ;;  %4994 = vmatpush.bf16.msra.mxu0 %v9343_v22 }
 0x743   :  { %v4675_v52 = vadd.f32 %v13092_v58, %v4674_v63  ;;  %11334 = vrcp.f32 %v4733_v60  ;;  %5008 = vmatpush.bf16.msra.mxu1 %v9347_v34  ;;  %v4736_v21 = vsub.f32 1.0, %v4735_v45  ;;  %v14182_v17 = vand.u32 2147483647, %v13051_v32  ;;  %vm4716_vm14 = vmor %vm4714_vm11, %vm4715_vm10 }
 0x744   :  { %v4712_v54 = vmul.f32 %v11329_v55, %v4711_v1  ;;  %v14183_v50 = vand.u32 2147483648, %v13066_v31  ;;  %11336 = vtanh.f32 %v13119_v0  ;;  %v4760_v51 = vand.u32 2147483648, %v4733_v60 }
 0x745   :  { %v4679_v4 = vsel %vm4678_vm12, %v13092_v58, %v4675_v52  ;;  %vm4681_vm13 = vcmp.eq.f32.partialorder %v14182_v17, 8.507059e+37  ;;  %5036 = vmatpush.bf16.msra.mxu3 %v9355_v12  ;;  %v4737_v59 = vmul.f32 %v13104_v15, %v4736_v21  ;;  %v4743_v20 = vand.u32 2147483647, %v13049_v40  ;;  %v9596_v17 = vld [vmem:[#allocation8 + $0x1e8] sm:$0xf] }
 0x746   :  { %v4713_v37 = vadd.f32 %v11329_v55, %v4712_v54  ;;  %v4721_v42 = vor.u32 1.1754944e-38, %v14183_v50  ;;  %v4684_v36 = vsel %vm4681_vm13, %v4683_v6, %v4679_v4  ;;  %5022 = vmatpush.bf16.msra.mxu2 %v9351_v18  ;;  %v4758_v45 = vand.u32 2147483647, %v4733_v60  ;;  %v10770_v6 = vld [vmem:[#allocation8 + $0x1e4] sm:$0xf] }
 0x747   :  { %v4767_v28 = vmul.f32 %v11333_v13, %v4684_v36  ;;  %v4738_v31 = vadd.f32 %v13104_v15, %v4737_v59  ;;  %vm4754_vm4 = vweird.f32 %v4733_v60  ;;  %v4761_v63 = vor.u32 1.1754944e-38, %v4760_v51  ;;  %v9590_v4 = vld [vmem:[#allocation8 + $0x1f0] sm:$0xf0]  ;;  %v10766_v51 = vld [vmem:[#allocation8 + $0x1c4] sm:$0xf] }
 0x748   :  { %v4717_v8 = vsel %vm4716_vm14, %v11329_v55, %v4713_v37  ;;  %v4745_v55 = vand.u32 2147483648, %v13049_v40  ;;  %vm4744_vm6 = vcmp.eq.f32.partialorder %v4743_v20, 8.507059e+37  ;;  %vm4759_vm7 = vcmp.eq.f32.partialorder %v4758_v45, 8.507059e+37  ;;  %v10773_v37 = vld [vmem:[#allocation8 + $0x1f4] sm:$0xf0] }
 0x749   :  { %v4722_v46 = vsel %vm4719_vm15, %v4721_v42, %v4717_v8  ;;  %v11335_v52 = vpop.eup %11334  ;;  %v4742_v19 = vsel %vm4741_vm3, %v13104_v15, %v4738_v31  ;;  %v10772_v15 = vld [vmem:[#allocation8 + $0x1ec] sm:$0xf0]  ;;  %v4131_v50 = vadd.f32 %v12892_v9, %v13010_v25  ;;  %v4180_v42 = vadd.f32 %v12894_v48, %v13013_v62  ;;  %v9574_v20 = vld [vmem:[#allocation8 + $0x1d0] sm:$0xf0]  ;;  %v10769_v48 = vld [vmem:[#allocation8 + $0x1d4] sm:$0xf0] }
 0x74a   :  { %v4765_v33 = vmul.f32 0.0, %v4722_v46  ;;  %v4750_v32 = vmul.f32 %v11335_v52, %v4733_v60  ;;  %vm4755_vm2 = vweird.f32 %v11335_v52  ;;  %v11337_v22 = vpop.eup %11336  ;;  %v4746_v1 = vor.u32 1.1754944e-38, %v4745_v55  ;;  %v9588_v60 = vld [vmem:[#allocation8 + $0x1e0] sm:$0xf]  ;;  %v9598_v46 = vld [vmem:[#allocation8 + $0x1f8] sm:$0xf0] }
 0x74b   :  { %vm4756_vm5 = vmor %vm4754_vm4, %vm4755_vm2  ;;  %v9589_v21 = vor.u32 %v10772_v15, %v9588_v60  ;;  %v9593_v36 = vor.u32 %v10770_v6, %v9590_v4  ;;  %v9597_v8 = vor.u32 %v10773_v37, %v9596_v17  ;;  %v10768_v55 = vld [vmem:[#allocation8 + $0x1cc] sm:$0xf0]  ;;  %v9564_v60 = vld [vmem:[#allocation8 + $0x1a8] sm:$0xf]  ;;  %v4133_v6 = vadd.f32 %v12902_v61, %v13010_v25 }
 0x74c   :  { %v13135_v58 = vadd.f32 %v4767_v28, %v4765_v33  ;;  %v4751_v2 = vsub.f32 1.0, %v4750_v32  ;;  %v4747_v12 = vsel %vm4744_vm6, %v4746_v1, %v4742_v19  ;;  %v10771_v28 = vld [vmem:[#allocation8 + $0x1ec] sm:$0xf]  ;;  %v9577_v19 = vor.u32 %v10766_v51, %v9574_v20  ;;  %v10765_v15 = vld [vmem:[#allocation8 + $0x1b4] sm:$0xf0] }
 0x74d   :  { %v4772_v26 = vmul.f32 %v11337_v22, %v4747_v12  ;;  %5390 = vmatpush.bf16.msrb.mxu0 %v9589_v21  ;;  %5404 = vmatpush.bf16.msrb.mxu1 %v9593_v36  ;;  %v10767_v1 = vld [vmem:[#allocation8 + $0x1cc] sm:$0xf]  ;;  %v10764_v12 = vld [vmem:[#allocation8 + $0x1ac] sm:$0xf0]  ;;  %v4182_v21 = vadd.f32 %v12904_v53, %v13013_v62  ;;  %v9565_v37 = vor.u32 %v10765_v15, %v9564_v60  ;;  %v9532_v60 = vld [vmem:[#allocation8 + $0x168] sm:$0xf] }
 0x74e   :  { %11338 = vtanh.f32 %v13135_v58  ;;  %v4752_v14 = vmul.f32 %v11335_v52, %v4751_v2  ;;  %5418 = vmatpush.bf16.msrb.mxu2 %v9597_v8  ;;  %v9572_v2 = vld [vmem:[#allocation8 + $0x1c0] sm:$0xf]  ;;  %v10760_v61 = vld [vmem:[#allocation8 + $0x18c] sm:$0xf0]  ;;  %v10757_v15 = vld [vmem:[#allocation8 + $0x174] sm:$0xf0] }
 0x74f   :  { %v9573_v9 = vor.u32 %v10768_v55, %v9572_v2  ;;  %v9548_v2 = vld [vmem:[#allocation8 + $0x188] sm:$0xf] }
 0x750   :  { %v4753_v10 = vadd.f32 %v11335_v52, %v4752_v14  ;;  %v9580_v14 = vld [vmem:[#allocation8 + $0x1c8] sm:$0xf] }
 0x751   :  { %v9581_v22 = vor.u32 %v10769_v48, %v9580_v14  ;;  %5391 = vmatpush.bf16.msrb.mxu0 %v9573_v9  ;;  %5405 = vmatpush.bf16.msrb.mxu1 %v9577_v19  ;;  %v10761_v14 = vld [vmem:[#allocation8 + $0x194] sm:$0xf0]  ;;  %v10759_v19 = vld [vmem:[#allocation8 + $0x18c] sm:$0xf] }
 0x752   :  { %v4757_v18 = vsel %vm4756_vm5, %v11335_v52, %v4753_v10  ;;  %v9601_v52 = vor.u32 %v10771_v28, %v9598_v46 }
 0x753   :  { %v4762_v54 = vsel %vm4759_vm7, %v4761_v63, %v4757_v18  ;;  %v9582_v63 = vld [vmem:[#allocation8 + $0x1d8] sm:$0xf0]  ;;  %5419 = vmatpush.bf16.msrb.mxu2 %v9581_v22  ;;  %v9556_v18 = vld [vmem:[#allocation8 + $0x1a0] sm:$0xf] }
 0x754   :  { %v11339_v34 = vpop.eup %11338  ;;  %5432 = vmatpush.bf16.msrb.mxu3 %v9601_v52  ;;  %v10758_v52 = vld [vmem:[#allocation8 + $0x184] sm:$0xf]  ;;  %v9550_v22 = vld [vmem:[#allocation8 + $0x198] sm:$0xf0] }
 0x755   :  { %v4773_v40 = vmul.f32 %v11339_v34, %v4762_v54  ;;  %v9585_v34 = vor.u32 %v10767_v1, %v9582_v63  ;;  %v10762_v54 = vld [vmem:[#allocation8 + $0x1a4] sm:$0xf] }
 0x757   :  { %v10993_v13 = vpack.c.bf16 %v4773_v40, %v4772_v26  ;;  %v4278_v26 = vadd.f32 %v12896_v35, %v13022_v23  ;;  %v9557_v40 = vor.u32 %v10764_v12, %v9556_v18  ;;  %5420 = vmatpush.bf16.msrb.mxu2 %v9565_v37  ;;  %v9524_v18 = vld [vmem:[#allocation8 + $0x160] sm:$0xf]  ;;  %v10756_v12 = vld [vmem:[#allocation8 + $0x16c] sm:$0xf0] }
 0x758   :  { %5433 = vmatpush.bf16.msrb.mxu3 %v9585_v34  ;;  %v9553_v34 = vor.u32 %v10759_v19, %v9550_v22 }
 0x759   :  { %10994 = vst [vmem:[#allocation4 + $0x30] sm:$0xff] %v10993_v13   ;;  %4995 = vmatmul.bf16.vlgmr.msra.gmra.mxu0 %v10993_v13  ;;  %5009 = vmatmul.bf16.vlgmr.msra.gmra.mxu1 %v10993_v13 }
 0x75a   :  { %5023 = vmatmul.bf16.vlgmr.msra.gmra.mxu2 %v10993_v13  ;;  %5037 = vmatmul.bf16.vlgmr.msra.gmra.mxu3 %v10993_v13  ;;  %v9558_v13 = vld [vmem:[#allocation8 + $0x1b0] sm:$0xf0] }
 0x75b   :  { %v9561_v17 = vor.u32 %v10762_v54, %v9558_v13  ;;  %5392 = vmatpush.bf16.msrb.mxu0 %v9557_v40  ;;  %v10754_v54 = vld [vmem:[#allocation8 + $0x164] sm:$0xf]  ;;  %v4229_v40 = vadd.f32 %v12898_v38, %v13033_v43 }
 0x75d   :  { %5406 = vmatpush.bf16.msrb.mxu1 %v9561_v17  ;;  %v9534_v17 = vld [vmem:[#allocation8 + $0x178] sm:$0xf0] }
 0x7d6   :  { %v4996_v59 = vpop.f32.mrf.mxu0  ;;  %v5010_v33 = vpop.f32.mrf.mxu1 }
 0x7d7   :  { %v5043_v32 = vadd.f32 %v4996_v59, %v4131_v50  ;;  %v5044_v31 = vadd.f32 %v5010_v33, %v4180_v42  ;;  %v10763_v50 = vld [vmem:[#allocation8 + $0x1ac] sm:$0xf]  ;;  %v9566_v42 = vld [vmem:[#allocation8 + $0x1b8] sm:$0xf0]  ;;  %v9540_v33 = vld [vmem:[#allocation8 + $0x180] sm:$0xf] }
 0x7d8   :  { %v9569_v28 = vor.u32 %v10763_v50, %v9566_v42  ;;  %v9541_v53 = vor.u32 %v10760_v61, %v9540_v33  ;;  %v9510_v61 = vld [vmem:[#allocation8 + $0x150] sm:$0xf0] }
 0x7d9   :  { %v9468_v45 = vmul.f32 -1.442695, %v5043_v32  ;;  %v9470_v10 = vmul.f32 -1.442695, %v5044_v31  ;;  %v9542_v31 = vld [vmem:[#allocation8 + $0x190] sm:$0xf0] }
 0x7da   :  { %5434 = vmatpush.bf16.msrb.mxu3 %v9569_v28  ;;  %v9545_v20 = vor.u32 %v10758_v52, %v9542_v31  ;;  %5393 = vmatpush.bf16.msrb.mxu0 %v9541_v53  ;;  %v10752_v28 = vld [vmem:[#allocation8 + $0x14c] sm:$0xf0] }
 0x7db   :  { %11340 = vpow2.f32 %v9468_v45 }
 0x7dc   :  { %11342 = vpow2.f32 %v9470_v10  ;;  %v9549_v10 = vor.u32 %v10761_v14, %v9548_v2  ;;  %5407 = vmatpush.bf16.msrb.mxu1 %v9545_v20 }
 0x7dd   :  { %v5038_v4 = vpop.f32.mrf.mxu3  ;;  %v5024_v63 = vpop.f32.mrf.mxu2 }
 0x7de   :  { %v5046_v36 = vadd.f32 %v5038_v4, %v4278_v26  ;;  %v4998_v8 = vpop.f32.mrf.mxu0  ;;  %v5012_v35 = vpop.f32.mrf.mxu1  ;;  %5421 = vmatpush.bf16.msrb.mxu2 %v9549_v10  ;;  %5435 = vmatpush.bf16.msrb.mxu3 %v9553_v34  ;;  %v9526_v26 = vld [vmem:[#allocation8 + $0x170] sm:$0xf0]  ;;  %v10755_v4 = vld [vmem:[#allocation8 + $0x16c] sm:$0xf]  ;;  %v5045_v50 = vadd.f32 %v5024_v63, %v4229_v40 }
 0x7df   :  { %v5047_v46 = vadd.f32 %v4998_v8, %v4133_v6  ;;  %v5048_v59 = vadd.f32 %v5012_v35, %v4182_v21  ;;  %v4280_v6 = vadd.f32 %v12908_v3, %v13022_v23  ;;  %v9525_v21 = vor.u32 %v10756_v12, %v9524_v18  ;;  %v9508_v35 = vld [vmem:[#allocation8 + $0x140] sm:$0xf]  ;;  %v9516_v12 = vld [vmem:[#allocation8 + $0x148] sm:$0xf] }
 0x7e0   :  { %v9472_v32 = vmul.f32 -1.442695, %v5046_v36  ;;  %v9529_v42 = vor.u32 %v10754_v54, %v9526_v26  ;;  %v9533_v36 = vor.u32 %v10757_v15, %v9532_v60  ;;  %v9537_v8 = vor.u32 %v10755_v4, %v9534_v17  ;;  %v10753_v54 = vld [vmem:[#allocation8 + $0x154] sm:$0xf0]  ;;  %v10748_v4 = vld [vmem:[#allocation8 + $0x12c] sm:$0xf0] }
 0x7e1   :  { %v11341_v55 = vpop.eup %11340  ;;  %v9469_v51 = vmul.f32 -1.442695, %v5047_v46  ;;  %v9471_v9 = vmul.f32 -1.442695, %v5048_v59  ;;  %v10750_v46 = vld [vmem:[#allocation8 + $0x144] sm:$0xf]  ;;  %5394 = vmatpush.bf16.msrb.mxu0 %v9525_v21  ;;  %v9509_v33 = vor.u32 %v10752_v28, %v9508_v35 }
 0x7e2   :  { %v11343_v48 = vpop.eup %11342  ;;  %v13155_v45 = vadd.f32 1.0, %v11341_v55  ;;  %11344 = vpow2.f32 %v9472_v32  ;;  %5408 = vmatpush.bf16.msrb.mxu1 %v9529_v42  ;;  %5422 = vmatpush.bf16.msrb.mxu2 %v9533_v36  ;;  %v9513_v31 = vor.u32 %v10750_v46, %v9510_v61  ;;  %v4231_v55 = vadd.f32 %v12910_v57, %v13033_v43  ;;  %v9492_v21 = vld [vmem:[#allocation8 + $0x120] sm:$0xf]  ;;  %v10746_v36 = vld [vmem:[#allocation8 + $0x124] sm:$0xf] }
 0x7e3   :  { %v13157_v1 = vadd.f32 1.0, %v11343_v48  ;;  %11346 = vpow2.f32 %v9469_v51  ;;  %5436 = vmatpush.bf16.msrb.mxu3 %v9537_v8  ;;  %v9517_v42 = vor.u32 %v10753_v54, %v9516_v12  ;;  %v9494_v8 = vld [vmem:[#allocation8 + $0x130] sm:$0xf0] }
 0x7e4   :  { %11348 = vrcp.f32 %v13155_v45  ;;  %v5068_v3 = vand.u32 2147483647, %v13155_v45  ;;  %vm5064_vm12 = vweird.f32 %v13155_v45  ;;  %v9497_v18 = vor.u32 %v10746_v36, %v9494_v8  ;;  %v9478_v54 = vld [vmem:[#allocation8 + $0x110] sm:$0xf0] }
 0x7e5   :  { %11350 = vrcp.f32 %v13157_v1  ;;  %v5040_v13 = vpop.f32.mrf.mxu3  ;;  %v5108_v48 = vand.u32 2147483648, %v13157_v1  ;;  %v5106_v10 = vand.u32 2147483647, %v13157_v1  ;;  %v5026_v57 = vpop.f32.mrf.mxu2  ;;  %5395 = vmatpush.bf16.msrb.mxu0 %v9509_v33  ;;  %vm5102_vm11 = vweird.f32 %v13157_v1 }
 0x7e6   :  { %11352 = vpow2.f32 %v9471_v9  ;;  %v5050_v38 = vadd.f32 %v5040_v13, %v4280_v6  ;;  %v5070_v9 = vand.u32 2147483648, %v13155_v45  ;;  %vm13187_vm9 = vcmp.eq.f32.partialorder %v5068_v3, 8.507059e+37  ;;  %5409 = vmatpush.bf16.msrb.mxu1 %v9513_v31  ;;  %v10751_v13 = vld [vmem:[#allocation8 + $0x14c] sm:$0xf]  ;;  %v9518_v6 = vld [vmem:[#allocation8 + $0x158] sm:$0xf0]  ;;  %5423 = vmatpush.bf16.msrb.mxu2 %v9517_v42 }
 0x7e7   :  { %11354 = vtanh.f32 %v5045_v50  ;;  %v5049_v15 = vadd.f32 %v5026_v57, %v4231_v55  ;;  %v5109_v17 = vor.u32 1.1754944e-38, %v5108_v48  ;;  %vm13212_vm15 = vcmp.eq.f32.partialorder %v5106_v10, 8.507059e+37  ;;  %v10749_v55 = vld [vmem:[#allocation8 + $0x134] sm:$0xf0]  ;;  %v10742_v57 = vld [vmem:[#allocation8 + $0x104] sm:$0xf] }
 0x7e8   :  { %v11345_v37 = vpop.eup %11344  ;;  %v9473_v63 = vmul.f32 -1.442695, %v5050_v38  ;;  %v5071_v40 = vor.u32 1.1754944e-38, %v5070_v9  ;;  %v9500_v38 = vld [vmem:[#allocation8 + $0x128] sm:$0xf]  ;;  %v9521_v3 = vor.u32 %v10751_v13, %v9518_v6  ;;  %v9493_v31 = vor.u32 %v10748_v4, %v9492_v21 }
 0x7e9   :  { %v11347_v59 = vpop.eup %11346  ;;  %v13168_v32 = vadd.f32 1.0, %v11345_v37  ;;  %v9502_v9 = vld [vmem:[#allocation8 + $0x138] sm:$0xf0]  ;;  %v10743_v6 = vld [vmem:[#allocation8 + $0x10c] sm:$0xf] }
 0x7ea   :  { %v13165_v52 = vpop.eup %11348  ;;  %v13170_v53 = vadd.f32 1.0, %v11347_v59  ;;  %5437 = vmatpush.bf16.msrb.mxu3 %v9521_v3  ;;  %5396 = vmatpush.bf16.msrb.mxu0 %v9493_v31  ;;  %v9486_v21 = vld [vmem:[#allocation8 + $0x118] sm:$0xf0] }
 0x7eb   :  { %v13172_v2 = vpop.eup %11350  ;;  %v5060_v51 = vmul.f32 %v13165_v52, %v13155_v45  ;;  %vm5065_vm8 = vweird.f32 %v13165_v52  ;;  %5410 = vmatpush.bf16.msrb.mxu1 %v9497_v18  ;;  %v9481_v45 = vor.u32 %v10742_v57, %v9478_v54  ;;  %v9489_v28 = vor.u32 %v10743_v6, %v9486_v21 }
 0x7ec   :  { %v11353_v20 = vpop.eup %11352  ;;  %v5098_v14 = vmul.f32 %v13172_v2, %v13157_v1  ;;  %11356 = vrcp.f32 %v13170_v53  ;;  %vm5103_vm10 = vweird.f32 %v13172_v2  ;;  %vm13201_vm13 = vmor %vm5064_vm12, %vm5065_vm8  ;;  %v5083_v59 = vand.u32 2147483647, %v13170_v53 }
 0x7ed   :  { %v5061_v19 = vsub.f32 1.0, %v5060_v51  ;;  %v13184_v22 = vadd.f32 1.0, %v11353_v20  ;;  %11358 = vrcp.f32 %v13168_v32  ;;  %v11355_v1 = vpop.eup %11354  ;;  %vm13207_vm14 = vmor %vm5102_vm11, %vm5103_vm10  ;;  %v10747_v51 = vld [vmem:[#allocation8 + $0x12c] sm:$0xf]  ;;  %vm5079_vm0 = vweird.f32 %v13170_v53 }
 0x7ee   :  { %v5099_v34 = vsub.f32 1.0, %v5098_v14  ;;  %v9505_v50 = vor.u32 %v10747_v51, %v9502_v9  ;;  %vm5084_vm5 = vcmp.eq.f32.partialorder %v5083_v59, 8.507059e+37  ;;  %v5148_v59 = vand.u32 2147483648, %v13168_v32 }
 0x7ef   :  { %v5062_v26 = vmul.f32 %v13165_v52, %v5061_v19  ;;  %11360 = vrcp.f32 %v13184_v22  ;;  %v5123_v46 = vand.u32 2147483648, %v13184_v22  ;;  %v10744_v19 = vld [vmem:[#allocation8 + $0x10c] sm:$0xf0]  ;;  %v5121_v31 = vand.u32 2147483647, %v13184_v22  ;;  %5411 = vmatpush.bf16.msrb.mxu1 %v9481_v45 }
 0x7f0   :  { %v5100_v60 = vmul.f32 %v13172_v2, %v5099_v34  ;;  %11362 = vpow2.f32 %v9473_v63  ;;  %5438 = vmatpush.bf16.msrb.mxu3 %v9505_v50  ;;  %vm5117_vm3 = vweird.f32 %v13184_v22  ;;  %v9730_v45 = vld [vmem:[#allocation8 + $0x1e8] sm:$0xf] }
 0x7f1   :  { %v5063_v37 = vadd.f32 %v13165_v52, %v5062_v26  ;;  %11364 = vtanh.f32 %v5049_v15  ;;  %v9484_v26 = vld [vmem:[#allocation8 + $0x108] sm:$0xf]  ;;  %v5085_v15 = vand.u32 2147483648, %v13170_v53  ;;  %vm5122_vm7 = vcmp.eq.f32.partialorder %v5121_v31, 8.507059e+37  ;;  %v10803_v31 = vld [vmem:[#allocation8 + $0x1ec] sm:$0xf] }
 0x7f2   :  { %v5101_v35 = vadd.f32 %v13172_v2, %v5100_v60  ;;  %v13218_v33 = vpop.eup %11356 }
 0x7f3   :  { %v5067_v61 = vsel %vm13201_vm13, %v13165_v52, %v5063_v37  ;;  %v13223_v20 = vpop.eup %11358  ;;  %v5075_v10 = vmul.f32 %v13218_v33, %v13170_v53  ;;  %v9476_v52 = vld [vmem:[#allocation8 + $0x100] sm:$0xf]  ;;  %v9501_v37 = vor.u32 %v10749_v55, %v9500_v38  ;;  %vm5080_vm1 = vweird.f32 %v13218_v33 }
 0x7f4   :  { %v5072_v14 = vsel %vm13187_vm9, %v5071_v40, %v5067_v61  ;;  %v5105_v48 = vsel %vm13207_vm14, %v13172_v2, %v5101_v35  ;;  %v10745_v2 = vld [vmem:[#allocation8 + $0x114] sm:$0xf0]  ;;  %v9477_v42 = vor.u32 %v10744_v19, %v9476_v52  ;;  %vm5081_vm4 = vmor %vm5079_vm0, %vm5080_vm1  ;;  %v5086_v55 = vor.u32 1.1754944e-38, %v5085_v15  ;;  %5439 = vmatpush.bf16.msrb.mxu3 %v9489_v28 }
 0x7f5   :  { %v11361_v63 = vpop.eup %11360  ;;  %v5110_v34 = vsel %vm13212_vm15, %v5109_v17, %v5105_v48  ;;  %v5169_v12 = vmul.f32 %v11355_v1, %v5072_v14  ;;  %v5076_v13 = vsub.f32 1.0, %v5075_v10  ;;  %v5138_v17 = vmul.f32 %v13223_v20, %v13168_v32  ;;  %5424 = vmatpush.bf16.msrb.mxu2 %v9501_v37 }
 0x7f6   :  { %v5167_v40 = vmul.f32 %v5110_v34, %v13119_v0  ;;  %v5113_v60 = vmul.f32 %v11361_v63, %v13184_v22  ;;  %v11363_v4 = vpop.eup %11362  ;;  %v9485_v35 = vor.u32 %v10745_v2, %v9484_v26  ;;  %vm5118_vm2 = vweird.f32 %v11361_v63  ;;  %5397 = vmatpush.bf16.msrb.mxu0 %v9477_v42  ;;  %v9722_v42 = vld [vmem:[#allocation8 + $0x1e0] sm:$0xf] }
 0x7f7   :  { %v5077_v0 = vmul.f32 %v13218_v33, %v5076_v13  ;;  %v5136_v1 = vadd.f32 1.0, %v11363_v4  ;;  %v11365_v61 = vpop.eup %11364  ;;  %v5139_v51 = vsub.f32 1.0, %v5138_v17  ;;  %vm5119_vm6 = vmor %vm5117_vm3, %vm5118_vm2  ;;  %v5124_v48 = vor.u32 1.1754944e-38, %v5123_v46 }
 0x7f8   :  { %v13240_v36 = vadd.f32 %v5169_v12, %v5167_v40  ;;  %v5114_v8 = vsub.f32 1.0, %v5113_v60  ;;  %vm5143_vm8 = vweird.f32 %v13223_v20  ;;  %vm5142_vm9 = vweird.f32 %v13168_v32 }
 0x7f9   :  { %v5078_v38 = vadd.f32 %v13218_v33, %v5077_v0  ;;  %11366 = vrcp.f32 %v5136_v1  ;;  %5425 = vmatpush.bf16.msrb.mxu2 %v9485_v35  ;;  %v5140_v34 = vmul.f32 %v13223_v20, %v5139_v51  ;;  %v5161_v26 = vand.u32 2147483647, %v5136_v1  ;;  %vm5144_vm11 = vmor %vm5142_vm9, %vm5143_vm8  ;;  %v10805_v35 = vld [vmem:[#allocation8 + $0x1f4] sm:$0xf0] }
 0x7fa   :  { %v5115_v3 = vmul.f32 %v11361_v63, %v5114_v8  ;;  %11368 = vtanh.f32 %v13240_v36  ;;  %vm5157_vm12 = vweird.f32 %v5136_v1  ;;  %v5149_v60 = vor.u32 1.1754944e-38, %v5148_v59  ;;  %v10802_v8 = vld [vmem:[#allocation8 + $0x1e4] sm:$0xf]  ;;  %v10799_v59 = vld [vmem:[#allocation8 + $0x1cc] sm:$0xf] }
 0x7fb   :  { %v5082_v9 = vsel %vm5081_vm4, %v13218_v33, %v5078_v38  ;;  %v5141_v22 = vadd.f32 %v13223_v20, %v5140_v34  ;;  %vm5162_vm15 = vcmp.eq.f32.partialorder %v5161_v26, 8.507059e+37  ;;  %v4136_v28 = vadd.f32 %v12912_v49, %v13010_v25  ;;  %v9708_v34 = vld [vmem:[#allocation8 + $0x1d0] sm:$0xf0]  ;;  %v10796_v26 = vld [vmem:[#allocation8 + $0x1ac] sm:$0xf0] }
 0x7fc   :  { %v5116_v14 = vadd.f32 %v11361_v63, %v5115_v3  ;;  %v5087_v10 = vsel %vm5084_vm5, %v5086_v55, %v5082_v9  ;;  %v9731_v38 = vor.u32 %v10805_v35, %v9730_v45  ;;  %v9732_v55 = vld [vmem:[#allocation8 + $0x1f8] sm:$0xf0]  ;;  %v9674_v35 = vld [vmem:[#allocation8 + $0x180] sm:$0xf] }
 0x7fd   :  { %v5170_v19 = vmul.f32 %v11365_v61, %v5087_v10  ;;  %v5145_v40 = vsel %vm5144_vm11, %v13223_v20, %v5141_v22  ;;  %v10804_v20 = vld [vmem:[#allocation8 + $0x1ec] sm:$0xf0]  ;;  %v4185_v61 = vadd.f32 %v12914_v27, %v13013_v62  ;;  %v10801_v27 = vld [vmem:[#allocation8 + $0x1d4] sm:$0xf0] }
 0x7fe   :  { %v5120_v52 = vsel %vm5119_vm6, %v11361_v63, %v5116_v14  ;;  %v5163_v63 = vand.u32 2147483648, %v5136_v1  ;;  %v9723_v0 = vor.u32 %v10804_v20, %v9722_v42  ;;  %v9735_v14 = vor.u32 %v10803_v31, %v9732_v55  ;;  %5821 = vmatpush.bf16.msra.mxu2 %v9731_v38  ;;  %v9700_v42 = vld [vmem:[#allocation8 + $0x1b8] sm:$0xf0]  ;;  %v9682_v38 = vld [vmem:[#allocation8 + $0x188] sm:$0xf] }
 0x7ff   :  { %v5125_v57 = vsel %vm5122_vm7, %v5124_v48, %v5120_v52  ;;  %v11367_v33 = vpop.eup %11366  ;;  %v9706_v52 = vld [vmem:[#allocation8 + $0x1c0] sm:$0xf] }
 0x800   :  { %v5168_v12 = vmul.f32 %v5125_v57, %v13135_v58  ;;  %v5153_v53 = vmul.f32 %v11367_v33, %v5136_v1  ;;  %v5146_v58 = vand.u32 2147483647, %v13168_v32  ;;  %vm5158_vm10 = vweird.f32 %v11367_v33  ;;  %v11369_v13 = vpop.eup %11368  ;;  %v9724_v1 = vld [vmem:[#allocation8 + $0x1f0] sm:$0xf0]  ;;  %5793 = vmatpush.bf16.msra.mxu0 %v9723_v0  ;;  %v10798_v57 = vld [vmem:[#allocation8 + $0x1c4] sm:$0xf]  ;;  %5835 = vmatpush.bf16.msra.mxu3 %v9735_v14 }
 0x801   :  { %vm5159_vm13 = vmor %vm5157_vm12, %vm5158_vm10  ;;  %v5164_v15 = vor.u32 1.1754944e-38, %v5163_v63  ;;  %v9727_v3 = vor.u32 %v10802_v8, %v9724_v1  ;;  %v9711_v22 = vor.u32 %v10798_v57, %v9708_v34  ;;  %v9716_v63 = vld [vmem:[#allocation8 + $0x1d8] sm:$0xf0]  ;;  %v10793_v14 = vld [vmem:[#allocation8 + $0x194] sm:$0xf0] }
 0x802   :  { %v13256_v18 = vadd.f32 %v5170_v19, %v5168_v12  ;;  %v5154_v46 = vsub.f32 1.0, %v5153_v53  ;;  %vm5147_vm14 = vcmp.eq.f32.partialorder %v5146_v58, 8.507059e+37  ;;  %v10800_v19 = vld [vmem:[#allocation8 + $0x1cc] sm:$0xf0]  ;;  %v9714_v12 = vld [vmem:[#allocation8 + $0x1c8] sm:$0xf]  ;;  %v9719_v58 = vor.u32 %v10799_v59, %v9716_v63 }
 0x803   :  { %v5150_v4 = vsel %vm5147_vm14, %v5149_v60, %v5145_v40  ;;  %5807 = vmatpush.bf16.msra.mxu1 %v9727_v3  ;;  %v9707_v49 = vor.u32 %v10800_v19, %v9706_v52  ;;  %v4283_v40 = vadd.f32 %v12916_v11, %v13022_v23  ;;  %v9692_v60 = vld [vmem:[#allocation8 + $0x1b0] sm:$0xf0]  ;;  %v9683_v52 = vor.u32 %v10793_v14, %v9682_v38  ;;  %v10791_v19 = vld [vmem:[#allocation8 + $0x18c] sm:$0xf]  ;;  %v9684_v57 = vld [vmem:[#allocation8 + $0x198] sm:$0xf0] }
 0x804   :  { %11370 = vtanh.f32 %v13256_v18  ;;  %v5155_v54 = vmul.f32 %v11367_v33, %v5154_v46  ;;  %v5175_v37 = vmul.f32 %v11369_v13, %v5150_v4  ;;  %v9715_v46 = vor.u32 %v10801_v27, %v9714_v12  ;;  %5836 = vmatpush.bf16.msra.mxu3 %v9719_v58  ;;  %v9676_v3 = vld [vmem:[#allocation8 + $0x190] sm:$0xf0]  ;;  %v9658_v27 = vld [vmem:[#allocation8 + $0x160] sm:$0xf]  ;;  %v9666_v63 = vld [vmem:[#allocation8 + $0x168] sm:$0xf] }
 0x805   :  { %5794 = vmatpush.bf16.msra.mxu0 %v9707_v49  ;;  %v4187_v4 = vadd.f32 %v12922_v29, %v13013_v62  ;;  %v9687_v12 = vor.u32 %v10791_v19, %v9684_v57  ;;  %v10789_v58 = vld [vmem:[#allocation8 + $0x174] sm:$0xf0]  ;;  %v9650_v14 = vld [vmem:[#allocation8 + $0x148] sm:$0xf]  ;;  %v10783_v57 = vld [vmem:[#allocation8 + $0x14c] sm:$0xf] }
 0x806   :  { %v5156_v2 = vadd.f32 %v11367_v33, %v5155_v54  ;;  %5822 = vmatpush.bf16.msra.mxu2 %v9715_v46  ;;  %v9690_v54 = vld [vmem:[#allocation8 + $0x1a0] sm:$0xf]  ;;  %v4234_v46 = vadd.f32 %v12918_v47, %v13033_v43 }
 0x807   :  { %5808 = vmatpush.bf16.msra.mxu1 %v9711_v22  ;;  %v9691_v13 = vor.u32 %v10796_v26, %v9690_v54  ;;  %v9660_v22 = vld [vmem:[#allocation8 + $0x170] sm:$0xf0]  ;;  %v4285_v54 = vadd.f32 %v12924_v56, %v13022_v23 }
 0x808   :  { %v5160_v21 = vsel %vm5159_vm13, %v11367_v33, %v5156_v2  ;;  %v10794_v2 = vld [vmem:[#allocation8 + $0x1a4] sm:$0xf] }
 0x809   :  { %v5165_v17 = vsel %vm5162_vm15, %v5164_v15, %v5160_v21  ;;  %v9698_v15 = vld [vmem:[#allocation8 + $0x1a8] sm:$0xf]  ;;  %v4138_v21 = vadd.f32 %v12920_v39, %v13010_v25  ;;  %5795 = vmatpush.bf16.msra.mxu0 %v9691_v13  ;;  %v10792_v39 = vld [vmem:[#allocation8 + $0x18c] sm:$0xf0] }
 0x80a   :  { %v11371_v6 = vpop.eup %11370  ;;  %v9675_v29 = vor.u32 %v10792_v39, %v9674_v35 }
 0x80b   :  { %v5176_v32 = vmul.f32 %v11371_v6, %v5165_v17  ;;  %v10797_v6 = vld [vmem:[#allocation8 + $0x1b4] sm:$0xf0] }
 0x80d   :  { %v10998_v50 = vpack.c.bf16 %v5176_v32, %v5175_v37  ;;  %v9695_v37 = vor.u32 %v10794_v2, %v9692_v60  ;;  %v9699_v32 = vor.u32 %v10797_v6, %v9698_v15  ;;  %5796 = vmatpush.bf16.msra.mxu0 %v9675_v29  ;;  %v10787_v2 = vld [vmem:[#allocation8 + $0x16c] sm:$0xf]  ;;  %v9667_v6 = vor.u32 %v10789_v58, %v9666_v63  ;;  %v10778_v58 = vld [vmem:[#allocation8 + $0x124] sm:$0xf] }
 0x80f   :  { %10999 = vst [vmem:[#allocation4] sm:$0xff] %v10998_v50   ;;  %5398 = vmatmul.bf16.vlgmr.msrb.gmra.mxu0 %v10998_v50  ;;  %5412 = vmatmul.bf16.vlgmr.msrb.gmra.mxu1 %v10998_v50 }
 0x810   :  { %5426 = vmatmul.bf16.vlgmr.msrb.gmra.mxu2 %v10998_v50  ;;  %5440 = vmatmul.bf16.vlgmr.msrb.gmra.mxu3 %v10998_v50  ;;  %v10795_v50 = vld [vmem:[#allocation8 + $0x1ac] sm:$0xf] }
 0x811   :  { %v9703_v0 = vor.u32 %v10795_v50, %v9700_v42  ;;  %5809 = vmatpush.bf16.msra.mxu1 %v9695_v37  ;;  %5823 = vmatpush.bf16.msra.mxu2 %v9699_v32  ;;  %v10782_v37 = vld [vmem:[#allocation8 + $0x144] sm:$0xf]  ;;  %v9644_v42 = vld [vmem:[#allocation8 + $0x150] sm:$0xf0] }
 0x813   :  { %5837 = vmatpush.bf16.msra.mxu3 %v9703_v0  ;;  %v9647_v0 = vor.u32 %v10782_v37, %v9644_v42  ;;  %v10779_v37 = vld [vmem:[#allocation8 + $0x12c] sm:$0xf] }
 0x815   :  { %5824 = vmatpush.bf16.msra.mxu2 %v9683_v52 }
 0x817   :  { %5838 = vmatpush.bf16.msra.mxu3 %v9687_v12 }
 0x819   :  { %5825 = vmatpush.bf16.msra.mxu2 %v9667_v6 }
 0x88c   :  { %v5399_v51 = vpop.f32.mrf.mxu0  ;;  %v5413_v9 = vpop.f32.mrf.mxu1 }
 0x88d   :  { %v5446_v48 = vadd.f32 %v5399_v51, %v4136_v28  ;;  %v5447_v10 = vadd.f32 %v5413_v9, %v4185_v61  ;;  %v10790_v28 = vld [vmem:[#allocation8 + $0x184] sm:$0xf] }
 0x88e   :  { %v9679_v9 = vor.u32 %v10790_v28, %v9676_v3 }
 0x88f   :  { %v9602_v33 = vmul.f32 -1.442695, %v5446_v48  ;;  %v9604_v53 = vmul.f32 -1.442695, %v5447_v10 }
 0x890   :  { %5810 = vmatpush.bf16.msra.mxu1 %v9679_v9  ;;  %v10775_v9 = vld [vmem:[#allocation8 + $0x10c] sm:$0xf] }
 0x891   :  { %11372 = vpow2.f32 %v9602_v33  ;;  %v10788_v33 = vld [vmem:[#allocation8 + $0x16c] sm:$0xf0] }
 0x892   :  { %11374 = vpow2.f32 %v9604_v53  ;;  %v10786_v53 = vld [vmem:[#allocation8 + $0x164] sm:$0xf]  ;;  %v9659_v26 = vor.u32 %v10788_v33, %v9658_v27  ;;  %v9652_v27 = vld [vmem:[#allocation8 + $0x158] sm:$0xf0]  ;;  %v9626_v33 = vld [vmem:[#allocation8 + $0x120] sm:$0xf] }
 0x893   :  { %v5441_v17 = vpop.f32.mrf.mxu3  ;;  %v5427_v34 = vpop.f32.mrf.mxu2  ;;  %v9663_v15 = vor.u32 %v10786_v53, %v9660_v22  ;;  %v10780_v53 = vld [vmem:[#allocation8 + $0x12c] sm:$0xf0] }
 0x894   :  { %v5449_v20 = vadd.f32 %v5441_v17, %v4283_v40  ;;  %v5401_v8 = vpop.f32.mrf.mxu0  ;;  %v5415_v11 = vpop.f32.mrf.mxu1  ;;  %v9668_v40 = vld [vmem:[#allocation8 + $0x178] sm:$0xf0]  ;;  %v5448_v60 = vadd.f32 %v5427_v34, %v4234_v46  ;;  %v10784_v17 = vld [vmem:[#allocation8 + $0x14c] sm:$0xf0]  ;;  %5797 = vmatpush.bf16.msra.mxu0 %v9659_v26 }
 0x895   :  { %v5450_v1 = vadd.f32 %v5401_v8, %v4138_v21  ;;  %v5451_v45 = vadd.f32 %v5415_v11, %v4187_v4  ;;  %v9671_v21 = vor.u32 %v10787_v2, %v9668_v40  ;;  %v9642_v4 = vld [vmem:[#allocation8 + $0x140] sm:$0xf]  ;;  %5811 = vmatpush.bf16.msra.mxu1 %v9663_v15 }
 0x896   :  { %v9606_v61 = vmul.f32 -1.442695, %v5449_v20  ;;  %v9643_v50 = vor.u32 %v10784_v17, %v9642_v4  ;;  %v9627_v4 = vor.u32 %v10780_v53, %v9626_v33  ;;  %v10781_v17 = vld [vmem:[#allocation8 + $0x134] sm:$0xf0] }
 0x897   :  { %v11373_v31 = vpop.eup %11372  ;;  %v9603_v55 = vmul.f32 -1.442695, %v5450_v1  ;;  %v9605_v51 = vmul.f32 -1.442695, %v5451_v45  ;;  %v4236_v45 = vadd.f32 %v12926_v41, %v13033_v43  ;;  %5839 = vmatpush.bf16.msra.mxu3 %v9671_v21  ;;  %v9655_v21 = vor.u32 %v10783_v57, %v9652_v27 }
 0x898   :  { %v11375_v48 = vpop.eup %11374  ;;  %v13276_v10 = vadd.f32 1.0, %v11373_v31  ;;  %11376 = vpow2.f32 %v9606_v61  ;;  %5798 = vmatpush.bf16.msra.mxu0 %v9643_v50 }
 0x899   :  { %v13278_v49 = vadd.f32 1.0, %v11375_v48  ;;  %11378 = vpow2.f32 %v9603_v55  ;;  %5812 = vmatpush.bf16.msra.mxu1 %v9647_v0  ;;  %v10785_v48 = vld [vmem:[#allocation8 + $0x154] sm:$0xf0]  ;;  %v10776_v0 = vld [vmem:[#allocation8 + $0x10c] sm:$0xf0] }
 0x89a   :  { %11380 = vrcp.f32 %v13276_v10  ;;  %v5471_v56 = vand.u32 2147483647, %v13276_v10  ;;  %v5473_v39 = vand.u32 2147483648, %v13276_v10  ;;  %vm5467_vm4 = vweird.f32 %v13276_v10 }
 0x89b   :  { %11382 = vrcp.f32 %v13278_v49  ;;  %v5443_v59 = vpop.f32.mrf.mxu3  ;;  %v5511_v29 = vand.u32 2147483648, %v13278_v49  ;;  %v5509_v3 = vand.u32 2147483647, %v13278_v49  ;;  %v5429_v41 = vpop.f32.mrf.mxu2  ;;  %vm5505_vm3 = vweird.f32 %v13278_v49  ;;  %5840 = vmatpush.bf16.msra.mxu3 %v9655_v21 }
 0x89c   :  { %11384 = vpow2.f32 %v9605_v51  ;;  %v5453_v47 = vadd.f32 %v5443_v59, %v4285_v54  ;;  %vm13308_vm1 = vcmp.eq.f32.partialorder %v5471_v56, 8.507059e+37  ;;  %v5474_v19 = vor.u32 1.1754944e-38, %v5473_v39  ;;  %v9628_v54 = vld [vmem:[#allocation8 + $0x130] sm:$0xf0]  ;;  %5799 = vmatpush.bf16.msra.mxu0 %v9627_v4 }
 0x89d   :  { %11386 = vtanh.f32 %v5448_v60  ;;  %v5452_v12 = vadd.f32 %v5429_v41, %v4236_v45  ;;  %v5512_v22 = vor.u32 1.1754944e-38, %v5511_v29  ;;  %v9651_v63 = vor.u32 %v10785_v48, %v9650_v14  ;;  %v9634_v60 = vld [vmem:[#allocation8 + $0x128] sm:$0xf]  ;;  %v10774_v45 = vld [vmem:[#allocation8 + $0x104] sm:$0xf] }
 0x89e   :  { %v11377_v13 = vpop.eup %11376  ;;  %v9607_v55 = vmul.f32 -1.442695, %v5453_v47  ;;  %vm13333_vm7 = vcmp.eq.f32.partialorder %v5509_v3, 8.507059e+37  ;;  %v9612_v29 = vld [vmem:[#allocation8 + $0x110] sm:$0xf0] }
 0x89f   :  { %v11379_v32 = vpop.eup %11378  ;;  %v13289_v8 = vadd.f32 1.0, %v11377_v13  ;;  %5826 = vmatpush.bf16.msra.mxu2 %v9651_v63  ;;  %v9618_v3 = vld [vmem:[#allocation8 + $0x108] sm:$0xf]  ;;  %v9620_v14 = vld [vmem:[#allocation8 + $0x118] sm:$0xf0]  ;;  %v9615_v53 = vor.u32 %v10774_v45, %v9612_v29 }
 0x8a0   :  { %v13286_v20 = vpop.eup %11380  ;;  %v13291_v11 = vadd.f32 1.0, %v11379_v32  ;;  %v9636_v32 = vld [vmem:[#allocation8 + $0x138] sm:$0xf0] }
 0x8a1   :  { %v13293_v1 = vpop.eup %11382  ;;  %v5463_v35 = vmul.f32 %v13286_v20, %v13276_v10  ;;  %vm5468_vm0 = vweird.f32 %v13286_v20  ;;  %v9639_v57 = vor.u32 %v10779_v37, %v9636_v32 }
 0x8a2   :  { %v11385_v28 = vpop.eup %11384  ;;  %v5501_v61 = vmul.f32 %v13293_v1, %v13278_v49  ;;  %11388 = vrcp.f32 %v13291_v11  ;;  %vm5506_vm2 = vweird.f32 %v13293_v1  ;;  %vm13322_vm5 = vmor %vm5467_vm4, %vm5468_vm0  ;;  %v5486_v13 = vand.u32 2147483647, %v13291_v11 }
 0x8a3   :  { %v5464_v38 = vsub.f32 1.0, %v5463_v35  ;;  %v13305_v31 = vadd.f32 1.0, %v11385_v28  ;;  %11390 = vrcp.f32 %v13289_v8  ;;  %v11387_v49 = vpop.eup %11386  ;;  %vm13328_vm6 = vmor %vm5505_vm3, %vm5506_vm2  ;;  %vm5482_vm8 = vweird.f32 %v13291_v11  ;;  %5841 = vmatpush.bf16.msra.mxu3 %v9639_v57 }
 0x8a4   :  { %v5502_v51 = vsub.f32 1.0, %v5501_v61  ;;  %v9631_v61 = vor.u32 %v10778_v58, %v9628_v54  ;;  %vm5487_vm13 = vcmp.eq.f32.partialorder %v5486_v13, 8.507059e+37  ;;  %v5551_v13 = vand.u32 2147483648, %v13289_v8 }
 0x8a5   :  { %v5465_v52 = vmul.f32 %v13286_v20, %v5464_v38  ;;  %11392 = vrcp.f32 %v13305_v31  ;;  %v5526_v40 = vand.u32 2147483648, %v13305_v31  ;;  %v5524_v54 = vand.u32 2147483647, %v13305_v31 }
 0x8a6   :  { %v5503_v34 = vmul.f32 %v13293_v1, %v5502_v51  ;;  %11394 = vpow2.f32 %v9607_v55  ;;  %v5488_v51 = vand.u32 2147483648, %v13291_v11  ;;  %5813 = vmatpush.bf16.msra.mxu1 %v9631_v61  ;;  %vm5520_vm11 = vweird.f32 %v13305_v31 }
 0x8a7   :  { %v5466_v46 = vadd.f32 %v13286_v20, %v5465_v52  ;;  %11396 = vtanh.f32 %v5452_v12  ;;  %vm5525_vm15 = vcmp.eq.f32.partialorder %v5524_v54, 8.507059e+37  ;;  %v4190_v57 = vadd.f32 %v12930_v7, %v13013_v62  ;;  %v10832_v54 = vld [vmem:[#allocation8 + $0x1cc] sm:$0xf0]  ;;  %v10833_v7 = vld [vmem:[#allocation8 + $0x1d4] sm:$0xf0] }
 0x8a8   :  { %v5504_v26 = vadd.f32 %v13293_v1, %v5503_v34  ;;  %v13339_v15 = vpop.eup %11388 }
 0x8a9   :  { %v5470_v6 = vsel %vm13322_vm5, %v13286_v20, %v5466_v46  ;;  %v13344_v47 = vpop.eup %11390  ;;  %v5478_v56 = vmul.f32 %v13339_v15, %v13291_v11  ;;  %v9610_v20 = vld [vmem:[#allocation8 + $0x100] sm:$0xf]  ;;  %vm5483_vm9 = vweird.f32 %v13339_v15  ;;  %v9623_v46 = vor.u32 %v10775_v9, %v9620_v14  ;;  %v9858_v14 = vld [vmem:[#allocation8 + $0x1f0] sm:$0xf0] }
 0x8aa   :  { %v5475_v50 = vsel %vm13308_vm1, %v5474_v19, %v5470_v6  ;;  %v5508_v42 = vsel %vm13328_vm6, %v13293_v1, %v5504_v26  ;;  %v10777_v1 = vld [vmem:[#allocation8 + $0x114] sm:$0xf0]  ;;  %v5541_v52 = vmul.f32 %v13344_v47, %v13289_v8  ;;  %v9635_v19 = vor.u32 %v10781_v17, %v9634_v60  ;;  %vm5484_vm12 = vmor %vm5482_vm8, %vm5483_vm9  ;;  %5814 = vmatpush.bf16.msra.mxu1 %v9615_v53 }
 0x8ab   :  { %v11393_v35 = vpop.eup %11392  ;;  %v5513_v39 = vsel %vm13333_vm7, %v5512_v22, %v5508_v42  ;;  %v5572_v28 = vmul.f32 %v11387_v49, %v5475_v50  ;;  %v5479_v41 = vsub.f32 1.0, %v5478_v56  ;;  %v9611_v34 = vor.u32 %v10776_v0, %v9610_v20  ;;  %5842 = vmatpush.bf16.msra.mxu3 %v9623_v46 }
 0x8ac   :  { %v5570_v38 = vmul.f32 %v5513_v39, %v13240_v36  ;;  %v5516_v55 = vmul.f32 %v11393_v35, %v13305_v31  ;;  %v11395_v48 = vpop.eup %11394  ;;  %5827 = vmatpush.bf16.msra.mxu2 %v9635_v19  ;;  %v9619_v22 = vor.u32 %v10777_v1, %v9618_v3  ;;  %vm5521_vm10 = vweird.f32 %v11393_v35 }
 0x8ad   :  { %v5480_v36 = vmul.f32 %v13339_v15, %v5479_v41  ;;  %v5539_v33 = vadd.f32 1.0, %v11395_v48  ;;  %v11397_v59 = vpop.eup %11396  ;;  %5800 = vmatpush.bf16.msra.mxu0 %v9611_v34  ;;  %v5489_v49 = vor.u32 1.1754944e-38, %v5488_v51  ;;  %v5542_v10 = vsub.f32 1.0, %v5541_v52  ;;  %vm5522_vm14 = vmor %vm5520_vm11, %vm5521_vm10  ;;  %v10834_v51 = vld [vmem:[#allocation8 + $0x1e4] sm:$0xf] }
 0x8ae   :  { %v13361_v12 = vadd.f32 %v5572_v28, %v5570_v38  ;;  %v5517_v27 = vsub.f32 1.0, %v5516_v55  ;;  %v5527_v60 = vor.u32 1.1754944e-38, %v5526_v40  ;;  %vm5546_vm0 = vweird.f32 %v13344_v47  ;;  %v9856_v55 = vld [vmem:[#allocation8 + $0x1e0] sm:$0xf]  ;;  %v9864_v48 = vld [vmem:[#allocation8 + $0x1e8] sm:$0xf] }
 0x8af   :  { %v5481_v58 = vadd.f32 %v13339_v15, %v5480_v36  ;;  %11398 = vrcp.f32 %v5539_v33  ;;  %v5543_v37 = vmul.f32 %v13344_v47, %v5542_v10  ;;  %vm5545_vm1 = vweird.f32 %v13289_v8  ;;  %v10837_v52 = vld [vmem:[#allocation8 + $0x1f4] sm:$0xf0]  ;;  %v10835_v36 = vld [vmem:[#allocation8 + $0x1ec] sm:$0xf]  ;;  %v9842_v10 = vld [vmem:[#allocation8 + $0x1d0] sm:$0xf0] }
 0x8b0   :  { %v5518_v63 = vmul.f32 %v11393_v35, %v5517_v27  ;;  %5828 = vmatpush.bf16.msra.mxu2 %v9619_v22  ;;  %11400 = vtanh.f32 %v13361_v12  ;;  %v5566_v42 = vand.u32 2147483648, %v5539_v33  ;;  %v5564_v20 = vand.u32 2147483647, %v5539_v33  ;;  %vm5547_vm3 = vmor %vm5545_vm1, %vm5546_vm0 }
 0x8b1   :  { %v5485_v26 = vsel %vm5484_vm12, %v13339_v15, %v5481_v58  ;;  %v5544_v31 = vadd.f32 %v13344_v47, %v5543_v37  ;;  %vm5560_vm4 = vweird.f32 %v5539_v33  ;;  %v5552_v39 = vor.u32 1.1754944e-38, %v5551_v13  ;;  %v9840_v58 = vld [vmem:[#allocation8 + $0x1c0] sm:$0xf]  ;;  %v9826_v13 = vld [vmem:[#allocation8 + $0x1b0] sm:$0xf0] }
 0x8b2   :  { %v5519_v2 = vadd.f32 %v11393_v35, %v5518_v63  ;;  %v5490_v6 = vsel %vm5487_vm13, %v5489_v49, %v5485_v26  ;;  %v5567_v28 = vor.u32 1.1754944e-38, %v5566_v42  ;;  %vm5565_vm7 = vcmp.eq.f32.partialorder %v5564_v20, 8.507059e+37  ;;  %v10830_v49 = vld [vmem:[#allocation8 + $0x1c4] sm:$0xf]  ;;  %v9848_v26 = vld [vmem:[#allocation8 + $0x1c8] sm:$0xf] }
 0x8b3   :  { %v5573_v4 = vmul.f32 %v11397_v59, %v5490_v6  ;;  %v5548_v45 = vsel %vm5547_vm3, %v13344_v47, %v5544_v31  ;;  %v10836_v47 = vld [vmem:[#allocation8 + $0x1ec] sm:$0xf0]  ;;  %v4141_v19 = vadd.f32 %v12928_v16, %v13010_v25  ;;  %v9861_v34 = vor.u32 %v10834_v51, %v9858_v14  ;;  %v9832_v42 = vld [vmem:[#allocation8 + $0x1a8] sm:$0xf] }
 0x8b4   :  { %v5523_v21 = vsel %vm5522_vm14, %v11393_v35, %v5519_v2  ;;  %v9857_v9 = vor.u32 %v10836_v47, %v9856_v55  ;;  %v9865_v27 = vor.u32 %v10837_v52, %v9864_v48  ;;  %v9841_v16 = vor.u32 %v10832_v54, %v9840_v58  ;;  %v9810_v47 = vld [vmem:[#allocation8 + $0x190] sm:$0xf0]  ;;  %v9816_v51 = vld [vmem:[#allocation8 + $0x188] sm:$0xf]  ;;  %v10818_v58 = vld [vmem:[#allocation8 + $0x164] sm:$0xf] }
 0x8b5   :  { %v5528_v17 = vsel %vm5525_vm15, %v5527_v60, %v5523_v21  ;;  %v11399_v15 = vpop.eup %11398  ;;  %6210 = vmatpush.bf16.msrb.mxu1 %v9861_v34  ;;  %v9845_v6 = vor.u32 %v10830_v49, %v9842_v10  ;;  %v9849_v21 = vor.u32 %v10833_v7, %v9848_v26  ;;  %v4288_v31 = vadd.f32 %v12932_v30, %v13022_v23  ;;  %v9794_v54 = vld [vmem:[#allocation8 + $0x170] sm:$0xf0]  ;;  %v9800_v10 = vld [vmem:[#allocation8 + $0x168] sm:$0xf]  ;;  %v10821_v26 = vld [vmem:[#allocation8 + $0x174] sm:$0xf0] }
 0x8b6   :  { %v5571_v32 = vmul.f32 %v5528_v17, %v13256_v18  ;;  %v5556_v11 = vmul.f32 %v11399_v15, %v5539_v33  ;;  %v5549_v18 = vand.u32 2147483647, %v13289_v8  ;;  %vm5561_vm2 = vweird.f32 %v11399_v15  ;;  %v11401_v35 = vpop.eup %11400  ;;  %v9866_v33 = vld [vmem:[#allocation8 + $0x1f8] sm:$0xf0]  ;;  %6196 = vmatpush.bf16.msrb.mxu0 %v9857_v9  ;;  %6224 = vmatpush.bf16.msrb.mxu2 %v9865_v27 }
 0x8b7   :  { %vm5562_vm5 = vmor %vm5560_vm4, %vm5561_vm2  ;;  %v9869_v46 = vor.u32 %v10835_v36, %v9866_v33  ;;  %v9850_v17 = vld [vmem:[#allocation8 + $0x1d8] sm:$0xf0]  ;;  %v4192_v20 = vadd.f32 %v12938_v5, %v13013_v62  ;;  %v10823_v36 = vld [vmem:[#allocation8 + $0x18c] sm:$0xf]  ;;  %v4239_v49 = vadd.f32 %v12934_v44, %v13033_v43 }
 0x8b8   :  { %v13377_v50 = vadd.f32 %v5573_v4, %v5571_v32  ;;  %v5557_v40 = vsub.f32 1.0, %v5556_v11  ;;  %vm5550_vm6 = vcmp.eq.f32.partialorder %v5549_v18, 8.507059e+37  ;;  %v10831_v4 = vld [vmem:[#allocation8 + $0x1cc] sm:$0xf]  ;;  %v9824_v32 = vld [vmem:[#allocation8 + $0x1a0] sm:$0xf] }
 0x8b9   :  { %v5553_v3 = vsel %vm5550_vm6, %v5552_v39, %v5548_v45  ;;  %6238 = vmatpush.bf16.msrb.mxu3 %v9869_v46  ;;  %6211 = vmatpush.bf16.msrb.mxu1 %v9845_v6  ;;  %v9853_v37 = vor.u32 %v10831_v4, %v9850_v17  ;;  %v10826_v11 = vld [vmem:[#allocation8 + $0x1a4] sm:$0xf]  ;;  %v10829_v18 = vld [vmem:[#allocation8 + $0x1b4] sm:$0xf0]  ;;  %v10827_v39 = vld [vmem:[#allocation8 + $0x1ac] sm:$0xf] }
 0x8ba   :  { %11402 = vtanh.f32 %v13377_v50  ;;  %v5558_v56 = vmul.f32 %v11399_v15, %v5557_v40  ;;  %v5578_v38 = vmul.f32 %v11401_v35, %v5553_v3  ;;  %6197 = vmatpush.bf16.msrb.mxu0 %v9841_v16  ;;  %6225 = vmatpush.bf16.msrb.mxu2 %v9849_v21  ;;  %v9829_v45 = vor.u32 %v10826_v11, %v9826_v13  ;;  %v9818_v33 = vld [vmem:[#allocation8 + $0x198] sm:$0xf0]  ;;  %v10819_v6 = vld [vmem:[#allocation8 + $0x16c] sm:$0xf]  ;;  %v9776_v11 = vld [vmem:[#allocation8 + $0x140] sm:$0xf] }
 0x8bb   :  { %v9833_v35 = vor.u32 %v10829_v18, %v9832_v42  ;;  %v9821_v46 = vor.u32 %v10823_v36, %v9818_v33  ;;  %v14200_v7 = vld [vmem:[#allocation19_spill] sm:$0xff]  ;;  %v9778_v18 = vld [vmem:[#allocation8 + $0x150] sm:$0xf0]  ;;  %v9760_v33 = vld [vmem:[#allocation8 + $0x120] sm:$0xf] }
 0x8bc   :  { %v5559_v0 = vadd.f32 %v11399_v15, %v5558_v56  ;;  %v4143_v56 = vadd.f32 %v12936_v24, %v13010_v25  ;;  %v10824_v24 = vld [vmem:[#allocation8 + $0x18c] sm:$0xf0]  ;;  %v9802_v21 = vld [vmem:[#allocation8 + $0x178] sm:$0xf0] }
 0x8bd   :  { %6239 = vmatpush.bf16.msrb.mxu3 %v9853_v37  ;;  %6212 = vmatpush.bf16.msrb.mxu1 %v9829_v45  ;;  %v9797_v37 = vor.u32 %v10818_v58, %v9794_v54  ;;  %v9786_v36 = vld [vmem:[#allocation8 + $0x158] sm:$0xf0]  ;;  %v10810_v54 = vld [vmem:[#allocation8 + $0x124] sm:$0xf] }
 0x8be   :  { %v5563_v29 = vsel %vm5562_vm5, %v11399_v15, %v5559_v0  ;;  %v10828_v15 = vld [vmem:[#allocation8 + $0x1ac] sm:$0xf0]  ;;  %6226 = vmatpush.bf16.msrb.mxu2 %v9833_v35 }
 0x8bf   :  { %v5568_v1 = vsel %vm5565_vm7, %v5567_v28, %v5563_v29  ;;  %v9825_v40 = vor.u32 %v10828_v15, %v9824_v32  ;;  %v9834_v28 = vld [vmem:[#allocation8 + $0x1b8] sm:$0xf0]  ;;  %v9801_v32 = vor.u32 %v10821_v26, %v9800_v10  ;;  %v9805_v15 = vor.u32 %v10819_v6, %v9802_v21 }
 0x8c0   :  { %v11403_v61 = vpop.eup %11402  ;;  %v9837_v3 = vor.u32 %v10827_v39, %v9834_v28  ;;  %v14201_v28 = vld [vmem:[#allocation18_spill] sm:$0xff] }
 0x8c1   :  { %v5579_v8 = vmul.f32 %v11403_v61, %v5568_v1  ;;  %6198 = vmatpush.bf16.msrb.mxu0 %v9825_v40  ;;  %v10814_v40 = vld [vmem:[#allocation8 + $0x144] sm:$0xf] }
 0x8c2   :  { %6240 = vmatpush.bf16.msrb.mxu3 %v9837_v3  ;;  %v9781_v35 = vor.u32 %v10814_v40, %v9778_v18 }
 0x8c3   :  { %v11003_v41 = vpack.c.bf16 %v5579_v8, %v5578_v38  ;;  %v9808_v8 = vld [vmem:[#allocation8 + $0x180] sm:$0xf] }
 0x8c4   :  { %v9809_v5 = vor.u32 %v10824_v24, %v9808_v8 }
 0x8c5   :  { %11004 = vst [vmem:[#allocation4 + $0x18] sm:$0xff] %v11003_v41   ;;  %5801 = vmatmul.bf16.vlgmr.msra.gmra.mxu0 %v11003_v41  ;;  %5815 = vmatmul.bf16.vlgmr.msra.gmra.mxu1 %v11003_v41 }
 0x8c6   :  { %5829 = vmatmul.bf16.vlgmr.msra.gmra.mxu2 %v11003_v41  ;;  %5843 = vmatmul.bf16.vlgmr.msra.gmra.mxu3 %v11003_v41  ;;  %v10822_v41 = vld [vmem:[#allocation8 + $0x184] sm:$0xf] }
 0x8c7   :  { %v9813_v52 = vor.u32 %v10822_v41, %v9810_v47  ;;  %6199 = vmatpush.bf16.msrb.mxu0 %v9809_v5  ;;  %6241 = vmatpush.bf16.msrb.mxu3 %v9821_v46 }
 0x8c9   :  { %6213 = vmatpush.bf16.msrb.mxu1 %v9813_v52 }
 0x8cb   :  { %6242 = vmatpush.bf16.msrb.mxu3 %v9805_v15 }
 0x8cd   :  { %6214 = vmatpush.bf16.msrb.mxu1 %v9797_v37  ;;  %v10811_v37 = vld [vmem:[#allocation8 + $0x12c] sm:$0xf] }
 0x8d1   :  { %6215 = vmatpush.bf16.msrb.mxu1 %v9781_v35 }
 0x942   :  { %v5802_v53 = vpop.f32.mrf.mxu0  ;;  %v5816_v22 = vpop.f32.mrf.mxu1 }
 0x943   :  { %v5849_v59 = vadd.f32 %v5802_v53, %v4141_v19  ;;  %v5850_v63 = vadd.f32 %v5816_v22, %v4190_v57  ;;  %v10825_v19 = vld [vmem:[#allocation8 + $0x194] sm:$0xf0] }
 0x944   :  { %v9817_v27 = vor.u32 %v10825_v19, %v9816_v51  ;;  %v10815_v19 = vld [vmem:[#allocation8 + $0x14c] sm:$0xf] }
 0x945   :  { %v9736_v2 = vmul.f32 -1.442695, %v5849_v59  ;;  %v9738_v60 = vmul.f32 -1.442695, %v5850_v63  ;;  %v9792_v59 = vld [vmem:[#allocation8 + $0x160] sm:$0xf]  ;;  %v9789_v21 = vor.u32 %v10815_v19, %v9786_v36 }
 0x946   :  { %6227 = vmatpush.bf16.msrb.mxu2 %v9817_v27  ;;  %v10820_v63 = vld [vmem:[#allocation8 + $0x16c] sm:$0xf0] }
 0x947   :  { %11404 = vpow2.f32 %v9736_v2  ;;  %v4290_v2 = vadd.f32 %v14200_v7, %v13022_v23  ;;  %6243 = vmatpush.bf16.msrb.mxu3 %v9789_v21 }
 0x948   :  { %11406 = vpow2.f32 %v9738_v60  ;;  %v9793_v60 = vor.u32 %v10820_v63, %v9792_v59 }
 0x949   :  { %v5844_v0 = vpop.f32.mrf.mxu3  ;;  %v5830_v22 = vpop.f32.mrf.mxu2 }
 0x94a   :  { %v5852_v61 = vadd.f32 %v5844_v0, %v4288_v31  ;;  %v5804_v29 = vpop.f32.mrf.mxu0  ;;  %v5818_v30 = vpop.f32.mrf.mxu1  ;;  %v5851_v17 = vadd.f32 %v5830_v22, %v4239_v49  ;;  %v10816_v31 = vld [vmem:[#allocation8 + $0x14c] sm:$0xf0]  ;;  %6200 = vmatpush.bf16.msrb.mxu0 %v9793_v60  ;;  %6228 = vmatpush.bf16.msrb.mxu2 %v9801_v32  ;;  %v9762_v49 = vld [vmem:[#allocation8 + $0x130] sm:$0xf0]  ;;  %v9770_v32 = vld [vmem:[#allocation8 + $0x138] sm:$0xf0] }
 0x94b   :  { %v5853_v1 = vadd.f32 %v5804_v29, %v4143_v56  ;;  %v5854_v38 = vadd.f32 %v5818_v30, %v4192_v20  ;;  %v9777_v42 = vor.u32 %v10816_v31, %v9776_v11  ;;  %v10812_v22 = vld [vmem:[#allocation8 + $0x12c] sm:$0xf0]  ;;  %v9765_v35 = vor.u32 %v10810_v54, %v9762_v49 }
 0x94c   :  { %v9740_v55 = vmul.f32 -1.442695, %v5852_v61  ;;  %v4241_v61 = vadd.f32 %v14201_v28, %v13033_v43  ;;  %v9746_v28 = vld [vmem:[#allocation8 + $0x110] sm:$0xf0] }
 0x94d   :  { %v11405_v9 = vpop.eup %11404  ;;  %v9737_v14 = vmul.f32 -1.442695, %v5853_v1  ;;  %v9739_v48 = vmul.f32 -1.442695, %v5854_v38  ;;  %6216 = vmatpush.bf16.msrb.mxu1 %v9765_v35  ;;  %v9990_v35 = vld [vmem:[#allocation8 + $0x1e0] sm:$0xf] }
 0x94e   :  { %v11407_v57 = vpop.eup %11406  ;;  %v13397_v34 = vadd.f32 1.0, %v11405_v9  ;;  %11408 = vpow2.f32 %v9740_v55  ;;  %6201 = vmatpush.bf16.msrb.mxu0 %v9777_v42  ;;  %v9784_v9 = vld [vmem:[#allocation8 + $0x148] sm:$0xf]  ;;  %v10806_v42 = vld [vmem:[#allocation8 + $0x104] sm:$0xf] }
 0x94f   :  { %v13399_v53 = vadd.f32 1.0, %v11407_v57  ;;  %11410 = vpow2.f32 %v9737_v14  ;;  %v10817_v14 = vld [vmem:[#allocation8 + $0x154] sm:$0xf0] }
 0x950   :  { %11412 = vrcp.f32 %v13397_v34  ;;  %v5874_v20 = vand.u32 2147483647, %v13397_v34  ;;  %v5876_v30 = vand.u32 2147483648, %v13397_v34  ;;  %vm5870_vm12 = vweird.f32 %v13397_v34 }
 0x951   :  { %11414 = vrcp.f32 %v13399_v53  ;;  %v5846_v16 = vpop.f32.mrf.mxu3  ;;  %v5914_v38 = vand.u32 2147483648, %v13399_v53  ;;  %v5912_v8 = vand.u32 2147483647, %v13399_v53  ;;  %v5832_v55 = vpop.f32.mrf.mxu2  ;;  %vm5908_vm11 = vweird.f32 %v13399_v53 }
 0x952   :  { %11416 = vpow2.f32 %v9739_v48  ;;  %v5856_v44 = vadd.f32 %v5846_v16, %v4290_v2  ;;  %vm13429_vm9 = vcmp.eq.f32.partialorder %v5874_v20, 8.507059e+37  ;;  %v5877_v52 = vor.u32 1.1754944e-38, %v5876_v30  ;;  %v9768_v2 = vld [vmem:[#allocation8 + $0x128] sm:$0xf] }
 0x953   :  { %11418 = vtanh.f32 %v5851_v17  ;;  %v5855_v27 = vadd.f32 %v5832_v55, %v4241_v61  ;;  %v5915_v46 = vor.u32 1.1754944e-38, %v5914_v38  ;;  %v9785_v58 = vor.u32 %v10817_v14, %v9784_v9  ;;  %v10813_v17 = vld [vmem:[#allocation8 + $0x134] sm:$0xf0]  ;;  %v9752_v61 = vld [vmem:[#allocation8 + $0x108] sm:$0xf] }
 0x954   :  { %v11409_v4 = vpop.eup %11408  ;;  %v9741_v5 = vmul.f32 -1.442695, %v5856_v44  ;;  %vm13454_vm15 = vcmp.eq.f32.partialorder %v5912_v8, 8.507059e+37  ;;  %v10808_v44 = vld [vmem:[#allocation8 + $0x10c] sm:$0xf0] }
 0x955   :  { %v11411_v13 = vpop.eup %11410  ;;  %v13410_v0 = vadd.f32 1.0, %v11409_v4  ;;  %6229 = vmatpush.bf16.msrb.mxu2 %v9785_v58  ;;  %v9761_v4 = vor.u32 %v10812_v22, %v9760_v33  ;;  %v10807_v38 = vld [vmem:[#allocation8 + $0x10c] sm:$0xf]  ;;  %v9754_v8 = vld [vmem:[#allocation8 + $0x118] sm:$0xf0] }
 0x956   :  { %v13407_v56 = vpop.eup %11412  ;;  %v13412_v45 = vadd.f32 1.0, %v11411_v13  ;;  %v9744_v13 = vld [vmem:[#allocation8 + $0x100] sm:$0xf] }
 0x957   :  { %v13414_v39 = vpop.eup %11414  ;;  %v5866_v29 = vmul.f32 %v13407_v56, %v13397_v34  ;;  %vm5871_vm8 = vweird.f32 %v13407_v56  ;;  %6202 = vmatpush.bf16.msrb.mxu0 %v9761_v4  ;;  %v9745_v51 = vor.u32 %v10808_v44, %v9744_v13 }
 0x958   :  { %v11417_v3 = vpop.eup %11416  ;;  %v5904_v1 = vmul.f32 %v13414_v39, %v13399_v53  ;;  %11420 = vrcp.f32 %v13412_v45  ;;  %vm5909_vm10 = vweird.f32 %v13414_v39  ;;  %vm13443_vm13 = vmor %vm5870_vm12, %vm5871_vm8  ;;  %v5889_v7 = vand.u32 2147483647, %v13412_v45 }
 0x959   :  { %v5867_v24 = vsub.f32 1.0, %v5866_v29  ;;  %v13426_v41 = vadd.f32 1.0, %v11417_v3  ;;  %11422 = vrcp.f32 %v13410_v0  ;;  %v11419_v53 = vpop.eup %11418  ;;  %vm13449_vm14 = vmor %vm5908_vm11, %vm5909_vm10  ;;  %vm5885_vm0 = vweird.f32 %v13412_v45 }
 0x95a   :  { %v5905_v47 = vsub.f32 1.0, %v5904_v1  ;;  %v5891_v1 = vand.u32 2147483648, %v13412_v45  ;;  %vm5890_vm5 = vcmp.eq.f32.partialorder %v5889_v7, 8.507059e+37  ;;  %v5954_v7 = vand.u32 2147483648, %v13410_v0 }
 0x95b   :  { %v5868_v48 = vmul.f32 %v13407_v56, %v5867_v24  ;;  %11424 = vrcp.f32 %v13426_v41  ;;  %v5929_v26 = vand.u32 2147483648, %v13426_v41  ;;  %v5927_v22 = vand.u32 2147483647, %v13426_v41  ;;  %6203 = vmatpush.bf16.msrb.mxu0 %v9745_v51 }
 0x95c   :  { %v5906_v57 = vmul.f32 %v13414_v39, %v5905_v47  ;;  %11426 = vpow2.f32 %v9741_v5  ;;  %v9769_v5 = vor.u32 %v10813_v17, %v9768_v2  ;;  %v9773_v47 = vor.u32 %v10811_v37, %v9770_v32 }
 0x95d   :  { %v5869_v59 = vadd.f32 %v13407_v56, %v5868_v48  ;;  %11428 = vtanh.f32 %v5855_v27  ;;  %vm5923_vm3 = vweird.f32 %v13426_v41  ;;  %v5930_v54 = vor.u32 1.1754944e-38, %v5929_v26 }
 0x95e   :  { %v5907_v16 = vadd.f32 %v13414_v39, %v5906_v57  ;;  %v13460_v60 = vpop.eup %11420  ;;  %6230 = vmatpush.bf16.msrb.mxu2 %v9769_v5  ;;  %6244 = vmatpush.bf16.msrb.mxu3 %v9773_v47  ;;  %v9757_v57 = vor.u32 %v10807_v38, %v9754_v8  ;;  %vm5928_vm7 = vcmp.eq.f32.partialorder %v5927_v22, 8.507059e+37  ;;  %v14211_v38 = vld [vmem:[#allocation23_spill] sm:$0xff]  ;;  %v10867_v5 = vld [vmem:[#allocation8 + $0x1ec] sm:$0xf]  ;;  %v9982_v22 = vld [vmem:[#allocation8 + $0x1c8] sm:$0xf] }
 0x95f   :  { %v5873_v6 = vsel %vm13443_vm13, %v13407_v56, %v5869_v59  ;;  %v13465_v15 = vpop.eup %11422  ;;  %v5881_v40 = vmul.f32 %v13460_v60, %v13412_v45  ;;  %vm5886_vm1 = vweird.f32 %v13460_v60  ;;  %v4195_v8 = vadd.f32 %v14211_v38, %v13013_v62  ;;  %v10000_v47 = vld [vmem:[#allocation8 + $0x1f8] sm:$0xf0] }
 0x960   :  { %v5878_v11 = vsel %vm13429_vm9, %v5877_v52, %v5873_v6  ;;  %v5911_v31 = vsel %vm13449_vm14, %v13414_v39, %v5907_v16  ;;  %v10809_v39 = vld [vmem:[#allocation8 + $0x114] sm:$0xf0]  ;;  %v5944_v55 = vmul.f32 %v13465_v15, %v13410_v0  ;;  %v9749_v52 = vor.u32 %v10806_v42, %v9746_v28  ;;  %vm5887_vm4 = vmor %vm5885_vm0, %vm5886_vm1  ;;  %v10866_v28 = vld [vmem:[#allocation8 + $0x1e4] sm:$0xf] }
 0x961   :  { %v11425_v18 = vpop.eup %11424  ;;  %v5916_v56 = vsel %vm13454_vm15, %v5915_v46, %v5911_v31  ;;  %v5975_v20 = vmul.f32 %v11419_v53, %v5878_v11  ;;  %v5882_v30 = vsub.f32 1.0, %v5881_v40  ;;  %v9753_v19 = vor.u32 %v10809_v39, %v9752_v61  ;;  %v9992_v39 = vld [vmem:[#allocation8 + $0x1f0] sm:$0xf0] }
 0x962   :  { %v5973_v29 = vmul.f32 %v5916_v56, %v13361_v12  ;;  %v5919_v3 = vmul.f32 %v11425_v18, %v13426_v41  ;;  %v11427_v24 = vpop.eup %11426  ;;  %vm5924_vm2 = vweird.f32 %v11425_v18  ;;  %v5892_v46 = vor.u32 1.1754944e-38, %v5891_v1  ;;  %6217 = vmatpush.bf16.msrb.mxu1 %v9749_v52  ;;  %6245 = vmatpush.bf16.msrb.mxu3 %v9757_v57  ;;  %v10864_v57 = vld [vmem:[#allocation8 + $0x1cc] sm:$0xf0] }
 0x963   :  { %v5883_v12 = vmul.f32 %v13460_v60, %v5882_v30  ;;  %v5942_v48 = vadd.f32 1.0, %v11427_v24  ;;  %v11429_v27 = vpop.eup %11428  ;;  %v5945_v59 = vsub.f32 1.0, %v5944_v55  ;;  %vm5925_vm6 = vmor %vm5923_vm3, %vm5924_vm2  ;;  %6231 = vmatpush.bf16.msrb.mxu2 %v9753_v19  ;;  %vm5949_vm8 = vweird.f32 %v13465_v15  ;;  %v10869_v30 = vld [vmem:[#allocation8 + $0x1f4] sm:$0xf0]  ;;  %v9974_v19 = vld [vmem:[#allocation8 + $0x1c0] sm:$0xf] }
 0x964   :  { %v13482_v9 = vadd.f32 %v5975_v20, %v5973_v29  ;;  %v5920_v14 = vsub.f32 1.0, %v5919_v3  ;;  %vm5948_vm9 = vweird.f32 %v13410_v0  ;;  %v5955_v31 = vor.u32 1.1754944e-38, %v5954_v7  ;;  %v9998_v29 = vld [vmem:[#allocation8 + $0x1e8] sm:$0xf] }
 0x965   :  { %v5884_v33 = vadd.f32 %v13460_v60, %v5883_v12  ;;  %11430 = vrcp.f32 %v5942_v48  ;;  %v5946_v10 = vmul.f32 %v13465_v15, %v5945_v59  ;;  %v5969_v21 = vand.u32 2147483648, %v5942_v48  ;;  %vm5950_vm11 = vmor %vm5948_vm9, %vm5949_vm8  ;;  %v14210_v3 = vld [vmem:[#allocation21_spill] sm:$0xff] }
 0x966   :  { %v5921_v36 = vmul.f32 %v11425_v18, %v5920_v14  ;;  %11432 = vtanh.f32 %v13482_v9  ;;  %v5967_v17 = vand.u32 2147483647, %v5942_v48  ;;  %vm5963_vm12 = vweird.f32 %v5942_v48  ;;  %v9966_v7 = vld [vmem:[#allocation8 + $0x1a8] sm:$0xf] }
 0x967   :  { %v5888_v63 = vsel %vm5887_vm4, %v13460_v60, %v5884_v33  ;;  %v5947_v41 = vadd.f32 %v13465_v15, %v5946_v10  ;;  %v5970_v40 = vor.u32 1.1754944e-38, %v5969_v21  ;;  %v4146_v1 = vadd.f32 %v14210_v3, %v13010_v25  ;;  %v9976_v33 = vld [vmem:[#allocation8 + $0x1d0] sm:$0xf0]  ;;  %v10860_v10 = vld [vmem:[#allocation8 + $0x1ac] sm:$0xf0] }
 0x968   :  { %v5922_v58 = vadd.f32 %v11425_v18, %v5921_v36  ;;  %v5893_v49 = vsel %vm5890_vm5, %v5892_v46, %v5888_v63  ;;  %vm5968_vm15 = vcmp.eq.f32.partialorder %v5967_v17, 8.507059e+37  ;;  %v9995_v24 = vor.u32 %v10866_v28, %v9992_v39  ;;  %v10865_v46 = vld [vmem:[#allocation8 + $0x1d4] sm:$0xf0]  ;;  %v14214_v17 = vld [vmem:[#allocation26_spill] sm:$0xff]  ;;  %v10854_v28 = vld [vmem:[#allocation8 + $0x184] sm:$0xf] }
 0x969   :  { %v5976_v34 = vmul.f32 %v11429_v27, %v5893_v49  ;;  %v5951_v32 = vsel %vm5950_vm11, %v13465_v15, %v5947_v41  ;;  %v10868_v15 = vld [vmem:[#allocation8 + $0x1ec] sm:$0xf0]  ;;  %v9999_v55 = vor.u32 %v10869_v30, %v9998_v29  ;;  %v10003_v12 = vor.u32 %v10867_v5, %v10000_v47  ;;  %v10862_v27 = vld [vmem:[#allocation8 + $0x1c4] sm:$0xf]  ;;  %v10863_v49 = vld [vmem:[#allocation8 + $0x1cc] sm:$0xf] }
 0x96a   :  { %v5926_v53 = vsel %vm5925_vm6, %v11425_v18, %v5922_v58  ;;  %v9991_v61 = vor.u32 %v10868_v15, %v9990_v35  ;;  %6613 = vmatpush.bf16.msra.mxu1 %v9995_v24  ;;  %v9975_v36 = vor.u32 %v10864_v57, %v9974_v19  ;;  %v9979_v58 = vor.u32 %v10862_v27, %v9976_v33  ;;  %v10861_v21 = vld [vmem:[#allocation8 + $0x1b4] sm:$0xf0]  ;;  %v9942_v35 = vld [vmem:[#allocation8 + $0x180] sm:$0xf]  ;;  %v10856_v15 = vld [vmem:[#allocation8 + $0x18c] sm:$0xf0] }
 0x96b   :  { %v5931_v16 = vsel %vm5928_vm7, %v5930_v54, %v5926_v53  ;;  %v11431_v60 = vpop.eup %11430  ;;  %6627 = vmatpush.bf16.msra.mxu2 %v9999_v55  ;;  %6641 = vmatpush.bf16.msra.mxu3 %v10003_v12  ;;  %v9983_v54 = vor.u32 %v10865_v46, %v9982_v22  ;;  %v9984_v53 = vld [vmem:[#allocation8 + $0x1d8] sm:$0xf0]  ;;  %v9943_v39 = vor.u32 %v10856_v15, %v9942_v35  ;;  %v9944_v29 = vld [vmem:[#allocation8 + $0x190] sm:$0xf0]  ;;  %v9950_v30 = vld [vmem:[#allocation8 + $0x188] sm:$0xf] }
 0x96c   :  { %v5974_v2 = vmul.f32 %v5931_v16, %v13377_v50  ;;  %v5959_v45 = vmul.f32 %v11431_v60, %v5942_v48  ;;  %v5952_v50 = vand.u32 2147483647, %v13410_v0  ;;  %vm5964_vm10 = vweird.f32 %v11431_v60  ;;  %v11433_v11 = vpop.eup %11432  ;;  %6599 = vmatpush.bf16.msra.mxu0 %v9991_v61  ;;  %v9958_v16 = vld [vmem:[#allocation8 + $0x1a0] sm:$0xf]  ;;  %v10857_v24 = vld [vmem:[#allocation8 + $0x194] sm:$0xf0] }
 0x96d   :  { %vm5965_vm13 = vmor %vm5963_vm12, %vm5964_vm10  ;;  %v9959_v41 = vor.u32 %v10860_v10, %v9958_v16  ;;  %v9951_v47 = vor.u32 %v10857_v24, %v9950_v30  ;;  %v9926_v19 = vld [vmem:[#allocation8 + $0x160] sm:$0xf]  ;;  %v10852_v57 = vld [vmem:[#allocation8 + $0x16c] sm:$0xf0] }
 0x96e   :  { %v13498_v6 = vadd.f32 %v5976_v34, %v5974_v2  ;;  %v5960_v26 = vsub.f32 1.0, %v5959_v45  ;;  %vm5953_vm14 = vcmp.eq.f32.partialorder %v5952_v50, 8.507059e+37  ;;  %6614 = vmatpush.bf16.msra.mxu1 %v9979_v58  ;;  %v9987_v34 = vor.u32 %v10863_v49, %v9984_v53  ;;  %v10858_v2 = vld [vmem:[#allocation8 + $0x1a4] sm:$0xf]  ;;  %v14213_v50 = vld [vmem:[#allocation17_spill] sm:$0xff] }
 0x96f   :  { %v5956_v42 = vsel %vm5953_vm14, %v5955_v31, %v5951_v32  ;;  %6628 = vmatpush.bf16.msra.mxu2 %v9983_v54  ;;  %v9967_v31 = vor.u32 %v10861_v21, %v9966_v7  ;;  %v10850_v27 = vld [vmem:[#allocation8 + $0x164] sm:$0xf]  ;;  %v9927_v49 = vor.u32 %v10852_v57, %v9926_v19  ;;  %v10851_v53 = vld [vmem:[#allocation8 + $0x16c] sm:$0xf] }
 0x970   :  { %11434 = vtanh.f32 %v13498_v6  ;;  %v5961_v4 = vmul.f32 %v11431_v60, %v5960_v26  ;;  %v5981_v56 = vmul.f32 %v11433_v11, %v5956_v42  ;;  %6600 = vmatpush.bf16.msra.mxu0 %v9975_v36  ;;  %v9960_v26 = vld [vmem:[#allocation8 + $0x1b0] sm:$0xf0]  ;;  %6642 = vmatpush.bf16.msra.mxu3 %v9987_v34  ;;  %v14215_v33 = vld [vmem:[#allocation20_spill] sm:$0xff]  ;;  %v9936_v34 = vld [vmem:[#allocation8 + $0x178] sm:$0xf0] }
 0x971   :  { %v9963_v11 = vor.u32 %v10858_v2, %v9960_v26  ;;  %v9928_v36 = vld [vmem:[#allocation8 + $0x170] sm:$0xf0]  ;;  %v4244_v22 = vadd.f32 %v14215_v33, %v13033_v43  ;;  %v14216_v58 = vld [vmem:[#allocation24_spill] sm:$0xff]  ;;  %v10848_v26 = vld [vmem:[#allocation8 + $0x14c] sm:$0xf0] }
 0x972   :  { %v5962_v37 = vadd.f32 %v11431_v60, %v5961_v4  ;;  %v4148_v4 = vadd.f32 %v14213_v50, %v13010_v25  ;;  %v4295_v54 = vadd.f32 %v14216_v58, %v13022_v23  ;;  %v9931_v2 = vor.u32 %v10850_v27, %v9928_v36  ;;  %v10846_v7 = vld [vmem:[#allocation8 + $0x144] sm:$0xf] }
 0x973   :  { %6615 = vmatpush.bf16.msra.mxu1 %v9963_v11  ;;  %6629 = vmatpush.bf16.msra.mxu2 %v9967_v31  ;;  %v10842_v33 = vld [vmem:[#allocation8 + $0x124] sm:$0xf] }
 0x974   :  { %v5966_v44 = vsel %vm5965_vm13, %v11431_v60, %v5962_v37  ;;  %v14212_v60 = vld [vmem:[#allocation16_spill] sm:$0xff]  ;;  %v4197_v37 = vadd.f32 %v14214_v17, %v13013_v62  ;;  %6601 = vmatpush.bf16.msra.mxu0 %v9959_v41  ;;  %v9912_v17 = vld [vmem:[#allocation8 + $0x150] sm:$0xf0] }
 0x975   :  { %v5971_v18 = vsel %vm5968_vm15, %v5970_v40, %v5966_v44  ;;  %v4293_v45 = vadd.f32 %v14212_v60, %v13022_v23  ;;  %v10859_v40 = vld [vmem:[#allocation8 + $0x1ac] sm:$0xf]  ;;  %v9910_v41 = vld [vmem:[#allocation8 + $0x140] sm:$0xf] }
 0x976   :  { %v11435_v13 = vpop.eup %11434 }
 0x977   :  { %v5982_v0 = vmul.f32 %v11435_v13, %v5971_v18  ;;  %v9968_v13 = vld [vmem:[#allocation8 + $0x1b8] sm:$0xf0]  ;;  %6630 = vmatpush.bf16.msra.mxu2 %v9951_v47 }
 0x978   :  { %6602 = vmatpush.bf16.msra.mxu0 %v9943_v39 }
 0x979   :  { %v11008_v20 = vpack.c.bf16 %v5982_v0, %v5981_v56  ;;  %v9971_v56 = vor.u32 %v10859_v40, %v9968_v13  ;;  %v9915_v40 = vor.u32 %v10846_v7, %v9912_v17 }
 0x97b   :  { %11009 = vst [vmem:[#allocation4 + $0x10] sm:$0xff] %v11008_v20   ;;  %6204 = vmatmul.bf16.vlgmr.msrb.gmra.mxu0 %v11008_v20  ;;  %6218 = vmatmul.bf16.vlgmr.msrb.gmra.mxu1 %v11008_v20 }
 0x97c   :  { %6232 = vmatmul.bf16.vlgmr.msrb.gmra.mxu2 %v11008_v20  ;;  %6246 = vmatmul.bf16.vlgmr.msrb.gmra.mxu3 %v11008_v20 }
 0x97d   :  { %6643 = vmatpush.bf16.msra.mxu3 %v9971_v56  ;;  %6603 = vmatpush.bf16.msra.mxu0 %v9927_v49 }
 0x9f8   :  { %v6205_v51 = vpop.f32.mrf.mxu0  ;;  %v6219_v14 = vpop.f32.mrf.mxu1 }
 0x9f9   :  { %v6252_v48 = vadd.f32 %v6205_v51, %v4146_v1  ;;  %v6253_v52 = vadd.f32 %v6219_v14, %v4195_v8  ;;  %v9947_v8 = vor.u32 %v10854_v28, %v9944_v29  ;;  %v10855_v51 = vld [vmem:[#allocation8 + $0x18c] sm:$0xf]  ;;  %v9952_v14 = vld [vmem:[#allocation8 + $0x198] sm:$0xf0] }
 0x9fb   :  { %v9870_v59 = vmul.f32 -1.442695, %v6252_v48  ;;  %v9872_v63 = vmul.f32 -1.442695, %v6253_v52  ;;  %6616 = vmatpush.bf16.msra.mxu1 %v9947_v8  ;;  %v9955_v52 = vor.u32 %v10855_v51, %v9952_v14  ;;  %v9920_v14 = vld [vmem:[#allocation8 + $0x158] sm:$0xf0] }
 0x9fd   :  { %11436 = vpow2.f32 %v9870_v59  ;;  %6644 = vmatpush.bf16.msra.mxu3 %v9955_v52  ;;  %v9934_v59 = vld [vmem:[#allocation8 + $0x168] sm:$0xf]  ;;  %v10844_v52 = vld [vmem:[#allocation8 + $0x12c] sm:$0xf0] }
 0x9fe   :  { %11438 = vpow2.f32 %v9872_v63  ;;  %v10853_v63 = vld [vmem:[#allocation8 + $0x174] sm:$0xf0] }
 0x9ff   :  { %v6247_v32 = vpop.f32.mrf.mxu3  ;;  %v6233_v48 = vpop.f32.mrf.mxu2  ;;  %v9935_v60 = vor.u32 %v10853_v63, %v9934_v59  ;;  %6617 = vmatpush.bf16.msra.mxu1 %v9931_v2  ;;  %v10843_v2 = vld [vmem:[#allocation8 + $0x12c] sm:$0xf] }
 0xa00   :  { %v6255_v44 = vadd.f32 %v6247_v32, %v4293_v45  ;;  %v6207_v42 = vpop.f32.mrf.mxu0  ;;  %v6221_v18 = vpop.f32.mrf.mxu1  ;;  %v6254_v10 = vadd.f32 %v6233_v48, %v4244_v22  ;;  %v9939_v45 = vor.u32 %v10851_v53, %v9936_v34  ;;  %v9894_v48 = vld [vmem:[#allocation8 + $0x120] sm:$0xf]  ;;  %v9896_v22 = vld [vmem:[#allocation8 + $0x130] sm:$0xf0] }
 0xa01   :  { %v6256_v0 = vadd.f32 %v6207_v42, %v4148_v4  ;;  %v6257_v20 = vadd.f32 %v6221_v18, %v4197_v37  ;;  %v9911_v4 = vor.u32 %v10848_v26, %v9910_v41  ;;  %6631 = vmatpush.bf16.msra.mxu2 %v9935_v60  ;;  %v9904_v60 = vld [vmem:[#allocation8 + $0x138] sm:$0xf0] }
 0xa02   :  { %v9874_v61 = vmul.f32 -1.442695, %v6255_v44  ;;  %v14217_v44 = vld [vmem:[#allocation22_spill] sm:$0xff]  ;;  %6645 = vmatpush.bf16.msra.mxu3 %v9939_v45 }
 0xa03   :  { %v11437_v3 = vpop.eup %11436  ;;  %v9871_v1 = vmul.f32 -1.442695, %v6256_v0  ;;  %v9873_v38 = vmul.f32 -1.442695, %v6257_v20  ;;  %v4246_v42 = vadd.f32 %v14217_v44, %v13033_v43  ;;  %6604 = vmatpush.bf16.msra.mxu0 %v9911_v4  ;;  %6618 = vmatpush.bf16.msra.mxu1 %v9915_v40  ;;  %v10838_v4 = vld [vmem:[#allocation8 + $0x104] sm:$0xf]  ;;  %v9899_v40 = vor.u32 %v10842_v33, %v9896_v22 }
 0xa04   :  { %v11439_v55 = vpop.eup %11438  ;;  %v13518_v5 = vadd.f32 1.0, %v11437_v3  ;;  %11440 = vpow2.f32 %v9874_v61  ;;  %v9880_v44 = vld [vmem:[#allocation8 + $0x110] sm:$0xf0] }
 0xa05   :  { %v13520_v12 = vadd.f32 1.0, %v11439_v55  ;;  %11442 = vpow2.f32 %v9871_v1  ;;  %v9918_v1 = vld [vmem:[#allocation8 + $0x148] sm:$0xf]  ;;  %v10847_v55 = vld [vmem:[#allocation8 + $0x14c] sm:$0xf] }
 0xa06   :  { %11444 = vrcp.f32 %v13518_v5  ;;  %v6277_v32 = vand.u32 2147483647, %v13518_v5  ;;  %v6279_v56 = vand.u32 2147483648, %v13518_v5  ;;  %vm6273_vm4 = vweird.f32 %v13518_v5 }
 0xa07   :  { %11446 = vrcp.f32 %v13520_v12  ;;  %v6249_v46 = vpop.f32.mrf.mxu3  ;;  %v6317_v35 = vand.u32 2147483648, %v13520_v12  ;;  %v6315_v15 = vand.u32 2147483647, %v13520_v12  ;;  %v6235_v39 = vpop.f32.mrf.mxu2  ;;  %vm6311_vm3 = vweird.f32 %v13520_v12  ;;  %6619 = vmatpush.bf16.msra.mxu1 %v9899_v40  ;;  %v10124_v40 = vld [vmem:[#allocation8 + $0x1e0] sm:$0xf] }
 0xa08   :  { %11448 = vpow2.f32 %v9873_v38  ;;  %v6259_v50 = vadd.f32 %v6249_v46, %v4295_v54  ;;  %vm13550_vm1 = vcmp.eq.f32.partialorder %v6277_v32, 8.507059e+37  ;;  %v10849_v38 = vld [vmem:[#allocation8 + $0x154] sm:$0xf0]  ;;  %v6280_v24 = vor.u32 1.1754944e-38, %v6279_v56  ;;  %v9902_v54 = vld [vmem:[#allocation8 + $0x128] sm:$0xf] }
 0xa09   :  { %11450 = vtanh.f32 %v6254_v10  ;;  %v6258_v51 = vadd.f32 %v6235_v39, %v4246_v42  ;;  %v6318_v19 = vor.u32 1.1754944e-38, %v6317_v35  ;;  %v9919_v36 = vor.u32 %v10849_v38, %v9918_v1  ;;  %v10845_v10 = vld [vmem:[#allocation8 + $0x134] sm:$0xf0]  ;;  %v9886_v42 = vld [vmem:[#allocation8 + $0x108] sm:$0xf] }
 0xa0a   :  { %v11441_v16 = vpop.eup %11440  ;;  %v9875_v29 = vmul.f32 -1.442695, %v6259_v50  ;;  %vm13575_vm7 = vcmp.eq.f32.partialorder %v6315_v15, 8.507059e+37  ;;  %v9923_v34 = vor.u32 %v10847_v55, %v9920_v14  ;;  %v10840_v50 = vld [vmem:[#allocation8 + $0x10c] sm:$0xf0] }
 0xa0b   :  { %v11443_v21 = vpop.eup %11442  ;;  %v13531_v11 = vadd.f32 1.0, %v11441_v16  ;;  %6632 = vmatpush.bf16.msra.mxu2 %v9919_v36  ;;  %v9895_v16 = vor.u32 %v10844_v52, %v9894_v48  ;;  %v10839_v35 = vld [vmem:[#allocation8 + $0x10c] sm:$0xf]  ;;  %v9888_v15 = vld [vmem:[#allocation8 + $0x118] sm:$0xf0] }
 0xa0c   :  { %v13528_v37 = vpop.eup %11444  ;;  %v13533_v31 = vadd.f32 1.0, %v11443_v21  ;;  %v9878_v21 = vld [vmem:[#allocation8 + $0x100] sm:$0xf]  ;;  %6646 = vmatpush.bf16.msra.mxu3 %v9923_v34 }
 0xa0d   :  { %v13535_v13 = vpop.eup %11446  ;;  %v6269_v18 = vmul.f32 %v13528_v37, %v13518_v5  ;;  %vm6274_vm0 = vweird.f32 %v13528_v37  ;;  %6605 = vmatpush.bf16.msra.mxu0 %v9895_v16  ;;  %v9879_v3 = vor.u32 %v10840_v50, %v9878_v21 }
 0xa0e   :  { %v11449_v0 = vpop.eup %11448  ;;  %v6307_v20 = vmul.f32 %v13535_v13, %v13520_v12  ;;  %11452 = vrcp.f32 %v13533_v31  ;;  %vm6312_vm2 = vweird.f32 %v13535_v13  ;;  %vm13564_vm5 = vmor %vm6273_vm4, %vm6274_vm0  ;;  %v6292_v58 = vand.u32 2147483647, %v13533_v31 }
 0xa0f   :  { %v6270_v28 = vsub.f32 1.0, %v6269_v18  ;;  %v13547_v61 = vadd.f32 1.0, %v11449_v0  ;;  %11454 = vrcp.f32 %v13531_v11  ;;  %v11451_v12 = vpop.eup %11450  ;;  %vm13570_vm6 = vmor %vm6311_vm3, %vm6312_vm2  ;;  %vm6288_vm8 = vweird.f32 %v13533_v31 }
 0xa10   :  { %v6308_v30 = vsub.f32 1.0, %v6307_v20  ;;  %v6294_v20 = vand.u32 2147483648, %v13533_v31  ;;  %vm6293_vm13 = vcmp.eq.f32.partialorder %v6292_v58, 8.507059e+37  ;;  %v6357_v58 = vand.u32 2147483648, %v13531_v11 }
 0xa11   :  { %v6271_v8 = vmul.f32 %v13528_v37, %v6270_v28  ;;  %11456 = vrcp.f32 %v13547_v61  ;;  %v6332_v63 = vand.u32 2147483648, %v13547_v61  ;;  %v6330_v52 = vand.u32 2147483647, %v13547_v61  ;;  %6606 = vmatpush.bf16.msra.mxu0 %v9879_v3 }
 0xa12   :  { %v6309_v47 = vmul.f32 %v13535_v13, %v6308_v30  ;;  %11458 = vpow2.f32 %v9875_v29  ;;  %v9903_v29 = vor.u32 %v10845_v10, %v9902_v54  ;;  %v9907_v30 = vor.u32 %v10843_v2, %v9904_v60 }
 0xa13   :  { %v6272_v57 = vadd.f32 %v13528_v37, %v6271_v8  ;;  %11460 = vtanh.f32 %v6258_v51  ;;  %vm6326_vm11 = vweird.f32 %v13547_v61  ;;  %v6333_v33 = vor.u32 1.1754944e-38, %v6332_v63 }
 0xa14   :  { %v6310_v46 = vadd.f32 %v13535_v13, %v6309_v47  ;;  %v13581_v49 = vpop.eup %11452  ;;  %6633 = vmatpush.bf16.msra.mxu2 %v9903_v29  ;;  %6647 = vmatpush.bf16.msra.mxu3 %v9907_v30  ;;  %v9891_v47 = vor.u32 %v10839_v35, %v9888_v15  ;;  %vm6331_vm15 = vcmp.eq.f32.partialorder %v6330_v52, 8.507059e+37  ;;  %v14227_v35 = vld [vmem:[#allocation29_spill] sm:$0xff]  ;;  %v10134_v30 = vld [vmem:[#allocation8 + $0x1f8] sm:$0xf0] }
 0xa15   :  { %v6276_v53 = vsel %vm13564_vm5, %v13528_v37, %v6272_v57  ;;  %v13586_v45 = vpop.eup %11454  ;;  %v6284_v7 = vmul.f32 %v13581_v49, %v13533_v31  ;;  %vm6289_vm9 = vweird.f32 %v13581_v49  ;;  %v4200_v15 = vadd.f32 %v14227_v35, %v13013_v62  ;;  %v10899_v29 = vld [vmem:[#allocation8 + $0x1ec] sm:$0xf]  ;;  %v10116_v52 = vld [vmem:[#allocation8 + $0x1c8] sm:$0xf] }
 0xa16   :  { %v6281_v41 = vsel %vm13550_vm1, %v6280_v24, %v6276_v53  ;;  %v6314_v26 = vsel %vm13570_vm6, %v13535_v13, %v6310_v46  ;;  %v10841_v13 = vld [vmem:[#allocation8 + $0x114] sm:$0xf0]  ;;  %v6347_v39 = vmul.f32 %v13586_v45, %v13531_v11  ;;  %v9883_v24 = vor.u32 %v10838_v4, %v9880_v44  ;;  %vm6290_vm12 = vmor %vm6288_vm8, %vm6289_vm9  ;;  %v10898_v44 = vld [vmem:[#allocation8 + $0x1e4] sm:$0xf] }
 0xa17   :  { %v11457_v17 = vpop.eup %11456  ;;  %v6319_v37 = vsel %vm13575_vm7, %v6318_v19, %v6314_v26  ;;  %v6378_v32 = vmul.f32 %v11451_v12, %v6281_v41  ;;  %v6285_v56 = vsub.f32 1.0, %v6284_v7  ;;  %v9887_v55 = vor.u32 %v10841_v13, %v9886_v42  ;;  %v10126_v13 = vld [vmem:[#allocation8 + $0x1f0] sm:$0xf0] }
 0xa18   :  { %v6376_v18 = vmul.f32 %v6319_v37, %v13482_v9  ;;  %v6322_v0 = vmul.f32 %v11457_v17, %v13547_v61  ;;  %v11459_v28 = vpop.eup %11458  ;;  %vm6327_vm10 = vweird.f32 %v11457_v17  ;;  %v6295_v19 = vor.u32 1.1754944e-38, %v6294_v20  ;;  %6620 = vmatpush.bf16.msra.mxu1 %v9883_v24  ;;  %6648 = vmatpush.bf16.msra.mxu3 %v9891_v47  ;;  %v10896_v47 = vld [vmem:[#allocation8 + $0x1cc] sm:$0xf0] }
 0xa19   :  { %v6286_v9 = vmul.f32 %v13581_v49, %v6285_v56  ;;  %v6345_v8 = vadd.f32 1.0, %v11459_v28  ;;  %v11461_v51 = vpop.eup %11460  ;;  %v6348_v57 = vsub.f32 1.0, %v6347_v39  ;;  %vm6328_vm14 = vmor %vm6326_vm11, %vm6327_vm10  ;;  %6634 = vmatpush.bf16.msra.mxu2 %v9887_v55  ;;  %vm6352_vm0 = vweird.f32 %v13586_v45  ;;  %v10901_v56 = vld [vmem:[#allocation8 + $0x1f4] sm:$0xf0]  ;;  %v10108_v55 = vld [vmem:[#allocation8 + $0x1c0] sm:$0xf] }
 0xa1a   :  { %v13603_v1 = vadd.f32 %v6378_v32, %v6376_v18  ;;  %v6323_v38 = vsub.f32 1.0, %v6322_v0  ;;  %vm6351_vm1 = vweird.f32 %v13531_v11  ;;  %v6358_v26 = vor.u32 1.1754944e-38, %v6357_v58  ;;  %v10132_v18 = vld [vmem:[#allocation8 + $0x1e8] sm:$0xf]  ;;  %v14226_v0 = vld [vmem:[#allocation27_spill] sm:$0xff] }
 0xa1b   :  { %v6287_v48 = vadd.f32 %v13581_v49, %v6286_v9  ;;  %11462 = vrcp.f32 %v6345_v8  ;;  %v6349_v59 = vmul.f32 %v13586_v45, %v6348_v57  ;;  %v6372_v34 = vand.u32 2147483648, %v6345_v8  ;;  %vm6353_vm3 = vmor %vm6351_vm1, %vm6352_vm0  ;;  %v10100_v58 = vld [vmem:[#allocation8 + $0x1a8] sm:$0xf] }
 0xa1c   :  { %v6324_v14 = vmul.f32 %v11457_v17, %v6323_v38  ;;  %11464 = vtanh.f32 %v13603_v1  ;;  %v6370_v10 = vand.u32 2147483647, %v6345_v8  ;;  %vm6366_vm4 = vweird.f32 %v6345_v8 }
 0xa1d   :  { %v6291_v27 = vsel %vm6290_vm12, %v13581_v49, %v6287_v48  ;;  %v6350_v61 = vadd.f32 %v13586_v45, %v6349_v59  ;;  %v6373_v7 = vor.u32 1.1754944e-38, %v6372_v34  ;;  %v4151_v20 = vadd.f32 %v14226_v0, %v13010_v25  ;;  %v10110_v48 = vld [vmem:[#allocation8 + $0x1d0] sm:$0xf0]  ;;  %v10892_v59 = vld [vmem:[#allocation8 + $0x1ac] sm:$0xf0] }
 0xa1e   :  { %v6325_v36 = vadd.f32 %v11457_v17, %v6324_v14  ;;  %v6296_v22 = vsel %vm6293_vm13, %v6295_v19, %v6291_v27  ;;  %vm6371_vm7 = vcmp.eq.f32.partialorder %v6370_v10, 8.507059e+37  ;;  %v10129_v28 = vor.u32 %v10898_v44, %v10126_v13  ;;  %v10897_v19 = vld [vmem:[#allocation8 + $0x1d4] sm:$0xf0]  ;;  %v14230_v10 = vld [vmem:[#allocation32_spill] sm:$0xff] }
 0xa1f   :  { %v6379_v5 = vmul.f32 %v11461_v51, %v6296_v22  ;;  %v6354_v60 = vsel %vm6353_vm3, %v13586_v45, %v6350_v61  ;;  %v10900_v45 = vld [vmem:[#allocation8 + $0x1ec] sm:$0xf0]  ;;  %v10133_v39 = vor.u32 %v10901_v56, %v10132_v18  ;;  %v10137_v9 = vor.u32 %v10899_v29, %v10134_v30  ;;  %v10894_v51 = vld [vmem:[#allocation8 + $0x1c4] sm:$0xf]  ;;  %v10895_v22 = vld [vmem:[#allocation8 + $0x1cc] sm:$0xf] }
 0xa20   :  { %v6329_v12 = vsel %vm6328_vm14, %v11457_v17, %v6325_v36  ;;  %v10125_v42 = vor.u32 %v10900_v45, %v10124_v40  ;;  %7016 = vmatpush.bf16.msrb.mxu1 %v10129_v28  ;;  %v10109_v14 = vor.u32 %v10896_v47, %v10108_v55  ;;  %v10113_v36 = vor.u32 %v10894_v51, %v10110_v48  ;;  %v10893_v34 = vld [vmem:[#allocation8 + $0x1b4] sm:$0xf0]  ;;  %v10076_v40 = vld [vmem:[#allocation8 + $0x180] sm:$0xf]  ;;  %v10888_v45 = vld [vmem:[#allocation8 + $0x18c] sm:$0xf0] }
 0xa21   :  { %v6334_v46 = vsel %vm6331_vm15, %v6333_v33, %v6329_v12  ;;  %v11463_v49 = vpop.eup %11462  ;;  %7030 = vmatpush.bf16.msrb.mxu2 %v10133_v39  ;;  %7044 = vmatpush.bf16.msrb.mxu3 %v10137_v9  ;;  %v10117_v33 = vor.u32 %v10897_v19, %v10116_v52  ;;  %v10118_v12 = vld [vmem:[#allocation8 + $0x1d8] sm:$0xf0]  ;;  %v10886_v44 = vld [vmem:[#allocation8 + $0x184] sm:$0xf]  ;;  %v10077_v13 = vor.u32 %v10888_v45, %v10076_v40  ;;  %v10078_v18 = vld [vmem:[#allocation8 + $0x190] sm:$0xf0] }
 0xa22   :  { %v6377_v54 = vmul.f32 %v6334_v46, %v13498_v6  ;;  %v6362_v31 = vmul.f32 %v11463_v49, %v6345_v8  ;;  %v6355_v6 = vand.u32 2147483647, %v13531_v11  ;;  %vm6367_vm2 = vweird.f32 %v11463_v49  ;;  %v11465_v41 = vpop.eup %11464  ;;  %7002 = vmatpush.bf16.msrb.mxu0 %v10125_v42  ;;  %v10092_v46 = vld [vmem:[#allocation8 + $0x1a0] sm:$0xf]  ;;  %v10084_v56 = vld [vmem:[#allocation8 + $0x188] sm:$0xf] }
 0xa23   :  { %vm6368_vm5 = vmor %vm6366_vm4, %vm6367_vm2  ;;  %v10093_v61 = vor.u32 %v10892_v59, %v10092_v46  ;;  %v10889_v28 = vld [vmem:[#allocation8 + $0x194] sm:$0xf0]  ;;  %v10060_v55 = vld [vmem:[#allocation8 + $0x160] sm:$0xf] }
 0xa24   :  { %v13619_v53 = vadd.f32 %v6379_v5, %v6377_v54  ;;  %v6363_v63 = vsub.f32 1.0, %v6362_v31  ;;  %vm6356_vm6 = vcmp.eq.f32.partialorder %v6355_v6, 8.507059e+37  ;;  %7017 = vmatpush.bf16.msrb.mxu1 %v10113_v36  ;;  %v10121_v5 = vor.u32 %v10895_v22, %v10118_v12  ;;  %v10890_v54 = vld [vmem:[#allocation8 + $0x1a4] sm:$0xf]  ;;  %v14229_v6 = vld [vmem:[#allocation13_spill] sm:$0xff]  ;;  %v14232_v36 = vld [vmem:[#allocation30_spill] sm:$0xff] }
 0xa25   :  { %v6359_v4 = vsel %vm6356_vm6, %v6358_v26, %v6354_v60  ;;  %7031 = vmatpush.bf16.msrb.mxu2 %v10117_v33  ;;  %v10101_v26 = vor.u32 %v10893_v34, %v10100_v58  ;;  %v10085_v30 = vor.u32 %v10889_v28, %v10084_v56  ;;  %v10884_v47 = vld [vmem:[#allocation8 + $0x16c] sm:$0xf0]  ;;  %v10882_v51 = vld [vmem:[#allocation8 + $0x164] sm:$0xf]  ;;  %v14231_v48 = vld [vmem:[#allocation25_spill] sm:$0xff]  ;;  %v4300_v33 = vadd.f32 %v14232_v36, %v13022_v23 }
 0xa26   :  { %11466 = vtanh.f32 %v13619_v53  ;;  %v6364_v16 = vmul.f32 %v11463_v49, %v6363_v63  ;;  %v6384_v37 = vmul.f32 %v11465_v41, %v6359_v4  ;;  %7003 = vmatpush.bf16.msrb.mxu0 %v10109_v14  ;;  %v10094_v63 = vld [vmem:[#allocation8 + $0x1b0] sm:$0xf0]  ;;  %7045 = vmatpush.bf16.msrb.mxu3 %v10121_v5  ;;  %v4249_v52 = vadd.f32 %v14231_v48, %v13033_v43  ;;  %v10883_v12 = vld [vmem:[#allocation8 + $0x16c] sm:$0xf]  ;;  %v10070_v5 = vld [vmem:[#allocation8 + $0x178] sm:$0xf0] }
 0xa27   :  { %v10097_v41 = vor.u32 %v10890_v54, %v10094_v63  ;;  %v10062_v14 = vld [vmem:[#allocation8 + $0x170] sm:$0xf0]  ;;  %v10061_v22 = vor.u32 %v10884_v47, %v10060_v55  ;;  %v10880_v63 = vld [vmem:[#allocation8 + $0x14c] sm:$0xf0]  ;;  %v10878_v58 = vld [vmem:[#allocation8 + $0x144] sm:$0xf] }
 0xa28   :  { %v6365_v2 = vadd.f32 %v11463_v49, %v6364_v16  ;;  %v4153_v16 = vadd.f32 %v14229_v6, %v13010_v25  ;;  %v10065_v54 = vor.u32 %v10882_v51, %v10062_v14  ;;  %v10874_v48 = vld [vmem:[#allocation8 + $0x124] sm:$0xf] }
 0xa29   :  { %7018 = vmatpush.bf16.msrb.mxu1 %v10097_v41  ;;  %7032 = vmatpush.bf16.msrb.mxu2 %v10101_v26 }
 0xa2a   :  { %v6369_v50 = vsel %vm6368_vm5, %v11463_v49, %v6365_v2  ;;  %v14228_v49 = vld [vmem:[#allocation12_spill] sm:$0xff]  ;;  %v4202_v2 = vadd.f32 %v14230_v10, %v13013_v62  ;;  %7004 = vmatpush.bf16.msrb.mxu0 %v10093_v61  ;;  %v10046_v10 = vld [vmem:[#allocation8 + $0x150] sm:$0xf0] }
 0xa2b   :  { %v6374_v17 = vsel %vm6371_vm7, %v6373_v7, %v6369_v50  ;;  %v4298_v31 = vadd.f32 %v14228_v49, %v13022_v23  ;;  %v10891_v7 = vld [vmem:[#allocation8 + $0x1ac] sm:$0xf]  ;;  %v10044_v61 = vld [vmem:[#allocation8 + $0x140] sm:$0xf] }
 0xa2c   :  { %v11467_v21 = vpop.eup %11466 }
 0xa2d   :  { %v6385_v11 = vmul.f32 %v11467_v21, %v6374_v17  ;;  %v10102_v21 = vld [vmem:[#allocation8 + $0x1b8] sm:$0xf0]  ;;  %7033 = vmatpush.bf16.msrb.mxu2 %v10085_v30 }
 0xa2e   :  { %7005 = vmatpush.bf16.msrb.mxu0 %v10077_v13 }
 0xa2f   :  { %v11013_v32 = vpack.c.bf16 %v6385_v11, %v6384_v37  ;;  %v10105_v37 = vor.u32 %v10891_v7, %v10102_v21  ;;  %v10049_v7 = vor.u32 %v10878_v58, %v10046_v10 }
 0xa31   :  { %11014 = vst [vmem:[#allocation4 + $0x8] sm:$0xff] %v11013_v32   ;;  %6607 = vmatmul.bf16.vlgmr.msra.gmra.mxu0 %v11013_v32  ;;  %6621 = vmatmul.bf16.vlgmr.msra.gmra.mxu1 %v11013_v32 }
 0xa32   :  { %6635 = vmatmul.bf16.vlgmr.msra.gmra.mxu2 %v11013_v32  ;;  %6649 = vmatmul.bf16.vlgmr.msra.gmra.mxu3 %v11013_v32 }
 0xa33   :  { %7046 = vmatpush.bf16.msrb.mxu3 %v10105_v37  ;;  %7006 = vmatpush.bf16.msrb.mxu0 %v10061_v22 }
 0xaae   :  { %v6608_v3 = vpop.f32.mrf.mxu0  ;;  %v6622_v38 = vpop.f32.mrf.mxu1 }
 0xaaf   :  { %v6655_v8 = vadd.f32 %v6608_v3, %v4151_v20  ;;  %v6656_v24 = vadd.f32 %v6622_v38, %v4200_v15  ;;  %v10081_v15 = vor.u32 %v10886_v44, %v10078_v18  ;;  %v10887_v3 = vld [vmem:[#allocation8 + $0x18c] sm:$0xf]  ;;  %v10086_v38 = vld [vmem:[#allocation8 + $0x198] sm:$0xf0] }
 0xab1   :  { %v10004_v57 = vmul.f32 -1.442695, %v6655_v8  ;;  %v10006_v27 = vmul.f32 -1.442695, %v6656_v24  ;;  %7019 = vmatpush.bf16.msrb.mxu1 %v10081_v15  ;;  %v10089_v24 = vor.u32 %v10887_v3, %v10086_v38  ;;  %v10054_v38 = vld [vmem:[#allocation8 + $0x158] sm:$0xf0] }
 0xab3   :  { %11468 = vpow2.f32 %v10004_v57  ;;  %7047 = vmatpush.bf16.msrb.mxu3 %v10089_v24  ;;  %v10068_v57 = vld [vmem:[#allocation8 + $0x168] sm:$0xf]  ;;  %v10876_v24 = vld [vmem:[#allocation8 + $0x12c] sm:$0xf0] }
 0xab4   :  { %11470 = vpow2.f32 %v10006_v27  ;;  %v10885_v27 = vld [vmem:[#allocation8 + $0x174] sm:$0xf0] }
 0xab5   :  { %v6650_v60 = vpop.f32.mrf.mxu3  ;;  %v6636_v8 = vpop.f32.mrf.mxu2  ;;  %v10069_v49 = vor.u32 %v10885_v27, %v10068_v57  ;;  %7020 = vmatpush.bf16.msrb.mxu1 %v10065_v54  ;;  %v10875_v54 = vld [vmem:[#allocation8 + $0x12c] sm:$0xf] }
 0xab6   :  { %v6658_v50 = vadd.f32 %v6650_v60, %v4298_v31  ;;  %v6610_v4 = vpop.f32.mrf.mxu0  ;;  %v6624_v17 = vpop.f32.mrf.mxu1  ;;  %v6657_v59 = vadd.f32 %v6636_v8, %v4249_v52  ;;  %v10073_v31 = vor.u32 %v10883_v12, %v10070_v5  ;;  %v10028_v8 = vld [vmem:[#allocation8 + $0x120] sm:$0xf]  ;;  %v10030_v52 = vld [vmem:[#allocation8 + $0x130] sm:$0xf0] }
 0xab7   :  { %v6659_v11 = vadd.f32 %v6610_v4, %v4153_v16  ;;  %v6660_v32 = vadd.f32 %v6624_v17, %v4202_v2  ;;  %v10045_v16 = vor.u32 %v10880_v63, %v10044_v61  ;;  %7034 = vmatpush.bf16.msrb.mxu2 %v10069_v49  ;;  %v10038_v49 = vld [vmem:[#allocation8 + $0x138] sm:$0xf0] }
 0xab8   :  { %v10008_v42 = vmul.f32 -1.442695, %v6658_v50  ;;  %v14233_v50 = vld [vmem:[#allocation28_spill] sm:$0xff]  ;;  %7048 = vmatpush.bf16.msrb.mxu3 %v10073_v31 }
 0xab9   :  { %v11469_v0 = vpop.eup %11468  ;;  %v10005_v20 = vmul.f32 -1.442695, %v6659_v11  ;;  %v10007_v35 = vmul.f32 -1.442695, %v6660_v32  ;;  %v4251_v4 = vadd.f32 %v14233_v50, %v13033_v43  ;;  %7007 = vmatpush.bf16.msrb.mxu0 %v10045_v16  ;;  %7021 = vmatpush.bf16.msrb.mxu1 %v10049_v7  ;;  %v10870_v16 = vld [vmem:[#allocation8 + $0x104] sm:$0xf]  ;;  %v10033_v7 = vor.u32 %v10874_v48, %v10030_v52 }
 0xaba   :  { %v11471_v39 = vpop.eup %11470  ;;  %v13639_v29 = vadd.f32 1.0, %v11469_v0  ;;  %11472 = vpow2.f32 %v10008_v42  ;;  %v10014_v50 = vld [vmem:[#allocation8 + $0x110] sm:$0xf0] }
 0xabb   :  { %v13641_v9 = vadd.f32 1.0, %v11471_v39  ;;  %11474 = vpow2.f32 %v10005_v20  ;;  %v10052_v20 = vld [vmem:[#allocation8 + $0x148] sm:$0xf]  ;;  %v10879_v39 = vld [vmem:[#allocation8 + $0x14c] sm:$0xf] }
 0xabc   :  { %11476 = vrcp.f32 %v13639_v29  ;;  %v6680_v60 = vand.u32 2147483647, %v13639_v29  ;;  %v6682_v37 = vand.u32 2147483648, %v13639_v29  ;;  %vm6676_vm12 = vweird.f32 %v13639_v29 }
 0xabd   :  { %11478 = vrcp.f32 %v13641_v9  ;;  %v6652_v19 = vpop.f32.mrf.mxu3  ;;  %v6720_v40 = vand.u32 2147483648, %v13641_v9  ;;  %v6718_v45 = vand.u32 2147483647, %v13641_v9  ;;  %v6638_v13 = vpop.f32.mrf.mxu2  ;;  %vm6714_vm11 = vweird.f32 %v13641_v9  ;;  %7022 = vmatpush.bf16.msrb.mxu1 %v10033_v7  ;;  %v10258_v7 = vld [vmem:[#allocation8 + $0x1e0] sm:$0xf] }
 0xabe   :  { %11480 = vpow2.f32 %v10007_v35  ;;  %v6662_v6 = vadd.f32 %v6652_v19, %v4300_v33  ;;  %vm13671_vm9 = vcmp.eq.f32.partialorder %v6680_v60, 8.507059e+37  ;;  %v10881_v35 = vld [vmem:[#allocation8 + $0x154] sm:$0xf0]  ;;  %v6683_v28 = vor.u32 1.1754944e-38, %v6682_v37  ;;  %v10036_v33 = vld [vmem:[#allocation8 + $0x128] sm:$0xf] }
 0xabf   :  { %11482 = vtanh.f32 %v6657_v59  ;;  %v6661_v3 = vadd.f32 %v6638_v13, %v4251_v4  ;;  %v6721_v55 = vor.u32 1.1754944e-38, %v6720_v40  ;;  %v10053_v14 = vor.u32 %v10881_v35, %v10052_v20  ;;  %v10877_v59 = vld [vmem:[#allocation8 + $0x134] sm:$0xf0]  ;;  %v10020_v4 = vld [vmem:[#allocation8 + $0x108] sm:$0xf] }
 0xac0   :  { %v11473_v46 = vpop.eup %11472  ;;  %v10009_v18 = vmul.f32 -1.442695, %v6662_v6  ;;  %vm13696_vm15 = vcmp.eq.f32.partialorder %v6718_v45, 8.507059e+37  ;;  %v10057_v5 = vor.u32 %v10879_v39, %v10054_v38  ;;  %v10872_v6 = vld [vmem:[#allocation8 + $0x10c] sm:$0xf0] }
 0xac1   :  { %v11475_v34 = vpop.eup %11474  ;;  %v13652_v41 = vadd.f32 1.0, %v11473_v46  ;;  %7035 = vmatpush.bf16.msrb.mxu2 %v10053_v14  ;;  %v10029_v46 = vor.u32 %v10876_v24, %v10028_v8  ;;  %v10871_v40 = vld [vmem:[#allocation8 + $0x10c] sm:$0xf]  ;;  %v10022_v45 = vld [vmem:[#allocation8 + $0x118] sm:$0xf0] }
 0xac2   :  { %v13649_v2 = vpop.eup %11476  ;;  %v13654_v26 = vadd.f32 1.0, %v11475_v34  ;;  %v10012_v34 = vld [vmem:[#allocation8 + $0x100] sm:$0xf]  ;;  %7049 = vmatpush.bf16.msrb.mxu3 %v10057_v5 }
 0xac3   :  { %v13656_v21 = vpop.eup %11478  ;;  %v6672_v17 = vmul.f32 %v13649_v2, %v13639_v29  ;;  %vm6677_vm8 = vweird.f32 %v13649_v2  ;;  %7008 = vmatpush.bf16.msrb.mxu0 %v10029_v46  ;;  %v10013_v0 = vor.u32 %v10872_v6, %v10012_v34 }
 0xac4   :  { %v11481_v11 = vpop.eup %11480  ;;  %v6710_v32 = vmul.f32 %v13656_v21, %v13641_v9  ;;  %11484 = vrcp.f32 %v13654_v26  ;;  %vm6715_vm10 = vweird.f32 %v13656_v21  ;;  %vm13685_vm13 = vmor %vm6676_vm12, %vm6677_vm8  ;;  %v6695_v36 = vand.u32 2147483647, %v13654_v26 }
 0xac5   :  { %v6673_v44 = vsub.f32 1.0, %v6672_v17  ;;  %v13668_v42 = vadd.f32 1.0, %v11481_v11  ;;  %11486 = vrcp.f32 %v13652_v41  ;;  %v11483_v9 = vpop.eup %11482  ;;  %vm13691_vm14 = vmor %vm6714_vm11, %vm6715_vm10  ;;  %vm6691_vm0 = vweird.f32 %v13654_v26 }
 0xac6   :  { %v6711_v56 = vsub.f32 1.0, %v6710_v32  ;;  %v6697_v32 = vand.u32 2147483648, %v13654_v26  ;;  %vm6696_vm5 = vcmp.eq.f32.partialorder %v6695_v36, 8.507059e+37  ;;  %v6760_v36 = vand.u32 2147483648, %v13652_v41 }
 0xac7   :  { %v6674_v15 = vmul.f32 %v13649_v2, %v6673_v44  ;;  %11488 = vrcp.f32 %v13668_v42  ;;  %v6735_v27 = vand.u32 2147483648, %v13668_v42  ;;  %v6733_v24 = vand.u32 2147483647, %v13668_v42  ;;  %7009 = vmatpush.bf16.msrb.mxu0 %v10013_v0 }
 0xac8   :  { %v6712_v30 = vmul.f32 %v13656_v21, %v6711_v56  ;;  %11490 = vpow2.f32 %v10009_v18  ;;  %v10037_v18 = vor.u32 %v10877_v59, %v10036_v33  ;;  %v10041_v56 = vor.u32 %v10875_v54, %v10038_v49 }
 0xac9   :  { %v6675_v47 = vadd.f32 %v13649_v2, %v6674_v15  ;;  %11492 = vtanh.f32 %v6661_v3  ;;  %vm6729_vm3 = vweird.f32 %v13668_v42  ;;  %v6736_v48 = vor.u32 1.1754944e-38, %v6735_v27 }
 0xaca   :  { %v6713_v19 = vadd.f32 %v13656_v21, %v6712_v30  ;;  %v13702_v22 = vpop.eup %11484  ;;  %7036 = vmatpush.bf16.msrb.mxu2 %v10037_v18  ;;  %7050 = vmatpush.bf16.msrb.mxu3 %v10041_v56  ;;  %v10025_v30 = vor.u32 %v10871_v40, %v10022_v45  ;;  %vm6734_vm7 = vcmp.eq.f32.partialorder %v6733_v24, 8.507059e+37  ;;  %v10210_v40 = vld [vmem:[#allocation8 + $0x180] sm:$0xf]  ;;  %v10920_v45 = vld [vmem:[#allocation8 + $0x18c] sm:$0xf0] }
 0xacb   :  { %v6679_v12 = vsel %vm13685_vm13, %v13649_v2, %v6675_v47  ;;  %v13707_v31 = vpop.eup %11486  ;;  %v6687_v58 = vmul.f32 %v13702_v22, %v13654_v26  ;;  %vm6692_vm1 = vweird.f32 %v13702_v22  ;;  %v10260_v18 = vld [vmem:[#allocation8 + $0x1f0] sm:$0xf0]  ;;  %v10266_v56 = vld [vmem:[#allocation8 + $0x1e8] sm:$0xf] }
 0xacc   :  { %v6684_v61 = vsel %vm13671_vm9, %v6683_v28, %v6679_v12  ;;  %v6717_v63 = vsel %vm13691_vm14, %v13656_v21, %v6713_v19  ;;  %v10873_v21 = vld [vmem:[#allocation8 + $0x114] sm:$0xf0]  ;;  %v6750_v13 = vmul.f32 %v13707_v31, %v13652_v41  ;;  %v10017_v28 = vor.u32 %v10870_v16, %v10014_v50  ;;  %vm6693_vm4 = vmor %vm6691_vm0, %vm6692_vm1 }
 0xacd   :  { %v11489_v10 = vpop.eup %11488  ;;  %v6722_v2 = vsel %vm13696_vm15, %v6721_v55, %v6717_v63  ;;  %v6781_v60 = vmul.f32 %v11483_v9, %v6684_v61  ;;  %v6688_v37 = vsub.f32 1.0, %v6687_v58  ;;  %v10021_v39 = vor.u32 %v10873_v21, %v10020_v4  ;;  %v10242_v4 = vld [vmem:[#allocation8 + $0x1c0] sm:$0xf]  ;;  %v10928_v21 = vld [vmem:[#allocation8 + $0x1cc] sm:$0xf0] }
 0xace   :  { %v6779_v17 = vmul.f32 %v6722_v2, %v13603_v1  ;;  %v6725_v11 = vmul.f32 %v11489_v10, %v13668_v42  ;;  %v11491_v44 = vpop.eup %11490  ;;  %vm6730_vm2 = vweird.f32 %v11489_v10  ;;  %v6698_v55 = vor.u32 1.1754944e-38, %v6697_v32  ;;  %7023 = vmatpush.bf16.msrb.mxu1 %v10017_v28  ;;  %7051 = vmatpush.bf16.msrb.mxu3 %v10025_v30  ;;  %v14242_v28 = vld [vmem:[#allocation33_spill] sm:$0xff]  ;;  %v14243_v30 = vld [vmem:[#allocation35_spill] sm:$0xff] }
 0xacf   :  { %v6689_v1 = vmul.f32 %v13702_v22, %v6688_v37  ;;  %v6748_v15 = vadd.f32 1.0, %v11491_v44  ;;  %v11493_v3 = vpop.eup %11492  ;;  %v6751_v47 = vsub.f32 1.0, %v6750_v13  ;;  %vm6731_vm6 = vmor %vm6729_vm3, %vm6730_vm2  ;;  %7037 = vmatpush.bf16.msrb.mxu2 %v10021_v39  ;;  %vm6755_vm8 = vweird.f32 %v13707_v31  ;;  %v10226_v37 = vld [vmem:[#allocation8 + $0x1a0] sm:$0xf]  ;;  %v10930_v13 = vld [vmem:[#allocation8 + $0x1e4] sm:$0xf] }
 0xad0   :  { %v13724_v20 = vadd.f32 %v6781_v60, %v6779_v17  ;;  %v6726_v35 = vsub.f32 1.0, %v6725_v11  ;;  %vm6754_vm9 = vweird.f32 %v13652_v41  ;;  %v6761_v63 = vor.u32 1.1754944e-38, %v6760_v36  ;;  %v10924_v11 = vld [vmem:[#allocation8 + $0x1ac] sm:$0xf0] }
 0xad1   :  { %v6690_v8 = vadd.f32 %v13702_v22, %v6689_v1  ;;  %11494 = vrcp.f32 %v6748_v15  ;;  %v6752_v57 = vmul.f32 %v13707_v31, %v6751_v47  ;;  %v6775_v5 = vand.u32 2147483648, %v6748_v15  ;;  %vm6756_vm11 = vmor %vm6754_vm9, %vm6755_vm8  ;;  %v10931_v1 = vld [vmem:[#allocation8 + $0x1ec] sm:$0xf]  ;;  %v10194_v47 = vld [vmem:[#allocation8 + $0x160] sm:$0xf] }
 0xad2   :  { %v6727_v38 = vmul.f32 %v11489_v10, %v6726_v35  ;;  %11496 = vtanh.f32 %v13724_v20  ;;  %v6773_v59 = vand.u32 2147483647, %v6748_v15  ;;  %vm6769_vm12 = vweird.f32 %v6748_v15  ;;  %v10933_v35 = vld [vmem:[#allocation8 + $0x1f4] sm:$0xf0] }
 0xad3   :  { %v6694_v51 = vsel %vm6693_vm4, %v13702_v22, %v6690_v8  ;;  %v6753_v42 = vadd.f32 %v13707_v31, %v6752_v57  ;;  %v6776_v58 = vor.u32 1.1754944e-38, %v6775_v5  ;;  %v10243_v17 = vor.u32 %v10928_v21, %v10242_v4 }
 0xad4   :  { %v6728_v14 = vadd.f32 %v11489_v10, %v6727_v38  ;;  %v6699_v52 = vsel %vm6696_vm5, %v6698_v55, %v6694_v51  ;;  %vm6774_vm15 = vcmp.eq.f32.partialorder %v6773_v59, 8.507059e+37  ;;  %v10227_v32 = vor.u32 %v10924_v11, %v10226_v37  ;;  %v10916_v51 = vld [vmem:[#allocation8 + $0x16c] sm:$0xf0]  ;;  %v10162_v11 = vld [vmem:[#allocation8 + $0x120] sm:$0xf] }
 0xad5   :  { %v6782_v29 = vmul.f32 %v11493_v3, %v6699_v52  ;;  %v6757_v49 = vsel %vm6756_vm11, %v13707_v31, %v6753_v42  ;;  %v10932_v31 = vld [vmem:[#allocation8 + $0x1ec] sm:$0xf0]  ;;  %v10211_v44 = vor.u32 %v10920_v45, %v10210_v40  ;;  %v10263_v0 = vor.u32 %v10930_v13, %v10260_v18  ;;  %v10918_v13 = vld [vmem:[#allocation8 + $0x184] sm:$0xf]  ;;  %v10212_v18 = vld [vmem:[#allocation8 + $0x190] sm:$0xf0] }
 0xad6   :  { %v6732_v9 = vsel %vm6731_vm6, %v11489_v10, %v6728_v14  ;;  %v10259_v50 = vor.u32 %v10932_v31, %v10258_v7  ;;  %v4156_v39 = vadd.f32 %v14242_v28, %v13010_v25  ;;  %v4205_v3 = vadd.f32 %v14243_v30, %v13013_v62 }
 0xad7   :  { %v6737_v19 = vsel %vm6734_vm7, %v6736_v48, %v6732_v9  ;;  %v11495_v22 = vpop.eup %11494  ;;  %v10267_v38 = vor.u32 %v10933_v35, %v10266_v56  ;;  %7419 = vmatpush.bf16.msra.mxu1 %v10263_v0  ;;  %v10195_v52 = vor.u32 %v10916_v51, %v10194_v47  ;;  %v10926_v9 = vld [vmem:[#allocation8 + $0x1c4] sm:$0xf]  ;;  %v10218_v56 = vld [vmem:[#allocation8 + $0x188] sm:$0xf]  ;;  %v10215_v35 = vor.u32 %v10918_v13, %v10212_v18  ;;  %v10146_v47 = vld [vmem:[#allocation8 + $0x100] sm:$0xf] }
 0xad8   :  { %v6780_v33 = vmul.f32 %v6737_v19, %v13619_v53  ;;  %v6765_v26 = vmul.f32 %v11495_v22, %v6748_v15  ;;  %v6758_v53 = vand.u32 2147483647, %v13652_v41  ;;  %vm6770_vm10 = vweird.f32 %v11495_v22  ;;  %v11497_v61 = vpop.eup %11496  ;;  %7405 = vmatpush.bf16.msra.mxu0 %v10259_v50  ;;  %v10268_v15 = vld [vmem:[#allocation8 + $0x1f8] sm:$0xf0]  ;;  %v10250_v19 = vld [vmem:[#allocation8 + $0x1c8] sm:$0xf] }
 0xad9   :  { %vm6771_vm13 = vmor %vm6769_vm12, %vm6770_vm10  ;;  %v10271_v8 = vor.u32 %v10931_v1, %v10268_v15  ;;  %7433 = vmatpush.bf16.msra.mxu2 %v10267_v38  ;;  %v10921_v1 = vld [vmem:[#allocation8 + $0x194] sm:$0xf0]  ;;  %v10919_v15 = vld [vmem:[#allocation8 + $0x18c] sm:$0xf] }
 0xada   :  { %v13740_v12 = vadd.f32 %v6782_v29, %v6780_v33  ;;  %v6766_v27 = vsub.f32 1.0, %v6765_v26  ;;  %vm6759_vm14 = vcmp.eq.f32.partialorder %v6758_v53, 8.507059e+37  ;;  %v10244_v29 = vld [vmem:[#allocation8 + $0x1d0] sm:$0xf0]  ;;  %v10929_v33 = vld [vmem:[#allocation8 + $0x1d4] sm:$0xf0] }
 0xadb   :  { %v6762_v16 = vsel %vm6759_vm14, %v6761_v63, %v6757_v49  ;;  %7447 = vmatpush.bf16.msra.mxu3 %v10271_v8  ;;  %v10247_v57 = vor.u32 %v10926_v9, %v10244_v29  ;;  %v10252_v26 = vld [vmem:[#allocation8 + $0x1d8] sm:$0xf0]  ;;  %v10251_v36 = vor.u32 %v10929_v33, %v10250_v19  ;;  %v10178_v53 = vld [vmem:[#allocation8 + $0x140] sm:$0xf]  ;;  %v10228_v49 = vld [vmem:[#allocation8 + $0x1b0] sm:$0xf0] }
 0xadc   :  { %11498 = vtanh.f32 %v13740_v12  ;;  %v6767_v46 = vmul.f32 %v11495_v22, %v6766_v27  ;;  %v6787_v2 = vmul.f32 %v11497_v61, %v6762_v16  ;;  %7406 = vmatpush.bf16.msra.mxu0 %v10243_v17  ;;  %v10234_v61 = vld [vmem:[#allocation8 + $0x1a8] sm:$0xf]  ;;  %v14244_v63 = vld [vmem:[#allocation14_spill] sm:$0xff]  ;;  %v10923_v16 = vld [vmem:[#allocation8 + $0x1ac] sm:$0xf] }
 0xadd   :  { %7420 = vmatpush.bf16.msra.mxu1 %v10247_v57  ;;  %7434 = vmatpush.bf16.msra.mxu2 %v10251_v36  ;;  %v10220_v38 = vld [vmem:[#allocation8 + $0x198] sm:$0xf0]  ;;  %v10904_v51 = vld [vmem:[#allocation8 + $0x10c] sm:$0xf0]  ;;  %v10914_v9 = vld [vmem:[#allocation8 + $0x164] sm:$0xf] }
 0xade   :  { %v6768_v54 = vadd.f32 %v11495_v22, %v6767_v46  ;;  %v10912_v46 = vld [vmem:[#allocation8 + $0x14c] sm:$0xf0]  ;;  %v10196_v29 = vld [vmem:[#allocation8 + $0x170] sm:$0xf0]  ;;  %v10949_v19 = vld [vmem:[%s14010_s4 + $0x38] sm:$0xff] }
 0xadf   :  { %v10179_v59 = vor.u32 %v10912_v46, %v10178_v53  ;;  %v10202_v57 = vld [vmem:[#allocation8 + $0x168] sm:$0xf]  ;;  %v10917_v33 = vld [vmem:[#allocation8 + $0x174] sm:$0xf0]  ;;  %v10204_v36 = vld [vmem:[#allocation8 + $0x178] sm:$0xf0]  ;;  %v10199_v46 = vor.u32 %v10914_v9, %v10196_v29 }
 0xae0   :  { %v6772_v6 = vsel %vm6771_vm13, %v11495_v22, %v6768_v54  ;;  %7407 = vmatpush.bf16.msra.mxu0 %v10227_v32  ;;  %v10927_v22 = vld [vmem:[#allocation8 + $0x1cc] sm:$0xf]  ;;  %v10922_v54 = vld [vmem:[#allocation8 + $0x1a4] sm:$0xf]  ;;  %v10908_v32 = vld [vmem:[#allocation8 + $0x12c] sm:$0xf0] }
 0xae1   :  { %v6777_v10 = vsel %vm6774_vm15, %v6776_v58, %v6772_v6  ;;  %v10255_v5 = vor.u32 %v10927_v22, %v10252_v26  ;;  %v4303_v58 = vadd.f32 %v14244_v63, %v13022_v23  ;;  %v10925_v6 = vld [vmem:[#allocation8 + $0x1b4] sm:$0xf0]  ;;  %v10203_v63 = vor.u32 %v10917_v33, %v10202_v57  ;;  %v10907_v9 = vld [vmem:[#allocation8 + $0x12c] sm:$0xf]  ;;  %v10172_v29 = vld [vmem:[#allocation8 + $0x138] sm:$0xf0] }
 0xae2   :  { %v11499_v34 = vpop.eup %11498  ;;  %v10235_v50 = vor.u32 %v10925_v6, %v10234_v61  ;;  %v14247_v22 = vld [vmem:[#allocation31_spill] sm:$0xff] }
 0xae3   :  { %v6788_v41 = vmul.f32 %v11499_v34, %v6777_v10  ;;  %7448 = vmatpush.bf16.msra.mxu3 %v10255_v5  ;;  %v10231_v34 = vor.u32 %v10922_v54, %v10228_v49  ;;  %v10236_v10 = vld [vmem:[#allocation8 + $0x1b8] sm:$0xf0]  ;;  %v4254_v26 = vadd.f32 %v14247_v22, %v13033_v43  ;;  %v14248_v5 = vld [vmem:[#allocation36_spill] sm:$0xff]  ;;  %v10180_v54 = vld [vmem:[#allocation8 + $0x150] sm:$0xf0] }
 0xae4   :  { %7408 = vmatpush.bf16.msra.mxu0 %v10211_v44  ;;  %v10239_v4 = vor.u32 %v10923_v16, %v10236_v10  ;;  %7435 = vmatpush.bf16.msra.mxu2 %v10235_v50  ;;  %v10163_v44 = vor.u32 %v10908_v32, %v10162_v11  ;;  %v4305_v53 = vadd.f32 %v14248_v5, %v13022_v23  ;;  %v10913_v6 = vld [vmem:[#allocation8 + $0x154] sm:$0xf0]  ;;  %v10911_v16 = vld [vmem:[#allocation8 + $0x14c] sm:$0xf]  ;;  %v10148_v5 = vld [vmem:[#allocation8 + $0x110] sm:$0xf0] }
 0xae5   :  { %v11018_v60 = vpack.c.bf16 %v6788_v41, %v6787_v2  ;;  %v14245_v2 = vld [vmem:[#allocation15_spill] sm:$0xff]  ;;  %7421 = vmatpush.bf16.msra.mxu1 %v10231_v34  ;;  %v10186_v34 = vld [vmem:[#allocation8 + $0x148] sm:$0xf] }
 0xae6   :  { %v4158_v41 = vadd.f32 %v14245_v2, %v13010_v25 }
 0xae7   :  { %11019 = vst [vmem:[#allocation4 + $0x20] sm:$0xff] %v11018_v60   ;;  %7010 = vmatmul.bf16.vlgmr.msrb.gmra.mxu0 %v11018_v60  ;;  %7024 = vmatmul.bf16.vlgmr.msrb.gmra.mxu1 %v11018_v60 }
 0xae8   :  { %7038 = vmatmul.bf16.vlgmr.msrb.gmra.mxu2 %v11018_v60  ;;  %7052 = vmatmul.bf16.vlgmr.msrb.gmra.mxu3 %v11018_v60  ;;  %v14246_v60 = vld [vmem:[#allocation37_spill] sm:$0xff] }
 0xae9   :  { %7409 = vmatpush.bf16.msra.mxu0 %v10195_v52  ;;  %v4207_v7 = vadd.f32 %v14246_v60, %v13013_v62  ;;  %7449 = vmatpush.bf16.msra.mxu3 %v10239_v4  ;;  %v10188_v60 = vld [vmem:[#allocation8 + $0x158] sm:$0xf0] }
 0xaea   :  { %7422 = vmatpush.bf16.msra.mxu1 %v10215_v35 }
 0xaed   :  { %7410 = vmatpush.bf16.msra.mxu0 %v10179_v59  ;;  %v10910_v59 = vld [vmem:[#allocation8 + $0x144] sm:$0xf] }
 0xaee   :  { %7423 = vmatpush.bf16.msra.mxu1 %v10199_v46 }
 0xaf1   :  { %7411 = vmatpush.bf16.msra.mxu0 %v10163_v44 }
 0xb64   :  { %v7011_v24 = vpop.f32.mrf.mxu0  ;;  %v7025_v55 = vpop.f32.mrf.mxu1 }
 0xb65   :  { %v7058_v14 = vadd.f32 %v7011_v24, %v4156_v39  ;;  %v7059_v48 = vadd.f32 %v7025_v55, %v4205_v3  ;;  %v10219_v3 = vor.u32 %v10921_v1, %v10218_v56  ;;  %v10223_v55 = vor.u32 %v10919_v15, %v10220_v38  ;;  %v14249_v1 = vld [vmem:[#allocation39_spill] sm:$0xff]  ;;  %v10164_v38 = vld [vmem:[#allocation8 + $0x130] sm:$0xf0] }
 0xb66   :  { %v4256_v15 = vadd.f32 %v14249_v1, %v13033_v43 }
 0xb67   :  { %v10138_v42 = vmul.f32 -1.442695, %v7058_v14  ;;  %v10140_v27 = vmul.f32 -1.442695, %v7059_v48  ;;  %7436 = vmatpush.bf16.msra.mxu2 %v10219_v3  ;;  %v10147_v48 = vor.u32 %v10904_v51, %v10146_v47  ;;  %7450 = vmatpush.bf16.msra.mxu3 %v10223_v55  ;;  %v10906_v3 = vld [vmem:[#allocation8 + $0x124] sm:$0xf] }
 0xb68   :  { %v10170_v47 = vld [vmem:[#allocation8 + $0x128] sm:$0xf]  ;;  %v10946_v51 = vld [vmem:[%s14010_s4 + $0x20] sm:$0xff]  ;;  %v10167_v33 = vor.u32 %v10906_v3, %v10164_v38 }
 0xb69   :  { %11500 = vpow2.f32 %v10138_v42  ;;  %7412 = vmatpush.bf16.msra.mxu0 %v10147_v48 }
 0xb6a   :  { %11502 = vpow2.f32 %v10140_v27  ;;  %v10915_v27 = vld [vmem:[#allocation8 + $0x16c] sm:$0xf] }
 0xb6b   :  { %v7053_v31 = vpop.f32.mrf.mxu3  ;;  %v7039_v52 = vpop.f32.mrf.mxu2  ;;  %7437 = vmatpush.bf16.msra.mxu2 %v10203_v63 }
 0xb6c   :  { %v7061_v21 = vadd.f32 %v7053_v31, %v4303_v58  ;;  %v7013_v17 = vpop.f32.mrf.mxu0  ;;  %v7027_v37 = vpop.f32.mrf.mxu1  ;;  %v7060_v61 = vadd.f32 %v7039_v52, %v4254_v26  ;;  %v10207_v58 = vor.u32 %v10915_v27, %v10204_v36  ;;  %v10909_v52 = vld [vmem:[#allocation8 + $0x134] sm:$0xf0]  ;;  %v10902_v36 = vld [vmem:[#allocation8 + $0x104] sm:$0xf] }
 0xb6d   :  { %v7062_v40 = vadd.f32 %v7013_v17, %v4158_v41  ;;  %v7063_v45 = vadd.f32 %v7027_v37, %v4207_v7  ;;  %7735 = vmatpush.bf16.msrb.mxu0 %v10949_v19  ;;  %v10183_v41 = vor.u32 %v10910_v59, %v10180_v54  ;;  %v10948_v7 = vld [vmem:[%s14010_s4 + $0x30] sm:$0xff]  ;;  %v10191_v17 = vor.u32 %v10911_v16, %v10188_v60  ;;  %v10905_v16 = vld [vmem:[#allocation8 + $0x114] sm:$0xf0] }
 0xb6e   :  { %v10142_v0 = vmul.f32 -1.442695, %v7061_v21  ;;  %7451 = vmatpush.bf16.msra.mxu3 %v10207_v58  ;;  %v10187_v21 = vor.u32 %v10913_v6, %v10186_v34  ;;  %v10171_v59 = vor.u32 %v10909_v52, %v10170_v47  ;;  %v10175_v54 = vor.u32 %v10907_v9, %v10172_v29  ;;  %v10942_v29 = vld [vmem:[%s14010_s4] sm:$0xff] }
 0xb6f   :  { %v11501_v28 = vpop.eup %11500  ;;  %v10139_v39 = vmul.f32 -1.442695, %v7062_v40  ;;  %v10141_v30 = vmul.f32 -1.442695, %v7063_v45  ;;  %v10947_v40 = vld [vmem:[%s14010_s4 + $0x28] sm:$0xff]  ;;  %7424 = vmatpush.bf16.msra.mxu1 %v10183_v41 }
 0xb70   :  { %v11503_v8 = vpop.eup %11502  ;;  %v13760_v24 = vadd.f32 1.0, %v11501_v28  ;;  %11504 = vpow2.f32 %v10142_v0  ;;  %7438 = vmatpush.bf16.msra.mxu2 %v10187_v21 }
 0xb71   :  { %v13762_v14 = vadd.f32 1.0, %v11503_v8  ;;  %11506 = vpow2.f32 %v10139_v39  ;;  %7736 = vmatpush.bf16.msrb.mxu0 %v10948_v7 }
 0xb72   :  { %11508 = vrcp.f32 %v13760_v24  ;;  %v7083_v32 = vand.u32 2147483647, %v13760_v24  ;;  %v7085_v13 = vand.u32 2147483648, %v13760_v24  ;;  %7452 = vmatpush.bf16.msra.mxu3 %v10191_v17  ;;  %vm7079_vm3 = vweird.f32 %v13760_v24 }
 0xb73   :  { %11510 = vrcp.f32 %v13762_v14  ;;  %v7055_v42 = vpop.f32.mrf.mxu3  ;;  %v7121_v18 = vand.u32 2147483647, %v13762_v14  ;;  %v7123_v39 = vand.u32 2147483648, %v13762_v14  ;;  %vm7117_vm4 = vweird.f32 %v13762_v14  ;;  %7425 = vmatpush.bf16.msra.mxu1 %v10167_v33 }
 0xb74   :  { %11512 = vpow2.f32 %v10141_v30  ;;  %v7065_v2 = vadd.f32 %v7055_v42, %v4305_v53  ;;  %v7041_v30 = vpop.f32.mrf.mxu2  ;;  %vm13803_vm1 = vcmp.eq.f32.partialorder %v7083_v32, 8.507059e+37  ;;  %v7086_v27 = vor.u32 1.1754944e-38, %v7085_v13  ;;  %7439 = vmatpush.bf16.msra.mxu2 %v10171_v59 }
 0xb75   :  { %11514 = vtanh.f32 %v7060_v61  ;;  %7737 = vmatpush.bf16.msrb.mxu0 %v10947_v40  ;;  %v7064_v57 = vadd.f32 %v7041_v30, %v4256_v15  ;;  %v7124_v26 = vor.u32 1.1754944e-38, %v7123_v39  ;;  %vm7122_vm7 = vcmp.eq.f32.partialorder %v7121_v18, 8.507059e+37  ;;  %v10945_v61 = vld [vmem:[%s14010_s4 + $0x18] sm:$0xff]  ;;  %v10944_v18 = vld [vmem:[%s14010_s4 + $0x10] sm:$0xff] }
 0xb76   :  { %v11505_v49 = vpop.eup %11504  ;;  %v10143_v35 = vmul.f32 -1.442695, %v7065_v2  ;;  %v10156_v2 = vld [vmem:[#allocation8 + $0x118] sm:$0xf0]  ;;  %7453 = vmatpush.bf16.msra.mxu3 %v10175_v54 }
 0xb77   :  { %v11507_v10 = vpop.eup %11506  ;;  %v13778_v50 = vadd.f32 1.0, %v11505_v49  ;;  %v10154_v49 = vld [vmem:[#allocation8 + $0x108] sm:$0xf] }
 0xb78   :  { %v13776_v31 = vpop.eup %11508  ;;  %v13780_v4 = vadd.f32 1.0, %v11507_v10  ;;  %v10903_v10 = vld [vmem:[#allocation8 + $0x10c] sm:$0xf] }
 0xb79   :  { %v13782_v37 = vpop.eup %11510  ;;  %v7075_v11 = vmul.f32 %v13776_v31, %v13760_v24  ;;  %vm7080_vm0 = vweird.f32 %v13776_v31  ;;  %7738 = vmatpush.bf16.msrb.mxu0 %v10946_v51  ;;  %v10159_v13 = vor.u32 %v10903_v10, %v10156_v2  ;;  %v10934_v2 = vld [vmem:[#allocation4 + $0x30] sm:$0xff] }
 0xb7a   :  { %v11513_v45 = vpop.eup %11512  ;;  %v7113_v44 = vmul.f32 %v13782_v37, %v13762_v14  ;;  %11516 = vrcp.f32 %v13780_v4  ;;  %vm7118_vm2 = vweird.f32 %v13782_v37  ;;  %vm13818_vm5 = vmor %vm7079_vm3, %vm7080_vm0  ;;  %vm7094_vm9 = vweird.f32 %v13780_v4 }
 0xb7b   :  { %v7076_v56 = vsub.f32 1.0, %v7075_v11  ;;  %v13795_v0 = vadd.f32 1.0, %v11513_v45  ;;  %11518 = vrcp.f32 %v13778_v50  ;;  %v11515_v22 = vpop.eup %11514  ;;  %vm13827_vm6 = vmor %vm7117_vm4, %vm7118_vm2  ;;  %v7100_v45 = vand.u32 2147483648, %v13780_v4  ;;  %7454 = vmatpush.bf16.msra.mxu3 %v10159_v13 }
 0xb7c   :  { %v7114_v28 = vsub.f32 1.0, %v7113_v44  ;;  %v10155_v44 = vor.u32 %v10905_v16, %v10154_v49 }
 0xb7d   :  { %v7077_v8 = vmul.f32 %v13776_v31, %v7076_v56  ;;  %11520 = vrcp.f32 %v13795_v0  ;;  %7739 = vmatpush.bf16.msrb.mxu0 %v10945_v61  ;;  %v7138_v1 = vand.u32 2147483648, %v13795_v0  ;;  %v7136_v30 = vand.u32 2147483647, %v13795_v0 }
 0xb7e   :  { %v7115_v48 = vmul.f32 %v13782_v37, %v7114_v28  ;;  %11522 = vpow2.f32 %v10143_v35  ;;  %7440 = vmatpush.bf16.msra.mxu2 %v10155_v44  ;;  %vm7132_vm11 = vweird.f32 %v13795_v0  ;;  %v7101_v38 = vor.u32 1.1754944e-38, %v7100_v45 }
 0xb7f   :  { %v7078_v19 = vadd.f32 %v13776_v31, %v7077_v8  ;;  %11524 = vtanh.f32 %v7064_v57  ;;  %v7139_v51 = vor.u32 1.1754944e-38, %v7138_v1  ;;  %vm7137_vm15 = vcmp.eq.f32.partialorder %v7136_v30, 8.507059e+37 }
 0xb80   :  { %v7116_v24 = vadd.f32 %v13782_v37, %v7115_v48  ;;  %v13823_v53 = vpop.eup %11516 }
 0xb81   :  { %v7082_v14 = vsel %vm13818_vm5, %v13776_v31, %v7078_v19  ;;  %v13837_v63 = vpop.eup %11518  ;;  %v7090_v6 = vmul.f32 %v13823_v53, %v13780_v4  ;;  %v10151_v31 = vor.u32 %v10902_v36, %v10148_v5  ;;  %vm7095_vm8 = vweird.f32 %v13823_v53  ;;  %7740 = vmatpush.bf16.msrb.mxu0 %v10944_v18 }
 0xb82   :  { %v7087_v58 = vsel %vm13803_vm1, %v7086_v27, %v7082_v14  ;;  %v7120_v34 = vsel %vm13827_vm6, %v13782_v37, %v7116_v24  ;;  %v7098_v37 = vand.u32 2147483647, %v13780_v4  ;;  %v7153_v40 = vmul.f32 %v13837_v63, %v13778_v50  ;;  %vm7096_vm12 = vmor %vm7094_vm9, %vm7095_vm8  ;;  %v10943_v4 = vld [vmem:[%s14010_s4 + $0x8] sm:$0xff] }
 0xb83   :  { %v11521_v41 = vpop.eup %11520  ;;  %v7125_v60 = vsel %vm7122_vm7, %v7124_v26, %v7120_v34  ;;  %v7184_v7 = vmul.f32 %v11515_v22, %v7087_v58  ;;  %v7091_v17 = vsub.f32 1.0, %v7090_v6  ;;  %7426 = vmatpush.bf16.msra.mxu1 %v10151_v31  ;;  %vm7158_vm0 = vweird.f32 %v13837_v63  ;;  %v10939_v31 = vld [vmem:[#allocation4 + $0x20] sm:$0xff] }
 0xb84   :  { %v7182_v21 = vmul.f32 %v7125_v60, %v13724_v20  ;;  %v7128_v11 = vmul.f32 %v11521_v41, %v13795_v0  ;;  %v11523_v32 = vpop.eup %11522  ;;  %vm7133_vm10 = vweird.f32 %v11521_v41  ;;  %v7154_v8 = vsub.f32 1.0, %v7153_v40  ;;  %v10937_v60 = vld [vmem:[#allocation4 + $0x10] sm:$0xff] }
 0xb85   :  { %v7092_v35 = vmul.f32 %v13823_v53, %v7091_v17  ;;  %v7151_v15 = vadd.f32 1.0, %v11523_v32  ;;  %v11525_v3 = vpop.eup %11524  ;;  %vm7099_vm13 = vcmp.eq.f32.partialorder %v7098_v37, 8.507059e+37  ;;  %vm7134_vm14 = vmor %vm7132_vm11, %vm7133_vm10  ;;  %7741 = vmatpush.bf16.msrb.mxu0 %v10943_v4  ;;  %vm7157_vm1 = vweird.f32 %v13778_v50  ;;  %v14256_v17 = vld [vmem:[#allocation34_spill] sm:$0xff] }
 0xb86   :  { %v13855_v20 = vadd.f32 %v7184_v7, %v7182_v21  ;;  %v7129_v56 = vsub.f32 1.0, %v7128_v11  ;;  %v7155_v19 = vmul.f32 %v13837_v63, %v7154_v8  ;;  %v7163_v24 = vand.u32 2147483648, %v13778_v50  ;;  %vm7159_vm3 = vmor %vm7157_vm1, %vm7158_vm0  ;;  %v10938_v7 = vld [vmem:[#allocation4 + $0x8] sm:$0xff]  ;;  %v14257_v37 = vld [vmem:[#allocation38_spill] sm:$0xff] }
 0xb87   :  { %v7093_v39 = vadd.f32 %v13823_v53, %v7092_v35  ;;  %11526 = vrcp.f32 %v7151_v15  ;;  %v7178_v36 = vand.u32 2147483648, %v7151_v15  ;;  %vm7172_vm4 = vweird.f32 %v7151_v15  ;;  %v14258_v35 = vld [vmem:[#allocation40_spill] sm:$0xff] }
 0xb88   :  { %v7130_v28 = vmul.f32 %v11521_v41, %v7129_v56  ;;  %11528 = vtanh.f32 %v13855_v20  ;;  %v7156_v42 = vadd.f32 %v13837_v63, %v7155_v19  ;;  %v7164_v54 = vor.u32 1.1754944e-38, %v7163_v24 }
 0xb89   :  { %v7097_v55 = vsel %vm7096_vm12, %v13823_v53, %v7093_v39  ;;  %7742 = vmatpush.bf16.msrb.mxu0 %v10942_v29  ;;  %v7176_v53 = vand.u32 2147483647, %v7151_v15  ;;  %v7179_v49 = vor.u32 1.1754944e-38, %v7178_v36  ;;  %v4161_v11 = vadd.f32 %v14256_v17, %v13010_v25  ;;  %v14260_v39 = vld [vmem:[#allocation42_spill] sm:$0xff] }
 0xb8a   :  { %v7131_v47 = vadd.f32 %v11521_v41, %v7130_v28  ;;  %v7102_v48 = vsel %vm7099_vm13, %v7101_v38, %v7097_v55  ;;  %v7160_v14 = vsel %vm7159_vm3, %v13837_v63, %v7156_v42  ;;  %v10935_v63 = vld [vmem:[#allocation4] sm:$0xff]  ;;  %v4210_v32 = vadd.f32 %v14257_v37, %v13013_v62 }
 0xb8b   :  { %v7185_v9 = vmul.f32 %v11525_v3, %v7102_v48  ;;  %vm7177_vm7 = vcmp.eq.f32.partialorder %v7176_v53, 8.507059e+37  ;;  %v4308_v1 = vadd.f32 %v14258_v35, %v13022_v23  ;;  %v4212_v30 = vadd.f32 %v14260_v39, %v13013_v62  ;;  %v13896_v62 = vld [vmem:[%s14011_s5] ss:$0 sm:$0xff] }
 0xb8c   :  { %v7135_v52 = vsel %vm7134_vm14, %v11521_v41, %v7131_v47  ;;  %v10936_v41 = vld [vmem:[#allocation4 + $0x18] sm:$0xff] }
 0xb8d   :  { %v7140_v0 = vsel %vm7137_vm15, %v7139_v51, %v7135_v52  ;;  %v11527_v33 = vpop.eup %11526 }
 0xb8e   :  { %v7183_v57 = vmul.f32 %v7140_v0, %v13740_v12  ;;  %v7168_v26 = vmul.f32 %v11527_v33, %v7151_v15  ;;  %v7161_v12 = vand.u32 2147483647, %v13778_v50  ;;  %vm7173_vm2 = vweird.f32 %v11527_v33  ;;  %v11529_v59 = vpop.eup %11528  ;;  %v14259_v15 = vld [vmem:[#allocation41_spill] sm:$0xff] }
 0xb8f   :  { %vm7174_vm5 = vmor %vm7172_vm4, %vm7173_vm2  ;;  %v4163_v28 = vadd.f32 %v14259_v15, %v13010_v25  ;;  %v14261_v25 = vld [vmem:[#allocation43_spill] sm:$0xff] }
 0xb90   :  { %v13873_v22 = vadd.f32 %v7185_v9, %v7183_v57  ;;  %v7169_v27 = vsub.f32 1.0, %v7168_v26  ;;  %vm7162_vm6 = vcmp.eq.f32.partialorder %v7161_v12, 8.507059e+37 }
 0xb91   :  { %v7165_v34 = vsel %vm7162_vm6, %v7164_v54, %v7160_v14 }
 0xb92   :  { %11530 = vtanh.f32 %v13873_v22  ;;  %v7170_v5 = vmul.f32 %v11527_v33, %v7169_v27  ;;  %v7190_v16 = vmul.f32 %v11529_v59, %v7165_v34  ;;  %v14262_v27 = vld [vmem:[#allocation44_spill] sm:$0xff] }
 0xb93   :  { %v4310_v24 = vadd.f32 %v14262_v27, %v13022_v23 }
 0xb94   :  { %v7171_v46 = vadd.f32 %v11527_v33, %v7170_v5 }
 0xb96   :  { %v7175_v58 = vsel %vm7174_vm5, %v11527_v33, %v7171_v46  ;;  %v4259_v33 = vadd.f32 %v14261_v25, %v13033_v43 }
 0xb97   :  { %v7180_v6 = vsel %vm7177_vm7, %v7179_v49, %v7175_v58  ;;  %v14263_v58 = vld [vmem:[#allocation45_spill] sm:$0xff] }
 0xb98   :  { %v11531_v61 = vpop.eup %11530  ;;  %v4261_v34 = vadd.f32 %v14263_v58, %v13033_v43 }
 0xb99   :  { %v7191_v50 = vmul.f32 %v11531_v61, %v7180_v6 }
 0xb9b   :  { %v11023_v10 = vpack.c.bf16 %v7191_v50, %v7190_v16 }
 0xb9d   :  { %11024 = vst [vmem:[#allocation4 + $0x28] sm:$0xff] %v11023_v10   ;;  %7413 = vmatmul.bf16.vlgmr.msra.gmra.mxu0 %v11023_v10  ;;  %7427 = vmatmul.bf16.vlgmr.msra.gmra.mxu1 %v11023_v10 }
 0xb9e   :  { %7441 = vmatmul.bf16.vlgmr.msra.gmra.mxu2 %v11023_v10  ;;  %7455 = vmatmul.bf16.vlgmr.msra.gmra.mxu3 %v11023_v10 }
 0xba4   :  { %v10940_v21 = vld [vmem:[#allocation4 + $0x28] sm:$0xff] }
 0xbad   :  { %7743 = vmatmul.bf16.vlgmr.msrb.gmra.mxu0 %v10934_v2 }
 0xbbd   :  { %7748 = vmatmul.bf16.gmra.mxu0 %v10935_v63 }
 0xbcd   :  { %7753 = vmatmul.bf16.gmra.mxu0 %v10936_v41 }
 0xbdd   :  { %7758 = vmatmul.bf16.gmra.mxu0 %v10937_v60 }
 0xbed   :  { %7763 = vmatmul.bf16.gmra.mxu0 %v10938_v7 }
 0xbfd   :  { %7768 = vmatmul.bf16.gmra.mxu0 %v10939_v31 }
 0xc0d   :  { %7773 = vmatmul.bf16.gmra.mxu0 %v10940_v21 }
 0xc1a   :  { %v7414_v40 = vpop.f32.mrf.mxu0  ;;  %v7428_v45 = vpop.f32.mrf.mxu1 }
 0xc1b   :  { %v7461_v44 = vadd.f32 %v7414_v40, %v4161_v11  ;;  %v7462_v13 = vadd.f32 %v7428_v45, %v4210_v32 }
 0xc1d   :  { %v10272_v18 = vmul.f32 -1.442695, %v7461_v44  ;;  %v10274_v56 = vmul.f32 -1.442695, %v7462_v13 }
 0xc1f   :  { %11532 = vpow2.f32 %v10272_v18 }
 0xc20   :  { %11534 = vpow2.f32 %v10274_v56 }
 0xc21   :  { %v7456_v3 = vpop.f32.mrf.mxu3  ;;  %v7442_v29 = vpop.f32.mrf.mxu2 }
 0xc22   :  { %v7464_v38 = vadd.f32 %v7456_v3, %v4308_v1  ;;  %v7416_v4 = vpop.f32.mrf.mxu0  ;;  %v7430_v8 = vpop.f32.mrf.mxu1  ;;  %v7463_v5 = vadd.f32 %v7442_v29, %v4259_v33 }
 0xc23   :  { %v7465_v55 = vadd.f32 %v7416_v4, %v4163_v28  ;;  %v7466_v47 = vadd.f32 %v7430_v8, %v4212_v30 }
 0xc24   :  { %v10276_v51 = vmul.f32 -1.442695, %v7464_v38 }
 0xc25   :  { %v11533_v48 = vpop.eup %11532  ;;  %v10273_v52 = vmul.f32 -1.442695, %v7465_v55  ;;  %v10275_v19 = vmul.f32 -1.442695, %v7466_v47 }
 0xc26   :  { %v11535_v9 = vpop.eup %11534  ;;  %v7475_v0 = vadd.f32 1.0, %v11533_v48  ;;  %11536 = vpow2.f32 %v10276_v51 }
 0xc27   :  { %v7513_v57 = vadd.f32 1.0, %v11535_v9  ;;  %11538 = vpow2.f32 %v10273_v52 }
 0xc28   :  { %11540 = vrcp.f32 %v7475_v0  ;;  %v7486_v16 = vand.u32 2147483647, %v7475_v0  ;;  %v7488_v7 = vand.u32 2147483648, %v7475_v0  ;;  %vm7482_vm10 = vweird.f32 %v7475_v0 }
 0xc29   :  { %11542 = vrcp.f32 %v7513_v57  ;;  %v7458_v26 = vpop.f32.mrf.mxu3  ;;  %v7444_v50 = vpop.f32.mrf.mxu2  ;;  %v7526_v60 = vand.u32 2147483648, %v7513_v57  ;;  %v7524_v31 = vand.u32 2147483647, %v7513_v57  ;;  %vm7520_vm11 = vweird.f32 %v7513_v57 }
 0xc2a   :  { %11544 = vpow2.f32 %v10275_v19  ;;  %v7744_v42 = vpop.f32.mrf.mxu0  ;;  %v7468_v14 = vadd.f32 %v7458_v26, %v4310_v24  ;;  %v7467_v43 = vadd.f32 %v7444_v50, %v4261_v34  ;;  %vm7487_vm13 = vcmp.eq.f32.partialorder %v7486_v16, 8.507059e+37 }
 0xc2b   :  { %v7745_v36 = vadd.f32 %v13896_v62, %v7744_v42  ;;  %v7489_v44 = vor.u32 1.1754944e-38, %v7488_v7  ;;  %v7527_v35 = vor.u32 1.1754944e-38, %v7526_v60  ;;  %vm7525_vm15 = vcmp.eq.f32.partialorder %v7524_v31, 8.507059e+37 }
 0xc2c   :  { %v11537_v12 = vpop.eup %11536  ;;  %v10277_v63 = vmul.f32 -1.442695, %v7468_v14 }
 0xc2d   :  { %v11539_v53 = vpop.eup %11538  ;;  %v13903_v46 = vadd.f32 1.0, %v11537_v12  ;;  %7784 = vst [vmem:[%s14012_s6] sm:$0xff] %v7745_v36 }
 0xc2e   :  { %v11541_v59 = vpop.eup %11540  ;;  %v13908_v54 = vadd.f32 1.0, %v11539_v53 }
 0xc2f   :  { %v11543_v49 = vpop.eup %11542  ;;  %v7478_v61 = vmul.f32 %v11541_v59, %v7475_v0  ;;  %11546 = vrcp.f32 %v13903_v46  ;;  %vm7483_vm8 = vweird.f32 %v11541_v59  ;;  %v7566_v8 = vand.u32 2147483648, %v13903_v46 }
 0xc30   :  { %v11545_v23 = vpop.eup %11544  ;;  %v7516_v6 = vmul.f32 %v11543_v49, %v7513_v57  ;;  %11548 = vtanh.f32 %v7463_v5  ;;  %vm7521_vm9 = vweird.f32 %v11543_v49  ;;  %vm7484_vm12 = vmor %vm7482_vm10, %vm7483_vm8  ;;  %vm7497_vm0 = vweird.f32 %v13908_v54 }
 0xc31   :  { %v7479_v10 = vsub.f32 1.0, %v7478_v61  ;;  %11550 = vrcp.f32 %v13908_v54  ;;  %v13914_v2 = vadd.f32 1.0, %v11545_v23  ;;  %vm7522_vm14 = vmor %vm7520_vm11, %vm7521_vm9  ;;  %v7501_v29 = vand.u32 2147483647, %v13908_v54 }
 0xc32   :  { %v7517_v41 = vsub.f32 1.0, %v7516_v6  ;;  %v7746_v21 = vpop.f32.mrf.mxu0  ;;  %v7503_v19 = vand.u32 2147483648, %v13908_v54  ;;  %vm7560_vm4 = vweird.f32 %v13903_v46  ;;  %v7564_v5 = vand.u32 2147483647, %v13903_v46 }
 0xc33   :  { %v7480_v17 = vmul.f32 %v11541_v59, %v7479_v10  ;;  %11552 = vrcp.f32 %v13914_v2  ;;  %v7747_v40 = vadd.f32 %v13896_v62, %v7746_v21  ;;  %v7541_v0 = vand.u32 2147483648, %v13914_v2 }
 0xc34   :  { %v7518_v11 = vmul.f32 %v11543_v49, %v7517_v41  ;;  %11554 = vpow2.f32 %v10277_v63  ;;  %v7539_v27 = vand.u32 2147483647, %v13914_v2  ;;  %v7504_v53 = vor.u32 1.1754944e-38, %v7503_v19 }
 0xc35   :  { %v13917_v37 = vpop.eup %11546  ;;  %v7481_v32 = vadd.f32 %v11541_v59, %v7480_v17  ;;  %11556 = vtanh.f32 %v7467_v43  ;;  %7785 = vst [vmem:[%s14012_s6 + $0x8] sm:$0xff] %v7747_v40  ;;  %vm7535_vm7 = vweird.f32 %v13914_v2  ;;  %vm7502_vm8 = vcmp.eq.f32.partialorder %v7501_v29, 8.507059e+37 }
 0xc36   :  { %v11549_v45 = vpop.eup %11548  ;;  %v7519_v13 = vadd.f32 %v11543_v49, %v7518_v11  ;;  %v7556_v18 = vmul.f32 %v13917_v37, %v13903_v46  ;;  %vm7561_vm2 = vweird.f32 %v13917_v37  ;;  %v7542_v46 = vor.u32 1.1754944e-38, %v7541_v0 }
 0xc37   :  { %v11551_v56 = vpop.eup %11550  ;;  %v7485_v1 = vsel %vm7484_vm12, %v11541_v59, %v7481_v32  ;;  %vm13945_vm6 = vmor %vm7560_vm4, %vm7561_vm2  ;;  %vm7540_vm10 = vcmp.eq.f32.partialorder %v7539_v27, 8.507059e+37  ;;  %vm7565_vm11 = vcmp.eq.f32.partialorder %v7564_v5, 8.507059e+37 }
 0xc38   :  { %v7490_v15 = vsel %vm7487_vm13, %v7489_v44, %v7485_v1  ;;  %v7523_v28 = vsel %vm7522_vm14, %v11543_v49, %v7519_v13  ;;  %v7557_v39 = vsub.f32 1.0, %v7556_v18  ;;  %v7493_v30 = vmul.f32 %v11551_v56, %v13908_v54 }
 0xc39   :  { %v11553_v3 = vpop.eup %11552  ;;  %v7528_v38 = vsel %vm7525_vm15, %v7527_v35, %v7523_v28  ;;  %v7587_v4 = vmul.f32 %v11549_v45, %v7490_v15  ;;  %vm7498_vm1 = vweird.f32 %v11551_v56  ;;  %v7567_v54 = vor.u32 1.1754944e-38, %v7566_v8 }
 0xc3a   :  { %v7585_v55 = vmul.f32 %v7528_v38, %v13855_v20  ;;  %v7558_v47 = vmul.f32 %v13917_v37, %v7557_v39  ;;  %v7494_v51 = vsub.f32 1.0, %v7493_v30  ;;  %v7531_v48 = vmul.f32 %v11553_v3, %v13914_v2  ;;  %v7749_v52 = vpop.f32.mrf.mxu0  ;;  %v11555_v9 = vpop.eup %11554  ;;  %vm7499_vm5 = vmor %vm7497_vm0, %vm7498_vm1 }
 0xc3b   :  { %v7750_v57 = vadd.f32 %v13896_v62, %v7749_v52  ;;  %v11557_v20 = vpop.eup %11556  ;;  %v7554_v24 = vadd.f32 1.0, %v11555_v9  ;;  %vm7536_vm3 = vweird.f32 %v11553_v3 }
 0xc3c   :  { %v7589_v25 = vadd.f32 %v7587_v4, %v7585_v55  ;;  %v7532_v33 = vsub.f32 1.0, %v7531_v48  ;;  %v7495_v26 = vmul.f32 %v11551_v56, %v7494_v51  ;;  %v7559_v42 = vadd.f32 %v13917_v37, %v7558_v47  ;;  %vm7537_vm9 = vmor %vm7535_vm7, %vm7536_vm3 }
 0xc3d   :  { %7786 = vst [vmem:[%s14012_s6 + $0x10] sm:$0xff] %v7750_v57  ;;  %v7581_v17 = vand.u32 2147483648, %v7554_v24  ;;  %v7579_v11 = vand.u32 2147483647, %v7554_v24  ;;  %vm7575_vm13 = vweird.f32 %v7554_v24 }
 0xc3e   :  { %11558 = vtanh.f32 %v7589_v25  ;;  %v7533_v36 = vmul.f32 %v11553_v3, %v7532_v33  ;;  %v7496_v12 = vadd.f32 %v11551_v56, %v7495_v26  ;;  %v7563_v61 = vsel %vm13945_vm6, %v13917_v37, %v7559_v42 }
 0xc3f   :  { %11560 = vrcp.f32 %v7554_v24  ;;  %v7568_v2 = vsel %vm7565_vm11, %v7567_v54, %v7563_v61  ;;  %vm7580_vm15 = vcmp.eq.f32.partialorder %v7579_v11, 8.507059e+37 }
 0xc40   :  { %v7500_v59 = vsel %vm7499_vm5, %v11551_v56, %v7496_v12  ;;  %v7534_v49 = vadd.f32 %v11553_v3, %v7533_v36 }
 0xc41   :  { %v7505_v23 = vsel %vm7502_vm8, %v7504_v53, %v7500_v59 }
 0xc42   :  { %v7538_v58 = vsel %vm7537_vm9, %v11553_v3, %v7534_v49  ;;  %v7588_v34 = vmul.f32 %v11557_v20, %v7505_v23  ;;  %v7751_v6 = vpop.f32.mrf.mxu0 }
 0xc43   :  { %v7543_v16 = vsel %vm7540_vm10, %v7542_v46, %v7538_v58  ;;  %v7752_v50 = vadd.f32 %v13896_v62, %v7751_v6 }
 0xc44   :  { %v11559_v10 = vpop.eup %11558  ;;  %v7586_v63 = vmul.f32 %v7543_v16, %v13873_v22  ;;  %v7582_v22 = vor.u32 1.1754944e-38, %v7581_v17 }
 0xc45   :  { %v11561_v41 = vpop.eup %11560  ;;  %v7593_v60 = vmul.f32 %v11559_v10, %v7568_v2  ;;  %7787 = vst [vmem:[%s14012_s6 + $0x18] sm:$0xff] %v7752_v50 }
 0xc46   :  { %v7590_v7 = vadd.f32 %v7588_v34, %v7586_v63  ;;  %v7571_v31 = vmul.f32 %v11561_v41, %v7554_v24  ;;  %vm7576_vm12 = vweird.f32 %v11561_v41 }
 0xc47   :  { %vm7577_vm14 = vmor %vm7575_vm13, %vm7576_vm12 }
 0xc48   :  { %11562 = vtanh.f32 %v7590_v7  ;;  %v7572_v21 = vsub.f32 1.0, %v7571_v31 }
 0xc4a   :  { %v7573_v43 = vmul.f32 %v11561_v41, %v7572_v21  ;;  %v7754_v37 = vpop.f32.mrf.mxu0 }
 0xc4b   :  { %v7755_v32 = vadd.f32 %v13896_v62, %v7754_v37 }
 0xc4c   :  { %v7574_v40 = vadd.f32 %v11561_v41, %v7573_v43 }
 0xc4d   :  { %7788 = vst [vmem:[%s14012_s6 + $0x20] sm:$0xff] %v7755_v32 }
 0xc4e   :  { %v11563_v45 = vpop.eup %11562  ;;  %v7578_v44 = vsel %vm7577_vm14, %v11561_v41, %v7574_v40 }
 0xc4f   :  { %v7583_v13 = vsel %vm7580_vm15, %v7582_v22, %v7578_v44 }
 0xc50   :  { %v7594_v18 = vmul.f32 %v11563_v45, %v7583_v13 }
 0xc52   :  { %v11028_v56 = vpack.c.bf16 %v7594_v18, %v7593_v60  ;;  %v7756_v35 = vpop.f32.mrf.mxu0 }
 0xc53   :  { %v7757_v1 = vadd.f32 %v13896_v62, %v7756_v35 }
 0xc54   :  { %11029 = vst [vmem:[#allocation4 + $0x38] sm:$0xff] %v11028_v56  }
 0xc55   :  { %7789 = vst [vmem:[%s14012_s6 + $0x28] sm:$0xff] %v7757_v1 }
 0xc5a   :  { %v7759_v15 = vpop.f32.mrf.mxu0 }
 0xc5b   :  { %v7760_v28 = vadd.f32 %v13896_v62, %v7759_v15  ;;  %v10941_v39 = vld [vmem:[#allocation4 + $0x38] sm:$0xff] }
 0xc5c   :  { %7778 = vmatmul.bf16.gmra.mxu0 %v10941_v39 }
 0xc5d   :  { %7790 = vst [vmem:[%s14012_s6 + $0x30] sm:$0xff] %v7760_v28 }
 0xc62   :  { %v7761_v30 = vpop.f32.mrf.mxu0 }
 0xc63   :  { %v7762_v3 = vadd.f32 %v13896_v62, %v7761_v30 }
 0xc65   :  { %7791 = vst [vmem:[%s14012_s6 + $0x38] sm:$0xff] %v7762_v3 }
 0xc6a   :  { %v7764_v38 = vpop.f32.mrf.mxu0 }
 0xc6b   :  { %v7765_v4 = vadd.f32 %v13896_v62, %v7764_v38 }
 0xc6d   :  { %7792 = vst [vmem:[%s14012_s6 + $0x40] sm:$0xff] %v7765_v4 }
 0xc72   :  { %v7766_v8 = vpop.f32.mrf.mxu0 }
 0xc73   :  { %v7767_v55 = vadd.f32 %v13896_v62, %v7766_v8 }
 0xc75   :  { %7793 = vst [vmem:[%s14012_s6 + $0x48] sm:$0xff] %v7767_v55 }
 0xc7a   :  { %v7769_v47 = vpop.f32.mrf.mxu0 }
 0xc7b   :  { %v7770_v51 = vadd.f32 %v13896_v62, %v7769_v47 }
 0xc7d   :  { %7794 = vst [vmem:[%s14012_s6 + $0x50] sm:$0xff] %v7770_v51 }
 0xc82   :  { %v7771_v48 = vpop.f32.mrf.mxu0 }
 0xc83   :  { %v7772_v52 = vadd.f32 %v13896_v62, %v7771_v48 }
 0xc85   :  { %7795 = vst [vmem:[%s14012_s6 + $0x58] sm:$0xff] %v7772_v52 }
 0xc8a   :  { %v7774_v9 = vpop.f32.mrf.mxu0 }
 0xc8b   :  { %v7775_v0 = vadd.f32 %v13896_v62, %v7774_v9 }
 0xc8d   :  { %7796 = vst [vmem:[%s14012_s6 + $0x60] sm:$0xff] %v7775_v0 }
 0xc92   :  { %v7776_v29 = vpop.f32.mrf.mxu0 }
 0xc93   :  { %v7777_v19 = vadd.f32 %v13896_v62, %v7776_v29 }
 0xc95   :  { %7797 = vst [vmem:[%s14012_s6 + $0x68] sm:$0xff] %v7777_v19 }
 0xcd9   :  { %v7779_v57 = vpop.f32.mrf.mxu0 }
 0xcda   :  { %v7780_v25 = vadd.f32 %v13896_v62, %v7779_v57 }
 0xcdc   :  { %7798 = vst [vmem:[%s14012_s6 + $0x70] sm:$0xff] %v7780_v25 }
 0xce1   :  { %v7781_v33 = vpop.f32.mrf.mxu0 }
 0xce2   :  { %v7782_v26 = vadd.f32 %v13896_v62, %v7781_v33 }
 0xce4   :  { %7799 = vst [vmem:[%s14012_s6 + $0x78] sm:$0xff] %v7782_v26 }
 0xce5   :  { %7804 = vsyncpa [#allocation7], 1 }
 0xce6   :  { %7805 = vsyncpa [#allocation9], 1 }

</bundles_post_ra>
